<compile_context>
chip_gen: v5e
topology: v5e:2x2
jax: 0.10.0
libtpu: 0.0.40
codegen_flags: <defaults>
</compile_context>

<pallas_src>
import functools

import jax
import jax.numpy as jnp
from jax.experimental import pallas as pl
from jax.experimental.pallas import tpu as pltpu


def _round_up(x, m):
    return ((x + m - 1) // m) * m


def _tpu_generation():
    try:
        dev = jax.devices()[0]
        if dev.platform != "tpu":
            return None
        kind = dev.device_kind.lower().replace(" ", "")
    except Exception:
        return None
    if "v7" in kind or "tpu7" in kind:
        return "v7x"
    if "v6" in kind:
        return "v6e"
    if "v5" in kind and ("lite" in kind or "v5e" in kind):
        return "v5e"
    if "v5" in kind:
        return "v5p"
    return None


# generation -> (elementwise dtype, vmem_limit_bytes)
_GEN_CONFIG = {
    "v5e": (jnp.float32, 100 * 1024 * 1024),   # no bf16 VPU/EUP -> keep f32
    "v5p": (jnp.float32, 100 * 1024 * 1024),
    "v6e": (jnp.bfloat16, 100 * 1024 * 1024),  # bf16 EUP/VALU
    "v7x": (jnp.bfloat16, 48 * 1024 * 1024),   # 64 MiB VMEM per TC
    None:  (jnp.float32, 64 * 1024 * 1024),
}


def bahdanau_kernel(q_ref, enc_ref, bias_ref, w1_ref, w2_ref, v_ref,
                    ctx_ref, attw_ref,
                    m_sc, l_sc, acc_sc, tq_sc, *, elem_dtype):
    # q_ref   : (TB, Dq)        compute dtype (bf16)
    # enc_ref : (TB, tS, De)    compute dtype (bf16)
    # bias_ref: (TB, tS)        f32 additive mask bias (0 or -1e9)
    # w1_ref  : (Dq, A), w2_ref : (De, A)  compute dtype; v_ref : (1, A) f32
    # ctx_ref : (TB, De) f32 (resident over S axis)
    # attw_ref: (TB, S_pad) f32 (resident over S axis)
    # scratch : m_sc/l_sc (TB,1) f32, acc_sc (TB,De) f32, tq_sc (TB,A) f32
    s = pl.program_id(1)
    n_s = pl.num_programs(1)
    TB, tS, De = enc_ref.shape
    A = w1_ref.shape[1]

    @pl.when(s == 0)
    def _init():
        m_sc[...] = jnp.full_like(m_sc, -jnp.inf)
        l_sc[...] = jnp.zeros_like(l_sc)
        acc_sc[...] = jnp.zeros_like(acc_sc)
        attw_ref[...] = jnp.zeros_like(attw_ref)
        # W1(query): one MXU matmul per batch block, reused for every S tile.
        tq_sc[...] = jnp.dot(q_ref[...], w1_ref[...],
                             preferred_element_type=jnp.float32)

    enc = enc_ref[...]                                            # (TB,tS,De)

    # W2(enc): batch & seq fused into one MXU tile, f32 accumulation.
    tk = jnp.dot(enc.reshape(TB * tS, De), w2_ref[...],
                 preferred_element_type=jnp.float32).reshape(TB, tS, A)

    # energies = tanh(W1(q) + W2(h)); elementwise path in elem_dtype
    # (bf16 on v6e/v7x, f32 on v5e).
    energies = jnp.tanh((tq_sc[...][:, None, :] + tk).astype(elem_dtype))

    # V projection as a lane reduce on the XLU (no M=1 MXU push), f32 accum.
    v = v_ref[...].reshape(1, 1, A).astype(elem_dtype)
    scores = jnp.sum(energies * v, axis=-1, dtype=jnp.float32)    # (TB, tS)
    scores = scores + bias_ref[...]

    # Online (flash-style) softmax across the S grid axis.
    m_prev = m_sc[...]
    m_new = jnp.maximum(m_prev, jnp.max(scores, axis=-1, keepdims=True))
    alpha = jnp.exp(m_prev - m_new)
    p = jnp.exp(scores - m_new)                                   # (TB, tS) f32
    l_sc[...] = alpha * l_sc[...] + jnp.sum(p, axis=-1, keepdims=True)
    # Context accumulate: multiply in the narrow dtype, accumulate in f32
    # (no full f32 copy of the encoder tile).
    acc_sc[...] = alpha * acc_sc[...] + jnp.sum(
        p.astype(elem_dtype)[:, :, None] * enc, axis=1, dtype=jnp.float32)
    m_sc[...] = m_new

    # Resident attention-weight tile: rescale already-written blocks by alpha,
    # then store this block's unnormalized probabilities in place.
    @pl.when(s > 0)
    def _rescale():
        attw_ref[...] = attw_ref[...] * alpha

    start = pl.multiple_of(s * tS, tS)
    attw_ref[:, pl.ds(start, tS)] = p

    @pl.when(s == n_s - 1)
    def _finalize():
        inv_l = pl.reciprocal(l_sc[...], approx=True)             # EUP slot
        ctx_ref[...] = (acc_sc[...] * inv_l).astype(ctx_ref.dtype)
        attw_ref[...] = attw_ref[...] * inv_l


def bahdanau_attention(query, enc, mask=None, W1=None, W2=None, V=None,
                       *, compute_dtype=jnp.bfloat16, max_seq_block=512):
    B, Dq = query.shape
    _, S, De = enc.shape
    A = W1.shape[1]

    gen = _tpu_generation()
    elem_dtype, vmem_limit = _GEN_CONFIG.get(gen, _GEN_CONFIG[None])

    # Lane-dense padding: feature dims and S to multiples of 128.
    Dq_pad = _round_up(Dq, 128)
    De_pad = _round_up(De, 128)
    A_pad = _round_up(A, 128)
    S_pad = _round_up(S, 128)

    # Sequence tile for the online-softmax ("arbitrary") grid axis.
    if S_pad <= max_seq_block:
        tS = S_pad
    else:
        tS = 128
        for cand in (512, 256):
            if cand <= max_seq_block and S_pad % cand == 0:
                tS = cand
                break
    n_s = S_pad // tS

    # TB from an explicit VMEM budget (double-buffered inputs + f32/elem
    # intermediates + resident weights/context), clamped to a multiple of 8.
    elem_bytes = jnp.dtype(elem_dtype).itemsize
    cbytes = jnp.dtype(compute_dtype).itemsize
    vmem_budget = int(vmem_limit * 0.6)
    per_row = (
        2 * tS * De_pad * cbytes             # encoder tiles (double-buffered)
        + 2 * tS * 4                         # bias tiles
        + 2 * Dq_pad * cbytes                # query tiles
        + tS * A_pad * 4                     # tk (f32 MXU result)
        + 2 * tS * A_pad * elem_bytes        # energies + energies*v
        + 2 * tS * De_pad * elem_bytes       # p*enc product (+ possible upcast)
        + 3 * tS * 4                         # scores / p temporaries
        + S_pad * 4                          # resident attention-weight tile
        + 2 * De_pad * 4 + A_pad * 4 + 16    # acc, ctx, tq, m, l
    )
    TB = int(vmem_budget // int(per_row * 1.25))
    TB = max(8, min(512, (TB // 8) * 8))
    TB = min(TB, _round_up(B, 8))
    if gen == "v7x" and B > 8:
        # Ensure >= 2 batch blocks so the "parallel" axis feeds both TCs.
        TB = min(TB, _round_up(-(-B // 2), 8))

    B_pad = _round_up(B, TB)
    n_b = B_pad // TB

    if mask is None:
        mask = jnp.ones((B, S), dtype=jnp.int32)

    # Zero-pad data/weights (mathematically neutral); -1e9 bias in padded S.
    q_p = jnp.zeros((B_pad, Dq_pad), query.dtype).at[:B, :Dq].set(query)
    enc_p = jnp.zeros((B_pad, S_pad, De_pad), enc.dtype).at[:B, :S, :De].set(enc)
    w1_p = jnp.zeros((Dq_pad, A_pad), W1.dtype).at[:Dq, :A].set(W1)
    w2_p = jnp.zeros((De_pad, A_pad), W2.dtype).at[:De, :A].set(W2)
    v_p = jnp.zeros((1, A_pad), jnp.float32).at[0, :A].set(V.astype(jnp.float32))

    bias = jnp.full((B_pad, S_pad), -1e9, dtype=jnp.float32)
    bias = bias.at[:B, :S].set(
        jnp.where(mask == 0, jnp.float32(-1e9), jnp.float32(0.0)))

    # bf16 MXU inputs; f32 accumulation / softmax inside the kernel.
    q_c = q_p.astype(compute_dtype)
    enc_c = enc_p.astype(compute_dtype)
    w1_c = w1_p.astype(compute_dtype)
    w2_c = w2_p.astype(compute_dtype)

    kernel = functools.partial(bahdanau_kernel, elem_dtype=elem_dtype)

    grid_spec = pltpu.PrefetchScalarGridSpec(
        num_scalar_prefetch=0,
        grid=(n_b, n_s),
        in_specs=[
            pl.BlockSpec((TB, Dq_pad), lambda b, s: (b, 0)),        # query
            pl.BlockSpec((TB, tS, De_pad), lambda b, s: (b, s, 0)), # encoder
            pl.BlockSpec((TB, tS), lambda b, s: (b, s)),            # mask bias
            pl.BlockSpec((Dq_pad, A_pad), lambda b, s: (0, 0)),     # W1
            pl.BlockSpec((De_pad, A_pad), lambda b, s: (0, 0)),     # W2
            pl.BlockSpec((1, A_pad), lambda b, s: (0, 0)),          # V row
        ],
        out_specs=[
            pl.BlockSpec((TB, De_pad), lambda b, s: (b, 0)),        # context
            pl.BlockSpec((TB, S_pad), lambda b, s: (b, 0)),         # weights
        ],
        scratch_shapes=[
            pltpu.VMEM((TB, 1), jnp.float32),        # running max
            pltpu.VMEM((TB, 1), jnp.float32),        # running denominator
            pltpu.VMEM((TB, De_pad), jnp.float32),   # context accumulator
            pltpu.VMEM((TB, A_pad), jnp.float32),    # W1(query)
        ],
    )

    ctx_pad, attw_pad = pl.pallas_call(
        kernel,
        out_shape=(jax.ShapeDtypeStruct((B_pad, De_pad), jnp.float32),
                   jax.ShapeDtypeStruct((B_pad, S_pad), jnp.float32)),
        grid_spec=grid_spec,
        compiler_params=pltpu.CompilerParams(
            dimension_semantics=("parallel", "arbitrary"),
            vmem_limit_bytes=vmem_limit),
    )(q_c, enc_c, bias, w1_c, w2_c, v_p)

    return ctx_pad[:B, :De], attw_pad[:B, :S]


def reference_f32(query, enc, mask, W1, W2, V):
    tq = query @ W1                                          # (B, A)
    tk = jnp.einsum('bsd,da->bsa', enc, W2)                  # (B, S, A)
    e = jnp.tanh(tq[:, None, :] + tk)                        # (B, S, A)
    scores = jnp.einsum('bsa,a->bs', e, V)                   # (B, S)
    scores = jnp.where(mask == 0, -1e9, scores)
    w = jax.nn.softmax(scores, axis=1)
    ctx = jnp.einsum('bs,bsd->bd', w, enc)
    return ctx, w


def reference_mixed(query, enc, mask, W1, W2, V,
                    compute_dtype=jnp.bfloat16, elem_dtype=jnp.float32):
    # Same math with the kernel's mixed-precision policy (bf16 MXU inputs,
    # elem_dtype tanh/elementwise, f32 accumulation & softmax).
    qc = query.astype(compute_dtype)
    ec = enc.astype(compute_dtype)
    tq = jnp.dot(qc, W1.astype(compute_dtype),
                 preferred_element_type=jnp.float32)
    tk = jnp.einsum('bsd,da->bsa', ec, W2.astype(compute_dtype),
                    preferred_element_type=jnp.float32)
    e = jnp.tanh((tq[:, None, :] + tk).astype(elem_dtype))
    scores = jnp.sum(e * V.astype(elem_dtype), axis=-1, dtype=jnp.float32)
    scores = jnp.where(mask == 0, jnp.float32(-1e9), scores)
    w = jax.nn.softmax(scores, axis=1)
    ctx = jnp.sum(w.astype(elem_dtype)[:, :, None] * ec, axis=1,
                  dtype=jnp.float32)
    return ctx, w


if __name__ == "__main__":
    B, S = 2, 8
    Dq, De, A = 32, 32, 32  # decoder_hidden_dim, encoder_hidden_dim, attention_hidden_dim

    key = jax.random.PRNGKey(0)
    k_q, k_e, k_w1, k_w2, k_v = jax.random.split(key, 5)

    query = jax.random.normal(k_q, (B, Dq), dtype=jnp.float32)
    enc = jax.random.normal(k_e, (B, S, De), dtype=jnp.float32)
    # deterministic synthetic parameters (nn.Linear-style uniform init, no bias)
    W1 = jax.random.uniform(k_w1, (Dq, A), jnp.float32, -1.0, 1.0) / jnp.sqrt(Dq)
    W2 = jax.random.uniform(k_w2, (De, A), jnp.float32, -1.0, 1.0) / jnp.sqrt(De)
    V = jax.random.uniform(k_v, (A,), jnp.float32, -1.0, 1.0) / jnp.sqrt(A)

    # mask: keep everything for batch 0, mask out last 3 positions for batch 1
    mask = jnp.ones((B, S), dtype=jnp.int32)
    mask = mask.at[1, S - 3:].set(0)

    ctx, attw = bahdanau_attention(query, enc, mask, W1, W2, V)
    jax.block_until_ready((ctx, attw))

    gen = _tpu_generation()
    elem_dtype = _GEN_CONFIG.get(gen, _GEN_CONFIG[None])[0]

    # Tight check against a reference using the same mixed-precision policy.
    ctx_m, attw_m = reference_mixed(query, enc, mask, W1, W2, V,
                                    elem_dtype=elem_dtype)
    assert jnp.allclose(ctx, ctx_m, atol=5e-3, rtol=5e-3), "context mismatch (mixed ref)"
    assert jnp.allclose(attw, attw_m, atol=5e-3, rtol=5e-3), "weights mismatch (mixed ref)"

    # Loose sanity check against the pure f32 reference (bf16 input rounding).
    ctx_f, attw_f = reference_f32(query, enc, mask, W1, W2, V)
    assert jnp.allclose(ctx, ctx_f, atol=5e-2, rtol=5e-2), "context mismatch (f32 ref)"
    assert jnp.allclose(attw, attw_f, atol=5e-2, rtol=5e-2), "weights mismatch (f32 ref)"

    print("KERNEL_OK")
</pallas_src>

<mosaic_0001>
module attributes {stable_mosaic.version = 11 : i64} {
  func.func @bahdanau_kernel(%arg0: i32, %arg1: i32, %arg2: memref<8x128xbf16, #tpu.memory_space<vmem>>, %arg3: memref<8x128x128xbf16, #tpu.memory_space<vmem>>, %arg4: memref<8x128xf32, #tpu.memory_space<vmem>>, %arg5: memref<128x128xbf16, #tpu.memory_space<vmem>>, %arg6: memref<128x128xbf16, #tpu.memory_space<vmem>>, %arg7: memref<1x128xf32, #tpu.memory_space<vmem>>, %arg8: memref<8x128xf32, #tpu.memory_space<vmem>>, %arg9: memref<8x128xf32, #tpu.memory_space<vmem>>, %arg10: memref<8x1xf32, #tpu.memory_space<vmem>>, %arg11: memref<8x1xf32, #tpu.memory_space<vmem>>, %arg12: memref<8x128xf32, #tpu.memory_space<vmem>>, %arg13: memref<8x128xf32, #tpu.memory_space<vmem>>) attributes {dimension_semantics = [#tpu.dimension_semantics<parallel>, #tpu.dimension_semantics<arbitrary>], iteration_bounds = array<i64: 1, 1>, scalar_prefetch = 0 : i64, scratch_operands = 4 : i64, tpu.core_type = #tpu.core_type<tc>, window_params = [{transform_indices = @transform_0, window_bounds = array<i64: 8, 128>}, {transform_indices = @transform_1, window_bounds = array<i64: 8, 128, 128>}, {transform_indices = @transform_2, window_bounds = array<i64: 8, 128>}, {pipeline_mode = #tpu.pipeline_mode<synchronous>, transform_indices = @transform_3, window_bounds = array<i64: 128, 128>}, {pipeline_mode = #tpu.pipeline_mode<synchronous>, transform_indices = @transform_4, window_bounds = array<i64: 128, 128>}, {pipeline_mode = #tpu.pipeline_mode<synchronous>, transform_indices = @transform_5, window_bounds = array<i64: 1, 128>}, {transform_indices = @transform_6, window_bounds = array<i64: 8, 128>}, {transform_indices = @transform_7, window_bounds = array<i64: 8, 128>}]} {
    %c0_i32 = arith.constant 0 : i32
    %0 = arith.cmpi eq, %arg1, %c0_i32 : i32
    %1 = arith.extui %0 : i1 to i32
    %c0_i32_0 = arith.constant 0 : i32
    %2 = arith.cmpi ne, %1, %c0_i32_0 : i32
    scf.if %2 {
      %cst_32 = arith.constant 0xFF800000 : f32
      %56 = vector.broadcast %cst_32 : f32 to vector<8x1xf32>
      %c0_33 = arith.constant 0 : index
      %c0_34 = arith.constant 0 : index
      %57 = vector.load %arg10[%c0_33, %c0_34] : memref<8x1xf32, #tpu.memory_space<vmem>>, vector<8x1xf32>
      tpu.vector_store %arg10[%c0_33, %c0_34], %56 {strides = array<i32>} : memref<8x1xf32, #tpu.memory_space<vmem>>, vector<8x1xf32>,
      %cst_35 = arith.constant 0.000000e+00 : f32
      %58 = vector.broadcast %cst_35 : f32 to vector<8x1xf32>
      %c0_36 = arith.constant 0 : index
      %c0_37 = arith.constant 0 : index
      %59 = vector.load %arg11[%c0_36, %c0_37] : memref<8x1xf32, #tpu.memory_space<vmem>>, vector<8x1xf32>
      tpu.vector_store %arg11[%c0_36, %c0_37], %58 {strides = array<i32>} : memref<8x1xf32, #tpu.memory_space<vmem>>, vector<8x1xf32>,
      %cst_38 = arith.constant 0.000000e+00 : f32
      %60 = vector.broadcast %cst_38 : f32 to vector<8x128xf32>
      %c0_39 = arith.constant 0 : index
      %c0_40 = arith.constant 0 : index
      %61 = vector.load %arg12[%c0_39, %c0_40] : memref<8x128xf32, #tpu.memory_space<vmem>>, vector<8x128xf32>
      tpu.vector_store %arg12[%c0_39, %c0_40], %60 {strides = array<i32>} : memref<8x128xf32, #tpu.memory_space<vmem>>, vector<8x128xf32>,
      %cst_41 = arith.constant 0.000000e+00 : f32
      %62 = vector.broadcast %cst_41 : f32 to vector<8x128xf32>
      %c0_42 = arith.constant 0 : index
      %c0_43 = arith.constant 0 : index
      %63 = vector.load %arg9[%c0_42, %c0_43] : memref<8x128xf32, #tpu.memory_space<vmem>>, vector<8x128xf32>
      tpu.vector_store %arg9[%c0_42, %c0_43], %62 {strides = array<i32>} : memref<8x128xf32, #tpu.memory_space<vmem>>, vector<8x128xf32>,
      %c0_44 = arith.constant 0 : index
      %c0_45 = arith.constant 0 : index
      %64 = vector.load %arg2[%c0_44, %c0_45] : memref<8x128xbf16, #tpu.memory_space<vmem>>, vector<8x128xbf16>
      %c0_46 = arith.constant 0 : index
      %c0_47 = arith.constant 0 : index
      %65 = vector.load %arg5[%c0_46, %c0_47] : memref<128x128xbf16, #tpu.memory_space<vmem>>, vector<128x128xbf16>
      %cst_48 = arith.constant dense<0.000000e+00> : vector<8x128xf32>
      %66 = tpu.matmul %64, %65, %cst_48 {dimension_numbers = #tpu.dot_dimension_numbers<[1], [0], [0], [1], [0, 0, 1, 1], [], []>} : vector<8x128xbf16>, vector<128x128xbf16>, vector<8x128xf32> -> vector<8x128xf32>
      %c0_49 = arith.constant 0 : index
      %c0_50 = arith.constant 0 : index
      %67 = vector.load %arg13[%c0_49, %c0_50] : memref<8x128xf32, #tpu.memory_space<vmem>>, vector<8x128xf32>
      tpu.vector_store %arg13[%c0_49, %c0_50], %66 {strides = array<i32>} : memref<8x128xf32, #tpu.memory_space<vmem>>, vector<8x128xf32>,
    } else {
    }
    %c0 = arith.constant 0 : index
    %c0_1 = arith.constant 0 : index
    %c0_2 = arith.constant 0 : index
    %3 = vector.load %arg3[%c0, %c0_1, %c0_2] : memref<8x128x128xbf16, #tpu.memory_space<vmem>>, vector<8x128x128xbf16>
    %4 = vector.shape_cast %3 : vector<8x128x128xbf16> to vector<1024x128xbf16>
    %c0_3 = arith.constant 0 : index
    %c0_4 = arith.constant 0 : index
    %5 = vector.load %arg6[%c0_3, %c0_4] : memref<128x128xbf16, #tpu.memory_space<vmem>>, vector<128x128xbf16>
    %cst = arith.constant dense<0.000000e+00> : vector<1024x128xf32>
    %6 = tpu.matmul %4, %5, %cst {dimension_numbers = #tpu.dot_dimension_numbers<[1], [0], [0], [1], [0, 0, 1, 1], [], []>} : vector<1024x128xbf16>, vector<128x128xbf16>, vector<1024x128xf32> -> vector<1024x128xf32>
    %7 = vector.shape_cast %6 : vector<1024x128xf32> to vector<8x128x128xf32>
    %c0_5 = arith.constant 0 : index
    %c0_6 = arith.constant 0 : index
    %8 = vector.load %arg13[%c0_5, %c0_6] : memref<8x128xf32, #tpu.memory_space<vmem>>, vector<8x128xf32>
    %9 = vector.shape_cast %8 : vector<8x128xf32> to vector<8x1x128xf32>
    %10 = vector.broadcast %9 : vector<8x1x128xf32> to vector<8x128x128xf32>
    %11 = arith.addf %10, %7 : vector<8x128x128xf32>
    %12 = math.tanh %11 : vector<8x128x128xf32>
    %c0_7 = arith.constant 0 : index
    %c0_8 = arith.constant 0 : index
    %13 = vector.load %arg7[%c0_7, %c0_8] : memref<1x128xf32, #tpu.memory_space<vmem>>, vector<1x128xf32>
    %14 = vector.shape_cast %13 : vector<1x128xf32> to vector<1x1x128xf32>
    %15 = vector.broadcast %14 : vector<1x1x128xf32> to vector<8x128x128xf32>
    %16 = arith.mulf %12, %15 : vector<8x128x128xf32>
    %cst_9 = arith.constant dense<0.000000e+00> : vector<8x128xf32>
    %17 = vector.multi_reduction <add>, %16, %cst_9 [2] : vector<8x128x128xf32> to vector<8x128xf32>
    %c0_10 = arith.constant 0 : index
    %c0_11 = arith.constant 0 : index
    %18 = vector.load %arg4[%c0_10, %c0_11] : memref<8x128xf32, #tpu.memory_space<vmem>>, vector<8x128xf32>
    %19 = arith.addf %17, %18 : vector<8x128xf32>
    %c0_12 = arith.constant 0 : index
    %c0_13 = arith.constant 0 : index
    %20 = vector.load %arg10[%c0_12, %c0_13] : memref<8x1xf32, #tpu.memory_space<vmem>>, vector<8x1xf32>
    %cst_14 = arith.constant dense<0xFF800000> : vector<8xf32>
    %21 = vector.multi_reduction <maximumf>, %19, %cst_14 [1] : vector<8x128xf32> to vector<8xf32>
    %22 = vector.shape_cast %21 : vector<8xf32> to vector<8x1xf32>
    %23 = arith.maximumf %20, %22 : vector<8x1xf32>
    %24 = arith.subf %20, %23 : vector<8x1xf32>
    %25 = math.exp %24 : vector<8x1xf32>
    %26 = vector.broadcast %23 : vector<8x1xf32> to vector<8x128xf32>
    %27 = arith.subf %19, %26 : vector<8x128xf32>
    %28 = math.exp %27 : vector<8x128xf32>
    %c0_15 = arith.constant 0 : index
    %c0_16 = arith.constant 0 : index
    %29 = vector.load %arg11[%c0_15, %c0_16] : memref<8x1xf32, #tpu.memory_space<vmem>>, vector<8x1xf32>
    %30 = arith.mulf %25, %29 : vector<8x1xf32>
    %cst_17 = arith.constant dense<0.000000e+00> : vector<8xf32>
    %31 = vector.multi_reduction <add>, %28, %cst_17 [1] : vector<8x128xf32> to vector<8xf32>
    %32 = vector.shape_cast %31 : vector<8xf32> to vector<8x1xf32>
    %33 = arith.addf %30, %32 : vector<8x1xf32>
    %c0_18 = arith.constant 0 : index
    %c0_19 = arith.constant 0 : index
    %34 = vector.load %arg11[%c0_18, %c0_19] : memref<8x1xf32, #tpu.memory_space<vmem>>, vector<8x1xf32>
    tpu.vector_store %arg11[%c0_18, %c0_19], %33 {strides = array<i32>} : memref<8x1xf32, #tpu.memory_space<vmem>>, vector<8x1xf32>,
    %c0_20 = arith.constant 0 : index
    %c0_21 = arith.constant 0 : index
    %35 = vector.load %arg12[%c0_20, %c0_21] : memref<8x128xf32, #tpu.memory_space<vmem>>, vector<8x128xf32>
    %36 = vector.broadcast %25 : vector<8x1xf32> to vector<8x128xf32>
    %37 = arith.mulf %36, %35 : vector<8x128xf32>
    %38 = vector.shape_cast %28 : vector<8x128xf32> to vector<8x128x1xf32>
    %39 = arith.extf %3 : vector<8x128x128xbf16> to vector<8x128x128xf32>
    %40 = vector.broadcast %38 : vector<8x128x1xf32> to vector<8x128x128xf32>
    %41 = arith.mulf %40, %39 : vector<8x128x128xf32>
    %cst_22 = arith.constant dense<0.000000e+00> : vector<8x128xf32>
    %42 = vector.multi_reduction <add>, %41, %cst_22 [1] : vector<8x128x128xf32> to vector<8x128xf32>
    %43 = arith.addf %37, %42 : vector<8x128xf32>
    %c0_23 = arith.constant 0 : index
    %c0_24 = arith.constant 0 : index
    %44 = vector.load %arg12[%c0_23, %c0_24] : memref<8x128xf32, #tpu.memory_space<vmem>>, vector<8x128xf32>
    tpu.vector_store %arg12[%c0_23, %c0_24], %43 {strides = array<i32>} : memref<8x128xf32, #tpu.memory_space<vmem>>, vector<8x128xf32>,
    %c0_25 = arith.constant 0 : index
    %c0_26 = arith.constant 0 : index
    %45 = vector.load %arg10[%c0_25, %c0_26] : memref<8x1xf32, #tpu.memory_space<vmem>>, vector<8x1xf32>
    tpu.vector_store %arg10[%c0_25, %c0_26], %23 {strides = array<i32>} : memref<8x1xf32, #tpu.memory_space<vmem>>, vector<8x1xf32>,
    %c0_i32_27 = arith.constant 0 : i32
    %46 = arith.cmpi sgt, %arg1, %c0_i32_27 : i32
    %47 = arith.extui %46 : i1 to i32
    %c0_i32_28 = arith.constant 0 : i32
    %48 = arith.cmpi ne, %47, %c0_i32_28 : i32
    scf.if %48 {
      %c0_32 = arith.constant 0 : index
      %c0_33 = arith.constant 0 : index
      %56 = vector.load %arg9[%c0_32, %c0_33] : memref<8x128xf32, #tpu.memory_space<vmem>>, vector<8x128xf32>
      %57 = vector.broadcast %25 : vector<8x1xf32> to vector<8x128xf32>
      %58 = arith.mulf %56, %57 : vector<8x128xf32>
      %c0_34 = arith.constant 0 : index
      %c0_35 = arith.constant 0 : index
      %59 = vector.load %arg9[%c0_34, %c0_35] : memref<8x128xf32, #tpu.memory_space<vmem>>, vector<8x128xf32>
      tpu.vector_store %arg9[%c0_34, %c0_35], %58 {strides = array<i32>} : memref<8x128xf32, #tpu.memory_space<vmem>>, vector<8x128xf32>,
    } else {
    }
    %c128_i32 = arith.constant 128 : i32
    %49 = arith.muli %arg1, %c128_i32 : i32
    %50 = tpu.assume_multiple %49, 128 : i32
    %c0_29 = arith.constant 0 : index
    %51 = arith.index_cast %50 : i32 to index
    %52 = vector.load %arg9[%c0_29, %51] : memref<8x128xf32, #tpu.memory_space<vmem>>, vector<8x128xf32>
    tpu.vector_store %arg9[%c0_29, %51], %28 {strides = array<i32>} : memref<8x128xf32, #tpu.memory_space<vmem>>, vector<8x128xf32>,
    %c0_i32_30 = arith.constant 0 : i32
    %53 = arith.cmpi eq, %arg1, %c0_i32_30 : i32
    %54 = arith.extui %53 : i1 to i32
    %c0_i32_31 = arith.constant 0 : i32
    %55 = arith.cmpi ne, %54, %c0_i32_31 : i32
    scf.if %55 {
      %c0_32 = arith.constant 0 : index
      %c0_33 = arith.constant 0 : index
      %56 = vector.load %arg11[%c0_32, %c0_33] : memref<8x1xf32, #tpu.memory_space<vmem>>, vector<8x1xf32>
      %57 = tpu.reciprocal %56 {approx = true} : vector<8x1xf32> -> vector<8x1xf32>
      %c0_34 = arith.constant 0 : index
      %c0_35 = arith.constant 0 : index
      %58 = vector.load %arg12[%c0_34, %c0_35] : memref<8x128xf32, #tpu.memory_space<vmem>>, vector<8x128xf32>
      %59 = vector.broadcast %57 : vector<8x1xf32> to vector<8x128xf32>
      %60 = arith.mulf %58, %59 : vector<8x128xf32>
      %c0_36 = arith.constant 0 : index
      %c0_37 = arith.constant 0 : index
      %61 = vector.load %arg8[%c0_36, %c0_37] : memref<8x128xf32, #tpu.memory_space<vmem>>, vector<8x128xf32>
      tpu.vector_store %arg8[%c0_36, %c0_37], %60 {strides = array<i32>} : memref<8x128xf32, #tpu.memory_space<vmem>>, vector<8x128xf32>,
      %c0_38 = arith.constant 0 : index
      %c0_39 = arith.constant 0 : index
      %62 = vector.load %arg9[%c0_38, %c0_39] : memref<8x128xf32, #tpu.memory_space<vmem>>, vector<8x128xf32>
      %63 = vector.broadcast %57 : vector<8x1xf32> to vector<8x128xf32>
      %64 = arith.mulf %62, %63 : vector<8x128xf32>
      %c0_40 = arith.constant 0 : index
      %c0_41 = arith.constant 0 : index
      %65 = vector.load %arg9[%c0_40, %c0_41] : memref<8x128xf32, #tpu.memory_space<vmem>>, vector<8x128xf32>
      tpu.vector_store %arg9[%c0_40, %c0_41], %64 {strides = array<i32>} : memref<8x128xf32, #tpu.memory_space<vmem>>, vector<8x128xf32>,
    } else {
    }
    return
  }
  func.func @transform_0(%arg0: i32, %arg1: i32) -> (i32, i32) {
    %c0_i32 = arith.constant 0 : i32
    %c0_i32_0 = arith.constant 0 : i32
    return %arg0, %c0_i32 : i32, i32
  }
  func.func @transform_1(%arg0: i32, %arg1: i32) -> (i32, i32, i32) {
    %c0_i32 = arith.constant 0 : i32
    %c0_i32_0 = arith.constant 0 : i32
    return %arg0, %arg1, %c0_i32 : i32, i32, i32
  }
  func.func @transform_2(%arg0: i32, %arg1: i32) -> (i32, i32) {
    %c0_i32 = arith.constant 0 : i32
    return %arg0, %arg1 : i32, i32
  }
  func.func @transform_3(%arg0: i32, %arg1: i32) -> (i32, i32) {
    %c0_i32 = arith.constant 0 : i32
    %c0_i32_0 = arith.constant 0 : i32
    %c0_i32_1 = arith.constant 0 : i32
    return %c0_i32, %c0_i32_0 : i32, i32
  }
  func.func @transform_4(%arg0: i32, %arg1: i32) -> (i32, i32) {
    %c0_i32 = arith.constant 0 : i32
    %c0_i32_0 = arith.constant 0 : i32
    %c0_i32_1 = arith.constant 0 : i32
    return %c0_i32, %c0_i32_0 : i32, i32
  }
  func.func @transform_5(%arg0: i32, %arg1: i32) -> (i32, i32) {
    %c0_i32 = arith.constant 0 : i32
    %c0_i32_0 = arith.constant 0 : i32
    %c0_i32_1 = arith.constant 0 : i32
    return %c0_i32, %c0_i32_0 : i32, i32
  }
  func.func @transform_6(%arg0: i32, %arg1: i32) -> (i32, i32) {
    %c0_i32 = arith.constant 0 : i32
    %c0_i32_0 = arith.constant 0 : i32
    return %arg0, %c0_i32 : i32, i32
  }
  func.func @transform_7(%arg0: i32, %arg1: i32) -> (i32, i32) {
    %c0_i32 = arith.constant 0 : i32
    %c0_i32_0 = arith.constant 0 : i32
    return %arg0, %c0_i32 : i32, i32
  }
}

</mosaic_0001>

<bundles_post_ra>
// kernel: tpu_custom_call.1
= control target key start
LH: loop header
LB: loop body
LE: loop exit
PB: predicated region body
PF: predicated region fallthrough
CT: control target
= control target key end

     0   :  { %13 = vsyncpa [#allocation7], 0  ;;  %s10284_s0 = inlined_call_operand.hbm [shape: bf16[8,128], index: 0, kind: input, shape index: {}]   ;;  %s10285_s1 = inlined_call_operand.hbm [shape: bf16[8,128,128], index: 1, kind: input, shape index: {}]   ;;  %s10286_s2 = inlined_call_operand.hbm [shape: f32[8,128], index: 2, kind: input, shape index: {}]   ;;  %s10287_s3 = inlined_call_operand.hbm [shape: bf16[128,128], index: 3, kind: input, shape index: {}]   ;;  %s10288_s4 = inlined_call_operand.hbm [shape: bf16[128,128], index: 4, kind: input, shape index: {}]   ;;  %s10289_s5 = inlined_call_operand.vmem [shape: f32[1,128], index: 5, kind: input, shape index: {}]   ;;  %s10290_s6 = inlined_call_operand.hbm [shape: f32[8,128], index: 6, kind: output, shape index: {0}]   ;;  %s10291_s7 = inlined_call_operand.hbm [shape: f32[8,128], index: 7, kind: output, shape index: {1}]  }
   0x1   :  { %14 = vsyncpa [#allocation10], 0 }
   0x2   :  { %15 = vsyncpa [#allocation13], 0 }
   0x3   :  { %16 = vsyncpa [#allocation8], 0  ;;  %s33_s26 = sshll.u32 %s10285_s1, 4  ;;  %s34_s26 = int_to_ptr.hbm [resolvable:$true] %s33_s26 }
   0x4   :  { %17 = vsyncpa [#allocation17], 0  ;;  %s6687_s27 = smov [#allocation9]   ;;  %s57_s8 = sshll.u32 %s10287_s3, 4  ;;  %s58_s8 = int_to_ptr.hbm [resolvable:$true] %s57_s8 }
   0x5   :  { %s35_s28 = sshll.u32 %s6687_s27, 4  ;;  %s6688_s9 = smov 64   ;;  %s36_s28 = int_to_ptr.vmem [resolvable:$true] %s35_s28 }
   0x6   :  { %s6689_s10 = smov 4   ;;  %s6690_s11 = smov [#allocation12]  }
   0x7   :  { %41 = dma.hbm_to_vmem [thread:$0]  %s34_s26, 8192, %s36_s28, [#allocation10], %s6688_s9, %s6688_s9, %s6689_s10  }
   0x8   :  { %s59_s12 = sshll.u32 %s6690_s11, 4  ;;  %s23_s15 = sshll.u32 %s10284_s0, 4  ;;  %s60_s12 = int_to_ptr.vmem [resolvable:$true] %s59_s12  ;;  %s24_s15 = int_to_ptr.hbm [resolvable:$true] %s23_s15 }
   0x9   :  { %65 = dma.hbm_to_vmem [thread:$0]  %s58_s8, 1024, %s60_s12, [#allocation13], %s6688_s9, %s6688_s9, %s6689_s10  }
   0xa   :  { %s47_s17 = sshll.u32 %s10286_s2, 4  ;;  %s6691_s18 = smov [#allocation6]   ;;  %s48_s17 = int_to_ptr.hbm [resolvable:$true] %s47_s17 }
   0xb   :  { %s25_s19 = sshll.u32 %s6691_s18, 4  ;;  %s6692_s3 = smov [#allocation11]   ;;  %s26_s19 = int_to_ptr.vmem [resolvable:$true] %s25_s19 }
   0xc   :  { %28 = dma.hbm_to_vmem [thread:$0]  %s24_s15, 64, %s26_s19, [#allocation7]  }
   0xd   :  { %s49_s20 = sshll.u32 %s6692_s3, 4  ;;  %s70_s23 = sshll.u32 %s10288_s4, 4  ;;  %s50_s20 = int_to_ptr.vmem [resolvable:$true] %s49_s20  ;;  %s71_s23 = int_to_ptr.hbm [resolvable:$true] %s70_s23 }
   0xe   :  { %52 = dma.hbm_to_vmem [thread:$0]  %s48_s17, 128, %s50_s20, [#allocation10]  }
   0xf   :  { %s6693_s0 = smov [#allocation14]  }
  0x10   :  { %s72_s24 = sshll.u32 %s6693_s0, 4  ;;  %s73_s24 = int_to_ptr.vmem [resolvable:$true] %s72_s24 }
  0x11   :  { %78 = dma.hbm_to_vmem [thread:$0]  %s71_s23, 1024, %s73_s24, [#allocation13], %s6688_s9, %s6688_s9, %s6689_s10  }
  0x12   :  { %6677 = dma.done.wait [#allocation7], 64  }
  0x13   :  { %6678 = vsyncadd [#allocation7], 4294967232 }
  0x14   :  { %6679 = dma.done.wait [#allocation10], 8320  }
  0x15   :  { %6680 = vsyncadd [#allocation10], 4294958976 }
  0x16   :  { %6681 = dma.done.wait [#allocation13], 2048  }
  0x17   :  { %6682 = vsyncadd [#allocation13], 4294965248  ;;  %v10292_v0 = vlaneseq  ;;  %v5759_v3 = vld [vmem:[#allocation12 + $0x38] sm:$0xff]  ;;  %v5758_v7 = vld [vmem:[#allocation12 + $0x30] sm:$0xff]  ;;  %vm3315_vm0 = vcmask 130112   ;;  %vm3319_vm1 = vcmask 195712  }
  0x18   :  { %v6763_v4 = vld [vmem:[#allocation14 + $0x38] sm:$0xff]  ;;  %175 = vmatpush.bf16.msra.mxu0 %v5759_v3  ;;  %v6771_v8 = vld [vmem:[#allocation14 + $0x30] sm:$0xff]  ;;  %v5757_v9 = vld [vmem:[#allocation12 + $0x28] sm:$0xff]  ;;  %vm3323_vm2 = vcmask 261312   ;;  %vm3327_vm3 = vcmask 326912   ;;  %vm3331_vm4 = vcmask 392512  }
  0x19   :  { %v6755_v1 = vshrl.u32 %v10292_v0, 7  ;;  %v6765_v5 = vld [vmem:[#allocation11] sm:$0xff]  ;;  %5832 = vmatpush.bf16.msra.mxu1 %v6763_v4  ;;  %5833 = vmatpush.bf16.msra.mxu2 %v6763_v4  ;;  %v5829_v10 = vld [vmem:[#allocation14 + $0x28] sm:$0xff]  ;;  %v5756_v12 = vld [vmem:[#allocation12 + $0x20] sm:$0xff]  ;;  %vm10439_vm5 = vcmask 458112   ;;  %vm10440_vm6 = vcmask 523712  }
  0x1a   :  { %v6768_v6 = vperm.slane %v6765_v5, 0  ;;  %5834 = vmatpush.bf16.msra.mxu3 %v6763_v4  ;;  %v5828_v13 = vld [vmem:[#allocation14 + $0x20] sm:$0xff]  ;;  %v5755_v15 = vld [vmem:[#allocation12 + $0x18] sm:$0xff]  ;;  %v5754_v17 = vld [vmem:[#allocation12 + $0x10] sm:$0xff]  ;;  %v6841_v52 = vperm.slane %v6765_v5, 1  ;;  %vm3343_vm7 = vcmask 589312  }
  0x1b   :  { %5868 = vset.pattern.permute.xlu2 %v6755_v1  ;;  %v6759_v2 = vadd.s32 16, %v6755_v1  ;;  %5907 = vset.pattern.permute.xlu0 %v6755_v1  ;;  %v6781_v11 = vadd.s32 24, %v6755_v1  ;;  %v6784_v14 = vadd.s32 40, %v6755_v1  ;;  %v5827_v16 = vld [vmem:[#allocation14 + $0x18] sm:$0xff]  ;;  %v5826_v18 = vld [vmem:[#allocation14 + $0x10] sm:$0xff]  ;;  %v5753_v19 = vld [vmem:[#allocation12 + $0x8] sm:$0xff] }
  0x1c   :  { %176 = vmatpush.bf16.msra.mxu0 %v5758_v7  ;;  %v5825_v20 = vld [vmem:[#allocation14 + $0x8] sm:$0xff]  ;;  %v6791_v21 = vadd.s32 32, %v6755_v1  ;;  %v5752_v22 = vld [vmem:[#allocation12] sm:$0xff]  ;;  %v6794_v24 = vadd.s32 56, %v6755_v1  ;;  %v110_v27 = vld [vmem:[#allocation6] sm:$0xf] }
  0x1d   :  { %5869 = vset.pattern.permute.xlu1 %v6759_v2  ;;  %5835 = vmatpush.bf16.msra.mxu1 %v6771_v8  ;;  %v5824_v23 = vld [vmem:[#allocation14] sm:$0xff]  ;;  %v5774_v25 = vld [vmem:[#allocation9 + $0x70] sm:$0xff]  ;;  %v5807_v28 = vld [vmem:[#allocation9 + $0x178] sm:$0xff]  ;;  %v6803_v29 = vadd.s32 48, %v6755_v1  ;;  %v6806_v30 = vadd.s32 80, %v6755_v1  ;;  %v6813_v34 = vadd.s32 72, %v6755_v1 }
  0x1e   :  { %5836 = vmatpush.bf16.msra.mxu2 %v6771_v8  ;;  %5837 = vmatpush.bf16.msra.mxu3 %v6771_v8  ;;  %v5790_v26 = vld [vmem:[#allocation9 + $0xf0] sm:$0xff]  ;;  %v5775_v31 = vld [vmem:[#allocation9 + $0x78] sm:$0xff]  ;;  %v5808_v33 = vld [vmem:[#allocation9 + $0x180] sm:$0xff]  ;;  %v6816_v35 = vadd.s32 96, %v6755_v1  ;;  %v6823_v40 = vadd.s32 88, %v6755_v1  ;;  %v6826_v41 = vadd.s32 120, %v6755_v1 }
  0x1f   :  { %v5791_v32 = vld [vmem:[#allocation9 + $0xf8] sm:$0xff]  ;;  %v5760_v36 = vld [vmem:[#allocation9] sm:$0xff]  ;;  %v5809_v39 = vld [vmem:[#allocation9 + $0x188] sm:$0xff]  ;;  %v6833_v46 = vadd.s32 112, %v6755_v1  ;;  %v6836_v47 = vadd.s32 8, %v6755_v1  ;;  %vm3347_vm8 = vcmask 654912  }
  0x20   :  { %177 = vmatpush.bf16.msra.mxu0 %v5757_v9  ;;  %v5776_v37 = vld [vmem:[#allocation9 + $0x80] sm:$0xff]  ;;  %v5761_v42 = vld [vmem:[#allocation9 + $0x8] sm:$0xff]  ;;  %v5810_v45 = vld [vmem:[#allocation9 + $0x190] sm:$0xff]  ;;  %vm10443_vm9 = vcmask 720512   ;;  %vm10441_vm10 = vcmask 786112   ;;  %vm10442_vm11 = vcmask 851712  }
  0x21   :  { %5838 = vmatpush.bf16.msra.mxu1 %v5829_v10  ;;  %v5792_v38 = vld [vmem:[#allocation9 + $0x100] sm:$0xff]  ;;  %v5777_v43 = vld [vmem:[#allocation9 + $0x88] sm:$0xff]  ;;  %v5762_v48 = vld [vmem:[#allocation9 + $0x10] sm:$0xff]  ;;  %vm3363_vm12 = vcmask 917312   ;;  %vm3367_vm13 = vcmask 982912   ;;  %vm3371_vm14 = vcmask 1048512  }
  0x22   :  { %5839 = vmatpush.bf16.msra.mxu2 %v5829_v10  ;;  %5840 = vmatpush.bf16.msra.mxu3 %v5829_v10  ;;  %v5793_v44 = vld [vmem:[#allocation9 + $0x108] sm:$0xff]  ;;  %v5778_v49 = vld [vmem:[#allocation9 + $0x90] sm:$0xff]  ;;  %v5811_v51 = vld [vmem:[#allocation9 + $0x198] sm:$0xff]  ;;  %vm10446_vm15 = vcmask 7168   ;;  %s5403_s30 = sshll.u32 %s10290_s6, 4  ;;  %s6698_s8 = smov [#allocation16]   ;;  %s5404_s30 = int_to_ptr.hbm [resolvable:$true] %s5403_s30 }
  0x23   :  { %1770 = vperm.xlu2 %5868, %v6768_v6   ;;  %v5794_v50 = vld [vmem:[#allocation9 + $0x110] sm:$0xff]  ;;  %v5763_v53 = vld [vmem:[#allocation9 + $0x18] sm:$0xff]  ;;  %v5812_v56 = vld [vmem:[#allocation9 + $0x1a0] sm:$0xff]  ;;  %s5412_s9 = sshll.u32 %s6698_s8, 4  ;;  %s5414_s12 = sshll.u32 %s10291_s7, 4  ;;  %s5413_s9 = int_to_ptr.vmem [resolvable:$true] %s5412_s9  ;;  %s5415_s12 = int_to_ptr.hbm [resolvable:$true] %s5414_s12 }
  0x24   :  { %178 = vmatpush.bf16.msra.mxu0 %v5756_v12  ;;  %v5779_v54 = vld [vmem:[#allocation9 + $0x98] sm:$0xff]  ;;  %v5764_v57 = vld [vmem:[#allocation9 + $0x20] sm:$0xff]  ;;  %v5813_v60 = vld [vmem:[#allocation9 + $0x1a8] sm:$0xff] }
  0x25   :  { %1782 = vperm.xlu1 %5869, %v6768_v6   ;;  %5841 = vmatpush.bf16.msra.mxu1 %v5828_v13  ;;  %v5795_v55 = vld [vmem:[#allocation9 + $0x118] sm:$0xff]  ;;  %v5780_v58 = vld [vmem:[#allocation9 + $0xa0] sm:$0xff]  ;;  %v5765_v61 = vld [vmem:[#allocation9 + $0x28] sm:$0xff] }
  0x26   :  { %5842 = vmatpush.bf16.msra.mxu2 %v5828_v13  ;;  %5843 = vmatpush.bf16.msra.mxu3 %v5828_v13  ;;  %v5796_v59 = vld [vmem:[#allocation9 + $0x120] sm:$0xff]  ;;  %v5781_v62 = vld [vmem:[#allocation9 + $0xa8] sm:$0xff]  ;;  %v5814_v3 = vld [vmem:[#allocation9 + $0x1b0] sm:$0xff] }
  0x27   :  { %v5797_v63 = vld [vmem:[#allocation9 + $0x128] sm:$0xff]  ;;  %v5766_v5 = vld [vmem:[#allocation9 + $0x30] sm:$0xff] }
  0x28   :  { %179 = vmatpush.bf16.msra.mxu0 %v5755_v15  ;;  %v5782_v7 = vld [vmem:[#allocation9 + $0xb0] sm:$0xff] }
  0x29   :  { %5844 = vmatpush.bf16.msra.mxu1 %v5827_v16 }
  0x2a   :  { %5845 = vmatpush.bf16.msra.mxu2 %v5827_v16  ;;  %5846 = vmatpush.bf16.msra.mxu3 %v5827_v16 }
  0x2b   :  { %5870 = vset.pattern.permute.xlu2 %v6781_v11 }
  0x2c   :  { %180 = vmatpush.bf16.msra.mxu0 %v5754_v17 }
  0x2d   :  { %5872 = vset.pattern.permute.xlu1 %v6784_v14  ;;  %5847 = vmatpush.bf16.msra.mxu1 %v5826_v18 }
  0x2e   :  { %5848 = vmatpush.bf16.msra.mxu2 %v5826_v18  ;;  %5849 = vmatpush.bf16.msra.mxu3 %v5826_v18 }
  0x30   :  { %181 = vmatpush.bf16.msra.mxu0 %v5753_v19 }
  0x31   :  { %5850 = vmatpush.bf16.msra.mxu1 %v5825_v20 }
  0x32   :  { %5851 = vmatpush.bf16.msra.mxu2 %v5825_v20  ;;  %5852 = vmatpush.bf16.msra.mxu3 %v5825_v20 }
  0x33   :  { %1788 = vperm.xlu2 %5870, %v6768_v6  }
  0x34   :  { %182 = vmatpush.bf16.msra.mxu0 %v5752_v22  ;;  %v6873_v22 = vld [vmem:[%s10289_s5] ss:$0 sm:$0xff] }
  0x35   :  { %1800 = vperm.xlu1 %5872, %v6768_v6   ;;  %5853 = vmatpush.bf16.msra.mxu1 %v5824_v23 }
  0x36   :  { %5854 = vmatpush.bf16.msra.mxu2 %v5824_v23  ;;  %5855 = vmatpush.bf16.msra.mxu3 %v5824_v23 }
  0x37   :  { %183 = vmatmul.bf16.vlgmr.msra.gmra.mxu0 %v110_v27  ;;  %v5799_v27 = vld [vmem:[#allocation9 + $0x138] sm:$0xff] }
  0x38   :  { %765 = vmatpush.bf16.msrb.mxu0 %v6763_v4  ;;  %843 = vmatmul.bf16.vlgmr.msra.gmra.mxu1 %v5774_v25  ;;  %v6858_v4 = vadd.s32 64, %v6755_v1  ;;  %v5783_v25 = vld [vmem:[#allocation9 + $0xb8] sm:$0xff] }
  0x39   :  { %923 = vmatmul.bf16.vlgmr.msra.gmra.mxu2 %v5790_v26  ;;  %1008 = vmatmul.bf16.vlgmr.msra.gmra.mxu3 %v5807_v28  ;;  %v5816_v28 = vld [vmem:[#allocation9 + $0x1c0] sm:$0xff] }
  0x3b   :  { %5871 = vset.pattern.permute.xlu2 %v6791_v21 }
  0x3c   :  { %766 = vmatpush.bf16.msrb.mxu0 %v6771_v8  ;;  %v5798_v8 = vld [vmem:[#allocation9 + $0x130] sm:$0xff] }
  0x3d   :  { %5874 = vset.pattern.permute.xlu1 %v6794_v24 }
  0x40   :  { %767 = vmatpush.bf16.msrb.mxu0 %v5829_v10  ;;  %v5815_v10 = vld [vmem:[#allocation9 + $0x1b8] sm:$0xff] }
  0x43   :  { %1794 = vperm.xlu2 %5871, %v6768_v6  }
  0x44   :  { %768 = vmatpush.bf16.msrb.mxu0 %v5828_v13 }
  0x45   :  { %1812 = vperm.xlu1 %5874, %v6768_v6  }
  0x48   :  { %769 = vmatpush.bf16.msrb.mxu0 %v5827_v16  ;;  %848 = vmatmul.bf16.gmra.mxu1 %v5775_v31 }
  0x49   :  { %928 = vmatmul.bf16.gmra.mxu2 %v5791_v32  ;;  %1013 = vmatmul.bf16.gmra.mxu3 %v5808_v33 }
  0x4b   :  { %5873 = vset.pattern.permute.xlu2 %v6803_v29 }
  0x4c   :  { %770 = vmatpush.bf16.msrb.mxu0 %v5826_v18 }
  0x4d   :  { %5876 = vset.pattern.permute.xlu1 %v6806_v30 }
  0x50   :  { %771 = vmatpush.bf16.msrb.mxu0 %v5825_v20  ;;  %v5767_v20 = vld [vmem:[#allocation9 + $0x38] sm:$0xff] }
  0x53   :  { %1806 = vperm.xlu2 %5873, %v6768_v6  }
  0x54   :  { %772 = vmatpush.bf16.msrb.mxu0 %v5824_v23 }
  0x55   :  { %1830 = vperm.xlu1 %5876, %v6768_v6  }
  0x57   :  { %773 = vmatmul.bf16.vlgmr.msrb.gmra.mxu0 %v5760_v36 }
  0x58   :  { %853 = vmatmul.bf16.gmra.mxu1 %v5776_v37 }
  0x59   :  { %933 = vmatmul.bf16.gmra.mxu2 %v5792_v38  ;;  %1018 = vmatmul.bf16.gmra.mxu3 %v5809_v39 }
  0x5b   :  { %5875 = vset.pattern.permute.xlu2 %v6813_v34 }
  0x5d   :  { %5878 = vset.pattern.permute.xlu1 %v6816_v35 }
  0x63   :  { %1824 = vperm.xlu2 %5875, %v6768_v6  }
  0x65   :  { %1842 = vperm.xlu1 %5878, %v6768_v6  }
  0x67   :  { %778 = vmatmul.bf16.gmra.mxu0 %v5761_v42 }
  0x68   :  { %858 = vmatmul.bf16.gmra.mxu1 %v5777_v43 }
  0x69   :  { %938 = vmatmul.bf16.gmra.mxu2 %v5793_v44  ;;  %1023 = vmatmul.bf16.gmra.mxu3 %v5810_v45  ;;  %v5768_v45 = vld [vmem:[#allocation9 + $0x40] sm:$0xff] }
  0x6b   :  { %5877 = vset.pattern.permute.xlu2 %v6823_v40 }
  0x6d   :  { %5880 = vset.pattern.permute.xlu1 %v6826_v41 }
  0x73   :  { %1836 = vperm.xlu2 %5877, %v6768_v6  }
  0x75   :  { %1860 = vperm.xlu1 %5880, %v6768_v6  }
  0x77   :  { %783 = vmatmul.bf16.gmra.mxu0 %v5762_v48 }
  0x78   :  { %863 = vmatmul.bf16.gmra.mxu1 %v5778_v49 }
  0x79   :  { %943 = vmatmul.bf16.gmra.mxu2 %v5794_v50  ;;  %1028 = vmatmul.bf16.gmra.mxu3 %v5811_v51 }
  0x7b   :  { %5879 = vset.pattern.permute.xlu2 %v6833_v46 }
  0x7d   :  { %5882 = vset.pattern.permute.xlu1 %v6836_v47 }
  0x83   :  { %1854 = vperm.xlu2 %5879, %v6768_v6  }
  0x85   :  { %1873 = vperm.xlu1 %5882, %v6841_v52  }
  0x87   :  { %788 = vmatmul.bf16.gmra.mxu0 %v5763_v53 }
  0x88   :  { %868 = vmatmul.bf16.gmra.mxu1 %v5779_v54  ;;  %v5784_v54 = vld [vmem:[#allocation9 + $0xc0] sm:$0xff] }
  0x89   :  { %948 = vmatmul.bf16.gmra.mxu2 %v5795_v55  ;;  %1033 = vmatmul.bf16.gmra.mxu3 %v5812_v56  ;;  %v5800_v55 = vld [vmem:[#allocation9 + $0x140] sm:$0xff]  ;;  %v5817_v56 = vld [vmem:[#allocation9 + $0x1c8] sm:$0xff] }
  0x8b   :  { %5881 = vset.pattern.permute.xlu2 %v6755_v1 }
  0x8d   :  { %5884 = vset.pattern.permute.xlu1 %v6791_v21 }
  0x93   :  { %1867 = vperm.xlu2 %5881, %v6841_v52  }
  0x95   :  { %1891 = vperm.xlu1 %5884, %v6841_v52  }
  0x97   :  { %793 = vmatmul.bf16.gmra.mxu0 %v5764_v57 }
  0x98   :  { %873 = vmatmul.bf16.gmra.mxu1 %v5780_v58 }
  0x99   :  { %953 = vmatmul.bf16.gmra.mxu2 %v5796_v59  ;;  %1038 = vmatmul.bf16.gmra.mxu3 %v5813_v60 }
  0x9b   :  { %5883 = vset.pattern.permute.xlu2 %v6781_v11 }
  0x9d   :  { %5886 = vset.pattern.permute.xlu1 %v6803_v29 }
  0xa3   :  { %1885 = vperm.xlu2 %5883, %v6841_v52  }
  0xa5   :  { %1903 = vperm.xlu1 %5886, %v6841_v52  }
  0xa7   :  { %798 = vmatmul.bf16.gmra.mxu0 %v5765_v61 }
  0xa8   :  { %878 = vmatmul.bf16.gmra.mxu1 %v5781_v62 }
  0xa9   :  { %958 = vmatmul.bf16.gmra.mxu2 %v5797_v63  ;;  %1043 = vmatmul.bf16.gmra.mxu3 %v5814_v3 }
  0xab   :  { %5885 = vset.pattern.permute.xlu2 %v6784_v14 }
  0xad   :  { %5888 = vset.pattern.permute.xlu1 %v6813_v34 }
  0xb3   :  { %1897 = vperm.xlu2 %5885, %v6841_v52  }
  0xb4   :  { %v6861_v9 = vpop.f32.mrf.mxu0 }
  0xb5   :  { %1921 = vperm.xlu1 %5888, %v6841_v52   ;;  %v1098_v12 = vrot.slane %v6861_v9, 3  ;;  %v1096_v18 = vrot.slane %v6861_v9, 1  ;;  %v844_v19 = vpop.f32.mrf.mxu1  ;;  %v1100_v36 = vrot.slane %v6861_v9, 5  ;;  %v6886_v43 = vperm.slane %v6861_v9, 0 }
  0xb6   :  { %v1101_v57 = vrot.slane %v6861_v9, 6 }
  0xb7   :  { %803 = vmatmul.bf16.gmra.mxu0 %v5766_v5  ;;  %v6865_v13 = vperm.slane %v1098_v12, 0  ;;  %v6875_v23 = vperm.slane %v1096_v18, 0  ;;  %v6882_v38 = vperm.slane %v1100_v36, 0 }
  0xb8   :  { %883 = vmatmul.bf16.gmra.mxu1 %v5782_v7  ;;  %v6895_v63 = vperm.slane %v1101_v57, 0 }
  0xb9   :  { %963 = vmatmul.bf16.gmra.mxu2 %v5798_v8  ;;  %1048 = vmatmul.bf16.gmra.mxu3 %v5815_v10  ;;  %v1147_v32 = vadd.f32 %v6875_v23, %v844_v19  ;;  %v5785_v19 = vld [vmem:[#allocation9 + $0xc8] sm:$0xff] }
  0xbb   :  { %5887 = vset.pattern.permute.xlu2 %v6858_v4 }
  0xbc   :  { %v924_v15 = vpop.f32.mrf.mxu2  ;;  %v186_v17 = vpop.f32.mrf.mxu0 }
  0xbd   :  { %5890 = vset.pattern.permute.xlu1 %v6823_v40  ;;  %v1179_v16 = vadd.f32 %v6865_v13, %v924_v15  ;;  %v1009_v33 = vpop.f32.mrf.mxu3  ;;  %v846_v37 = vpop.f32.mrf.mxu1  ;;  %v5769_v17 = vld [vmem:[#allocation9 + $0x48] sm:$0xff] }
  0xbe   :  { %v1213_v42 = vadd.f32 %v6882_v38, %v1009_v33 }
  0xbf   :  { %5991 = vtanh.f32 %v1179_v16 }
  0xc0   :  { %5993 = vtanh.f32 %v1147_v32  ;;  %v1148_v32 = vadd.f32 %v6875_v23, %v846_v37 }
  0xc1   :  { %5995 = vtanh.f32 %v1213_v42 }
  0xc3   :  { %1915 = vperm.xlu2 %5887, %v6841_v52  }
  0xc4   :  { %v926_v48 = vpop.f32.mrf.mxu2 }
  0xc5   :  { %v5992_v26 = vpop.eup %5991  ;;  %v6888_v44 = vpop.f32.mrf.mxu3  ;;  %v1180_v59 = vadd.f32 %v6865_v13, %v926_v48 }
  0xc6   :  { %v1439_v31 = vmul.f32 %v5992_v26, %v6873_v22  ;;  %v5994_v39 = vpop.eup %5993  ;;  %v849_v50 = vpop.f32.mrf.mxu1  ;;  %v5801_v26 = vld [vmem:[#allocation9 + $0x148] sm:$0xff]  ;;  %v1214_v37 = vadd.f32 %v6882_v38, %v6888_v44 }
  0xc7   :  { %808 = vmatmul.bf16.gmra.mxu0 %v5767_v20  ;;  %v1407_v53 = vmul.f32 %v5994_v39, %v6873_v22  ;;  %v1149_v58 = vadd.f32 %v6875_v23, %v849_v50  ;;  %v5996_v60 = vpop.eup %5995 }
  0xc8   :  { %888 = vmatmul.bf16.gmra.mxu1 %v5783_v25  ;;  %1627 = vadd.xlane.f32.xlu0 %v1439_v31  ;;  %v1473_v10 = vmul.f32 %v5996_v60, %v6873_v22  ;;  %v5818_v31 = vld [vmem:[#allocation9 + $0x1d0] sm:$0xff] }
  0xc9   :  { %968 = vmatmul.bf16.gmra.mxu2 %v5799_v27  ;;  %1053 = vmatmul.bf16.gmra.mxu3 %v5816_v28 }
  0xcb   :  { %5889 = vset.pattern.permute.xlu2 %v6806_v30 }
  0xcc   :  { %v929_v5 = vpop.f32.mrf.mxu2 }
  0xcd   :  { %v1014_v3 = vpop.f32.mrf.mxu3 }
  0xce   :  { %v851_v8 = vpop.f32.mrf.mxu1  ;;  %v1215_v12 = vadd.f32 %v6895_v63, %v1014_v3  ;;  %v5786_v3 = vld [vmem:[#allocation9 + $0xd0] sm:$0xff] }
  0xcf   :  { %v1150_v15 = vadd.f32 %v6875_v23, %v851_v8 }
  0xd3   :  { %1927 = vperm.xlu2 %5889, %v6841_v52  }
  0xd4   :  { %v774_v49 = vpop.f32.mrf.mxu0  ;;  %v931_v33 = vpop.f32.mrf.mxu2 }
  0xd5   :  { %v1119_v51 = vadd.f32 %v6886_v43, %v774_v49  ;;  %v1016_v27 = vpop.f32.mrf.mxu3 }
  0xd6   :  { %v1216_v39 = vadd.f32 %v6895_v63, %v1016_v27  ;;  %v854_v48 = vpop.f32.mrf.mxu1 }
  0xd7   :  { %5997 = vtanh.f32 %v1119_v51  ;;  %813 = vmatmul.bf16.gmra.mxu0 %v5768_v45 }
  0xd8   :  { %893 = vmatmul.bf16.gmra.mxu1 %v5784_v54  ;;  %5999 = vtanh.f32 %v1149_v58  ;;  %v1182_v54 = vadd.f32 %v6865_v13, %v931_v33  ;;  %v1097_v58 = vrot.slane %v6861_v9, 2 }
  0xd9   :  { %973 = vmatmul.bf16.gmra.mxu2 %v5800_v55  ;;  %1058 = vmatmul.bf16.gmra.mxu3 %v5817_v56  ;;  %6001 = vtanh.f32 %v1180_v59  ;;  %v5770_v59 = vld [vmem:[#allocation9 + $0x50] sm:$0xff] }
  0xda   :  { %6003 = vtanh.f32 %v1215_v12  ;;  %v6916_v12 = vperm.slane %v1097_v58, 0 }
  0xdb   :  { %6005 = vtanh.f32 %v1150_v15  ;;  %v1181_v15 = vadd.f32 %v6865_v13, %v929_v5 }
  0xdc   :  { %v776_v61 = vpop.f32.mrf.mxu0  ;;  %6007 = vtanh.f32 %v1148_v32  ;;  %v934_v55 = vpop.f32.mrf.mxu2 }
  0xdd   :  { %v5998_v62 = vpop.eup %5997  ;;  %v1120_v36 = vadd.f32 %v6886_v43, %v776_v61  ;;  %v1099_v61 = vrot.slane %v6861_v9, 4  ;;  %v1019_v44 = vpop.f32.mrf.mxu3 }
  0xde   :  { %v1379_v7 = vmul.f32 %v5998_v62, %v6873_v22  ;;  %v6000_v16 = vpop.eup %5999 }
  0xdf   :  { %1563 = vadd.xlane.f32.xlu1 %v1407_v53  ;;  %v6002_v18 = vpop.eup %6001  ;;  %v1409_v25 = vmul.f32 %v6000_v16, %v6873_v22  ;;  %6009 = vtanh.f32 %v1120_v36  ;;  %v1151_v36 = vadd.f32 %v6916_v12, %v854_v48  ;;  %v5787_v48 = vld [vmem:[#allocation9 + $0xd8] sm:$0xff] }
  0xe0   :  { %1507 = vadd.xlane.f32.xlu0 %v1379_v7  ;;  %v1440_v28 = vmul.f32 %v6002_v18, %v6873_v22  ;;  %v6004_v42 = vpop.eup %6003  ;;  %6011 = vtanh.f32 %v1216_v39  ;;  %v856_v7 = vpop.f32.mrf.mxu1  ;;  %v6920_v18 = vperm.slane %v1099_v61, 0  ;;  %v5820_v61 = vld [vmem:[#allocation9 + $0x1e0] sm:$0xff] }
  0xe1   :  { %v6006_v45 = vpop.eup %6005  ;;  %v1475_v49 = vmul.f32 %v6004_v42, %v6873_v22  ;;  %6013 = vtanh.f32 %v1214_v37 }
  0xe2   :  { %v1410_v50 = vmul.f32 %v6006_v45, %v6873_v22  ;;  %v6008_v53 = vpop.eup %6007  ;;  %6015 = vtanh.f32 %v1182_v54 }
  0xe3   :  { %v1408_v62 = vmul.f32 %v6008_v53, %v6873_v22  ;;  %v5771_v53 = vld [vmem:[#allocation9 + $0x58] sm:$0xff] }
  0xe4   :  { %v779_v20 = vpop.f32.mrf.mxu0 }
  0xe5   :  { %v1121_v56 = vadd.f32 %v6886_v43, %v779_v20  ;;  %v6010_v57 = vpop.eup %6009  ;;  %v1152_v20 = vadd.f32 %v6916_v12, %v856_v7  ;;  %v1021_v32 = vpop.f32.mrf.mxu3 }
  0xe6   :  { %v6012_v60 = vpop.eup %6011  ;;  %v1380_v8 = vmul.f32 %v6010_v57, %v6873_v22  ;;  %v1218_v45 = vadd.f32 %v6895_v63, %v1021_v32 }
  0xe7   :  { %1695 = vadd.xlane.f32.xlu1 %v1473_v10  ;;  %818 = vmatmul.bf16.gmra.mxu0 %v5769_v17  ;;  %6017 = vtanh.f32 %v1121_v56  ;;  %v5802_v10 = vld [vmem:[#allocation9 + $0x150] sm:$0xff]  ;;  %v1476_v16 = vmul.f32 %v6012_v60, %v6873_v22  ;;  %v5819_v17 = vld [vmem:[#allocation9 + $0x1d8] sm:$0xff]  ;;  %v1217_v60 = vadd.f32 %v6895_v63, %v1019_v44 }
  0xe8   :  { %1567 = vadd.xlane.f32.xlu0 %v1409_v25  ;;  %898 = vmatmul.bf16.gmra.mxu1 %v5785_v19  ;;  %v6014_v19 = vpop.eup %6013  ;;  %v1183_v25 = vadd.f32 %v6920_v18, %v934_v55  ;;  %6019 = vtanh.f32 %v1181_v15 }
  0xe9   :  { %978 = vmatmul.bf16.gmra.mxu2 %v5801_v26  ;;  %1063 = vmatmul.bf16.gmra.mxu3 %v5818_v31  ;;  %v6016_v27 = vpop.eup %6015  ;;  %v1474_v31 = vmul.f32 %v6014_v19, %v6873_v22  ;;  %6021 = vtanh.f32 %v1152_v20 }
  0xea   :  { %6023 = vtanh.f32 %v1183_v25  ;;  %v1442_v33 = vmul.f32 %v6016_v27, %v6873_v22 }
  0xeb   :  { %6025 = vtanh.f32 %v1151_v36  ;;  %v5772_v36 = vld [vmem:[#allocation9 + $0x60] sm:$0xff] }
  0xec   :  { %v781_v51 = vpop.f32.mrf.mxu0  ;;  %6027 = vtanh.f32 %v1218_v45 }
  0xed   :  { %v6018_v5 = vpop.eup %6017  ;;  %v1122_v37 = vadd.f32 %v6886_v43, %v781_v51 }
  0xee   :  { %v1381_v39 = vmul.f32 %v6018_v5, %v6873_v22  ;;  %v6020_v42 = vpop.eup %6019 }
  0xef   :  { %1629 = vadd.xlane.f32.xlu1 %v1440_v28  ;;  %v936_v28 = vpop.f32.mrf.mxu2  ;;  %v1441_v56 = vmul.f32 %v6020_v42, %v6873_v22  ;;  %6029 = vtanh.f32 %v1122_v37 }
  0xf0   :  { %1699 = vadd.xlane.f32.xlu0 %v1475_v49  ;;  %v859_v49 = vpop.f32.mrf.mxu1  ;;  %6031 = vtanh.f32 %v1217_v60  ;;  %v1184_v20 = vadd.f32 %v6920_v18, %v936_v28  ;;  %v5788_v28 = vld [vmem:[#allocation9 + $0xe0] sm:$0xff] }
  0xf1   :  { %v1153_v7 = vadd.f32 %v6916_v12, %v859_v49 }
  0xf4   :  { %v6924_v26 = vpop.f32.mrf.mxu0 }
  0xf7   :  { %1569 = vadd.xlane.f32.xlu1 %v1410_v50  ;;  %823 = vmatmul.bf16.gmra.mxu0 %v5770_v59  ;;  %v6022_v50 = vpop.eup %6021  ;;  %v939_v57 = vpop.f32.mrf.mxu2  ;;  %v5803_v59 = vld [vmem:[#allocation9 + $0x158] sm:$0xff] }
  0xf8   :  { %1509 = vadd.xlane.f32.xlu0 %v1380_v8  ;;  %903 = vmatmul.bf16.gmra.mxu1 %v5786_v3  ;;  %v6024_v54 = vpop.eup %6023  ;;  %v1412_v58 = vmul.f32 %v6022_v50, %v6873_v22  ;;  %v1185_v3 = vadd.f32 %v6920_v18, %v939_v57  ;;  %v1024_v8 = vpop.f32.mrf.mxu3  ;;  %v5804_v50 = vld [vmem:[#allocation9 + $0x160] sm:$0xff] }
  0xf9   :  { %983 = vmatmul.bf16.gmra.mxu2 %v5802_v10  ;;  %1068 = vmatmul.bf16.gmra.mxu3 %v5819_v17  ;;  %v1443_v51 = vmul.f32 %v6024_v54, %v6873_v22  ;;  %v1219_v32 = vadd.f32 %v6895_v63, %v1024_v8 }
  0xfa   :  { %6033 = vtanh.f32 %v1185_v3 }
  0xfb   :  { %6035 = vtanh.f32 %v1153_v7 }
  0xfc   :  { %1565 = vadd.xlane.f32.xlu2 %v1408_v62  ;;  %v6932_v55 = vpop.f32.mrf.mxu0  ;;  %v6026_v62 = vpop.eup %6025  ;;  %6037 = vtanh.f32 %v1184_v20  ;;  %v5773_v20 = vld [vmem:[#allocation9 + $0x68] sm:$0xff] }
  0xfd   :  { %v6028_v10 = vpop.eup %6027  ;;  %v1411_v44 = vmul.f32 %v6026_v62, %v6873_v22  ;;  %v1124_v7 = vadd.f32 %v6886_v43, %v6932_v55 }
  0xfe   :  { %v6030_v15 = vpop.eup %6029  ;;  %v1478_v19 = vmul.f32 %v6028_v10, %v6873_v22 }
  0xff   :  { %1701 = vadd.xlane.f32.xlu1 %v1476_v16  ;;  %v6940_v16 = vpop.f32.mrf.mxu1  ;;  %v1382_v25 = vmul.f32 %v6030_v15, %v6873_v22  ;;  %v6032_v27 = vpop.eup %6031 }
 0x100   :  { %1633 = vadd.xlane.f32.xlu0 %v1442_v33  ;;  %v941_v5 = vpop.f32.mrf.mxu2  ;;  %v6034_v33 = vpop.eup %6033  ;;  %v1477_v45 = vmul.f32 %v6032_v27, %v6873_v22 }
 0x101   :  { %v6948_v42 = vpop.f32.mrf.mxu3  ;;  %v1445_v37 = vmul.f32 %v6034_v33, %v6873_v22  ;;  %v5805_v33 = vld [vmem:[#allocation9 + $0x168] sm:$0xff] }
 0x104   :  { %1697 = vadd.xlane.f32.xlu2 %v1474_v31  ;;  %v789_v17 = vpop.f32.mrf.mxu0 }
 0x105   :  { %v1125_v31 = vadd.f32 %v6886_v43, %v789_v17 }
 0x107   :  { %1511 = vadd.xlane.f32.xlu1 %v1381_v39  ;;  %828 = vmatmul.bf16.gmra.mxu0 %v5771_v53  ;;  %v6036_v39 = vpop.eup %6035  ;;  %6039 = vtanh.f32 %v1125_v31  ;;  %v864_v49 = vpop.f32.mrf.mxu1  ;;  %v1123_v53 = vadd.f32 %v6886_v43, %v6924_v26  ;;  %v5789_v31 = vld [vmem:[#allocation9 + $0xe8] sm:$0xff] }
 0x108   :  { %1573 = vadd.xlane.f32.xlu0 %v1412_v58  ;;  %908 = vmatmul.bf16.gmra.mxu1 %v5787_v48  ;;  %6041 = vtanh.f32 %v1219_v32  ;;  %v1413_v54 = vmul.f32 %v6036_v39, %v6873_v22  ;;  %v6038_v48 = vpop.eup %6037  ;;  %v1155_v57 = vadd.f32 %v6916_v12, %v864_v49  ;;  %v1186_v58 = vadd.f32 %v6920_v18, %v941_v5 }
 0x109   :  { %988 = vmatmul.bf16.gmra.mxu2 %v5803_v59  ;;  %1073 = vmatmul.bf16.gmra.mxu3 %v5820_v61  ;;  %6043 = vtanh.f32 %v1123_v53  ;;  %v1444_v61 = vmul.f32 %v6038_v48, %v6873_v22  ;;  %v1029_v62 = vpop.f32.mrf.mxu3 }
 0x10a   :  { %6045 = vtanh.f32 %v1155_v57  ;;  %v1221_v15 = vadd.f32 %v6895_v63, %v1029_v62 }
 0x10b   :  { %6047 = vtanh.f32 %v1186_v58  ;;  %v1220_v58 = vadd.f32 %v6895_v63, %v6948_v42 }
 0x10c   :  { %1631 = vadd.xlane.f32.xlu2 %v1441_v56  ;;  %v5821_v56 = vld [vmem:[#allocation9 + $0x1e8] sm:$0xff]  ;;  %v791_v59 = vpop.f32.mrf.mxu0  ;;  %6049 = vtanh.f32 %v1124_v7 }
 0x10d   :  { %v6040_v60 = vpop.eup %6039  ;;  %v1126_v17 = vadd.f32 %v6886_v43, %v791_v59  ;;  %6051 = vtanh.f32 %v1221_v15 }
 0x10e   :  { %v6042_v26 = vpop.eup %6041  ;;  %v1385_v3 = vmul.f32 %v6040_v60, %v6873_v22 }
 0x10f   :  { %1635 = vadd.xlane.f32.xlu1 %v1443_v51  ;;  %v6957_v51 = vpop.f32.mrf.mxu2  ;;  %v1479_v8 = vmul.f32 %v6042_v26, %v6873_v22  ;;  %v6044_v10 = vpop.eup %6043  ;;  %6053 = vtanh.f32 %v1126_v17 }
 0x110   :  { %1705 = vadd.xlane.f32.xlu0 %v1478_v19  ;;  %v6046_v19 = vpop.eup %6045  ;;  %v1383_v5 = vmul.f32 %v6044_v10, %v6873_v22  ;;  %v1187_v17 = vadd.f32 %v6920_v18, %v6957_v51 }
 0x111   :  { %v1415_v32 = vmul.f32 %v6046_v19, %v6873_v22 }
 0x114   :  { %1571 = vadd.xlane.f32.xlu2 %v1411_v44  ;;  %v866_v44 = vpop.f32.mrf.mxu1  ;;  %v6966_v27 = vpop.f32.mrf.mxu0 }
 0x117   :  { %1513 = vadd.xlane.f32.xlu1 %v1382_v25  ;;  %833 = vmatmul.bf16.gmra.mxu0 %v5772_v36  ;;  %v6048_v25 = vpop.eup %6047  ;;  %v946_v55 = vpop.f32.mrf.mxu2  ;;  %v1154_v36 = vadd.f32 %v6916_v12, %v6940_v16 }
 0x118   :  { %1639 = vadd.xlane.f32.xlu0 %v1445_v37  ;;  %913 = vmatmul.bf16.gmra.mxu1 %v5788_v28  ;;  %v1446_v39 = vmul.f32 %v6048_v25, %v6873_v22  ;;  %v1031_v28 = vpop.f32.mrf.mxu3  ;;  %v6050_v49 = vpop.eup %6049  ;;  %v1188_v37 = vadd.f32 %v6920_v18, %v946_v55 }
 0x119   :  { %993 = vmatmul.bf16.gmra.mxu2 %v5804_v50  ;;  %1078 = vmatmul.bf16.gmra.mxu3 %v5821_v56  ;;  %v1156_v50 = vadd.f32 %v6916_v12, %v866_v44  ;;  %v6052_v53 = vpop.eup %6051  ;;  %6055 = vtanh.f32 %v1154_v36  ;;  %v1384_v16 = vmul.f32 %v6050_v49, %v6873_v22  ;;  %v1222_v62 = vadd.f32 %v6895_v63, %v1031_v28  ;;  %v5806_v44 = vld [vmem:[#allocation9 + $0x170] sm:$0xff] }
 0x11a   :  { %6057 = vtanh.f32 %v1188_v37  ;;  %v1481_v57 = vmul.f32 %v6052_v53, %v6873_v22  ;;  %v1127_v28 = vadd.f32 %v6886_v43, %v6966_v27 }
 0x11b   :  { %6059 = vtanh.f32 %v1156_v50 }
 0x11c   :  { %1703 = vadd.xlane.f32.xlu2 %v1477_v45  ;;  %v5822_v45 = vld [vmem:[#allocation9 + $0x1f0] sm:$0xff]  ;;  %v6975_v56 = vpop.f32.mrf.mxu1  ;;  %v796_v48 = vpop.f32.mrf.mxu0  ;;  %6061 = vtanh.f32 %v1220_v58 }
 0x11f   :  { %1575 = vadd.xlane.f32.xlu1 %v1413_v54  ;;  %v6054_v54 = vpop.eup %6053  ;;  %v949_v59 = vpop.f32.mrf.mxu2 }
 0x120   :  { %1519 = vadd.xlane.f32.xlu0 %v1385_v3  ;;  %v1386_v60 = vmul.f32 %v6054_v54, %v6873_v22  ;;  %v6056_v26 = vpop.eup %6055  ;;  %v6984_v3 = vpop.f32.mrf.mxu3 }
 0x121   :  { %v6058_v7 = vpop.eup %6057  ;;  %v1414_v10 = vmul.f32 %v6056_v26, %v6873_v22  ;;  %v1157_v26 = vadd.f32 %v6916_v12, %v6975_v56 }
 0x122   :  { %v1448_v15 = vmul.f32 %v6058_v7, %v6873_v22 }
 0x124   :  { %1637 = vadd.xlane.f32.xlu2 %v1444_v61  ;;  %v1128_v61 = vadd.f32 %v6886_v43, %v796_v48  ;;  %v871_v42 = vpop.f32.mrf.mxu1 }
 0x126   :  { %6063 = vtanh.f32 %v1128_v61 }
 0x127   :  { %1707 = vadd.xlane.f32.xlu1 %v1479_v8  ;;  %838 = vmatmul.bf16.gmra.mxu0 %v5773_v20  ;;  %v6060_v8 = vpop.eup %6059  ;;  %6065 = vtanh.f32 %v1222_v62  ;;  %v5823_v20 = vld [vmem:[#allocation9 + $0x1f8] sm:$0xff]  ;;  %v6992_v55 = vpop.f32.mrf.mxu2 }
 0x128   :  { %1579 = vadd.xlane.f32.xlu0 %v1415_v32  ;;  %918 = vmatmul.bf16.gmra.mxu1 %v5789_v31  ;;  %v1416_v19 = vmul.f32 %v6060_v8, %v6873_v22  ;;  %v6062_v25 = vpop.eup %6061  ;;  %v1189_v31 = vadd.f32 %v6920_v18, %v949_v59  ;;  %v799_v32 = vpop.f32.mrf.mxu0  ;;  %6067 = vtanh.f32 %v1187_v17 }
 0x129   :  { %998 = vmatmul.bf16.gmra.mxu2 %v5805_v33  ;;  %1083 = vmatmul.bf16.gmra.mxu3 %v5822_v45  ;;  %v1480_v51 = vmul.f32 %v6062_v25, %v6873_v22  ;;  %v1129_v54 = vadd.f32 %v6886_v43, %v799_v32 }
 0x12c   :  { %1515 = vadd.xlane.f32.xlu2 %v1383_v5  ;;  %v1158_v5 = vadd.f32 %v6916_v12, %v871_v42  ;;  %v6064_v33 = vpop.eup %6063  ;;  %v874_v53 = vpop.f32.mrf.mxu1 }
 0x12d   :  { %v6066_v36 = vpop.eup %6065  ;;  %v1388_v45 = vmul.f32 %v6064_v33, %v6873_v22  ;;  %v1159_v8 = vadd.f32 %v6916_v12, %v874_v53 }
 0x12e   :  { %6069 = vtanh.f32 %v1158_v5  ;;  %v1482_v49 = vmul.f32 %v6066_v36, %v6873_v22  ;;  %v6068_v37 = vpop.eup %6067 }
 0x12f   :  { %1641 = vadd.xlane.f32.xlu1 %v1446_v39  ;;  %v1036_v39 = vpop.f32.mrf.mxu3  ;;  %6071 = vtanh.f32 %v1189_v31  ;;  %v954_v48 = vpop.f32.mrf.mxu2  ;;  %v1447_v59 = vmul.f32 %v6068_v37, %v6873_v22 }
 0x130   :  { %1711 = vadd.xlane.f32.xlu0 %v1481_v57  ;;  %v1224_v50 = vadd.f32 %v6895_v63, %v1036_v39  ;;  %6073 = vtanh.f32 %v1127_v28  ;;  %v801_v58 = vpop.f32.mrf.mxu0  ;;  %v1191_v7 = vadd.f32 %v6920_v18, %v954_v48  ;;  %v1190_v28 = vadd.f32 %v6920_v18, %v6992_v55 }
 0x132   :  { %6075 = vtanh.f32 %v1224_v50 }
 0x133   :  { %6077 = vtanh.f32 %v1129_v54 }
 0x134   :  { %1517 = vadd.xlane.f32.xlu2 %v1384_v16  ;;  %v6070_v16 = vpop.eup %6069  ;;  %6079 = vtanh.f32 %v1157_v26 }
 0x135   :  { %v6072_v57 = vpop.eup %6071  ;;  %v1418_v27 = vmul.f32 %v6070_v16, %v6873_v22  ;;  %6081 = vtanh.f32 %v1191_v7 }
 0x136   :  { %v1449_v61 = vmul.f32 %v6072_v57, %v6873_v22  ;;  %v6074_v62 = vpop.eup %6073  ;;  %6083 = vtanh.f32 %v1159_v8 }
 0x137   :  { %1521 = vadd.xlane.f32.xlu1 %v1386_v60  ;;  %v1039_v60 = vpop.f32.mrf.mxu3  ;;  %v956_v17 = vpop.f32.mrf.mxu2 }
 0x138   :  { %1645 = vadd.xlane.f32.xlu0 %v1448_v15  ;;  %v876_v15 = vpop.f32.mrf.mxu1  ;;  %v1225_v33 = vadd.f32 %v6895_v63, %v1039_v60  ;;  %v1192_v54 = vadd.f32 %v6920_v18, %v956_v17 }
 0x139   :  { %1003 = vmatmul.bf16.gmra.mxu2 %v5806_v44  ;;  %1088 = vmatmul.bf16.gmra.mxu3 %v5823_v20  ;;  %v1387_v44 = vmul.f32 %v6074_v62, %v6873_v22  ;;  %v1223_v20 = vadd.f32 %v6895_v63, %v6984_v3 }
 0x13b   :  { %6085 = vtanh.f32 %v1223_v20  ;;  %v1160_v20 = vadd.f32 %v6916_v12, %v876_v15 }
 0x13c   :  { %1577 = vadd.xlane.f32.xlu2 %v1414_v10  ;;  %v6076_v10 = vpop.eup %6075 }
 0x13d   :  { %v6078_v42 = vpop.eup %6077  ;;  %v1484_v56 = vmul.f32 %v6076_v10, %v6873_v22 }
 0x13e   :  { %v1389_v25 = vmul.f32 %v6078_v42, %v6873_v22  ;;  %v6080_v31 = vpop.eup %6079 }
 0x13f   :  { %1581 = vadd.xlane.f32.xlu1 %v1416_v19  ;;  %v804_v19 = vpop.f32.mrf.mxu0  ;;  %v7014_v5 = vpop.f32.mrf.mxu3 }
 0x140   :  { %1525 = vadd.xlane.f32.xlu0 %v1388_v45  ;;  %v1131_v32 = vadd.f32 %v6886_v43, %v804_v19  ;;  %v6082_v36 = vpop.eup %6081  ;;  %v879_v45 = vpop.f32.mrf.mxu1 }
 0x141   :  { %v6084_v39 = vpop.eup %6083  ;;  %v1451_v3 = vmul.f32 %v6082_v36, %v6873_v22  ;;  %v1161_v53 = vadd.f32 %v6916_v12, %v879_v45 }
 0x142   :  { %6087 = vtanh.f32 %v1131_v32  ;;  %v1419_v37 = vmul.f32 %v6084_v39, %v6873_v22  ;;  %v6086_v50 = vpop.eup %6085 }
 0x143   :  { %6089 = vtanh.f32 %v1225_v33  ;;  %v1483_v60 = vmul.f32 %v6086_v50, %v6873_v22  ;;  %v1226_v50 = vadd.f32 %v6895_v63, %v7014_v5  ;;  %v7053_v5 = vpop.xlane.xlu0 %1627 }
 0x144   :  { %1709 = vadd.xlane.f32.xlu2 %v1480_v51  ;;  %v1417_v51 = vmul.f32 %v6080_v31, %v6873_v22  ;;  %6091 = vtanh.f32 %v1190_v28  ;;  %10456 = vst [vmem:[#allocation23_spill] sm:$0xff] %v7053_v5 }
 0x145   :  { %6093 = vtanh.f32 %v1161_v53 }
 0x146   :  { %6095 = vtanh.f32 %v1192_v54 }
 0x147   :  { %1713 = vadd.xlane.f32.xlu1 %v1482_v49  ;;  %v7022_v49 = vpop.f32.mrf.mxu2  ;;  %v1044_v16 = vpop.f32.mrf.mxu3 }
 0x148   :  { %1585 = vadd.xlane.f32.xlu0 %v1418_v27  ;;  %v806_v48 = vpop.f32.mrf.mxu0  ;;  %v6088_v57 = vpop.eup %6087  ;;  %v1130_v27 = vadd.f32 %v6886_v43, %v801_v58  ;;  %v1227_v62 = vadd.f32 %v6895_v63, %v1044_v16 }
 0x149   :  { %v1391_v55 = vmul.f32 %v6088_v57, %v6873_v22  ;;  %v881_v8 = vpop.f32.mrf.mxu1  ;;  %v1132_v10 = vadd.f32 %v6886_v43, %v806_v48 }
 0x14a   :  { %6097 = vtanh.f32 %v1130_v27  ;;  %v1162_v33 = vadd.f32 %v6916_v12, %v881_v8 }
 0x14b   :  { %6099 = vtanh.f32 %v1227_v62 }
 0x14c   :  { %1643 = vadd.xlane.f32.xlu2 %v1447_v59  ;;  %v6090_v59 = vpop.eup %6089  ;;  %6101 = vtanh.f32 %v1132_v10 }
 0x14d   :  { %v1485_v26 = vmul.f32 %v6090_v59, %v6873_v22  ;;  %6103 = vtanh.f32 %v1160_v20 }
 0x14f   :  { %1647 = vadd.xlane.f32.xlu1 %v1449_v61  ;;  %v6092_v61 = vpop.eup %6091  ;;  %v961_v7 = vpop.f32.mrf.mxu2 }
 0x150   :  { %1717 = vadd.xlane.f32.xlu0 %v1484_v56  ;;  %v6094_v42 = vpop.eup %6093  ;;  %v1046_v17 = vpop.f32.mrf.mxu3  ;;  %v1450_v56 = vmul.f32 %v6092_v61, %v6873_v22  ;;  %v1194_v32 = vadd.f32 %v6920_v18, %v961_v7  ;;  %v1193_v61 = vadd.f32 %v6920_v18, %v7022_v49 }
 0x151   :  { %v809_v19 = vpop.f32.mrf.mxu0  ;;  %v1421_v58 = vmul.f32 %v6094_v42, %v6873_v22  ;;  %v7039_v45 = vpop.f32.mrf.mxu1  ;;  %v1228_v48 = vadd.f32 %v6895_v63, %v1046_v17 }
 0x152   :  { %6105 = vtanh.f32 %v1194_v32  ;;  %v1133_v20 = vadd.f32 %v6886_v43, %v809_v19 }
 0x153   :  { %6107 = vtanh.f32 %v1162_v33  ;;  %v7065_v32 = vpop.xlane.xlu0 %1507 }
 0x154   :  { %1523 = vadd.xlane.f32.xlu2 %v1387_v44  ;;  %v6096_v44 = vpop.eup %6095  ;;  %6109 = vtanh.f32 %v1226_v50 }
 0x155   :  { %v6098_v31 = vpop.eup %6097 }
 0x156   :  { %v6100_v36 = vpop.eup %6099 }
 0x157   :  { %1527 = vadd.xlane.f32.xlu1 %v1389_v25  ;;  %v1452_v25 = vmul.f32 %v6096_v44, %v6873_v22  ;;  %v964_v39 = vpop.f32.mrf.mxu2 }
 0x158   :  { %1651 = vadd.xlane.f32.xlu0 %v1451_v3  ;;  %v1390_v3 = vmul.f32 %v6098_v31, %v6873_v22  ;;  %v7042_v15 = vpop.f32.mrf.mxu3  ;;  %v1195_v42 = vadd.f32 %v6920_v18, %v964_v39 }
 0x159   :  { %v811_v28 = vpop.f32.mrf.mxu0  ;;  %v886_v27 = vpop.f32.mrf.mxu1 }
 0x15a   :  { %v1134_v16 = vadd.f32 %v6886_v43, %v811_v28  ;;  %v1164_v10 = vadd.f32 %v6916_v12, %v886_v27 }
 0x15c   :  { %1583 = vadd.xlane.f32.xlu2 %v1417_v51  ;;  %v6102_v51 = vpop.eup %6101  ;;  %6111 = vtanh.f32 %v1134_v16 }
 0x15d   :  { %v1392_v53 = vmul.f32 %v6102_v51, %v6873_v22  ;;  %v6104_v54 = vpop.eup %6103  ;;  %6113 = vtanh.f32 %v1228_v48 }
 0x15e   :  { %v6106_v57 = vpop.eup %6105  ;;  %6115 = vtanh.f32 %v1193_v61  ;;  %v1102_v61 = vrot.slane %v6861_v9, 7 }
 0x15f   :  { %1587 = vadd.xlane.f32.xlu1 %v1419_v37  ;;  %v1487_v37 = vmul.f32 %v6100_v36, %v6873_v22  ;;  %v6108_v59 = vpop.eup %6107  ;;  %6117 = vtanh.f32 %v1164_v10 }
 0x160   :  { %1531 = vadd.xlane.f32.xlu0 %v1391_v55  ;;  %v7051_v55 = vpop.f32.mrf.mxu2  ;;  %v1422_v62 = vmul.f32 %v6108_v59, %v6873_v22  ;;  %v1051_v7 = vpop.f32.mrf.mxu3  ;;  %6119 = vtanh.f32 %v1195_v42  ;;  %v1229_v42 = vadd.f32 %v6895_v63, %v7042_v15 }
 0x161   :  { %v6110_v8 = vpop.eup %6109  ;;  %v814_v44 = vpop.f32.mrf.mxu0  ;;  %v1230_v36 = vadd.f32 %v6895_v63, %v1051_v7  ;;  %6121 = vtanh.f32 %v1133_v20 }
 0x162   :  { %v6112_v17 = vpop.eup %6111  ;;  %v889_v39 = vpop.f32.mrf.mxu1 }
 0x163   :  { %v1394_v49 = vmul.f32 %v6112_v17, %v6873_v22  ;;  %6123 = vtanh.f32 %v1230_v36  ;;  %v1165_v59 = vadd.f32 %v6916_v12, %v889_v39  ;;  %v7090_v17 = vperm.slane %v1102_v61, 0  ;;  %v7102_v36 = vld [vmem:[%s10289_s5] ss:$0 sm:$0xff]  ;;  %s6697_s5 = smov [#allocation15]  }
 0x164   :  { %1715 = vadd.xlane.f32.xlu2 %v1483_v60  ;;  %v1420_v60 = vmul.f32 %v6104_v54, %v6873_v22  ;;  %s5401_s27 = sshll.u32 %s6697_s5, 4  ;;  %s5402_s27 = int_to_ptr.vmem [resolvable:$true] %s5401_s27 }
 0x167   :  { %1719 = vadd.xlane.f32.xlu1 %v1485_v26  ;;  %v1454_v26 = vmul.f32 %v6106_v57, %v6873_v22 }
 0x168   :  { %1591 = vadd.xlane.f32.xlu0 %v1421_v58  ;;  %v1486_v58 = vmul.f32 %v6110_v8, %v6873_v22  ;;  %v1054_v51 = vpop.f32.mrf.mxu3 }
 0x169   :  { %v7069_v50 = vpop.f32.mrf.mxu0 }
 0x16c   :  { %1649 = vadd.xlane.f32.xlu2 %v1450_v56  ;;  %v6114_v56 = vpop.eup %6113 }
 0x16d   :  { %v1488_v31 = vmul.f32 %v6114_v56, %v6873_v22  ;;  %v6116_v33 = vpop.eup %6115 }
 0x16e   :  { %v6118_v28 = vpop.eup %6117  ;;  %v1453_v43 = vmul.f32 %v6116_v33, %v6873_v22 }
 0x16f   :  { %1653 = vadd.xlane.f32.xlu1 %v1452_v25  ;;  %v969_v25 = vpop.f32.mrf.mxu2  ;;  %v1424_v19 = vmul.f32 %v6118_v28, %v6873_v22 }
 0x170   :  { %1723 = vadd.xlane.f32.xlu0 %v1487_v37  ;;  %v6120_v37 = vpop.eup %6119  ;;  %v1197_v48 = vadd.f32 %v6920_v18, %v969_v25 }
 0x171   :  { %v1455_v54 = vmul.f32 %v6120_v37, %v6873_v22  ;;  %v6122_v16 = vpop.eup %6121  ;;  %v819_v8 = vpop.f32.mrf.mxu0 }
 0x172   :  { %v6124_v27 = vpop.eup %6123  ;;  %v1393_v7 = vmul.f32 %v6122_v16, %v6873_v22  ;;  %v1137_v56 = vadd.f32 %v6875_v23, %v819_v8 }
 0x173   :  { %v1490_v10 = vmul.f32 %v6124_v27, %v6873_v22 }
 0x174   :  { %1529 = vadd.xlane.f32.xlu2 %v1390_v3  ;;  %v1135_v3 = vadd.f32 %v6875_v23, %v814_v44 }
 0x176   :  { %6125 = vtanh.f32 %v1135_v3  ;;  %v1196_v3 = vadd.f32 %v6920_v18, %v7051_v55 }
 0x177   :  { %1533 = vadd.xlane.f32.xlu1 %v1392_v53  ;;  %v1163_v53 = vadd.f32 %v6916_v12, %v7039_v45  ;;  %v971_v57 = vpop.f32.mrf.mxu2  ;;  %v7083_v45 = vpop.f32.mrf.mxu3 }
 0x178   :  { %1657 = vadd.xlane.f32.xlu0 %v1454_v26 }
 0x179   :  { %6127 = vtanh.f32 %v1163_v53 }
 0x17a   :  { %6129 = vtanh.f32 %v1197_v48 }
 0x17b   :  { %6131 = vtanh.f32 %v1165_v59 }
 0x17c   :  { %1589 = vadd.xlane.f32.xlu2 %v1420_v60  ;;  %v7078_v60 = vpop.xlane.xlu0 %1567  ;;  %v6126_v26 = vpop.eup %6125  ;;  %6133 = vtanh.f32 %v1229_v42 }
 0x17d   :  { %10457 = vst [vmem:[#allocation24_spill] sm:$0xff] %v7078_v60  ;;  %v1395_v44 = vmul.f32 %v6126_v26, %v6873_v22  ;;  %6135 = vtanh.f32 %v1137_v56  ;;  %v1136_v26 = vadd.f32 %v6875_v23, %v7069_v50 }
 0x17f   :  { %1593 = vadd.xlane.f32.xlu1 %v1422_v62  ;;  %v7081_v62 = vpop.f32.mrf.mxu1  ;;  %v6128_v9 = vpop.eup %6127 }
 0x180   :  { %1537 = vadd.xlane.f32.xlu0 %v1394_v49  ;;  %v6130_v49 = vpop.eup %6129  ;;  %v7094_v20 = vpop.f32.mrf.mxu2  ;;  %v1423_v63 = vmul.f32 %v6128_v9, %v6873_v22 }
 0x181   :  { %v6132_v25 = vpop.eup %6131  ;;  %v1059_v33 = vpop.f32.mrf.mxu3  ;;  %v1457_v39 = vmul.f32 %v7102_v36, %v6130_v49 }
 0x182   :  { %v1425_v28 = vmul.f32 %v7102_v36, %v6132_v25  ;;  %v6134_v22 = vpop.eup %6133  ;;  %v1166_v25 = vadd.f32 %v6916_v12, %v7081_v62 }
 0x183   :  { %v6136_v53 = vpop.eup %6135  ;;  %v1489_v16 = vmul.f32 %v7102_v36, %v6134_v22 }
 0x184   :  { %1721 = vadd.xlane.f32.xlu2 %v1486_v58  ;;  %v1231_v58 = vadd.f32 %v7090_v17, %v1054_v51  ;;  %v7105_v51 = vpop.permute.xlu2 %1770  ;;  %v1397_v55 = vmul.f32 %v7102_v36, %v6136_v53 }
 0x186   :  { %6137 = vtanh.f32 %v1231_v58  ;;  %v7126_v58 = vpop.permute.xlu1 %1782 }
 0x187   :  { %1725 = vadd.xlane.f32.xlu1 %v1488_v31  ;;  %v7096_v31 = vpop.xlane.xlu0 %1699  ;;  %v894_v15 = vpop.f32.mrf.mxu1  ;;  %6139 = vtanh.f32 %v1196_v3  ;;  %10461 = vst [vmem:[#allocation28_spill] sm:$0xff] %v7126_v58 }
 0x188   :  { %1597 = vadd.xlane.f32.xlu0 %v1424_v19  ;;  %10458 = vst [vmem:[#allocation25_spill] sm:$0xff] %v7096_v31  ;;  %v1167_v37 = vadd.f32 %v6865_v13, %v894_v15  ;;  %v821_v19 = vpop.f32.mrf.mxu0  ;;  %v976_v48 = vpop.f32.mrf.mxu2 }
 0x189   :  { %v1200_v3 = vadd.f32 %v6882_v38, %v976_v48  ;;  %v1232_v48 = vadd.f32 %v7090_v17, %v7083_v45 }
 0x18a   :  { %6141 = vtanh.f32 %v1167_v37 }
 0x18c   :  { %1655 = vadd.xlane.f32.xlu2 %v1453_v43  ;;  %v1198_v43 = vadd.f32 %v6920_v18, %v971_v57  ;;  %v7116_v27 = vpop.permute.xlu2 %1788  ;;  %v1061_v57 = vpop.f32.mrf.mxu3 }
 0x18d   :  { %10460 = vst [vmem:[#allocation27_spill] sm:$0xff] %v7116_v27 }
 0x18e   :  { %6143 = vtanh.f32 %v1198_v43  ;;  %v7143_v62 = vpop.permute.xlu1 %1800 }
 0x18f   :  { %1659 = vadd.xlane.f32.xlu1 %v1455_v54  ;;  %v6138_v54 = vpop.eup %6137  ;;  %v7113_v59 = vpop.xlane.xlu0 %1509  ;;  %6145 = vtanh.f32 %v1136_v26 }
 0x190   :  { %1729 = vadd.xlane.f32.xlu0 %v1490_v10  ;;  %10459 = vst [vmem:[#allocation26_spill] sm:$0xff] %v7113_v59  ;;  %v1491_v18 = vmul.f32 %v7102_v36, %v6138_v54  ;;  %v6140_v61 = vpop.eup %6139  ;;  %v896_v8 = vpop.f32.mrf.mxu1  ;;  %v1138_v10 = vadd.f32 %v6875_v23, %v821_v19 }
 0x191   :  { %v6142_v42 = vpop.eup %6141  ;;  %v7123_v9 = vpop.f32.mrf.mxu0  ;;  %v1456_v56 = vmul.f32 %v7102_v36, %v6140_v61 }
 0x192   :  { %v1427_v50 = vmul.f32 %v7102_v36, %v6142_v42 }
 0x194   :  { %1535 = vadd.xlane.f32.xlu2 %v1393_v7  ;;  %v1233_v7 = vadd.f32 %v7090_v17, %v1059_v33  ;;  %v7129_v49 = vpop.permute.xlu2 %1794  ;;  %v7138_v22 = vpop.f32.mrf.mxu3 }
 0x195   :  { %10462 = vst [vmem:[#allocation29_spill] sm:$0xff] %v7129_v49 }
 0x196   :  { %6147 = vtanh.f32 %v1233_v7  ;;  %v1234_v7 = vadd.f32 %v7090_v17, %v1061_v57  ;;  %v7158_v45 = vpop.permute.xlu1 %1812  ;;  %v1199_v57 = vadd.f32 %v6882_v38, %v7094_v20 }
 0x197   :  { %1539 = vadd.xlane.f32.xlu1 %v1395_v44  ;;  %v6144_v44 = vpop.eup %6143  ;;  %6149 = vtanh.f32 %v1138_v10  ;;  %v7134_v33 = vpop.xlane.xlu0 %1633  ;;  %10466 = vst [vmem:[#allocation33_spill] sm:$0xff] %v7158_v45 }
 0x198   :  { %1663 = vadd.xlane.f32.xlu0 %v1457_v39  ;;  %v1458_v15 = vmul.f32 %v7102_v36, %v6144_v44  ;;  %10463 = vst [vmem:[#allocation30_spill] sm:$0xff] %v7134_v33  ;;  %v6146_v39 = vpop.eup %6145  ;;  %6151 = vtanh.f32 %v1166_v25  ;;  %v7140_v19 = vpop.f32.mrf.mxu1 }
 0x199   :  { %v1396_v12 = vmul.f32 %v7102_v36, %v6146_v39  ;;  %6153 = vtanh.f32 %v1200_v3  ;;  %v826_v53 = vpop.f32.mrf.mxu0 }
 0x19a   :  { %v1140_v61 = vadd.f32 %v6875_v23, %v826_v53 }
 0x19c   :  { %1595 = vadd.xlane.f32.xlu2 %v1423_v63  ;;  %v979_v63 = vpop.f32.mrf.mxu2  ;;  %v6148_v37 = vpop.eup %6147 }
 0x19d   :  { %v6150_v43 = vpop.eup %6149  ;;  %v1493_v54 = vmul.f32 %v7102_v36, %v6148_v37  ;;  %v1066_v44 = vpop.f32.mrf.mxu3  ;;  %v1201_v37 = vadd.f32 %v6882_v38, %v979_v63  ;;  %v1139_v63 = vadd.f32 %v6875_v23, %v7123_v9 }
 0x19e   :  { %v6152_v26 = vpop.eup %6151 }
 0x19f   :  { %1599 = vadd.xlane.f32.xlu1 %v1425_v28  ;;  %v1168_v28 = vadd.f32 %v6865_v13, %v896_v8  ;;  %v7155_v8 = vpop.xlane.xlu0 %1573  ;;  %v6154_v10 = vpop.eup %6153 }
 0x1a0   :  { %1543 = vadd.xlane.f32.xlu0 %v1397_v55  ;;  %v1398_v55 = vmul.f32 %v7102_v36, %v6150_v43  ;;  %10465 = vst [vmem:[#allocation32_spill] sm:$0xff] %v7155_v8  ;;  %v1460_v25 = vmul.f32 %v7102_v36, %v6154_v10 }
 0x1a1   :  { %6155 = vtanh.f32 %v1168_v28  ;;  %v829_v43 = vpop.f32.mrf.mxu0 }
 0x1a2   :  { %6157 = vtanh.f32 %v1232_v48 }
 0x1a3   :  { %6159 = vtanh.f32 %v1140_v61 }
 0x1a4   :  { %1727 = vadd.xlane.f32.xlu2 %v1489_v16  ;;  %v7146_v16 = vpop.permute.xlu2 %1806  ;;  %6161 = vtanh.f32 %v1234_v7 }
 0x1a5   :  { %10464 = vst [vmem:[#allocation31_spill] sm:$0xff] %v7146_v16  ;;  %6163 = vtanh.f32 %v1199_v57  ;;  %v1069_v20 = vpop.f32.mrf.mxu3 }
 0x1a7   :  { %1731 = vadd.xlane.f32.xlu1 %v1491_v18  ;;  %v7151_v18 = vpop.f32.mrf.mxu2  ;;  %v6156_v42 = vpop.eup %6155 }
 0x1a8   :  { %1603 = vadd.xlane.f32.xlu0 %v1427_v50  ;;  %v901_v50 = vpop.f32.mrf.mxu1  ;;  %v1428_v39 = vmul.f32 %v7102_v36, %v6156_v42  ;;  %v6158_v3 = vpop.eup %6157 }
 0x1a9   :  { %v1170_v28 = vadd.f32 %v6865_v13, %v901_v50  ;;  %v7168_v48 = vpop.xlane.xlu0 %1705 }
 0x1aa   :  { %10468 = vst [vmem:[#allocation35_spill] sm:$0xff] %v7168_v48 }
 0x1ab   :  { %6165 = vtanh.f32 %v1170_v28 }
 0x1ac   :  { %1661 = vadd.xlane.f32.xlu2 %v1456_v56  ;;  %v1426_v56 = vmul.f32 %v7102_v36, %v6152_v26  ;;  %v7171_v26 = vpop.permute.xlu1 %1830  ;;  %6167 = vtanh.f32 %v1201_v37 }
 0x1ad   :  { %10469 = vst [vmem:[#allocation36_spill] sm:$0xff] %v7171_v26  ;;  %6169 = vtanh.f32 %v1139_v63 }
 0x1af   :  { %1665 = vadd.xlane.f32.xlu1 %v1458_v15  ;;  %v7161_v15 = vpop.permute.xlu2 %1824  ;;  %v984_v53 = vpop.f32.mrf.mxu2 }
 0x1b0   :  { %1735 = vadd.xlane.f32.xlu0 %v1493_v54  ;;  %10467 = vst [vmem:[#allocation34_spill] sm:$0xff] %v7161_v15  ;;  %v904_v50 = vpop.f32.mrf.mxu1 }
 0x1b4   :  { %1541 = vadd.xlane.f32.xlu2 %v1396_v12  ;;  %v6160_v12 = vpop.eup %6159  ;;  %v7184_v37 = vpop.permute.xlu1 %1842 }
 0x1b5   :  { %v6162_v54 = vpop.eup %6161  ;;  %v1400_v61 = vmul.f32 %v7102_v36, %v6160_v12  ;;  %10470 = vst [vmem:[#allocation37_spill] sm:$0xff] %v7184_v37  ;;  %v7186_v12 = vpop.xlane.xlu0 %1639 }
 0x1b6   :  { %v1494_v10 = vmul.f32 %v7102_v36, %v6162_v54  ;;  %v6164_v42 = vpop.eup %6163  ;;  %10471 = vst [vmem:[#allocation38_spill] sm:$0xff] %v7186_v12 }
 0x1b7   :  { %1545 = vadd.xlane.f32.xlu1 %v1398_v55  ;;  %v1492_v55 = vmul.f32 %v7102_v36, %v6158_v3  ;;  %v7174_v7 = vpop.permute.xlu2 %1836  ;;  %v6166_v57 = vpop.eup %6165  ;;  %v1459_v28 = vmul.f32 %v7102_v36, %v6164_v42  ;;  %v1171_v42 = vadd.f32 %v6865_v13, %v904_v50 }
 0x1b8   :  { %1669 = vadd.xlane.f32.xlu0 %v1460_v25  ;;  %v1141_v25 = vadd.f32 %v6875_v23, %v829_v43  ;;  %v7181_v3 = vpop.f32.mrf.mxu0  ;;  %v986_v9 = vpop.f32.mrf.mxu2  ;;  %v1169_v43 = vadd.f32 %v6865_v13, %v7140_v19 }
 0x1bc   :  { %1601 = vadd.xlane.f32.xlu2 %v1426_v56  ;;  %v1236_v56 = vadd.f32 %v7090_v17, %v1066_v44  ;;  %v1430_v44 = vmul.f32 %v7102_v36, %v6166_v57  ;;  %v7198_v57 = vpop.f32.mrf.mxu1  ;;  %v7201_v0 = vpop.permute.xlu1 %1860 }
 0x1bd   :  { %10472 = vst [vmem:[#allocation39_spill] sm:$0xff] %v7201_v0 }
 0x1be   :  { %6171 = vtanh.f32 %v1236_v56 }
 0x1bf   :  { %1605 = vadd.xlane.f32.xlu1 %v1428_v39  ;;  %v6168_v39 = vpop.eup %6167  ;;  %6173 = vtanh.f32 %v1141_v25  ;;  %v7189_v54 = vpop.permute.xlu2 %1854 }
 0x1c0   :  { %1549 = vadd.xlane.f32.xlu0 %v1400_v61  ;;  %v7194_v61 = vpop.f32.mrf.mxu3  ;;  %v6170_v63 = vpop.eup %6169  ;;  %6175 = vtanh.f32 %v1169_v43 }
 0x1c1   :  { %v834_v19 = vpop.f32.mrf.mxu0  ;;  %v7208_v50 = vpop.f32.mrf.mxu2 }
 0x1c4   :  { %1733 = vadd.xlane.f32.xlu2 %v1492_v55  ;;  %v1461_v55 = vmul.f32 %v7102_v36, %v6168_v39  ;;  %v6172_v56 = vpop.eup %6171 }
 0x1c5   :  { %v6174_v25 = vpop.eup %6173  ;;  %v1496_v39 = vmul.f32 %v7102_v36, %v6172_v56 }
 0x1c6   :  { %v1401_v43 = vmul.f32 %v7102_v36, %v6174_v25  ;;  %v909_v25 = vpop.f32.mrf.mxu1 }
 0x1c7   :  { %1737 = vadd.xlane.f32.xlu1 %v1494_v10  ;;  %v1203_v10 = vadd.f32 %v6882_v38, %v984_v53  ;;  %v1235_v53 = vadd.f32 %v7090_v17, %v7138_v22  ;;  %v7216_v22 = vpop.permute.xlu1 %1873 }
 0x1c8   :  { %1609 = vadd.xlane.f32.xlu0 %v1430_v44  ;;  %v7204_v44 = vpop.permute.xlu2 %1867 }
 0x1c9   :  { %6177 = vtanh.f32 %v1203_v10  ;;  %10473 = vst [vmem:[#allocation40_spill] sm:$0xff] %v7204_v44  ;;  %v1143_v10 = vadd.f32 %v6875_v23, %v834_v19  ;;  %v1202_v19 = vadd.f32 %v6882_v38, %v7151_v18 }
 0x1ca   :  { %6179 = vtanh.f32 %v1171_v42  ;;  %v1237_v42 = vadd.f32 %v7090_v17, %v1069_v20 }
 0x1cb   :  { %6181 = vtanh.f32 %v1235_v53 }
 0x1cc   :  { %1667 = vadd.xlane.f32.xlu2 %v1459_v28  ;;  %v1399_v28 = vmul.f32 %v7102_v36, %v6170_v63  ;;  %v6176_v63 = vpop.eup %6175  ;;  %6183 = vtanh.f32 %v1143_v10  ;;  %v1204_v10 = vadd.f32 %v6882_v38, %v986_v9  ;;  %v1142_v9 = vadd.f32 %v6875_v23, %v7181_v3 }
 0x1cd   :  { %v1429_v31 = vmul.f32 %v7102_v36, %v6176_v63  ;;  %6185 = vtanh.f32 %v1237_v42  ;;  %v991_v63 = vpop.f32.mrf.mxu2 }
 0x1ce   :  { %6187 = vtanh.f32 %v1202_v19 }
 0x1cf   :  { %1671 = vadd.xlane.f32.xlu1 %v1461_v55  ;;  %v7211_v55 = vpop.xlane.xlu0 %1519  ;;  %v6178_v56 = vpop.eup %6177 }
 0x1d0   :  { %10474 = vst [vmem:[#allocation41_spill] sm:$0xff] %v7211_v55  ;;  %1741 = vadd.xlane.f32.xlu0 %v1496_v39  ;;  %v6180_v48 = vpop.eup %6179  ;;  %v1463_v39 = vmul.f32 %v7102_v36, %v6178_v56  ;;  %v7219_v12 = vpop.permute.xlu2 %1885 }
 0x1d1   :  { %10475 = vst [vmem:[#allocation42_spill] sm:$0xff] %v7219_v12  ;;  %v1431_v20 = vmul.f32 %v7102_v36, %v6180_v48  ;;  %v6182_v53 = vpop.eup %6181  ;;  %v7229_v18 = vpop.permute.xlu1 %1891 }
 0x1d2   :  { %v6184_v33 = vpop.eup %6183  ;;  %v1495_v8 = vmul.f32 %v7102_v36, %v6182_v53 }
 0x1d3   :  { %v6186_v56 = vpop.eup %6185  ;;  %v1403_v48 = vmul.f32 %v7102_v36, %v6184_v33 }
 0x1d4   :  { %1547 = vadd.xlane.f32.xlu2 %v1399_v28  ;;  %v1074_v28 = vpop.f32.mrf.mxu3  ;;  %v6188_v19 = vpop.eup %6187 }
 0x1d5   :  { %v1462_v3 = vmul.f32 %v7102_v36, %v6188_v19  ;;  %v1206_v19 = vadd.f32 %v6882_v38, %v991_v63 }
 0x1d7   :  { %1551 = vadd.xlane.f32.xlu1 %v1401_v43  ;;  %v1173_v43 = vadd.f32 %v6865_v13, %v909_v25  ;;  %v7226_v42 = vpop.xlane.xlu0 %1579 }
 0x1d8   :  { %1675 = vadd.xlane.f32.xlu0 %v1463_v39  ;;  %10476 = vst [vmem:[#allocation43_spill] sm:$0xff] %v7226_v42  ;;  %v7232_v25 = vpop.permute.xlu2 %1897  ;;  %v1497_v39 = vmul.f32 %v7102_v36, %v6186_v56  ;;  %v911_v42 = vpop.f32.mrf.mxu1 }
 0x1d9   :  { %6189 = vtanh.f32 %v1173_v43  ;;  %10477 = vst [vmem:[#allocation44_spill] sm:$0xff] %v7232_v25  ;;  %v7244_v60 = vpop.permute.xlu1 %1903 }
 0x1da   :  { %6191 = vtanh.f32 %v1204_v10  ;;  %10479 = vst [vmem:[#allocation46_spill] sm:$0xff] %v7244_v60 }
 0x1db   :  { %6193 = vtanh.f32 %v1142_v9 }
 0x1dc   :  { %1607 = vadd.xlane.f32.xlu2 %v1429_v31  ;;  %v836_v31 = vpop.f32.mrf.mxu0  ;;  %v1076_v5 = vpop.f32.mrf.mxu3 }
 0x1dd   :  { %v1144_v53 = vadd.f32 %v6875_v23, %v836_v31 }
 0x1df   :  { %1611 = vadd.xlane.f32.xlu1 %v1431_v20  ;;  %v1239_v20 = vadd.f32 %v7090_v17, %v1074_v28  ;;  %v6190_v43 = vpop.eup %6189  ;;  %v7239_v33 = vpop.xlane.xlu0 %1711 }
 0x1e0   :  { %1555 = vadd.xlane.f32.xlu0 %v1403_v48  ;;  %v6192_v10 = vpop.eup %6191  ;;  %10478 = vst [vmem:[#allocation45_spill] sm:$0xff] %v7239_v33  ;;  %v1433_v28 = vmul.f32 %v7102_v36, %v6190_v43  ;;  %v7249_v31 = vpop.permute.xlu2 %1915  ;;  %v1172_v48 = vadd.f32 %v6865_v13, %v7198_v57 }
 0x1e1   :  { %6195 = vtanh.f32 %v1239_v20  ;;  %10480 = vst [vmem:[#allocation47_spill] sm:$0xff] %v7249_v31  ;;  %v1464_v9 = vmul.f32 %v7102_v36, %v6192_v10  ;;  %v1174_v20 = vadd.f32 %v6865_v13, %v911_v42  ;;  %v7256_v33 = vpop.f32.mrf.mxu1  ;;  %v7259_v60 = vpop.permute.xlu1 %1921 }
 0x1e2   :  { %6197 = vtanh.f32 %v1144_v53  ;;  %10481 = vst [vmem:[#allocation48_spill] sm:$0xff] %v7259_v60 }
 0x1e3   :  { %6199 = vtanh.f32 %v1172_v48  ;;  %v1238_v48 = vadd.f32 %v7090_v17, %v7194_v61 }
 0x1e4   :  { %1739 = vadd.xlane.f32.xlu2 %v1495_v8  ;;  %v994_v8 = vpop.f32.mrf.mxu2  ;;  %v7241_v12 = vpop.f32.mrf.mxu0  ;;  %6201 = vtanh.f32 %v1206_v19 }
 0x1e5   :  { %v7246_v56 = vpop.f32.mrf.mxu3  ;;  %6203 = vtanh.f32 %v1174_v20  ;;  %v1240_v20 = vadd.f32 %v7090_v17, %v1076_v5 }
 0x1e6   :  { %6205 = vtanh.f32 %v1238_v48 }
 0x1e7   :  { %1743 = vadd.xlane.f32.xlu1 %v1497_v39  ;;  %v6194_v39 = vpop.eup %6193  ;;  %v7263_v10 = vpop.xlane.xlu0 %1645 }
 0x1e8   :  { %1615 = vadd.xlane.f32.xlu0 %v1433_v28  ;;  %v6196_v53 = vpop.eup %6195  ;;  %v1402_v43 = vmul.f32 %v7102_v36, %v6194_v39  ;;  %10482 = vst [vmem:[#allocation49_spill] sm:$0xff] %v7263_v10  ;;  %v7266_v42 = vpop.permute.xlu2 %1927 }
 0x1e9   :  { %v1499_v63 = vmul.f32 %v7102_v36, %v6196_v53  ;;  %v916_v44 = vpop.f32.mrf.mxu1  ;;  %v7274_v31 = vpop.xlane.xlu1 %1563 }
 0x1ea   :  { %10483 = vst [vmem:[#allocation50_spill] sm:$0xff] %v7274_v31 }
 0x1ec   :  { %1673 = vadd.xlane.f32.xlu2 %v1462_v3  ;;  %v6198_v3 = vpop.eup %6197  ;;  %v7261_v57 = vpop.f32.mrf.mxu2 }
 0x1ed   :  { %v841_v28 = vpop.f32.mrf.mxu0  ;;  %v1081_v39 = vpop.f32.mrf.mxu3 }
 0x1ee   :  { %v6200_v60 = vpop.eup %6199  ;;  %v1146_v19 = vadd.f32 %v6875_v23, %v841_v28 }
 0x1ef   :  { %1677 = vadd.xlane.f32.xlu1 %v1464_v9  ;;  %v1404_v9 = vmul.f32 %v7102_v36, %v6198_v3  ;;  %v6202_v10 = vpop.eup %6201  ;;  %v1432_v53 = vmul.f32 %v7102_v36, %v6200_v60  ;;  %v1205_v3 = vadd.f32 %v6882_v38, %v7208_v50  ;;  %v7280_v5 = vpop.xlane.xlu0 %1525  ;;  %v1176_v60 = vadd.f32 %v6865_v13, %v916_v44 }
 0x1f0   :  { %1747 = vadd.xlane.f32.xlu0 %v1499_v63  ;;  %6207 = vtanh.f32 %v1146_v19  ;;  %v1466_v61 = vmul.f32 %v7102_v36, %v6202_v10  ;;  %10484 = vst [vmem:[#allocation51_spill] sm:$0xff] %v7280_v5  ;;  %v1207_v19 = vadd.f32 %v6882_v38, %v994_v8 }
 0x1f1   :  { %6209 = vtanh.f32 %v1240_v20  ;;  %v919_v31 = vpop.f32.mrf.mxu1 }
 0x1f2   :  { %6211 = vtanh.f32 %v1205_v3  ;;  %v1242_v3 = vadd.f32 %v7090_v17, %v1081_v39 }
 0x1f3   :  { %6213 = vtanh.f32 %v1176_v60 }
 0x1f4   :  { %1553 = vadd.xlane.f32.xlu2 %v1402_v43  ;;  %v6204_v43 = vpop.eup %6203  ;;  %v999_v63 = vpop.f32.mrf.mxu2  ;;  %6215 = vtanh.f32 %v1207_v19 }
 0x1f5   :  { %v1434_v28 = vmul.f32 %v7102_v36, %v6204_v43  ;;  %v6206_v48 = vpop.eup %6205  ;;  %v1084_v20 = vpop.f32.mrf.mxu3 }
 0x1f6   :  { %v1498_v50 = vmul.f32 %v7102_v36, %v6206_v48  ;;  %v1177_v48 = vadd.f32 %v6865_v13, %v919_v31  ;;  %v1175_v31 = vadd.f32 %v6865_v13, %v7256_v33 }
 0x1f7   :  { %1557 = vadd.xlane.f32.xlu1 %v1404_v9  ;;  %v7282_v9 = vpop.xlane.xlu2 %1565  ;;  %v7295_v19 = vpop.xlane.xlu0 %1585 }
 0x1f8   :  { %1681 = vadd.xlane.f32.xlu0 %v1466_v61  ;;  %v1145_v61 = vadd.f32 %v6875_v23, %v7241_v12  ;;  %10486 = vst [vmem:[#allocation53_spill] sm:$0xff] %v7295_v19  ;;  %v1243_v19 = vadd.f32 %v7090_v17, %v1084_v20  ;;  %v1241_v20 = vadd.f32 %v7090_v17, %v7246_v56 }
 0x1fa   :  { %6217 = vtanh.f32 %v1145_v61 }
 0x1fb   :  { %6219 = vtanh.f32 %v1242_v3 }
 0x1fc   :  { %1613 = vadd.xlane.f32.xlu2 %v1432_v53  ;;  %v6208_v53 = vpop.eup %6207  ;;  %v1001_v60 = vpop.f32.mrf.mxu2  ;;  %6221 = vtanh.f32 %v1177_v48 }
 0x1fd   :  { %v6210_v10 = vpop.eup %6209  ;;  %v1406_v43 = vmul.f32 %v7102_v36, %v6208_v53  ;;  %v7299_v12 = vpop.f32.mrf.mxu3  ;;  %6223 = vtanh.f32 %v1175_v31 }
 0x1fe   :  { %v1500_v44 = vmul.f32 %v7102_v36, %v6210_v10  ;;  %v6212_v8 = vpop.eup %6211 }
 0x1ff   :  { %1617 = vadd.xlane.f32.xlu1 %v1434_v28  ;;  %v7291_v28 = vpop.xlane.xlu1 %1695  ;;  %v7297_v53 = vpop.xlane.xlu2 %1697  ;;  %v1465_v10 = vmul.f32 %v7102_v36, %v6212_v8 }
 0x200   :  { %10485 = vst [vmem:[#allocation52_spill] sm:$0xff] %v7291_v28  ;;  %1561 = vadd.xlane.f32.xlu0 %v1406_v43  ;;  %v1209_v28 = vadd.f32 %v6882_v38, %v999_v63 }
 0x201   :  { %10487 = vst [vmem:[#allocation54_spill] sm:$0xff] %v7297_v53 }
 0x202   :  { %6225 = vtanh.f32 %v1209_v28 }
 0x203   :  { %6227 = vtanh.f32 %v1243_v19 }
 0x204   :  { %1745 = vadd.xlane.f32.xlu2 %v1498_v50  ;;  %v6214_v50 = vpop.eup %6213  ;;  %v7310_v48 = vpop.f32.mrf.mxu2  ;;  %6229 = vtanh.f32 %v1241_v20 }
 0x205   :  { %v6216_v23 = vpop.eup %6215  ;;  %v1436_v39 = vmul.f32 %v7102_v36, %v6214_v50  ;;  %v7312_v50 = vpop.xlane.xlu0 %1717 }
 0x206   :  { %v1467_v43 = vmul.f32 %v7102_v36, %v6216_v23  ;;  %10489 = vst [vmem:[#allocation56_spill] sm:$0xff] %v7312_v50  ;;  %v1089_v23 = vpop.f32.mrf.mxu3 }
 0x207   :  { %1749 = vadd.xlane.f32.xlu1 %v1500_v44  ;;  %v6218_v44 = vpop.eup %6217  ;;  %v7307_v61 = vpop.xlane.xlu1 %1629 }
 0x208   :  { %1621 = vadd.xlane.f32.xlu0 %v1436_v39  ;;  %10488 = vst [vmem:[#allocation55_spill] sm:$0xff] %v7307_v61  ;;  %v6220_v8 = vpop.eup %6219  ;;  %v1405_v33 = vmul.f32 %v7102_v36, %v6218_v44  ;;  %v1210_v44 = vadd.f32 %v6882_v38, %v1001_v60  ;;  %v1208_v60 = vadd.f32 %v6882_v38, %v7261_v57 }
 0x209   :  { %v6222_v3 = vpop.eup %6221  ;;  %v1502_v63 = vmul.f32 %v7102_v36, %v6220_v8 }
 0x20a   :  { %v1437_v39 = vmul.f32 %v7102_v36, %v6222_v3  ;;  %v6224_v31 = vpop.eup %6223 }
 0x20b   :  { %v6226_v50 = vpop.eup %6225 }
 0x20c   :  { %1679 = vadd.xlane.f32.xlu2 %v1465_v10  ;;  %v7315_v10 = vpop.xlane.xlu2 %1631  ;;  %v6228_v28 = vpop.eup %6227  ;;  %v1469_v3 = vmul.f32 %v7102_v36, %v6226_v50 }
 0x20d   :  { %v1006_v8 = vpop.f32.mrf.mxu2  ;;  %v7326_v56 = vpop.xlane.xlu0 %1651 }
 0x20e   :  { %10491 = vst [vmem:[#allocation58_spill] sm:$0xff] %v7326_v56  ;;  %v6230_v20 = vpop.eup %6229 }
 0x20f   :  { %1683 = vadd.xlane.f32.xlu1 %v1467_v43  ;;  %v1245_v43 = vadd.f32 %v7090_v17, %v1089_v23  ;;  %v7323_v19 = vpop.xlane.xlu1 %1569  ;;  %v1503_v23 = vmul.f32 %v7102_v36, %v6228_v28 }
 0x210   :  { %1753 = vadd.xlane.f32.xlu0 %v1502_v63  ;;  %10490 = vst [vmem:[#allocation57_spill] sm:$0xff] %v7323_v19 }
 0x211   :  { %6231 = vtanh.f32 %v1245_v43 }
 0x212   :  { %6233 = vtanh.f32 %v1210_v44  ;;  %v921_v44 = vpop.f32.mrf.mxu1 }
 0x213   :  { %6235 = vtanh.f32 %v1208_v60  ;;  %v1178_v57 = vadd.f32 %v6865_v13, %v921_v44 }
 0x214   :  { %1559 = vadd.xlane.f32.xlu2 %v1405_v33  ;;  %v1435_v33 = vmul.f32 %v7102_v36, %v6224_v31  ;;  %v7329_v63 = vpop.xlane.xlu2 %1571 }
 0x217   :  { %1623 = vadd.xlane.f32.xlu1 %v1437_v39  ;;  %v1212_v39 = vadd.f32 %v6882_v38, %v1006_v8  ;;  %v6232_v31 = vpop.eup %6231  ;;  %v7336_v50 = vpop.xlane.xlu1 %1701 }
 0x218   :  { %1687 = vadd.xlane.f32.xlu0 %v1469_v3  ;;  %v6234_v43 = vpop.eup %6233  ;;  %10492 = vst [vmem:[#allocation59_spill] sm:$0xff] %v7336_v50  ;;  %v1505_v61 = vmul.f32 %v7102_v36, %v6232_v31  ;;  %v7341_v3 = vpop.xlane.xlu0 %1531  ;;  %v1244_v31 = vadd.f32 %v7090_v17, %v7299_v12 }
 0x219   :  { %6237 = vtanh.f32 %v1212_v39  ;;  %v1470_v28 = vmul.f32 %v7102_v36, %v6234_v43  ;;  %10493 = vst [vmem:[#allocation60_spill] sm:$0xff] %v7341_v3  ;;  %v6236_v8 = vpop.eup %6235 }
 0x21a   :  { %6239 = vtanh.f32 %v1178_v57  ;;  %v7357_v57 = vadd.s32 104, %v6755_v1 }
 0x21b   :  { %6241 = vtanh.f32 %v1244_v31  ;;  %v7369_v31 = vld [vmem:[#allocation11] sm:$0xff] }
 0x21c   :  { %1619 = vadd.xlane.f32.xlu2 %v1435_v33  ;;  %v1501_v33 = vmul.f32 %v7102_v36, %v6230_v20  ;;  %v1468_v20 = vmul.f32 %v7102_v36, %v6236_v8  ;;  %v7557_v15 = vperm.slane %v7369_v31, 6 }
 0x21d   :  { %5891 = vset.pattern.permute.xlu2 %v7357_v57 }
 0x21f   :  { %1755 = vadd.xlane.f32.xlu1 %v1503_v23  ;;  %v7343_v23 = vpop.xlane.xlu2 %1703  ;;  %v6238_v60 = vpop.eup %6237 }
 0x220   :  { %1759 = vadd.xlane.f32.xlu0 %v1505_v61  ;;  %10494 = vst [vmem:[#allocation61_spill] sm:$0xff] %v7343_v23  ;;  %v1472_v39 = vmul.f32 %v7102_v36, %v6238_v60  ;;  %v7349_v13 = vpop.xlane.xlu1 %1511  ;;  %v6240_v43 = vpop.eup %6239 }
 0x221   :  { %10495 = vst [vmem:[#allocation62_spill] sm:$0xff] %v7349_v13  ;;  %v7351_v44 = vpop.xlane.xlu0 %1591  ;;  %v6242_v12 = vpop.eup %6241 }
 0x222   :  { %10496 = vst [vmem:[#allocation63_spill] sm:$0xff] %v7351_v44 }
 0x224   :  { %1751 = vadd.xlane.f32.xlu2 %v1501_v33  ;;  %v1438_v33 = vmul.f32 %v7102_v36, %v6240_v43  ;;  %v7372_v43 = vperm.slane %v7369_v31, 3 }
 0x227   :  { %1689 = vadd.xlane.f32.xlu1 %v1470_v28  ;;  %v7353_v61 = vpop.xlane.xlu2 %1637  ;;  %v1211_v28 = vadd.f32 %v6882_v38, %v7310_v48 }
 0x228   :  { %1693 = vadd.xlane.f32.xlu0 %v1472_v39  ;;  %v7362_v8 = vpop.xlane.xlu1 %1635 }
 0x229   :  { %10497 = vst [vmem:[#allocation64_spill] sm:$0xff] %v7362_v8  ;;  %6243 = vtanh.f32 %v1211_v28  ;;  %v7364_v60 = vpop.xlane.xlu0 %1723 }
 0x22a   :  { %10498 = vst [vmem:[#allocation65_spill] sm:$0xff] %v7364_v60 }
 0x22c   :  { %1685 = vadd.xlane.f32.xlu2 %v1468_v20  ;;  %v1504_v20 = vmul.f32 %v7102_v36, %v6242_v12 }
 0x22f   :  { %v7367_v39 = vpop.xlane.xlu2 %1515 }
 0x230   :  { %10499 = vst [vmem:[#allocation66_spill] sm:$0xff] %v7367_v39  ;;  %v7375_v38 = vpop.xlane.xlu1 %1513 }
 0x231   :  { %10500 = vst [vmem:[#allocation67_spill] sm:$0xff] %v7375_v38  ;;  %v7379_v28 = vpop.xlane.xlu0 %1657 }
 0x232   :  { %10501 = vst [vmem:[#allocation68_spill] sm:$0xff] %v7379_v28 }
 0x234   :  { %1625 = vadd.xlane.f32.xlu2 %v1438_v33  ;;  %v6244_v33 = vpop.eup %6243 }
 0x235   :  { %v1471_v48 = vmul.f32 %v7102_v36, %v6244_v33  ;;  %v1091_v33 = vpop.f32.mrf.mxu3 }
 0x236   :  { %v1246_v28 = vadd.f32 %v7090_v17, %v1091_v33 }
 0x237   :  { %v7381_v12 = vpop.xlane.xlu2 %1517 }
 0x238   :  { %6245 = vtanh.f32 %v1246_v28 }
 0x239   :  { %v7387_v50 = vpop.xlane.xlu0 %1537 }
 0x23a   :  { %10503 = vst [vmem:[#allocation70_spill] sm:$0xff] %v7387_v50 }
 0x23c   :  { %1757 = vadd.xlane.f32.xlu2 %v1504_v20  ;;  %2061 = vperm.xlu0 %5907, %v7372_v43   ;;  %v7385_v20 = vpop.xlane.xlu1 %1575 }
 0x23d   :  { %10502 = vst [vmem:[#allocation69_spill] sm:$0xff] %v7385_v20 }
 0x23f   :  { %v7389_v60 = vpop.xlane.xlu2 %1577 }
 0x240   :  { %1933 = vperm.xlu1 %5890, %v6841_v52  }
 0x241   :  { %v7394_v56 = vpop.xlane.xlu0 %1597 }
 0x242   :  { %10505 = vst [vmem:[#allocation72_spill] sm:$0xff] %v7394_v56 }
 0x244   :  { %1691 = vadd.xlane.f32.xlu2 %v1471_v48  ;;  %5912 = vset.pattern.permute.xlu0 %v6784_v14  ;;  %v7392_v8 = vpop.xlane.xlu1 %1707 }
 0x245   :  { %10504 = vst [vmem:[#allocation71_spill] sm:$0xff] %v7392_v8  ;;  %v6246_v8 = vpop.eup %6245 }
 0x246   :  { %v1506_v56 = vmul.f32 %v7102_v36, %v6246_v8 }
 0x247   :  { %v7396_v48 = vpop.xlane.xlu2 %1709 }
 0x248   :  { %5892 = vset.pattern.permute.xlu1 %v6833_v46  ;;  %10506 = vst [vmem:[#allocation73_spill] sm:$0xff] %v7396_v48 }
 0x249   :  { %v7403_v19 = vpop.xlane.xlu0 %1729 }
 0x24a   :  { %10508 = vst [vmem:[#allocation75_spill] sm:$0xff] %v7403_v19 }
 0x24c   :  { %2091 = vperm.xlu0 %5912, %v7372_v43   ;;  %v7401_v20 = vpop.xlane.xlu1 %1641 }
 0x24d   :  { %10507 = vst [vmem:[#allocation74_spill] sm:$0xff] %v7401_v20  ;;  %v7434_v20 = vperm.slane %v7369_v31, 4 }
 0x24f   :  { %v7406_v44 = vpop.xlane.xlu2 %1643 }
 0x251   :  { %v7413_v17 = vpop.xlane.xlu0 %1663 }
 0x252   :  { %10510 = vst [vmem:[#allocation77_spill] sm:$0xff] %v7413_v17 }
 0x254   :  { %5917 = vset.pattern.permute.xlu0 %v6806_v30  ;;  %v7410_v26 = vpop.xlane.xlu1 %1521 }
 0x255   :  { %10509 = vst [vmem:[#allocation76_spill] sm:$0xff] %v7410_v26 }
 0x257   :  { %v7416_v28 = vpop.xlane.xlu2 %1523 }
 0x259   :  { %v7422_v19 = vpop.xlane.xlu0 %1543 }
 0x25a   :  { %10512 = vst [vmem:[#allocation79_spill] sm:$0xff] %v7422_v19 }
 0x25c   :  { %1945 = vperm.xlu2 %5891, %v6841_v52   ;;  %2121 = vperm.xlu0 %5917, %v7372_v43   ;;  %v7419_v33 = vpop.xlane.xlu1 %1581 }
 0x25d   :  { %10511 = vst [vmem:[#allocation78_spill] sm:$0xff] %v7419_v33 }
 0x25f   :  { %v7424_v36 = vpop.xlane.xlu2 %1583 }
 0x261   :  { %v7436_v17 = vpop.xlane.xlu0 %1603 }
 0x262   :  { %10514 = vst [vmem:[#allocation81_spill] sm:$0xff] %v7436_v17 }
 0x264   :  { %5893 = vset.pattern.permute.xlu2 %v6826_v41  ;;  %5922 = vset.pattern.permute.xlu0 %v6826_v41  ;;  %v7431_v8 = vpop.xlane.xlu1 %1713 }
 0x265   :  { %10513 = vst [vmem:[#allocation80_spill] sm:$0xff] %v7431_v8 }
 0x267   :  { %v7438_v33 = vpop.xlane.xlu2 %1715 }
 0x268   :  { %10515 = vst [vmem:[#allocation82_spill] sm:$0xff] %v7438_v33 }
 0x269   :  { %v7445_v45 = vpop.xlane.xlu0 %1735 }
 0x26a   :  { %1761 = vadd.xlane.f32.xlu1 %v1506_v56  ;;  %v7427_v56 = vperm.slane %v7369_v31, 2  ;;  %10517 = vst [vmem:[#allocation84_spill] sm:$0xff] %v7445_v45 }
 0x26c   :  { %1957 = vperm.xlu2 %5893, %v6841_v52   ;;  %2151 = vperm.xlu0 %5922, %v7372_v43   ;;  %v7443_v25 = vpop.xlane.xlu1 %1647 }
 0x26d   :  { %10516 = vst [vmem:[#allocation83_spill] sm:$0xff] %v7443_v25 }
 0x26f   :  { %v7448_v8 = vpop.xlane.xlu2 %1649 }
 0x271   :  { %v7456_v26 = vpop.xlane.xlu0 %1669 }
 0x272   :  { %10519 = vst [vmem:[#allocation86_spill] sm:$0xff] %v7456_v26 }
 0x274   :  { %5895 = vset.pattern.permute.xlu2 %v6759_v2  ;;  %5927 = vset.pattern.permute.xlu0 %v6791_v21  ;;  %v7452_v17 = vpop.xlane.xlu1 %1527 }
 0x275   :  { %10518 = vst [vmem:[#allocation85_spill] sm:$0xff] %v7452_v17 }
 0x277   :  { %v7459_v25 = vpop.xlane.xlu2 %1529 }
 0x279   :  { %v7466_v19 = vpop.xlane.xlu0 %1549 }
 0x27a   :  { %10521 = vst [vmem:[#allocation88_spill] sm:$0xff] %v7466_v19 }
 0x27c   :  { %1976 = vperm.xlu2 %5895, %v7427_v56   ;;  %2182 = vperm.xlu0 %5927, %v7434_v20   ;;  %v7463_v45 = vpop.xlane.xlu1 %1587 }
 0x27d   :  { %10520 = vst [vmem:[#allocation87_spill] sm:$0xff] %v7463_v45  ;;  %v7483_v45 = vperm.slane %v7369_v31, 5 }
 0x27f   :  { %v7468_v17 = vpop.xlane.xlu2 %1589 }
 0x281   :  { %v7475_v49 = vpop.xlane.xlu0 %1609 }
 0x282   :  { %10523 = vst [vmem:[#allocation90_spill] sm:$0xff] %v7475_v49 }
 0x283   :  { %1951 = vperm.xlu1 %5892, %v6841_v52  }
 0x284   :  { %5897 = vset.pattern.permute.xlu2 %v6791_v21  ;;  %5932 = vset.pattern.permute.xlu0 %v6813_v34  ;;  %v7473_v26 = vpop.xlane.xlu1 %1719 }
 0x285   :  { %10522 = vst [vmem:[#allocation89_spill] sm:$0xff] %v7473_v26 }
 0x287   :  { %v7477_v39 = vpop.xlane.xlu2 %1721 }
 0x288   :  { %10524 = vst [vmem:[#allocation91_spill] sm:$0xff] %v7477_v39 }
 0x289   :  { %v7487_v0 = vpop.xlane.xlu0 %1741 }
 0x28a   :  { %10526 = vst [vmem:[#allocation93_spill] sm:$0xff] %v7487_v0 }
 0x28b   :  { %5894 = vset.pattern.permute.xlu1 %v6755_v1 }
 0x28c   :  { %1988 = vperm.xlu2 %5897, %v7427_v56   ;;  %2212 = vperm.xlu0 %5932, %v7434_v20   ;;  %v7485_v19 = vpop.xlane.xlu1 %1653 }
 0x28d   :  { %10525 = vst [vmem:[#allocation92_spill] sm:$0xff] %v7485_v19 }
 0x28f   :  { %v7490_v26 = vpop.xlane.xlu2 %1655 }
 0x291   :  { %v7498_v50 = vpop.xlane.xlu0 %1675 }
 0x292   :  { %10528 = vst [vmem:[#allocation95_spill] sm:$0xff] %v7498_v50 }
 0x293   :  { %1964 = vperm.xlu1 %5894, %v7427_v56  }
 0x294   :  { %5899 = vset.pattern.permute.xlu2 %v6794_v24  ;;  %5937 = vset.pattern.permute.xlu0 %v6833_v46  ;;  %v7494_v49 = vpop.xlane.xlu1 %1533 }
 0x295   :  { %10527 = vst [vmem:[#allocation94_spill] sm:$0xff] %v7494_v49 }
 0x297   :  { %v7501_v19 = vpop.xlane.xlu2 %1535 }
 0x299   :  { %v7508_v58 = vpop.xlane.xlu0 %1555 }
 0x29a   :  { %10530 = vst [vmem:[#allocation97_spill] sm:$0xff] %v7508_v58 }
 0x29b   :  { %5896 = vset.pattern.permute.xlu1 %v6781_v11 }
 0x29c   :  { %2006 = vperm.xlu2 %5899, %v7427_v56   ;;  %2242 = vperm.xlu0 %5937, %v7434_v20   ;;  %v7505_v0 = vpop.xlane.xlu1 %1593 }
 0x29d   :  { %10529 = vst [vmem:[#allocation96_spill] sm:$0xff] %v7505_v0 }
 0x29f   :  { %v7510_v49 = vpop.xlane.xlu2 %1595 }
 0x2a1   :  { %v7517_v13 = vpop.xlane.xlu0 %1615 }
 0x2a2   :  { %10532 = vst [vmem:[#allocation99_spill] sm:$0xff] %v7517_v13 }
 0x2a3   :  { %1982 = vperm.xlu1 %5896, %v7427_v56  }
 0x2a4   :  { %5901 = vset.pattern.permute.xlu2 %v6813_v34  ;;  %5942 = vset.pattern.permute.xlu0 %v6781_v11  ;;  %v7515_v50 = vpop.xlane.xlu1 %1725 }
 0x2a5   :  { %10531 = vst [vmem:[#allocation98_spill] sm:$0xff] %v7515_v50 }
 0x2a7   :  { %v7519_v37 = vpop.xlane.xlu2 %1727 }
 0x2a8   :  { %10533 = vst [vmem:[#allocation100_spill] sm:$0xff] %v7519_v37 }
 0x2a9   :  { %v7526_v58 = vpop.xlane.xlu0 %1747 }
 0x2aa   :  { %10535 = vst [vmem:[#allocation102_spill] sm:$0xff] %v7526_v58 }
 0x2ab   :  { %5898 = vset.pattern.permute.xlu1 %v6784_v14 }
 0x2ac   :  { %2018 = vperm.xlu2 %5901, %v7427_v56   ;;  %2273 = vperm.xlu0 %5942, %v7483_v45   ;;  %v7524_v0 = vpop.xlane.xlu1 %1659 }
 0x2ad   :  { %10534 = vst [vmem:[#allocation101_spill] sm:$0xff] %v7524_v0 }
 0x2af   :  { %v7529_v3 = vpop.xlane.xlu2 %1661 }
 0x2b1   :  { %v7537_v13 = vpop.xlane.xlu0 %1681 }
 0x2b2   :  { %10537 = vst [vmem:[#allocation104_spill] sm:$0xff] %v7537_v13 }
 0x2b3   :  { %1994 = vperm.xlu1 %5898, %v7427_v56  }
 0x2b4   :  { %5903 = vset.pattern.permute.xlu2 %v6816_v35  ;;  %5943 = vset.pattern.permute.xlu0 %v6858_v4  ;;  %v7533_v50 = vpop.xlane.xlu1 %1539 }
 0x2b5   :  { %10536 = vst [vmem:[#allocation103_spill] sm:$0xff] %v7533_v50 }
 0x2b7   :  { %v7540_v0 = vpop.xlane.xlu2 %1541 }
 0x2b9   :  { %v7547_v37 = vpop.xlane.xlu0 %1561 }
 0x2ba   :  { %10539 = vst [vmem:[#allocation106_spill] sm:$0xff] %v7547_v37 }
 0x2bb   :  { %5900 = vset.pattern.permute.xlu1 %v6858_v4 }
 0x2bc   :  { %2036 = vperm.xlu2 %5903, %v7427_v56   ;;  %1818 = vperm.xlu0 %5943, %v6768_v6   ;;  %v7544_v58 = vpop.xlane.xlu1 %1599 }
 0x2bd   :  { %10538 = vst [vmem:[#allocation105_spill] sm:$0xff] %v7544_v58 }
 0x2bf   :  { %v7549_v50 = vpop.xlane.xlu2 %1601 }
 0x2c1   :  { %v7559_v5 = vpop.xlane.xlu0 %1621 }
 0x2c2   :  { %10541 = vst [vmem:[#allocation108_spill] sm:$0xff] %v7559_v5 }
 0x2c3   :  { %2012 = vperm.xlu1 %5900, %v7427_v56  }
 0x2c4   :  { %5905 = vset.pattern.permute.xlu2 %v6833_v46  ;;  %2303 = vperm.xlu0 %5943, %v7483_v45   ;;  %v7554_v13 = vpop.xlane.xlu1 %1731 }
 0x2c5   :  { %10540 = vst [vmem:[#allocation107_spill] sm:$0xff] %v7554_v13 }
 0x2c7   :  { %v7561_v58 = vpop.xlane.xlu2 %1733 }
 0x2c8   :  { %10542 = vst [vmem:[#allocation109_spill] sm:$0xff] %v7561_v58 }
 0x2c9   :  { %v7568_v39 = vpop.xlane.xlu0 %1753 }
 0x2ca   :  { %10544 = vst [vmem:[#allocation111_spill] sm:$0xff] %v7568_v39 }
 0x2cb   :  { %5902 = vset.pattern.permute.xlu1 %v6806_v30 }
 0x2cc   :  { %2048 = vperm.xlu2 %5905, %v7427_v56   ;;  %5948 = vset.pattern.permute.xlu0 %v7357_v57  ;;  %v7566_v37 = vpop.xlane.xlu1 %1665 }
 0x2cd   :  { %10543 = vst [vmem:[#allocation110_spill] sm:$0xff] %v7566_v37 }
 0x2cf   :  { %v7571_v13 = vpop.xlane.xlu2 %1667 }
 0x2d1   :  { %v7579_v58 = vpop.xlane.xlu0 %1687 }
 0x2d2   :  { %10546 = vst [vmem:[#allocation113_spill] sm:$0xff] %v7579_v58 }
 0x2d3   :  { %2024 = vperm.xlu1 %5902, %v7427_v56  }
 0x2d4   :  { %5908 = vset.pattern.permute.xlu2 %v6836_v47  ;;  %1848 = vperm.xlu0 %5948, %v6768_v6   ;;  %v7575_v5 = vpop.xlane.xlu1 %1545 }
 0x2d5   :  { %10545 = vst [vmem:[#allocation112_spill] sm:$0xff] %v7575_v5 }
 0x2d7   :  { %v7582_v37 = vpop.xlane.xlu2 %1547 }
 0x2d9   :  { %v7589_v16 = vpop.xlane.xlu0 %1759 }
 0x2da   :  { %10548 = vst [vmem:[#allocation115_spill] sm:$0xff] %v7589_v16 }
 0x2db   :  { %5904 = vset.pattern.permute.xlu1 %v7357_v57 }
 0x2dc   :  { %2067 = vperm.xlu2 %5908, %v7372_v43   ;;  %2333 = vperm.xlu0 %5948, %v7483_v45   ;;  %v7586_v39 = vpop.xlane.xlu1 %1605 }
 0x2dd   :  { %10547 = vst [vmem:[#allocation114_spill] sm:$0xff] %v7586_v39 }
 0x2df   :  { %v7591_v5 = vpop.xlane.xlu2 %1607 }
 0x2e1   :  { %v7598_v55 = vpop.xlane.xlu0 %1693 }
 0x2e2   :  { %10550 = vst [vmem:[#allocation117_spill] sm:$0xff] %v7598_v55 }
 0x2e3   :  { %2042 = vperm.xlu1 %5904, %v7427_v56  }
 0x2e4   :  { %5910 = vset.pattern.permute.xlu2 %v6781_v11  ;;  %5953 = vset.pattern.permute.xlu0 %v6759_v2  ;;  %v7596_v58 = vpop.xlane.xlu1 %1737 }
 0x2e5   :  { %10549 = vst [vmem:[#allocation116_spill] sm:$0xff] %v7596_v58 }
 0x2e7   :  { %v7600_v27 = vpop.xlane.xlu2 %1739 }
 0x2e8   :  { %10551 = vst [vmem:[#allocation118_spill] sm:$0xff] %v7600_v27 }
 0x2e9   :  { %v7607_v39 = vpop.permute.xlu0 %2061 }
 0x2ea   :  { %10553 = vst [vmem:[#allocation120_spill] sm:$0xff] %v7607_v39 }
 0x2eb   :  { %5906 = vset.pattern.permute.xlu1 %v6826_v41 }
 0x2ec   :  { %2079 = vperm.xlu2 %5910, %v7372_v43   ;;  %1879 = vperm.xlu0 %5953, %v6841_v52   ;;  %v7605_v16 = vpop.xlane.xlu1 %1671 }
 0x2ed   :  { %10552 = vst [vmem:[#allocation119_spill] sm:$0xff] %v7605_v16 }
 0x2ef   :  { %v7610_v38 = vpop.xlane.xlu2 %1673 }
 0x2f1   :  { %v7614_v58 = vpop.permute.xlu0 %2091 }
 0x2f3   :  { %2054 = vperm.xlu1 %5906, %v7427_v56  }
 0x2f4   :  { %5913 = vset.pattern.permute.xlu2 %v6803_v29  ;;  %2364 = vperm.xlu0 %5953, %v7557_v15   ;;  %v7616_v55 = vpop.xlane.xlu1 %1551 }
 0x2f5   :  { %10554 = vst [vmem:[#allocation121_spill] sm:$0xff] %v7616_v55 }
 0x2f9   :  { %v7623_v16 = vpop.permute.xlu0 %2121 }
 0x2fa   :  { %10555 = vst [vmem:[#allocation122_spill] sm:$0xff] %v7623_v16 }
 0x2fb   :  { %5909 = vset.pattern.permute.xlu1 %v6759_v2 }
 0x2fc   :  { %2097 = vperm.xlu2 %5913, %v7372_v43   ;;  %5958 = vset.pattern.permute.xlu0 %v6794_v24  ;;  %v7627_v39 = vpop.xlane.xlu1 %1611 }
 0x2fd   :  { %10556 = vst [vmem:[#allocation123_spill] sm:$0xff] %v7627_v39 }
 0x301   :  { %v7632_v55 = vpop.permute.xlu0 %2151 }
 0x302   :  { %10557 = vst [vmem:[#allocation124_spill] sm:$0xff] %v7632_v55 }
 0x303   :  { %2073 = vperm.xlu1 %5909, %v7372_v43  }
 0x304   :  { %5915 = vset.pattern.permute.xlu2 %v6858_v4  ;;  %1909 = vperm.xlu0 %5958, %v6841_v52   ;;  %v7637_v59 = vpop.xlane.xlu1 %1743 }
 0x305   :  { %10558 = vst [vmem:[#allocation125_spill] sm:$0xff] %v7637_v59 }
 0x309   :  { %v7642_v16 = vpop.permute.xlu0 %2182 }
 0x30b   :  { %5911 = vset.pattern.permute.xlu1 %v6791_v21 }
 0x30c   :  { %2109 = vperm.xlu2 %5915, %v7372_v43   ;;  %2394 = vperm.xlu0 %5958, %v7557_v15   ;;  %v7649_v55 = vpop.xlane.xlu1 %1677 }
 0x30d   :  { %10560 = vst [vmem:[#allocation127_spill] sm:$0xff] %v7649_v55 }
 0x311   :  { %v7651_v33 = vpop.permute.xlu0 %2212 }
 0x312   :  { %10561 = vst [vmem:[#allocation128_spill] sm:$0xff] %v7651_v33 }
 0x313   :  { %2085 = vperm.xlu1 %5911, %v7372_v43  }
 0x314   :  { %5918 = vset.pattern.permute.xlu2 %v6823_v40  ;;  %5963 = vset.pattern.permute.xlu0 %v6816_v35 }
 0x31b   :  { %5914 = vset.pattern.permute.xlu1 %v6794_v24 }
 0x31c   :  { %2127 = vperm.xlu2 %5918, %v7372_v43   ;;  %1939 = vperm.xlu0 %5963, %v6841_v52   ;;  %v7621_v52 = vpop.xlane.xlu2 %1553 }
 0x323   :  { %2103 = vperm.xlu1 %5914, %v7372_v43  }
 0x324   :  { %5920 = vset.pattern.permute.xlu2 %v7357_v57  ;;  %2424 = vperm.xlu0 %5963, %v7557_v15   ;;  %v7630_v27 = vpop.xlane.xlu2 %1613 }
 0x32b   :  { %5916 = vset.pattern.permute.xlu1 %v6813_v34 }
 0x32c   :  { %2139 = vperm.xlu2 %5920, %v7372_v43   ;;  %5968 = vset.pattern.permute.xlu0 %v6836_v47  ;;  %v7644_v39 = vpop.xlane.xlu2 %1745 }
 0x32d   :  { %10559 = vst [vmem:[#allocation126_spill] sm:$0xff] %v7644_v39  ;;  %v7660_v39 = vpop.xlane.xlu1 %1557 }
 0x32e   :  { %10564 = vst [vmem:[#allocation131_spill] sm:$0xff] %v7660_v39 }
 0x333   :  { %2115 = vperm.xlu1 %5916, %v7372_v43  }
 0x334   :  { %5923 = vset.pattern.permute.xlu2 %v6755_v1  ;;  %1776 = vperm.xlu0 %5968, %v6768_v6   ;;  %v7640_v6 = vperm.slane %v7369_v31, 7  ;;  %v7654_v59 = vpop.xlane.xlu2 %1679  ;;  %v7658_v31 = vpop.permute.xlu0 %2242 }
 0x335   :  { %10562 = vst [vmem:[#allocation129_spill] sm:$0xff] %v7654_v59 }
 0x336   :  { %10563 = vst [vmem:[#allocation130_spill] sm:$0xff] %v7658_v31 }
 0x33b   :  { %5919 = vset.pattern.permute.xlu1 %v6816_v35 }
 0x33c   :  { %2158 = vperm.xlu2 %5923, %v7434_v20   ;;  %1970 = vperm.xlu0 %5968, %v7427_v56   ;;  %v7665_v55 = vpop.xlane.xlu2 %1559  ;;  %v7667_v33 = vpop.permute.xlu0 %2273 }
 0x33d   :  { %10565 = vst [vmem:[#allocation132_spill] sm:$0xff] %v7667_v33 }
 0x343   :  { %2133 = vperm.xlu1 %5919, %v7372_v43  }
 0x344   :  { %5925 = vset.pattern.permute.xlu2 %v6759_v2  ;;  %2455 = vperm.xlu0 %5968, %v7640_v6   ;;  %v7674_v31 = vpop.xlane.xlu2 %1619  ;;  %v1819_v39 = vpop.permute.xlu0 %1818 }
 0x34b   :  { %5921 = vset.pattern.permute.xlu1 %v6833_v46 }
 0x34c   :  { %2170 = vperm.xlu2 %5925, %v7434_v20   ;;  %5973 = vset.pattern.permute.xlu0 %v6803_v29  ;;  %v7681_v23 = vpop.xlane.xlu2 %1751  ;;  %v7683_v53 = vpop.permute.xlu0 %2303 }
 0x34d   :  { %10568 = vst [vmem:[#allocation135_spill] sm:$0xff] %v7681_v23 }
 0x34e   :  { %10569 = vst [vmem:[#allocation136_spill] sm:$0xff] %v7683_v53  ;;  %v10293_v53 = vmov 0  }
 0x353   :  { %2145 = vperm.xlu1 %5921, %v7372_v43   ;;  %v7671_v43 = vpop.xlane.xlu1 %1617 }
 0x354   :  { %5928 = vset.pattern.permute.xlu2 %v6784_v14  ;;  %2000 = vperm.xlu0 %5973, %v7427_v56   ;;  %10566 = vst [vmem:[#allocation133_spill] sm:$0xff] %v7671_v43  ;;  %v7690_v59 = vpop.permute.xlu0 %1848  ;;  %v7693_v33 = vpop.xlane.xlu2 %1685 }
 0x355   :  { %10571 = vst [vmem:[#allocation138_spill] sm:$0xff] %v7690_v59  ;;  %v7713_v59 = vadd.f32 %v7143_v62, %v7381_v12 }
 0x357   :  { %10575 = vst [vmem:[#allocation142_spill] sm:$0xff] %v7713_v59 }
 0x35b   :  { %5924 = vset.pattern.permute.xlu1 %v6836_v47  ;;  %v7679_v48 = vpop.xlane.xlu1 %1749 }
 0x35c   :  { %2188 = vperm.xlu2 %5928, %v7434_v20   ;;  %2485 = vperm.xlu0 %5973, %v7640_v6   ;;  %10567 = vst [vmem:[#allocation134_spill] sm:$0xff] %v7679_v48  ;;  %v7699_v48 = vadd.f32 %v7105_v51, %v7065_v32  ;;  %v7709_v23 = vpop.xlane.xlu2 %1625 }
 0x35e   :  { %10572 = vst [vmem:[#allocation139_spill] sm:$0xff] %v7699_v48 }
 0x363   :  { %2164 = vperm.xlu1 %5924, %v7434_v20   ;;  %v7688_v43 = vpop.xlane.xlu1 %1683 }
 0x364   :  { %5930 = vset.pattern.permute.xlu2 %v6794_v24  ;;  %5978 = vset.pattern.permute.xlu0 %v6823_v40  ;;  %10570 = vst [vmem:[#allocation137_spill] sm:$0xff] %v7688_v43  ;;  %v7706_v43 = vpop.permute.xlu0 %2333 }
 0x365   :  { %10574 = vst [vmem:[#allocation141_spill] sm:$0xff] %v7706_v43 }
 0x36b   :  { %5926 = vset.pattern.permute.xlu1 %v6781_v11 }
 0x36c   :  { %2200 = vperm.xlu2 %5930, %v7434_v20   ;;  %2030 = vperm.xlu0 %5978, %v7427_v56   ;;  %v7701_v56 = vpop.xlane.xlu1 %1623  ;;  %v7719_v51 = vpop.permute.xlu0 %1879 }
 0x36d   :  { %10573 = vst [vmem:[#allocation140_spill] sm:$0xff] %v7701_v56 }
 0x373   :  { %2176 = vperm.xlu1 %5926, %v7434_v20  }
 0x374   :  { %5933 = vset.pattern.permute.xlu2 %v6806_v30  ;;  %2515 = vperm.xlu0 %5978, %v7640_v6   ;;  %v7717_v32 = vpop.xlane.xlu1 %1755  ;;  %v7732_v12 = vpop.permute.xlu0 %2364 }
 0x375   :  { %10576 = vst [vmem:[#allocation143_spill] sm:$0xff] %v7717_v32 }
 0x37b   :  { %5929 = vset.pattern.permute.xlu1 %v6803_v29 }
 0x37c   :  { %2218 = vperm.xlu2 %5933, %v7434_v20   ;;  %5987 = vset.pattern.permute.xlu0 %v10293_v53  ;;  %v7722_v53 = vpop.xlane.xlu2 %1757  ;;  %v7730_v62 = vpop.xlane.xlu1 %1689 }
 0x37d   :  { %2927 = vperm.xlu0 %5987, %v7699_v48   ;;  %v7725_v48 = vadd.f32 %v1819_v39, %v7416_v28  ;;  %10578 = vst [vmem:[#allocation145_spill] sm:$0xff] %v7730_v62  ;;  %v1910_v28 = vpop.permute.xlu0 %1909 }
 0x37f   :  { %10577 = vst [vmem:[#allocation144_spill] sm:$0xff] %v7725_v48 }
 0x383   :  { %2194 = vperm.xlu1 %5929, %v7434_v20  }
 0x384   :  { %5935 = vset.pattern.permute.xlu2 %v6816_v35  ;;  %v7738_v32 = vpop.xlane.xlu2 %1691  ;;  %v7743_v39 = vpop.permute.xlu1 %1933 }
 0x385   :  { %2942 = vperm.xlu0 %5987, %v7713_v59   ;;  %v7736_v59 = vadd.f32 %v7174_v7, %v7459_v25  ;;  %v7754_v25 = vpop.permute.xlu0 %2394 }
 0x386   :  { %10582 = vst [vmem:[#allocation149_spill] sm:$0xff] %v7754_v25 }
 0x387   :  { %10579 = vst [vmem:[#allocation146_spill] sm:$0xff] %v7736_v59 }
 0x38b   :  { %5931 = vset.pattern.permute.xlu1 %v6858_v4 }
 0x38c   :  { %2230 = vperm.xlu2 %5935, %v7434_v20   ;;  %v1946_v62 = vpop.permute.xlu2 %1945  ;;  %v7752_v7 = vpop.xlane.xlu1 %1761 }
 0x38d   :  { %2951 = vperm.xlu0 %5987, %v7725_v48   ;;  %v7747_v48 = vadd.f32 %v7189_v54, %v7501_v19  ;;  %10581 = vst [vmem:[#allocation148_spill] sm:$0xff] %v7752_v7  ;;  %v7771_v7 = vadd.f32 %v7229_v18, %v7582_v37 }
 0x38f   :  { %10580 = vst [vmem:[#allocation147_spill] sm:$0xff] %v7747_v48 }
 0x390   :  { %10584 = vst [vmem:[#allocation151_spill] sm:$0xff] %v7771_v7 }
 0x393   :  { %2206 = vperm.xlu1 %5931, %v7434_v20  }
 0x394   :  { %5938 = vset.pattern.permute.xlu2 %v6826_v41  ;;  %v7763_v54 = vpop.permute.xlu2 %1957  ;;  %v7765_v19 = vpop.permute.xlu1 %1951 }
 0x395   :  { %2960 = vperm.xlu0 %5987, %v7736_v59   ;;  %v7758_v59 = vadd.f32 %v7216_v22, %v7540_v0 }
 0x397   :  { %10583 = vst [vmem:[#allocation150_spill] sm:$0xff] %v7758_v59 }
 0x39b   :  { %5934 = vset.pattern.permute.xlu1 %v6823_v40 }
 0x39c   :  { %2248 = vperm.xlu2 %5938, %v7434_v20   ;;  %v7776_v0 = vpop.permute.xlu2 %1976  ;;  %v1965_v22 = vpop.permute.xlu1 %1964 }
 0x39d   :  { %2969 = vperm.xlu0 %5987, %v7747_v48   ;;  %v7767_v48 = vpop.permute.xlu0 %1939 }
 0x3a3   :  { %2224 = vperm.xlu1 %5934, %v7434_v20  }
 0x3a4   :  { %5940 = vset.pattern.permute.xlu2 %v6836_v47  ;;  %v7786_v37 = vpop.permute.xlu2 %1988  ;;  %v1983_v18 = vpop.permute.xlu1 %1982 }
 0x3a5   :  { %2978 = vperm.xlu0 %5987, %v7758_v59   ;;  %v7779_v59 = vadd.f32 %v1910_v28, %v7621_v52  ;;  %v7781_v25 = vpop.permute.xlu0 %2424  ;;  %v7822_v43 = vadd.f32 %v1983_v18, %v7389_v60 }
 0x3a6   :  { %10586 = vst [vmem:[#allocation153_spill] sm:$0xff] %v7781_v25 }
 0x3a7   :  { %10585 = vst [vmem:[#allocation152_spill] sm:$0xff] %v7779_v59 }
 0x3a8   :  { %10590 = vst [vmem:[#allocation157_spill] sm:$0xff] %v7822_v43 }
 0x3ab   :  { %5936 = vset.pattern.permute.xlu1 %v7357_v57 }
 0x3ac   :  { %2261 = vperm.xlu2 %5940, %v7483_v45   ;;  %v7797_v52 = vpop.permute.xlu2 %2006  ;;  %v7799_v28 = vpop.permute.xlu1 %1994 }
 0x3ad   :  { %2987 = vperm.xlu0 %5987, %v7771_v7   ;;  %v7792_v7 = vpop.permute.xlu0 %1776 }
 0x3b3   :  { %2236 = vperm.xlu1 %5936, %v7434_v20   ;;  %v7790_v20 = vadd.f32 %v7266_v42, %v7665_v55 }
 0x3b4   :  { %5944 = vset.pattern.permute.xlu2 %v6791_v21  ;;  %v2019_v42 = vpop.permute.xlu2 %2018  ;;  %v7809_v25 = vpop.permute.xlu1 %2012 }
 0x3b5   :  { %2996 = vperm.xlu0 %5987, %v7779_v59   ;;  %10587 = vst [vmem:[#allocation154_spill] sm:$0xff] %v7790_v20  ;;  %v7802_v59 = vadd.f32 %v1946_v62, %v7282_v9  ;;  %v7806_v55 = vpop.permute.xlu0 %1970 }
 0x3b7   :  { %10588 = vst [vmem:[#allocation155_spill] sm:$0xff] %v7802_v59 }
 0x3bb   :  { %5939 = vset.pattern.permute.xlu1 %v6755_v1 }
 0x3bc   :  { %2279 = vperm.xlu2 %5944, %v7483_v45   ;;  %v2037_v9 = vpop.permute.xlu2 %2036  ;;  %v7817_v62 = vpop.permute.xlu1 %2024 }
 0x3bd   :  { %3005 = vperm.xlu0 %5987, %v7790_v20   ;;  %v7812_v20 = vadd.f32 %v1965_v22, %v7329_v63 }
 0x3bf   :  { %10589 = vst [vmem:[#allocation156_spill] sm:$0xff] %v7812_v20 }
 0x3c3   :  { %2255 = vperm.xlu1 %5939, %v7483_v45  }
 0x3c4   :  { %5946 = vset.pattern.permute.xlu2 %v6803_v29  ;;  %v7827_v63 = vpop.permute.xlu2 %2048  ;;  %v7829_v22 = vpop.permute.xlu1 %2042 }
 0x3c5   :  { %3014 = vperm.xlu0 %5987, %v7802_v59   ;;  %v7819_v59 = vpop.permute.xlu0 %2455  ;;  %10591 = vst [vmem:[#allocation158_spill] sm:$0xff] %v7827_v63  ;;  %v7848_v63 = vadd.f32 %v2037_v9, %v7510_v49 }
 0x3c7   :  { %10594 = vst [vmem:[#allocation161_spill] sm:$0xff] %v7848_v63 }
 0x3cb   :  { %5941 = vset.pattern.permute.xlu1 %v6759_v2 }
 0x3cc   :  { %2291 = vperm.xlu2 %5946, %v7483_v45   ;;  %v7837_v60 = vpop.permute.xlu2 %2067  ;;  %v2055_v18 = vpop.permute.xlu1 %2054 }
 0x3cd   :  { %3023 = vperm.xlu0 %5987, %v7812_v20   ;;  %v2001_v20 = vpop.permute.xlu0 %2000 }
 0x3ce   :  { %v7832_v56 = vadd.f32 %v2001_v20, %v7424_v36 }
 0x3d0   :  { %10592 = vst [vmem:[#allocation159_spill] sm:$0xff] %v7832_v56 }
 0x3d3   :  { %2267 = vperm.xlu1 %5941, %v7483_v45  }
 0x3d4   :  { %5949 = vset.pattern.permute.xlu2 %v6813_v34  ;;  %v7845_v36 = vpop.permute.xlu2 %2079  ;;  %v2074_v20 = vpop.permute.xlu1 %2073 }
 0x3d5   :  { %3032 = vperm.xlu0 %5987, %v7822_v43   ;;  %v7840_v43 = vadd.f32 %v2019_v42, %v7468_v17 }
 0x3d7   :  { %10593 = vst [vmem:[#allocation160_spill] sm:$0xff] %v7840_v43 }
 0x3db   :  { %5945 = vset.pattern.permute.xlu1 %v6784_v14 }
 0x3dc   :  { %2309 = vperm.xlu2 %5949, %v7483_v45   ;;  %v7853_v17 = vpop.permute.xlu2 %2097  ;;  %v7855_v42 = vpop.permute.xlu1 %2085 }
 0x3dd   :  { %3041 = vperm.xlu0 %5987, %v7832_v56  }
 0x3e3   :  { %2285 = vperm.xlu1 %5945, %v7483_v45  }
 0x3e4   :  { %5951 = vset.pattern.permute.xlu2 %v6823_v40  ;;  %v2110_v49 = vpop.permute.xlu2 %2109  ;;  %v7863_v9 = vpop.permute.xlu1 %2103 }
 0x3e5   :  { %3050 = vperm.xlu0 %5987, %v7840_v43   ;;  %v7858_v43 = vadd.f32 %v2055_v18, %v7549_v50 }
 0x3e7   :  { %10595 = vst [vmem:[#allocation162_spill] sm:$0xff] %v7858_v43 }
 0x3eb   :  { %5947 = vset.pattern.permute.xlu1 %v6794_v24 }
 0x3ec   :  { %2321 = vperm.xlu2 %5951, %v7483_v45   ;;  %v2128_v50 = vpop.permute.xlu2 %2127  ;;  %v7871_v18 = vpop.permute.xlu1 %2115 }
 0x3ed   :  { %3059 = vperm.xlu0 %5987, %v7848_v63   ;;  %v7866_v63 = vadd.f32 %v2074_v20, %v7591_v5 }
 0x3ef   :  { %10596 = vst [vmem:[#allocation163_spill] sm:$0xff] %v7866_v63 }
 0x3f3   :  { %2297 = vperm.xlu1 %5947, %v7483_v45  }
 0x3f4   :  { %5954 = vset.pattern.permute.xlu2 %v6833_v46  ;;  %v7880_v5 = vpop.permute.xlu2 %2139  ;;  %v7882_v20 = vpop.permute.xlu1 %2133 }
 0x3f5   :  { %3068 = vperm.xlu0 %5987, %v7858_v43   ;;  %v7875_v43 = vadd.f32 %v7614_v58, %v7630_v27 }
 0x3f7   :  { %10597 = vst [vmem:[#allocation164_spill] sm:$0xff] %v7875_v43 }
 0x3fb   :  { %5950 = vset.pattern.permute.xlu1 %v6806_v30 }
 0x3fc   :  { %2339 = vperm.xlu2 %5954, %v7483_v45   ;;  %v7890_v27 = vpop.permute.xlu2 %2158  ;;  %v2146_v58 = vpop.permute.xlu1 %2145 }
 0x3fd   :  { %3077 = vperm.xlu0 %5987, %v7866_v63   ;;  %v7885_v63 = vadd.f32 %v2110_v49, %v7674_v31  ;;  %v7901_v56 = vadd.f32 %v2146_v58, %v7315_v10 }
 0x3ff   :  { %10598 = vst [vmem:[#allocation165_spill] sm:$0xff] %v7885_v63 }
 0x400   :  { %10600 = vst [vmem:[#allocation167_spill] sm:$0xff] %v7901_v56 }
 0x403   :  { %2315 = vperm.xlu1 %5950, %v7483_v45  }
 0x404   :  { %5956 = vset.pattern.permute.xlu2 %v6755_v1  ;;  %v7898_v31 = vpop.permute.xlu2 %2170  ;;  %v2165_v49 = vpop.permute.xlu1 %2164 }
 0x405   :  { %3086 = vperm.xlu0 %5987, %v7875_v43   ;;  %v7893_v43 = vadd.f32 %v2128_v50, %v7709_v23 }
 0x407   :  { %10599 = vst [vmem:[#allocation166_spill] sm:$0xff] %v7893_v43 }
 0x40b   :  { %5952 = vset.pattern.permute.xlu1 %v6816_v35 }
 0x40c   :  { %2352 = vperm.xlu2 %5956, %v7557_v15   ;;  %v7906_v23 = vpop.permute.xlu2 %2188  ;;  %v7908_v50 = vpop.permute.xlu1 %2176 }
 0x40d   :  { %3095 = vperm.xlu0 %5987, %v7885_v63  }
 0x413   :  { %2327 = vperm.xlu1 %5952, %v7483_v45  }
 0x414   :  { %5959 = vset.pattern.permute.xlu2 %v6781_v11  ;;  %v2201_v10 = vpop.permute.xlu2 %2200  ;;  %v7916_v58 = vpop.permute.xlu1 %2194 }
 0x415   :  { %3104 = vperm.xlu0 %5987, %v7893_v43   ;;  %v7911_v43 = vadd.f32 %v2165_v49, %v7353_v61 }
 0x417   :  { %10601 = vst [vmem:[#allocation168_spill] sm:$0xff] %v7911_v43 }
 0x41b   :  { %5955 = vset.pattern.permute.xlu1 %v6826_v41 }
 0x41c   :  { %2370 = vperm.xlu2 %5959, %v7557_v15   ;;  %v2219_v61 = vpop.permute.xlu2 %2218  ;;  %v7925_v49 = vpop.permute.xlu1 %2206 }
 0x41d   :  { %3113 = vperm.xlu0 %5987, %v7901_v56  }
 0x423   :  { %2345 = vperm.xlu1 %5955, %v7483_v45   ;;  %v7920_v45 = vadd.f32 %v7642_v16, %v7406_v44 }
 0x424   :  { %5961 = vset.pattern.permute.xlu2 %v6784_v14  ;;  %v7933_v16 = vpop.permute.xlu2 %2230  ;;  %v7935_v44 = vpop.permute.xlu1 %2224 }
 0x425   :  { %3122 = vperm.xlu0 %5987, %v7911_v43   ;;  %10602 = vst [vmem:[#allocation169_spill] sm:$0xff] %v7920_v45 }
 0x42b   :  { %5957 = vset.pattern.permute.xlu1 %v6836_v47  ;;  %v7928_v47 = vadd.f32 %v2201_v10, %v7448_v8 }
 0x42c   :  { %2382 = vperm.xlu2 %5961, %v7557_v15   ;;  %v7943_v8 = vpop.permute.xlu2 %2248  ;;  %v2237_v10 = vpop.permute.xlu1 %2236 }
 0x42d   :  { %3131 = vperm.xlu0 %5987, %v7920_v45   ;;  %10603 = vst [vmem:[#allocation170_spill] sm:$0xff] %v7928_v47  ;;  %v7938_v45 = vadd.f32 %v2219_v61, %v7490_v26 }
 0x42f   :  { %10604 = vst [vmem:[#allocation171_spill] sm:$0xff] %v7938_v45 }
 0x433   :  { %2358 = vperm.xlu1 %5957, %v7557_v15  }
 0x434   :  { %5964 = vset.pattern.permute.xlu2 %v6858_v4  ;;  %v7951_v26 = vpop.permute.xlu2 %2261 }
 0x435   :  { %3140 = vperm.xlu0 %5987, %v7928_v47   ;;  %v7946_v47 = vadd.f32 %v2237_v10, %v7529_v3  ;;  %v2256_v61 = vpop.permute.xlu1 %2255 }
 0x436   :  { %v7954_v43 = vadd.f32 %v2256_v61, %v7571_v13  ;;  %v10609_v61 = vld [vmem:[#allocation129_spill] sm:$0xff] }
 0x437   :  { %10605 = vst [vmem:[#allocation172_spill] sm:$0xff] %v7946_v47 }
 0x438   :  { %10606 = vst [vmem:[#allocation173_spill] sm:$0xff] %v7954_v43 }
 0x43b   :  { %5960 = vset.pattern.permute.xlu1 %v6791_v21 }
 0x43c   :  { %2400 = vperm.xlu2 %5964, %v7557_v15   ;;  %v7959_v3 = vpop.permute.xlu2 %2279 }
 0x43d   :  { %3149 = vperm.xlu0 %5987, %v7938_v45  }
 0x443   :  { %2376 = vperm.xlu1 %5960, %v7557_v15  }
 0x444   :  { %5966 = vset.pattern.permute.xlu2 %v6806_v30  ;;  %v2292_v13 = vpop.permute.xlu2 %2291 }
 0x445   :  { %3158 = vperm.xlu0 %5987, %v7946_v47   ;;  %v7969_v47 = vadd.f32 %v2292_v13, %v10609_v61 }
 0x447   :  { %10610 = vst [vmem:[#allocation129_spill] sm:$0xff] %v7969_v47 }
 0x44b   :  { %5962 = vset.pattern.permute.xlu1 %v6803_v29  ;;  %v10607_v29 = vld [vmem:[#allocation132_spill] sm:$0xff] }
 0x44c   :  { %2412 = vperm.xlu2 %5966, %v7557_v15   ;;  %v7963_v10 = vadd.f32 %v10607_v29, %v7610_v38  ;;  %v2310_v38 = vpop.permute.xlu2 %2309 }
 0x44d   :  { %3167 = vperm.xlu0 %5987, %v7954_v43   ;;  %v7974_v43 = vpop.permute.xlu1 %2267  ;;  %v7977_v29 = vadd.f32 %v2310_v38, %v7693_v33 }
 0x44e   :  { %10608 = vst [vmem:[#allocation132_spill] sm:$0xff] %v7963_v10 }
 0x44f   :  { %10611 = vst [vmem:[#allocation174_spill] sm:$0xff] %v7977_v29 }
 0x453   :  { %2388 = vperm.xlu1 %5962, %v7557_v15  }
 0x454   :  { %5969 = vset.pattern.permute.xlu2 %v7357_v57  ;;  %v7992_v38 = vpop.permute.xlu2 %2321 }
 0x455   :  { %3176 = vperm.xlu0 %5987, %v7963_v10   ;;  %v7982_v13 = vpop.permute.xlu1 %2285 }
 0x45b   :  { %5965 = vset.pattern.permute.xlu1 %v6813_v34 }
 0x45c   :  { %2430 = vperm.xlu2 %5969, %v7557_v15  }
 0x45d   :  { %3185 = vperm.xlu0 %5987, %v7969_v47  }
 0x463   :  { %2406 = vperm.xlu1 %5965, %v7557_v15  }
 0x464   :  { %5971 = vset.pattern.permute.xlu2 %v6826_v41 }
 0x465   :  { %3194 = vperm.xlu0 %5987, %v7977_v29   ;;  %v7986_v61 = vpop.permute.xlu1 %2297 }
 0x46b   :  { %5967 = vset.pattern.permute.xlu1 %v6823_v40 }
 0x46c   :  { %2442 = vperm.xlu2 %5971, %v7557_v15  }
 0x473   :  { %2418 = vperm.xlu1 %5967, %v7557_v15  }
 0x474   :  { %5974 = vset.pattern.permute.xlu2 %v6759_v2  ;;  %v8000_v2 = vpop.permute.xlu2 %2339 }
 0x475   :  { %v7990_v33 = vpop.permute.xlu1 %2315 }
 0x47b   :  { %5970 = vset.pattern.permute.xlu1 %v6833_v46 }
 0x47c   :  { %2461 = vperm.xlu2 %5974, %v7640_v6   ;;  %v8004_v47 = vpop.permute.xlu2 %2352 }
 0x483   :  { %2436 = vperm.xlu1 %5970, %v7557_v15  }
 0x484   :  { %5976 = vset.pattern.permute.xlu2 %v6791_v21  ;;  %v10613_v21 = vld [vmem:[#allocation54_spill] sm:$0xff] }
 0x485   :  { %v2328_v40 = vpop.permute.xlu1 %2327 }
 0x486   :  { %v7997_v29 = vadd.f32 %v2328_v40, %v7738_v32  ;;  %v8012_v32 = vpop.permute.xlu2 %2370 }
 0x488   :  { %10612 = vst [vmem:[#allocation175_spill] sm:$0xff] %v7997_v29  ;;  %3203 = vperm.xlu0 %5987, %v7997_v29  }
 0x48b   :  { %5972 = vset.pattern.permute.xlu1 %v6755_v1  ;;  %v10615_v1 = vld [vmem:[#allocation61_spill] sm:$0xff] }
 0x48c   :  { %2473 = vperm.xlu2 %5976, %v7640_v6   ;;  %v8018_v40 = vadd.f32 %v7732_v12, %v10615_v1 }
 0x48e   :  { %10616 = vst [vmem:[#allocation61_spill] sm:$0xff] %v8018_v40  ;;  %v2383_v29 = vpop.permute.xlu2 %2382 }
 0x493   :  { %2449 = vperm.xlu1 %5972, %v7640_v6  }
 0x494   :  { %5979 = vset.pattern.permute.xlu2 %v6794_v24  ;;  %v10617_v24 = vld [vmem:[#allocation73_spill] sm:$0xff] }
 0x495   :  { %v2346_v15 = vpop.permute.xlu1 %2345 }
 0x496   :  { %v8009_v10 = vadd.f32 %v2346_v15, %v10613_v21  ;;  %v8024_v15 = vadd.f32 %v2383_v29, %v10617_v24  ;;  %v2401_v21 = vpop.permute.xlu2 %2400  ;;  %v10621_v29 = vld [vmem:[#allocation26_spill] sm:$0xff]  ;;  %v10625_v24 = vld [vmem:[#allocation27_spill] sm:$0xff] }
 0x497   :  { %v8047_v1 = vadd.f32 %v7792_v7, %v10621_v29  ;;  %v10627_v7 = vld [vmem:[#allocation41_spill] sm:$0xff] }
 0x498   :  { %10614 = vst [vmem:[#allocation54_spill] sm:$0xff] %v8009_v10  ;;  %3212 = vperm.xlu0 %5987, %v8009_v10  }
 0x499   :  { %10618 = vst [vmem:[#allocation73_spill] sm:$0xff] %v8024_v15 }
 0x49a   :  { %10622 = vst [vmem:[#allocation26_spill] sm:$0xff] %v8047_v1 }
 0x49b   :  { %5975 = vset.pattern.permute.xlu1 %v6781_v11  ;;  %v10619_v11 = vld [vmem:[#allocation82_spill] sm:$0xff] }
 0x49c   :  { %2491 = vperm.xlu2 %5979, %v7640_v6   ;;  %v8030_v12 = vadd.f32 %v2401_v21, %v10619_v11  ;;  %v10628_v11 = vld [vmem:[#allocation31_spill] sm:$0xff] }
 0x49d   :  { %v8064_v29 = vadd.f32 %v10628_v11, %v10627_v7  ;;  %v10635_v7 = vld [vmem:[#allocation60_spill] sm:$0xff]  ;;  %v10636_v11 = vld [vmem:[#allocation37_spill] sm:$0xff] }
 0x49e   :  { %10620 = vst [vmem:[#allocation82_spill] sm:$0xff] %v8030_v12  ;;  %v8084_v56 = vadd.f32 %v10636_v11, %v10635_v7  ;;  %v10643_v7 = vld [vmem:[#allocation70_spill] sm:$0xff]  ;;  %v10644_v11 = vld [vmem:[#allocation39_spill] sm:$0xff] }
 0x49f   :  { %10629 = vst [vmem:[#allocation27_spill] sm:$0xff] %v8064_v29 }
 0x4a0   :  { %3221 = vperm.xlu0 %5987, %v8018_v40   ;;  %v10630_v40 = vld [vmem:[#allocation91_spill] sm:$0xff] }
 0x4a1   :  { %10637 = vst [vmem:[#allocation91_spill] sm:$0xff] %v8084_v56 }
 0x4a3   :  { %2467 = vperm.xlu1 %5975, %v7640_v6  }
 0x4a4   :  { %5981 = vset.pattern.permute.xlu2 %v6813_v34 }
 0x4a8   :  { %3230 = vperm.xlu0 %5987, %v8024_v15  }
 0x4ab   :  { %5977 = vset.pattern.permute.xlu1 %v6784_v14  ;;  %v8039_v14 = vpop.permute.xlu1 %2358 }
 0x4ac   :  { %2503 = vperm.xlu2 %5981, %v7640_v6  }
 0x4b0   :  { %3239 = vperm.xlu0 %5987, %v8030_v12   ;;  %v8066_v12 = vpop.permute.xlu2 %2412 }
 0x4b3   :  { %2479 = vperm.xlu1 %5977, %v7640_v6  }
 0x4b4   :  { %5983 = vset.pattern.permute.xlu2 %v6816_v35  ;;  %v10623_v35 = vmov 0  }
 0x4b5   :  { %v8043_v34 = vpop.permute.xlu1 %2376 }
 0x4b8   :  { %v8078_v45 = vpop.permute.xlu2 %2430 }
 0x4bb   :  { %5980 = vset.pattern.permute.xlu1 %v6858_v4 }
 0x4bc   :  { %2521 = vperm.xlu2 %5983, %v7640_v6  }
 0x4c3   :  { %2497 = vperm.xlu1 %5980, %v7640_v6  }
 0x4c4   :  { %5985 = vset.pattern.permute.xlu2 %v6833_v46  ;;  %v10624_v46 = vld [vmem:[#allocation67_spill] sm:$0xff] }
 0x4c5   :  { %v8051_v4 = vpop.permute.xlu1 %2388  ;;  %v8056_v21 = vadd.f32 %v10625_v24, %v10624_v46  ;;  %v10633_v24 = vld [vmem:[#allocation34_spill] sm:$0xff] }
 0x4c6   :  { %v8086_v63 = vpop.permute.xlu2 %2442 }
 0x4c7   :  { %10626 = vst [vmem:[#allocation67_spill] sm:$0xff] %v8056_v21 }
 0x4cb   :  { %5982 = vset.pattern.permute.xlu1 %v6806_v30 }
 0x4cc   :  { %2533 = vperm.xlu2 %5985, %v7640_v6  }
 0x4d3   :  { %2509 = vperm.xlu1 %5982, %v7640_v6  }
 0x4d4   :  { %5988 = vset.pattern.permute.xlu2 %v10623_v35 }
 0x4d5   :  { %2930 = vperm.xlu2 %5988, %v8047_v1   ;;  %v8059_v30 = vpop.permute.xlu1 %2406  ;;  %v10679_v1 = vld [vmem:[#allocation24_spill] sm:$0xff] }
 0x4db   :  { %5984 = vset.pattern.permute.xlu1 %v7357_v57  ;;  %v10632_v57 = vld [vmem:[#allocation51_spill] sm:$0xff] }
 0x4dc   :  { %v8076_v10 = vadd.f32 %v10633_v24, %v10632_v57  ;;  %v8094_v24 = vpop.permute.xlu0 %2485 }
 0x4dd   :  { %2936 = vperm.xlu2 %5988, %v8056_v21   ;;  %v8104_v21 = vpop.permute.xlu2 %2461 }
 0x4de   :  { %10634 = vst [vmem:[#allocation31_spill] sm:$0xff] %v8076_v10 }
 0x4e3   :  { %2527 = vperm.xlu1 %5984, %v7640_v6  }
 0x4e5   :  { %v2419_v15 = vpop.permute.xlu1 %2418  ;;  %2945 = vperm.xlu2 %5988, %v8064_v29   ;;  %v8102_v29 = vadd.f32 %v10644_v11, %v10643_v7  ;;  %v10651_v11 = vld [vmem:[#allocation79_spill] sm:$0xff] }
 0x4e6   :  { %v8071_v46 = vadd.f32 %v2419_v15, %v10630_v40  ;;  %v10638_v15 = vld [vmem:[#allocation100_spill] sm:$0xff] }
 0x4e7   :  { %10645 = vst [vmem:[#allocation60_spill] sm:$0xff] %v8102_v29 }
 0x4e8   :  { %10631 = vst [vmem:[#allocation41_spill] sm:$0xff] %v8071_v46  ;;  %3248 = vperm.xlu0 %5987, %v8071_v46   ;;  %v10641_v46 = vld [vmem:[#allocation28_spill] sm:$0xff] }
 0x4eb   :  { %5986 = vset.pattern.permute.xlu1 %v6826_v41  ;;  %v10640_v41 = vld [vmem:[#allocation62_spill] sm:$0xff] }
 0x4ed   :  { %2954 = vperm.xlu2 %5988, %v8076_v10   ;;  %v8098_v10 = vadd.f32 %v10641_v46, %v10640_v41  ;;  %v8114_v46 = vpop.permute.xlu0 %2030  ;;  %v10649_v41 = vld [vmem:[#allocation29_spill] sm:$0xff] }
 0x4ef   :  { %10642 = vst [vmem:[#allocation34_spill] sm:$0xff] %v8098_v10 }
 0x4f3   :  { %2539 = vperm.xlu1 %5986, %v7640_v6   ;;  %v10646_v6 = vld [vmem:[#allocation109_spill] sm:$0xff] }
 0x4f5   :  { %v2437_v40 = vpop.permute.xlu1 %2436  ;;  %2963 = vperm.xlu2 %5988, %v8084_v56  }
 0x4f6   :  { %v8091_v57 = vadd.f32 %v2437_v40, %v10638_v15  ;;  %v8111_v40 = vadd.f32 %v7819_v59, %v10646_v6  ;;  %v10648_v15 = vld [vmem:[#allocation66_spill] sm:$0xff]  ;;  %v10655_v6 = vld [vmem:[#allocation76_spill] sm:$0xff] }
 0x4f7   :  { %v8118_v7 = vadd.f32 %v10649_v41, %v10648_v15  ;;  %v10658_v15 = vld [vmem:[#allocation88_spill] sm:$0xff] }
 0x4f8   :  { %10639 = vst [vmem:[#allocation51_spill] sm:$0xff] %v8091_v57  ;;  %3257 = vperm.xlu0 %5987, %v8091_v57   ;;  %v8122_v57 = vadd.f32 %v7719_v51, %v10651_v11  ;;  %v10659_v41 = vld [vmem:[#allocation44_spill] sm:$0xff]  ;;  %v8138_v51 = vpop.permute.xlu0 %2515 }
 0x4f9   :  { %10647 = vst [vmem:[#allocation37_spill] sm:$0xff] %v8111_v40 }
 0x4fa   :  { %10650 = vst [vmem:[#allocation100_spill] sm:$0xff] %v8118_v7 }
 0x4fb   :  { %5989 = vset.pattern.permute.xlu1 %v10623_v35  ;;  %10652 = vst [vmem:[#allocation62_spill] sm:$0xff] %v8122_v57  ;;  %v2474_v35 = vpop.permute.xlu2 %2473 }
 0x4fc   :  { %2933 = vperm.xlu1 %5989, %v8098_v10   ;;  %v8136_v10 = vadd.f32 %v10659_v41, %v10658_v15 }
 0x4fd   :  { %2972 = vperm.xlu2 %5988, %v8102_v29   ;;  %v10653_v29 = vld [vmem:[#allocation118_spill] sm:$0xff] }
 0x4fe   :  { %v8127_v59 = vadd.f32 %v2474_v35, %v10653_v29  ;;  %10660 = vst [vmem:[#allocation39_spill] sm:$0xff] %v8136_v10  ;;  %v10663_v35 = vld [vmem:[#allocation85_spill] sm:$0xff] }
 0x500   :  { %3266 = vperm.xlu0 %5987, %v8111_v40   ;;  %10654 = vst [vmem:[#allocation28_spill] sm:$0xff] %v8127_v59  ;;  %v10656_v40 = vld [vmem:[#allocation33_spill] sm:$0xff]  ;;  %v8155_v41 = vpop.permute.xlu0 %2927 }
 0x501   :  { %v8132_v56 = vadd.f32 %v10656_v40, %v10655_v6  ;;  %v10666_v6 = vld [vmem:[#allocation97_spill] sm:$0xff]  ;;  %10669 = vst [vmem:[#allocation79_spill] sm:$0xff] %v8155_v41 }
 0x503   :  { %10657 = vst [vmem:[#allocation70_spill] sm:$0xff] %v8132_v56  ;;  %v2492_v11 = vpop.permute.xlu2 %2491 }
 0x504   :  { %2939 = vperm.xlu1 %5989, %v8118_v7   ;;  %v10667_v7 = vld [vmem:[#allocation47_spill] sm:$0xff] }
 0x505   :  { %2981 = vperm.xlu2 %5988, %v8122_v57   ;;  %v10661_v57 = vld [vmem:[#allocation126_spill] sm:$0xff]  ;;  %v8152_v15 = vadd.f32 %v10667_v7, %v10666_v6  ;;  %v10676_v6 = vld [vmem:[#allocation103_spill] sm:$0xff] }
 0x506   :  { %v8143_v29 = vadd.f32 %v2492_v11, %v10661_v57  ;;  %v10670_v57 = vld [vmem:[#allocation94_spill] sm:$0xff] }
 0x507   :  { %10668 = vst [vmem:[#allocation29_spill] sm:$0xff] %v8152_v15  ;;  %v10671_v11 = vld [vmem:[#allocation138_spill] sm:$0xff] }
 0x508   :  { %3275 = vperm.xlu0 %5987, %v8127_v59   ;;  %10662 = vst [vmem:[#allocation109_spill] sm:$0xff] %v8143_v29  ;;  %v10664_v59 = vld [vmem:[#allocation36_spill] sm:$0xff] }
 0x509   :  { %v8148_v40 = vadd.f32 %v10664_v59, %v10663_v35  ;;  %v8172_v35 = vpop.permute.xlu0 %2942 }
 0x50a   :  { %10675 = vst [vmem:[#allocation33_spill] sm:$0xff] %v8172_v35 }
 0x50b   :  { %10665 = vst [vmem:[#allocation66_spill] sm:$0xff] %v8148_v40 }
 0x50c   :  { %2948 = vperm.xlu1 %5989, %v8132_v56   ;;  %v8162_v56 = vadd.f32 %v10671_v11, %v10670_v57  ;;  %v8180_v57 = vadd.f32 %v7765_v19, %v10679_v1 }
 0x50d   :  { %2990 = vperm.xlu2 %5988, %v8136_v10   ;;  %v8158_v10 = vpop.permute.xlu2 %2503 }
 0x50e   :  { %10672 = vst [vmem:[#allocation118_spill] sm:$0xff] %v8162_v56 }
 0x50f   :  { %10680 = vst [vmem:[#allocation44_spill] sm:$0xff] %v8180_v57 }
 0x510   :  { %3284 = vperm.xlu0 %5987, %v8143_v29   ;;  %v10673_v29 = vld [vmem:[#allocation106_spill] sm:$0xff] }
 0x511   :  { %v8166_v59 = vadd.f32 %v7743_v39, %v10673_v29  ;;  %v8183_v39 = vpop.permute.xlu1 %2449  ;;  %v8188_v11 = vpop.permute.xlu0 %2951 }
 0x512   :  { %10681 = vst [vmem:[#allocation126_spill] sm:$0xff] %v8188_v11  ;;  %v10691_v11 = vld [vmem:[#allocation43_spill] sm:$0xff] }
 0x513   :  { %10674 = vst [vmem:[#allocation76_spill] sm:$0xff] %v8166_v59 }
 0x514   :  { %2957 = vperm.xlu1 %5989, %v8148_v40  }
 0x515   :  { %2999 = vperm.xlu2 %5988, %v8152_v15   ;;  %v10677_v15 = vld [vmem:[#allocation40_spill] sm:$0xff] }
 0x516   :  { %v8170_v7 = vpop.permute.xlu2 %2521  ;;  %v8176_v40 = vadd.f32 %v10677_v15, %v10676_v6  ;;  %v10685_v15 = vld [vmem:[#allocation32_spill] sm:$0xff] }
 0x517   :  { %v8196_v6 = vadd.f32 %v7806_v55, %v10685_v15 }
 0x518   :  { %10678 = vst [vmem:[#allocation88_spill] sm:$0xff] %v8176_v40 }
 0x519   :  { %10686 = vst [vmem:[#allocation36_spill] sm:$0xff] %v8196_v6  ;;  %v8199_v19 = vpop.permute.xlu1 %2467 }
 0x51c   :  { %2966 = vperm.xlu1 %5989, %v8162_v56   ;;  %v10683_v56 = vld [vmem:[#allocation42_spill] sm:$0xff] }
 0x51d   :  { %3008 = vperm.xlu2 %5988, %v8166_v59   ;;  %v10682_v59 = vld [vmem:[#allocation112_spill] sm:$0xff] }
 0x51e   :  { %v8192_v35 = vadd.f32 %v10683_v56, %v10682_v59  ;;  %v8210_v56 = vadd.f32 %v7786_v37, %v10691_v11  ;;  %v8212_v59 = vpop.permute.xlu0 %2960 }
 0x51f   :  { %10693 = vst [vmem:[#allocation138_spill] sm:$0xff] %v8212_v59 }
 0x520   :  { %10684 = vst [vmem:[#allocation85_spill] sm:$0xff] %v8192_v35 }
 0x521   :  { %10692 = vst [vmem:[#allocation94_spill] sm:$0xff] %v8210_v56 }
 0x524   :  { %2975 = vperm.xlu1 %5989, %v8176_v40   ;;  %v10689_v40 = vld [vmem:[#allocation46_spill] sm:$0xff] }
 0x525   :  { %3017 = vperm.xlu2 %5988, %v8180_v57   ;;  %v10688_v57 = vld [vmem:[#allocation121_spill] sm:$0xff]  ;;  %v8215_v55 = vpop.permute.xlu1 %2479 }
 0x526   :  { %v8186_v29 = vpop.permute.xlu2 %2533  ;;  %v8206_v41 = vadd.f32 %v10689_v40, %v10688_v57  ;;  %v10697_v40 = vld [vmem:[#allocation53_spill] sm:$0xff]  ;;  %v8229_v37 = vpop.permute.xlu0 %2969 }
 0x527   :  { %v8226_v57 = vadd.f32 %v7797_v52, %v10697_v40  ;;  %10699 = vst [vmem:[#allocation40_spill] sm:$0xff] %v8229_v37  ;;  %v10704_v40 = vld [vmem:[#allocation135_spill] sm:$0xff] }
 0x528   :  { %10690 = vst [vmem:[#allocation47_spill] sm:$0xff] %v8206_v41 }
 0x529   :  { %10698 = vst [vmem:[#allocation103_spill] sm:$0xff] %v8226_v57 }
 0x52c   :  { %2984 = vperm.xlu1 %5989, %v8192_v35   ;;  %v10695_v35 = vld [vmem:[#allocation48_spill] sm:$0xff] }
 0x52d   :  { %3026 = vperm.xlu2 %5988, %v8196_v6   ;;  %v10694_v6 = vld [vmem:[#allocation131_spill] sm:$0xff] }
 0x52e   :  { %v8249_v37 = vpop.permute.xlu0 %2978 }
 0x52f   :  { %v8202_v1 = vpop.permute.xlu2 %2930 }
 0x530   :  { %10687 = vst [vmem:[#allocation97_spill] sm:$0xff] %v8202_v1  ;;  %v8222_v1 = vadd.f32 %v10695_v35, %v10694_v6  ;;  %v10702_v35 = vld [vmem:[#allocation63_spill] sm:$0xff] }
 0x531   :  { %v8242_v6 = vadd.f32 %v7817_v62, %v10702_v35  ;;  %v10709_v62 = vld [vmem:[#allocation72_spill] sm:$0xff] }
 0x532   :  { %10696 = vst [vmem:[#allocation106_spill] sm:$0xff] %v8222_v1  ;;  %v8260_v35 = vadd.f32 %v7829_v22, %v10709_v62 }
 0x533   :  { %10703 = vst [vmem:[#allocation112_spill] sm:$0xff] %v8242_v6 }
 0x534   :  { %2993 = vperm.xlu1 %5989, %v8206_v41   ;;  %10710 = vst [vmem:[#allocation46_spill] sm:$0xff] %v8260_v35 }
 0x535   :  { %3035 = vperm.xlu2 %5988, %v8210_v56   ;;  %v8231_v11 = vpop.permute.xlu1 %2497  ;;  %v10700_v56 = vld [vmem:[#allocation50_spill] sm:$0xff] }
 0x536   :  { %v8238_v59 = vadd.f32 %v7767_v48, %v10700_v56  ;;  %v10707_v48 = vld [vmem:[#allocation57_spill] sm:$0xff] }
 0x537   :  { %v8218_v15 = vpop.permute.xlu2 %2936  ;;  %v8256_v56 = vadd.f32 %v7763_v54, %v10707_v48 }
 0x538   :  { %10701 = vst [vmem:[#allocation24_spill] sm:$0xff] %v8238_v59 }
 0x539   :  { %10708 = vst [vmem:[#allocation121_spill] sm:$0xff] %v8256_v56 }
 0x53c   :  { %3002 = vperm.xlu1 %5989, %v8222_v1  }
 0x53d   :  { %3044 = vperm.xlu2 %5988, %v8226_v57  }
 0x53f   :  { %v8234_v41 = vpop.permute.xlu2 %2945 }
 0x544   :  { %3011 = vperm.xlu1 %5989, %v8238_v59  }
 0x545   :  { %v2510_v52 = vpop.permute.xlu1 %2509  ;;  %3053 = vperm.xlu2 %5988, %v8242_v6   ;;  %v10711_v6 = vld [vmem:[#allocation69_spill] sm:$0xff] }
 0x546   :  { %v8247_v1 = vadd.f32 %v2510_v52, %v10704_v40  ;;  %v8266_v40 = vpop.permute.xlu0 %2987  ;;  %v8270_v59 = vadd.f32 %v7776_v0, %v10711_v6  ;;  %v10720_v6 = vld [vmem:[#allocation90_spill] sm:$0xff] }
 0x547   :  { %v8251_v57 = vpop.permute.xlu2 %2954 }
 0x548   :  { %10705 = vst [vmem:[#allocation42_spill] sm:$0xff] %v8247_v1  ;;  %3293 = vperm.xlu0 %5987, %v8247_v1   ;;  %v10713_v1 = vld [vmem:[#allocation81_spill] sm:$0xff] }
 0x549   :  { %10706 = vst [vmem:[#allocation32_spill] sm:$0xff] %v8251_v57  ;;  %v10714_v57 = vld [vmem:[#allocation120_spill] sm:$0xff] }
 0x54a   :  { %10712 = vst [vmem:[#allocation43_spill] sm:$0xff] %v8270_v59  ;;  %v8274_v54 = vadd.f32 %v10714_v57, %v10713_v1  ;;  %v8290_v1 = vadd.f32 %v7845_v36, %v10720_v6 }
 0x54c   :  { %3020 = vperm.xlu1 %5989, %v8256_v56   ;;  %10715 = vst [vmem:[#allocation131_spill] sm:$0xff] %v8274_v54 }
 0x54d   :  { %3062 = vperm.xlu2 %5988, %v8260_v35   ;;  %v10718_v35 = vld [vmem:[#allocation78_spill] sm:$0xff]  ;;  %10721 = vst [vmem:[#allocation63_spill] sm:$0xff] %v8290_v1 }
 0x54e   :  { %v8286_v0 = vadd.f32 %v7799_v28, %v10718_v35  ;;  %v8292_v57 = vpop.permute.xlu0 %2996 }
 0x54f   :  { %v8264_v52 = vpop.permute.xlu2 %2963 }
 0x550   :  { %10719 = vst [vmem:[#allocation50_spill] sm:$0xff] %v8286_v0 }
 0x554   :  { %3029 = vperm.xlu1 %5989, %v8270_v59   ;;  %v10732_v59 = vld [vmem:[#allocation158_spill] sm:$0xff] }
 0x555   :  { %v2528_v22 = vpop.permute.xlu1 %2527  ;;  %3071 = vperm.xlu2 %5988, %v8274_v54  }
 0x556   :  { %v8279_v48 = vadd.f32 %v2528_v22, %v7722_v53  ;;  %v10722_v22 = vld [vmem:[#allocation87_spill] sm:$0xff]  ;;  %v8307_v36 = vpop.permute.xlu0 %3005 }
 0x557   :  { %v8281_v62 = vpop.permute.xlu2 %2972  ;;  %v8300_v54 = vadd.f32 %v7809_v25, %v10722_v22  ;;  %v10728_v25 = vld [vmem:[#allocation108_spill] sm:$0xff] }
 0x558   :  { %10716 = vst [vmem:[#allocation48_spill] sm:$0xff] %v8279_v48  ;;  %3302 = vperm.xlu0 %5987, %v8279_v48   ;;  %v10724_v48 = vld [vmem:[#allocation99_spill] sm:$0xff]  ;;  %v8320_v22 = vadd.f32 %v7871_v18, %v10728_v25 }
 0x559   :  { %10717 = vst [vmem:[#allocation53_spill] sm:$0xff] %v8281_v62  ;;  %v8304_v28 = vadd.f32 %v7853_v17, %v10724_v48 }
 0x55a   :  { %10723 = vst [vmem:[#allocation135_spill] sm:$0xff] %v8300_v54 }
 0x55b   :  { %10725 = vst [vmem:[#allocation57_spill] sm:$0xff] %v8304_v28 }
 0x55c   :  { %3038 = vperm.xlu1 %5989, %v8286_v0   ;;  %10729 = vst [vmem:[#allocation69_spill] sm:$0xff] %v8320_v22 }
 0x55d   :  { %3080 = vperm.xlu2 %5988, %v8290_v1   ;;  %v10726_v1 = vld [vmem:[#allocation96_spill] sm:$0xff] }
 0x55e   :  { %v8316_v0 = vadd.f32 %v8114_v46, %v10726_v1  ;;  %v8326_v48 = vpop.permute.xlu0 %3014  ;;  %v10734_v46 = vld [vmem:[#allocation23_spill] sm:$0xff] }
 0x55f   :  { %v8296_v53 = vpop.permute.xlu2 %2981  ;;  %v8336_v1 = vadd.f32 %v7882_v20, %v10734_v46 }
 0x560   :  { %10727 = vst [vmem:[#allocation72_spill] sm:$0xff] %v8316_v0 }
 0x561   :  { %10735 = vst [vmem:[#allocation78_spill] sm:$0xff] %v8336_v1 }
 0x564   :  { %3047 = vperm.xlu1 %5989, %v8300_v54  }
 0x565   :  { %v8309_v35 = vpop.permute.xlu1 %2539  ;;  %3089 = vperm.xlu2 %5988, %v8304_v28   ;;  %v10731_v28 = vld [vmem:[#allocation105_spill] sm:$0xff] }
 0x566   :  { %v8332_v56 = vadd.f32 %v10732_v59, %v10731_v28  ;;  %v10739_v59 = vld [vmem:[#allocation30_spill] sm:$0xff]  ;;  %v10740_v28 = vld [vmem:[#allocation124_spill] sm:$0xff] }
 0x567   :  { %v8312_v6 = vpop.permute.xlu2 %2990 }
 0x568   :  { %10733 = vst [vmem:[#allocation120_spill] sm:$0xff] %v8332_v56 }
 0x56c   :  { %3056 = vperm.xlu1 %5989, %v8316_v0   ;;  %v10737_v0 = vld [vmem:[#allocation114_spill] sm:$0xff] }
 0x56d   :  { %3098 = vperm.xlu2 %5988, %v8320_v22   ;;  %v8344_v22 = vpop.permute.xlu0 %3023  ;;  %v8348_v62 = vadd.f32 %v7837_v60, %v10737_v0 }
 0x56e   :  { %v8324_v17 = vpop.permute.xlu1 %2933 }
 0x56f   :  { %v8328_v54 = vpop.permute.xlu2 %2999  ;;  %10738 = vst [vmem:[#allocation87_spill] sm:$0xff] %v8348_v62 }
 0x570   :  { %10730 = vst [vmem:[#allocation81_spill] sm:$0xff] %v8328_v54  ;;  %v8352_v54 = vadd.f32 %v10740_v28, %v10739_v59 }
 0x572   :  { %10741 = vst [vmem:[#allocation99_spill] sm:$0xff] %v8352_v54 }
 0x574   :  { %3065 = vperm.xlu1 %5989, %v8332_v56  }
 0x575   :  { %3107 = vperm.xlu2 %5988, %v8336_v1   ;;  %v10743_v1 = vld [vmem:[#allocation123_spill] sm:$0xff]  ;;  %v8368_v0 = vpop.permute.xlu0 %3032 }
 0x576   :  { %v8340_v18 = vpop.permute.xlu1 %2939  ;;  %v8362_v56 = vadd.f32 %v7855_v42, %v10743_v1  ;;  %v10750_v42 = vld [vmem:[#allocation49_spill] sm:$0xff] }
 0x577   :  { %v8342_v25 = vpop.permute.xlu2 %3008  ;;  %v8382_v1 = vadd.f32 %v7906_v23, %v10750_v42 }
 0x578   :  { %10736 = vst [vmem:[#allocation90_spill] sm:$0xff] %v8342_v25  ;;  %v10745_v25 = vld [vmem:[#allocation38_spill] sm:$0xff] }
 0x579   :  { %10744 = vst [vmem:[#allocation108_spill] sm:$0xff] %v8362_v56  ;;  %v8366_v60 = vadd.f32 %v7898_v31, %v10745_v25 }
 0x57a   :  { %10751 = vst [vmem:[#allocation114_spill] sm:$0xff] %v8382_v1 }
 0x57b   :  { %10746 = vst [vmem:[#allocation105_spill] sm:$0xff] %v8366_v60 }
 0x57c   :  { %3074 = vperm.xlu1 %5989, %v8348_v62  }
 0x57d   :  { %3116 = vperm.xlu2 %5988, %v8352_v54   ;;  %v10748_v54 = vld [vmem:[#allocation133_spill] sm:$0xff]  ;;  %v8385_v31 = vpop.permute.xlu0 %3041 }
 0x57e   :  { %v8356_v20 = vpop.permute.xlu1 %2948  ;;  %v8378_v62 = vadd.f32 %v7863_v9, %v10748_v54  ;;  %v10757_v9 = vld [vmem:[#allocation58_spill] sm:$0xff] }
 0x57f   :  { %v8358_v46 = vpop.permute.xlu2 %3017  ;;  %v8398_v54 = vadd.f32 %v7925_v49, %v10757_v9 }
 0x580   :  { %10742 = vst [vmem:[#allocation96_spill] sm:$0xff] %v8358_v46  ;;  %v10755_v46 = vld [vmem:[#allocation122_spill] sm:$0xff] }
 0x581   :  { %10749 = vst [vmem:[#allocation23_spill] sm:$0xff] %v8378_v62 }
 0x582   :  { %10758 = vst [vmem:[#allocation38_spill] sm:$0xff] %v8398_v54 }
 0x584   :  { %3083 = vperm.xlu1 %5989, %v8362_v56   ;;  %v10754_v56 = vld [vmem:[#allocation140_spill] sm:$0xff] }
 0x585   :  { %3125 = vperm.xlu2 %5988, %v8366_v60   ;;  %v8404_v42 = vpop.permute.xlu0 %3050 }
 0x586   :  { %v8372_v59 = vpop.permute.xlu1 %2957 }
 0x587   :  { %v8374_v28 = vpop.permute.xlu2 %3026 }
 0x588   :  { %10747 = vst [vmem:[#allocation158_spill] sm:$0xff] %v8374_v28  ;;  %v8394_v28 = vadd.f32 %v10755_v46, %v10754_v56  ;;  %v10762_v56 = vld [vmem:[#allocation68_spill] sm:$0xff] }
 0x589   :  { %v8414_v46 = vadd.f32 %v7935_v44, %v10762_v56  ;;  %v10770_v56 = vld [vmem:[#allocation74_spill] sm:$0xff] }
 0x58a   :  { %10756 = vst [vmem:[#allocation123_spill] sm:$0xff] %v8394_v28 }
 0x58b   :  { %10763 = vst [vmem:[#allocation140_spill] sm:$0xff] %v8414_v46 }
 0x58c   :  { %3092 = vperm.xlu1 %5989, %v8378_v62   ;;  %v10760_v62 = vld [vmem:[#allocation55_spill] sm:$0xff] }
 0x58d   :  { %3134 = vperm.xlu2 %5988, %v8382_v1   ;;  %v8420_v9 = vpop.permute.xlu0 %3059 }
 0x58e   :  { %v8388_v25 = vpop.permute.xlu1 %2966 }
 0x58f   :  { %10752 = vst [vmem:[#allocation30_spill] sm:$0xff] %v8388_v25  ;;  %v8390_v60 = vpop.permute.xlu2 %3035  ;;  %v10767_v25 = vld [vmem:[#allocation130_spill] sm:$0xff] }
 0x590   :  { %10753 = vst [vmem:[#allocation124_spill] sm:$0xff] %v8390_v60  ;;  %v8410_v60 = vadd.f32 %v7880_v5, %v10760_v62 }
 0x592   :  { %10761 = vst [vmem:[#allocation49_spill] sm:$0xff] %v8410_v60 }
 0x594   :  { %3101 = vperm.xlu1 %5989, %v8394_v28  }
 0x595   :  { %3143 = vperm.xlu2 %5988, %v8398_v54   ;;  %v10764_v54 = vld [vmem:[#allocation64_spill] sm:$0xff] }
 0x596   :  { %v8402_v23 = vpop.permute.xlu1 %2975  ;;  %v8424_v28 = vadd.f32 %v7890_v27, %v10764_v54  ;;  %v8444_v54 = vpop.permute.xlu0 %3068 }
 0x597   :  { %v8406_v1 = vpop.permute.xlu2 %3044 }
 0x598   :  { %10759 = vst [vmem:[#allocation133_spill] sm:$0xff] %v8406_v1  ;;  %v10766_v1 = vld [vmem:[#allocation77_spill] sm:$0xff] }
 0x599   :  { %10765 = vst [vmem:[#allocation122_spill] sm:$0xff] %v8424_v28  ;;  %v8428_v5 = vadd.f32 %v10767_v25, %v10766_v1 }
 0x59a   :  { %10774 = vst [vmem:[#allocation77_spill] sm:$0xff] %v8444_v54 }
 0x59b   :  { %10768 = vst [vmem:[#allocation58_spill] sm:$0xff] %v8428_v5 }
 0x59c   :  { %3110 = vperm.xlu1 %5989, %v8410_v60   ;;  %v10772_v60 = vld [vmem:[#allocation86_spill] sm:$0xff] }
 0x59d   :  { %3152 = vperm.xlu2 %5988, %v8414_v46   ;;  %v8438_v46 = vadd.f32 %v7908_v50, %v10770_v56  ;;  %v8442_v27 = vadd.f32 %v7951_v26, %v10772_v60  ;;  %v10778_v50 = vld [vmem:[#allocation95_spill] sm:$0xff] }
 0x59e   :  { %v8418_v49 = vpop.permute.xlu1 %2984  ;;  %v8458_v56 = vadd.f32 %v7959_v3, %v10778_v50  ;;  %v8461_v26 = vpop.permute.xlu0 %3077 }
 0x59f   :  { %v8430_v62 = vpop.permute.xlu2 %3053  ;;  %10771 = vst [vmem:[#allocation68_spill] sm:$0xff] %v8438_v46 }
 0x5a0   :  { %10769 = vst [vmem:[#allocation55_spill] sm:$0xff] %v8430_v62 }
 0x5a1   :  { %10773 = vst [vmem:[#allocation64_spill] sm:$0xff] %v8442_v27 }
 0x5a2   :  { %10779 = vst [vmem:[#allocation86_spill] sm:$0xff] %v8458_v56 }
 0x5a4   :  { %3119 = vperm.xlu1 %5989, %v8424_v28  }
 0x5a5   :  { %3161 = vperm.xlu2 %5988, %v8428_v5   ;;  %v10776_v5 = vld [vmem:[#allocation83_spill] sm:$0xff] }
 0x5a6   :  { %v8434_v44 = vpop.permute.xlu1 %2993  ;;  %v8454_v28 = vadd.f32 %v7916_v58, %v10776_v5  ;;  %v10785_v58 = vld [vmem:[#allocation104_spill] sm:$0xff]  ;;  %v8480_v50 = vpop.permute.xlu0 %3086 }
 0x5a7   :  { %v8447_v1 = vpop.permute.xlu2 %3062  ;;  %v8474_v5 = vadd.f32 %v7986_v61, %v10785_v58 }
 0x5a8   :  { %10775 = vst [vmem:[#allocation130_spill] sm:$0xff] %v8447_v1  ;;  %v10783_v1 = vld [vmem:[#allocation128_spill] sm:$0xff] }
 0x5a9   :  { %10777 = vst [vmem:[#allocation74_spill] sm:$0xff] %v8454_v28 }
 0x5aa   :  { %10786 = vst [vmem:[#allocation128_spill] sm:$0xff] %v8474_v5 }
 0x5ac   :  { %3128 = vperm.xlu1 %5989, %v8438_v46  }
 0x5ad   :  { %3170 = vperm.xlu2 %5988, %v8442_v27   ;;  %v10782_v27 = vld [vmem:[#allocation92_spill] sm:$0xff] }
 0x5ae   :  { %v8450_v25 = vpop.permute.xlu1 %3002  ;;  %v8470_v62 = vadd.f32 %v10783_v1, %v10782_v27  ;;  %v10791_v27 = vld [vmem:[#allocation113_spill] sm:$0xff]  ;;  %v8496_v58 = vpop.permute.xlu0 %3095 }
 0x5af   :  { %v8466_v46 = vpop.permute.xlu2 %3071  ;;  %v8490_v1 = vadd.f32 %v7990_v33, %v10791_v27  ;;  %v10800_v27 = vld [vmem:[#allocation119_spill] sm:$0xff] }
 0x5b0   :  { %10781 = vst [vmem:[#allocation95_spill] sm:$0xff] %v8466_v46 }
 0x5b1   :  { %10784 = vst [vmem:[#allocation92_spill] sm:$0xff] %v8470_v62 }
 0x5b2   :  { %10792 = vst [vmem:[#allocation113_spill] sm:$0xff] %v8490_v1 }
 0x5b4   :  { %3137 = vperm.xlu1 %5989, %v8454_v28   ;;  %v10789_v28 = vld [vmem:[#allocation101_spill] sm:$0xff] }
 0x5b5   :  { %3179 = vperm.xlu2 %5988, %v8458_v56  }
 0x5b6   :  { %v8464_v60 = vpop.permute.xlu1 %3011 }
 0x5b7   :  { %10780 = vst [vmem:[#allocation83_spill] sm:$0xff] %v8464_v60  ;;  %v8482_v56 = vpop.permute.xlu2 %3080  ;;  %v8486_v60 = vadd.f32 %v7933_v16, %v10789_v28 }
 0x5b8   :  { %10788 = vst [vmem:[#allocation176_spill] sm:$0xff] %v8482_v56  ;;  %v10796_v56 = vld [vmem:[#allocation141_spill] sm:$0xff] }
 0x5b9   :  { %10790 = vst [vmem:[#allocation101_spill] sm:$0xff] %v8486_v60 }
 0x5bc   :  { %3146 = vperm.xlu1 %5989, %v8470_v62  }
 0x5bd   :  { %3188 = vperm.xlu2 %5988, %v8474_v5   ;;  %v10793_v5 = vld [vmem:[#allocation110_spill] sm:$0xff] }
 0x5be   :  { %v8478_v3 = vpop.permute.xlu1 %3020  ;;  %v8500_v62 = vadd.f32 %v7943_v8, %v10793_v5  ;;  %v8520_v5 = vpop.permute.xlu0 %3104 }
 0x5bf   :  { %10787 = vst [vmem:[#allocation104_spill] sm:$0xff] %v8478_v3  ;;  %v10795_v3 = vld [vmem:[#allocation117_spill] sm:$0xff]  ;;  %v8506_v28 = vpop.permute.xlu2 %3089 }
 0x5c0   :  { %10794 = vst [vmem:[#allocation110_spill] sm:$0xff] %v8500_v62  ;;  %v8504_v16 = vadd.f32 %v10796_v56, %v10795_v3 }
 0x5c1   :  { %10798 = vst [vmem:[#allocation141_spill] sm:$0xff] %v8506_v28 }
 0x5c2   :  { %10797 = vst [vmem:[#allocation117_spill] sm:$0xff] %v8504_v16 }
 0x5c4   :  { %3155 = vperm.xlu1 %5989, %v8486_v60   ;;  %v10802_v60 = vld [vmem:[#allocation25_spill] sm:$0xff] }
 0x5c5   :  { %3197 = vperm.xlu2 %5988, %v8490_v1   ;;  %v8514_v1 = vadd.f32 %v7974_v43, %v10800_v27  ;;  %v8518_v8 = vadd.f32 %v8004_v47, %v10802_v60  ;;  %v10808_v43 = vld [vmem:[#allocation35_spill] sm:$0xff] }
 0x5c6   :  { %v8494_v61 = vpop.permute.xlu1 %3029  ;;  %v8534_v27 = vadd.f32 %v8012_v32, %v10808_v43  ;;  %v8537_v47 = vpop.permute.xlu0 %3113 }
 0x5c7   :  { %10801 = vst [vmem:[#allocation119_spill] sm:$0xff] %v8514_v1  ;;  %v8523_v56 = vpop.permute.xlu2 %3098 }
 0x5c8   :  { %10803 = vst [vmem:[#allocation25_spill] sm:$0xff] %v8518_v8 }
 0x5c9   :  { %10804 = vst [vmem:[#allocation178_spill] sm:$0xff] %v8523_v56  ;;  %v10814_v56 = vld [vmem:[#allocation136_spill] sm:$0xff] }
 0x5ca   :  { %10809 = vst [vmem:[#allocation35_spill] sm:$0xff] %v8534_v27 }
 0x5cb   :  { %10810 = vst [vmem:[#allocation180_spill] sm:$0xff] %v8537_v47 }
 0x5cc   :  { %3164 = vperm.xlu1 %5989, %v8500_v62  }
 0x5cd   :  { %3206 = vperm.xlu2 %5988, %v8504_v16   ;;  %v10806_v16 = vld [vmem:[#allocation127_spill] sm:$0xff] }
 0x5ce   :  { %v8510_v33 = vpop.permute.xlu1 %3038  ;;  %v8530_v62 = vadd.f32 %v7982_v13, %v10806_v16  ;;  %v10816_v13 = vld [vmem:[#allocation45_spill] sm:$0xff]  ;;  %v8556_v43 = vpop.permute.xlu0 %3122 }
 0x5cf   :  { %10799 = vst [vmem:[#allocation177_spill] sm:$0xff] %v8510_v33  ;;  %v8550_v16 = vadd.f32 %v8051_v4, %v10816_v13 }
 0x5d0   :  { %10807 = vst [vmem:[#allocation127_spill] sm:$0xff] %v8530_v62 }
 0x5d1   :  { %10817 = vst [vmem:[#allocation136_spill] sm:$0xff] %v8550_v16 }
 0x5d4   :  { %3173 = vperm.xlu1 %5989, %v8514_v1   ;;  %v8542_v1 = vpop.permute.xlu2 %3107 }
 0x5d5   :  { %3215 = vperm.xlu2 %5988, %v8518_v8   ;;  %10812 = vst [vmem:[#allocation182_spill] sm:$0xff] %v8542_v1  ;;  %v10813_v8 = vld [vmem:[#allocation137_spill] sm:$0xff] }
 0x5d6   :  { %v8526_v3 = vpop.permute.xlu1 %3047  ;;  %v8546_v28 = vadd.f32 %v10814_v56, %v10813_v8  ;;  %v10822_v8 = vld [vmem:[#allocation56_spill] sm:$0xff]  ;;  %v8572_v13 = vpop.permute.xlu0 %3131 }
 0x5d7   :  { %10805 = vst [vmem:[#allocation179_spill] sm:$0xff] %v8526_v3  ;;  %v8566_v56 = vadd.f32 %v8059_v30, %v10822_v8  ;;  %v10832_v8 = vld [vmem:[#allocation59_spill] sm:$0xff] }
 0x5d8   :  { %10815 = vst [vmem:[#allocation137_spill] sm:$0xff] %v8546_v28 }
 0x5d9   :  { %10823 = vst [vmem:[#allocation56_spill] sm:$0xff] %v8566_v56 }
 0x5dc   :  { %3182 = vperm.xlu1 %5989, %v8530_v62   ;;  %v10820_v62 = vld [vmem:[#allocation145_spill] sm:$0xff] }
 0x5dd   :  { %3224 = vperm.xlu2 %5988, %v8534_v27   ;;  %v8558_v27 = vpop.permute.xlu2 %3116  ;;  %v8562_v1 = vadd.f32 %v7992_v38, %v10820_v62 }
 0x5de   :  { %v8540_v60 = vpop.permute.xlu1 %3056  ;;  %10819 = vst [vmem:[#allocation183_spill] sm:$0xff] %v8558_v27  ;;  %v10827_v27 = vld [vmem:[#allocation65_spill] sm:$0xff] }
 0x5df   :  { %10811 = vst [vmem:[#allocation181_spill] sm:$0xff] %v8540_v60  ;;  %v10845_v60 = vld [vmem:[#allocation149_spill] sm:$0xff] }
 0x5e0   :  { %10821 = vst [vmem:[#allocation145_spill] sm:$0xff] %v8562_v1 }
 0x5e4   :  { %3191 = vperm.xlu1 %5989, %v8546_v28  }
 0x5e5   :  { %3233 = vperm.xlu2 %5988, %v8550_v16   ;;  %v10825_v16 = vld [vmem:[#allocation52_spill] sm:$0xff]  ;;  %v8582_v62 = vpop.permute.xlu2 %3125 }
 0x5e6   :  { %v8554_v32 = vpop.permute.xlu1 %3065  ;;  %v8576_v28 = vadd.f32 %v8000_v2, %v10825_v16  ;;  %v10834_v2 = vld [vmem:[#allocation75_spill] sm:$0xff] }
 0x5e7   :  { %10818 = vst [vmem:[#allocation45_spill] sm:$0xff] %v8554_v32  ;;  %v10828_v32 = vld [vmem:[#allocation153_spill] sm:$0xff]  ;;  %v8596_v16 = vadd.f32 %v8086_v63, %v10834_v2 }
 0x5e8   :  { %10826 = vst [vmem:[#allocation52_spill] sm:$0xff] %v8576_v28  ;;  %v8580_v38 = vadd.f32 %v10828_v32, %v10827_v27 }
 0x5e9   :  { %10830 = vst [vmem:[#allocation153_spill] sm:$0xff] %v8582_v62 }
 0x5ea   :  { %10829 = vst [vmem:[#allocation65_spill] sm:$0xff] %v8580_v38 }
 0x5eb   :  { %10835 = vst [vmem:[#allocation75_spill] sm:$0xff] %v8596_v16 }
 0x5ec   :  { %3200 = vperm.xlu1 %5989, %v8562_v1   ;;  %v8592_v1 = vpop.permute.xlu0 %3140 }
 0x5ed   :  { %3242 = vperm.xlu2 %5988, %v8566_v56   ;;  %v8590_v56 = vadd.f32 %v8039_v14, %v10832_v8  ;;  %v8599_v27 = vpop.permute.xlu2 %3134  ;;  %v10840_v14 = vld [vmem:[#allocation84_spill] sm:$0xff] }
 0x5ee   :  { %v8570_v4 = vpop.permute.xlu1 %3074  ;;  %10836 = vst [vmem:[#allocation186_spill] sm:$0xff] %v8599_v27  ;;  %v8610_v8 = vadd.f32 %v8104_v21, %v10840_v14 }
 0x5ef   :  { %10824 = vst [vmem:[#allocation184_spill] sm:$0xff] %v8570_v4 }
 0x5f0   :  { %10833 = vst [vmem:[#allocation59_spill] sm:$0xff] %v8590_v56 }
 0x5f1   :  { %10841 = vst [vmem:[#allocation84_spill] sm:$0xff] %v8610_v8 }
 0x5f4   :  { %3209 = vperm.xlu1 %5989, %v8576_v28   ;;  %v8613_v63 = vpop.permute.xlu0 %3149 }
 0x5f5   :  { %3251 = vperm.xlu2 %5988, %v8580_v38   ;;  %v10838_v38 = vld [vmem:[#allocation71_spill] sm:$0xff] }
 0x5f6   :  { %v8586_v30 = vpop.permute.xlu1 %3083  ;;  %v8606_v28 = vadd.f32 %v8043_v34, %v10838_v38  ;;  %v10847_v34 = vld [vmem:[#allocation93_spill] sm:$0xff] }
 0x5f7   :  { %10831 = vst [vmem:[#allocation185_spill] sm:$0xff] %v8586_v30  ;;  %v8626_v38 = vadd.f32 %v8215_v55, %v10847_v34 }
 0x5f8   :  { %10839 = vst [vmem:[#allocation71_spill] sm:$0xff] %v8606_v28 }
 0x5f9   :  { %10848 = vst [vmem:[#allocation149_spill] sm:$0xff] %v8626_v38 }
 0x5fc   :  { %3218 = vperm.xlu1 %5989, %v8590_v56   ;;  %v8618_v56 = vpop.permute.xlu2 %3143  ;;  %v8632_v14 = vpop.permute.xlu0 %3158 }
 0x5fd   :  { %3260 = vperm.xlu2 %5988, %v8596_v16   ;;  %10843 = vst [vmem:[#allocation189_spill] sm:$0xff] %v8618_v56  ;;  %v10844_v16 = vld [vmem:[#allocation80_spill] sm:$0xff] }
 0x5fe   :  { %v8602_v32 = vpop.permute.xlu1 %3092  ;;  %v8622_v27 = vadd.f32 %v10845_v60, %v10844_v16  ;;  %10850 = vst [vmem:[#allocation190_spill] sm:$0xff] %v8632_v14  ;;  %v10854_v60 = vld [vmem:[#allocation102_spill] sm:$0xff] }
 0x5ff   :  { %10837 = vst [vmem:[#allocation187_spill] sm:$0xff] %v8602_v32  ;;  %v8642_v16 = vadd.f32 %v8231_v11, %v10854_v60  ;;  %v10863_v60 = vld [vmem:[#allocation107_spill] sm:$0xff] }
 0x600   :  { %10846 = vst [vmem:[#allocation80_spill] sm:$0xff] %v8622_v27 }
 0x601   :  { %10855 = vst [vmem:[#allocation102_spill] sm:$0xff] %v8642_v16 }
 0x604   :  { %3227 = vperm.xlu1 %5989, %v8606_v28   ;;  %v10852_v28 = vld [vmem:[#allocation89_spill] sm:$0xff]  ;;  %v8648_v34 = vpop.permute.xlu0 %3167 }
 0x605   :  { %3269 = vperm.xlu2 %5988, %v8610_v8   ;;  %v8634_v8 = vpop.permute.xlu2 %3152  ;;  %v8638_v56 = vadd.f32 %v8066_v12, %v10852_v28 }
 0x606   :  { %v8616_v2 = vpop.permute.xlu1 %3101  ;;  %10851 = vst [vmem:[#allocation191_spill] sm:$0xff] %v8634_v8  ;;  %v10859_v8 = vld [vmem:[#allocation111_spill] sm:$0xff] }
 0x607   :  { %10842 = vst [vmem:[#allocation188_spill] sm:$0xff] %v8616_v2  ;;  %v8656_v12 = vadd.f32 %v8138_v51, %v10859_v8 }
 0x608   :  { %10853 = vst [vmem:[#allocation89_spill] sm:$0xff] %v8638_v56 }
 0x609   :  { %10860 = vst [vmem:[#allocation111_spill] sm:$0xff] %v8656_v12 }
 0x60c   :  { %3236 = vperm.xlu1 %5989, %v8622_v27  }
 0x60d   :  { %3278 = vperm.xlu2 %5988, %v8626_v38   ;;  %v10857_v38 = vld [vmem:[#allocation98_spill] sm:$0xff]  ;;  %v8658_v28 = vpop.permute.xlu2 %3161 }
 0x60e   :  { %v8630_v21 = vpop.permute.xlu1 %3110  ;;  %v8652_v27 = vadd.f32 %v8078_v45, %v10857_v38  ;;  %10861 = vst [vmem:[#allocation193_spill] sm:$0xff] %v8658_v28  ;;  %v10865_v45 = vld [vmem:[#allocation115_spill] sm:$0xff] }
 0x60f   :  { %10849 = vst [vmem:[#allocation93_spill] sm:$0xff] %v8630_v21  ;;  %v8672_v38 = vadd.f32 %v8186_v29, %v10865_v45  ;;  %v10873_v45 = vld [vmem:[#allocation125_spill] sm:$0xff] }
 0x610   :  { %10858 = vst [vmem:[#allocation98_spill] sm:$0xff] %v8652_v27 }
 0x611   :  { %10866 = vst [vmem:[#allocation115_spill] sm:$0xff] %v8672_v38 }
 0x614   :  { %3245 = vperm.xlu1 %5989, %v8638_v56   ;;  %v8668_v56 = vpop.permute.xlu0 %3176 }
 0x615   :  { %3287 = vperm.xlu2 %5988, %v8642_v16   ;;  %v8666_v16 = vadd.f32 %v8183_v39, %v10863_v60  ;;  %v8675_v51 = vpop.permute.xlu2 %3170 }
 0x616   :  { %v8646_v55 = vpop.permute.xlu1 %3119  ;;  %10867 = vst [vmem:[#allocation195_spill] sm:$0xff] %v8675_v51 }
 0x617   :  { %10856 = vst [vmem:[#allocation192_spill] sm:$0xff] %v8646_v55 }
 0x618   :  { %10864 = vst [vmem:[#allocation107_spill] sm:$0xff] %v8666_v16 }
 0x61c   :  { %3254 = vperm.xlu1 %5989, %v8652_v27   ;;  %v8685_v39 = vpop.permute.xlu0 %3185 }
 0x61d   :  { %3296 = vperm.xlu2 %5988, %v8656_v12   ;;  %v10869_v12 = vld [vmem:[#allocation116_spill] sm:$0xff]  ;;  %v8689_v29 = vpop.permute.xlu2 %3179  ;;  %v10947_v54 = vld [vmem:[#allocation195_spill] sm:$0xff] }
 0x61e   :  { %v8662_v11 = vpop.permute.xlu1 %3128  ;;  %v8682_v27 = vadd.f32 %v8199_v19, %v10869_v12  ;;  %10872 = vst [vmem:[#allocation198_spill] sm:$0xff] %v8689_v29  ;;  %v10877_v12 = vld [vmem:[#allocation134_spill] sm:$0xff] }
 0x61f   :  { %10862 = vst [vmem:[#allocation194_spill] sm:$0xff] %v8662_v11 }
 0x620   :  { %10870 = vst [vmem:[#allocation116_spill] sm:$0xff] %v8682_v27 }
 0x624   :  { %3263 = vperm.xlu1 %5989, %v8666_v16   ;;  %v8693_v16 = vadd.f32 %v8094_v24, %v10873_v45  ;;  %v8698_v28 = vpop.permute.xlu0 %3194  ;;  %v10881_v24 = vld [vmem:[#allocation143_spill] sm:$0xff] }
 0x625   :  { %3305 = vperm.xlu2 %5988, %v8672_v38   ;;  %v8700_v19 = vpop.permute.xlu2 %3188  ;;  %v8713_v45 = vadd.f32 %v8170_v7, %v10881_v24 }
 0x626   :  { %v8678_v8 = vpop.permute.xlu1 %3137  ;;  %10874 = vst [vmem:[#allocation125_spill] sm:$0xff] %v8693_v16 }
 0x627   :  { %10868 = vst [vmem:[#allocation196_spill] sm:$0xff] %v8678_v8 }
 0x628   :  { %10876 = vst [vmem:[#allocation200_spill] sm:$0xff] %v8700_v19 }
 0x629   :  { %10882 = vst [vmem:[#allocation143_spill] sm:$0xff] %v8713_v45 }
 0x62c   :  { %3272 = vperm.xlu1 %5989, %v8682_v27   ;;  %v8704_v27 = vadd.f32 %v8158_v10, %v10877_v12  ;;  %v10886_v10 = vld [vmem:[#allocation148_spill] sm:$0xff] }
 0x62d   :  { %v8724_v12 = vadd.f32 %v8309_v35, %v10886_v10 }
 0x62e   :  { %v8687_v60 = vpop.permute.xlu1 %3146  ;;  %10878 = vst [vmem:[#allocation134_spill] sm:$0xff] %v8704_v27 }
 0x62f   :  { %10871 = vst [vmem:[#allocation197_spill] sm:$0xff] %v8687_v60  ;;  %v8709_v60 = vpop.permute.xlu0 %3203 }
 0x630   :  { %10880 = vst [vmem:[#allocation202_spill] sm:$0xff] %v8709_v60 }
 0x631   :  { %10887 = vst [vmem:[#allocation148_spill] sm:$0xff] %v8724_v12 }
 0x634   :  { %3281 = vperm.xlu1 %5989, %v8693_v16   ;;  %v8715_v16 = vpop.permute.xlu2 %3197 }
 0x635   :  { %10883 = vst [vmem:[#allocation203_spill] sm:$0xff] %v8715_v16 }
 0x636   :  { %v8696_v38 = vpop.permute.xlu1 %3155 }
 0x637   :  { %10875 = vst [vmem:[#allocation199_spill] sm:$0xff] %v8696_v38  ;;  %v8720_v19 = vpop.permute.xlu0 %3212 }
 0x638   :  { %10885 = vst [vmem:[#allocation205_spill] sm:$0xff] %v8720_v19 }
 0x63c   :  { %3290 = vperm.xlu1 %5989, %v8704_v27   ;;  %v8727_v27 = vpop.permute.xlu2 %3206 }
 0x63d   :  { %10888 = vst [vmem:[#allocation206_spill] sm:$0xff] %v8727_v27 }
 0x63e   :  { %v8707_v21 = vpop.permute.xlu1 %3164 }
 0x63f   :  { %10879 = vst [vmem:[#allocation201_spill] sm:$0xff] %v8707_v21  ;;  %v8731_v7 = vpop.permute.xlu0 %3221 }
 0x640   :  { %10890 = vst [vmem:[#allocation208_spill] sm:$0xff] %v8731_v7 }
 0x644   :  { %3299 = vperm.xlu1 %5989, %v8713_v45   ;;  %v8735_v16 = vpop.permute.xlu2 %3215 }
 0x645   :  { %10892 = vst [vmem:[#allocation210_spill] sm:$0xff] %v8735_v16 }
 0x646   :  { %v8718_v38 = vpop.permute.xlu1 %3173 }
 0x647   :  { %10884 = vst [vmem:[#allocation204_spill] sm:$0xff] %v8718_v38  ;;  %v8737_v45 = vpop.permute.xlu0 %3230 }
 0x648   :  { %10893 = vst [vmem:[#allocation211_spill] sm:$0xff] %v8737_v45 }
 0x64c   :  { %3308 = vperm.xlu1 %5989, %v8724_v12   ;;  %v8741_v8 = vpop.permute.xlu2 %3224 }
 0x64d   :  { %10895 = vst [vmem:[#allocation213_spill] sm:$0xff] %v8741_v8  ;;  %v10902_v8 = vld [vmem:[#allocation97_spill] sm:$0xff] }
 0x64e   :  { %v8729_v21 = vpop.permute.xlu1 %3182 }
 0x64f   :  { %10889 = vst [vmem:[#allocation207_spill] sm:$0xff] %v8729_v21  ;;  %v8743_v35 = vpop.permute.xlu0 %3239  ;;  %v10901_v21 = vlaneseq }
 0x650   :  { %10896 = vst [vmem:[#allocation214_spill] sm:$0xff] %v8743_v35 }
 0x654   :  { %v8747_v12 = vpop.permute.xlu2 %3233 }
 0x655   :  { %10898 = vst [vmem:[#allocation216_spill] sm:$0xff] %v8747_v12 }
 0x656   :  { %v8733_v24 = vpop.permute.xlu1 %3191 }
 0x657   :  { %10891 = vst [vmem:[#allocation209_spill] sm:$0xff] %v8733_v24  ;;  %v8749_v27 = vpop.permute.xlu0 %3248  ;;  %v8754_v24 = vand.u32 127, %v10901_v21  ;;  %v10905_v21 = vld [vmem:[#allocation79_spill] sm:$0xff] }
 0x658   :  { %10899 = vst [vmem:[#allocation217_spill] sm:$0xff] %v8749_v27  ;;  %v10910_v27 = vld [vmem:[#allocation138_spill] sm:$0xff] }
 0x659   :  { %v8757_v32 = vadd.s32 4294967288, %v8754_v24  ;;  %v3312_v11 = vperm.slane %v10905_v21, %v8754_v24  ;;  %v8775_v16 = vadd.s32 4294967264, %v8754_v24  ;;  %v8778_v51 = vadd.s32 4294967256, %v8754_v24 }
 0x65a   :  { %v8794_v55 = vadd.s32 4294967184, %v8754_v24  ;;  %v8811_v45 = vadd.s32 4294967240, %v8754_v24  ;;  %v8834_v46 = vadd.s32 4294967200, %v8754_v24 }
 0x65b   :  { %v3314_v62 = vperm.slane %v10902_v8, %v8757_v32  ;;  %v8781_v8 = vadd.s32 4294967272, %v8754_v24  ;;  %v3326_v21 = vperm.slane %v8340_v18, %v8775_v16 }
 0x65c   :  { %v8768_v3 = vpop.permute.xlu2 %3242  ;;  %10907 = vst [vmem:[#allocation220_spill] sm:$0xff] %v8794_v55  ;;  %v3386_v4 = vperm.slane %v8292_v57, %v8811_v45 }
 0x65d   :  { %10904 = vst [vmem:[#allocation219_spill] sm:$0xff] %v8768_v3  ;;  %v3322_v30 = vperm.slane %v8218_v15, %v8781_v8 }
 0x65e   :  { %v8739_v2 = vpop.permute.xlu1 %3200 }
 0x65f   :  { %10894 = vst [vmem:[#allocation212_spill] sm:$0xff] %v8739_v2  ;;  %v8760_v2 = vadd.s32 4294967280, %v8754_v24 }
 0x661   :  { %v3318_v12 = vperm.slane %v8324_v17, %v8760_v2  ;;  %v8785_v17 = vadd.s32 4294967232, %v8754_v24 }
 0x664   :  { %v8831_v35 = vpop.permute.xlu2 %3251 }
 0x665   :  { %10915 = vst [vmem:[#allocation221_spill] sm:$0xff] %v8831_v35  ;;  %v3380_v35 = vperm.slane %v8266_v40, %v8775_v16 }
 0x666   :  { %v8745_v10 = vpop.permute.xlu1 %3209 }
 0x667   :  { %10897 = vst [vmem:[#allocation215_spill] sm:$0xff] %v8745_v10  ;;  %v8764_v10 = vpop.permute.xlu0 %3257 }
 0x668   :  { %10903 = vst [vmem:[#allocation97_spill] sm:$0xff] %v8764_v10  ;;  %v3373_v10 = vperm.slane %v8402_v23, %v8754_v24  ;;  %v8824_v23 = vadd.s32 4294967248, %v8754_v24 }
 0x66a   :  { %v3334_v15 = vperm.slane %v8234_v41, %v8824_v23 }
 0x66e   :  { %v8751_v29 = vpop.permute.xlu1 %3218 }
 0x66f   :  { %10900 = vst [vmem:[#allocation218_spill] sm:$0xff] %v8751_v29  ;;  %v3316_v29 = vsel %vm3315_vm0, %v3314_v62, %v3312_v11  ;;  %v10908_v62 = vld [vmem:[#allocation33_spill] sm:$0xff] }
 0x670   :  { %v3320_v3 = vsel %vm3319_vm1, %v3318_v12, %v3316_v29  ;;  %v3330_v11 = vperm.slane %v10908_v62, %v8778_v51  ;;  %v10909_v29 = vld [vmem:[#allocation126_spill] sm:$0xff]  ;;  %v8827_v62 = vadd.s32 4294967224, %v8754_v24 }
 0x671   :  { %v3324_v33 = vsel %vm3323_vm2, %v3322_v30, %v3320_v3  ;;  %v3342_v12 = vperm.slane %v10909_v29, %v8785_v17  ;;  %v8814_v3 = vadd.s32 4294967216, %v8754_v24  ;;  %v8829_v29 = vpop.permute.xlu0 %3266 }
 0x672   :  { %v3328_v18 = vsel %vm3327_vm3, %v3326_v21, %v3324_v33  ;;  %v3374_v33 = vperm.slane %v8249_v37, %v8757_v32  ;;  %v8821_v21 = vadd.s32 4294967192, %v8754_v24  ;;  %10914 = vst [vmem:[#allocation138_spill] sm:$0xff] %v8829_v29  ;;  %v3338_v37 = vperm.slane %v8356_v20, %v8811_v45 }
 0x673   :  { %v3378_v29 = vperm.slane %v8418_v49, %v8781_v8  ;;  %v3376_v20 = vperm.slane %v8296_v53, %v8760_v2  ;;  %v3404_v49 = vperm.slane %v8344_v22, %v8754_v24 }
 0x674   :  { %10913 = vst [vmem:[#allocation126_spill] sm:$0xff] %v8821_v21  ;;  %v3375_v7 = vsel %vm3315_vm0, %v3374_v33, %v3373_v10 }
 0x675   :  { %v3377_v33 = vsel %vm3319_vm1, %v3376_v20, %v3375_v7 }
 0x676   :  { %v8772_v38 = vpop.permute.xlu1 %3227  ;;  %v3379_v22 = vsel %vm3323_vm2, %v3378_v29, %v3377_v33  ;;  %v3350_v29 = vperm.slane %v8372_v59, %v8814_v3  ;;  %v10916_v33 = vld [vmem:[#allocation32_spill] sm:$0xff]  ;;  %v3382_v59 = vperm.slane %v8312_v6, %v8778_v51 }
 0x677   :  { %10906 = vst [vmem:[#allocation79_spill] sm:$0xff] %v8772_v38  ;;  %v8791_v38 = vadd.s32 4294967208, %v8754_v24  ;;  %v3381_v41 = vsel %vm3327_vm3, %v3380_v35, %v3379_v22 }
 0x678   :  { %v3383_v53 = vsel %vm3331_vm4, %v3382_v59, %v3381_v41  ;;  %v3358_v41 = vperm.slane %v8264_v52, %v8834_v46 }
 0x679   :  { %v10919_v59 = vperm.slane %v10910_v27, %v8791_v38 }
 0x67e   :  { %v8816_v30 = vpop.permute.xlu1 %3236 }
 0x67f   :  { %10912 = vst [vmem:[#allocation33_spill] sm:$0xff] %v8816_v30  ;;  %v3332_v30 = vsel %vm3331_vm4, %v3330_v11, %v3328_v18  ;;  %v8849_v11 = vadd.s32 4294967176, %v8754_v24 }
 0x680   :  { %v3336_v40 = vsel %vm10439_vm5, %v3334_v15, %v3332_v30  ;;  %v3346_v15 = vperm.slane %v10916_v33, %v8827_v62  ;;  %v8901_v33 = vpop.permute.xlu2 %3260  ;;  %v10926_v30 = vld [vmem:[#allocation81_spill] sm:$0xff] }
 0x681   :  { %v3340_v18 = vsel %vm10440_vm6, %v3338_v37, %v3336_v40  ;;  %v3384_v37 = vperm.slane %v8434_v44, %v8824_v23  ;;  %10917 = vst [vmem:[#allocation32_spill] sm:$0xff] %v8901_v33  ;;  %v10924_v40 = vld [vmem:[#allocation211_spill] sm:$0xff]  ;;  %v3388_v57 = vperm.slane %v10926_v30, %v8785_v17 }
 0x682   :  { %v3344_v10 = vsel %vm3343_vm7, %v3342_v12, %v3340_v18  ;;  %v8899_v18 = vpop.permute.xlu0 %3275  ;;  %v10925_v12 = vld [vmem:[#allocation214_spill] sm:$0xff] }
 0x683   :  { %v3348_v7 = vsel %vm3347_vm8, %v3346_v15, %v3344_v10  ;;  %v3385_v22 = vsel %vm10439_vm5, %v3384_v37, %v3383_v53  ;;  %v10920_v53 = vld [vmem:[#allocation30_spill] sm:$0xff]  ;;  %v3407_v10 = vperm.slane %v8494_v61, %v8760_v2  ;;  %v10922_v15 = vld [vmem:[#allocation184_spill] sm:$0xff] }
 0x684   :  { %v3352_v6 = vsel %vm10443_vm9, %v3350_v29, %v3348_v7  ;;  %v10918_v7 = vld [vmem:[#allocation158_spill] sm:$0xff]  ;;  %v3362_v37 = vperm.slane %v10920_v53, %v8821_v21  ;;  %v3387_v52 = vsel %vm10440_vm6, %v3386_v4, %v3385_v22  ;;  %v3436_v27 = vperm.slane %v10922_v15, %v8757_v32  ;;  %v10927_v4 = vld [vmem:[#allocation53_spill] sm:$0xff]  ;;  %v10928_v15 = vld [vmem:[#allocation95_spill] sm:$0xff] }
 0x685   :  { %v3405_v29 = vperm.slane %v10918_v7, %v8757_v32  ;;  %v3356_v35 = vsel %vm10441_vm10, %v10919_v59, %v3352_v6  ;;  %v3390_v7 = vperm.slane %v8450_v25, %v8827_v62  ;;  %v10923_v6 = vld [vmem:[#allocation208_spill] sm:$0xff]  ;;  %v3370_v22 = vperm.slane %v10927_v4, %v8849_v11 }
 0x686   :  { %v8879_v20 = vpop.permute.xlu1 %3245  ;;  %v3360_v19 = vsel %vm10442_vm11, %v3358_v41, %v3356_v35  ;;  %v3435_v33 = vperm.slane %v10928_v15, %v8754_v24  ;;  %v3389_v53 = vsel %vm3343_vm7, %v3388_v57, %v3387_v52  ;;  %v10932_v57 = vld [vmem:[#allocation90_spill] sm:$0xff]  ;;  %v10933_v52 = vld [vmem:[#allocation40_spill] sm:$0xff]  ;;  %v10938_v4 = vperm.slane %v8307_v36, %v8814_v3 }
 0x687   :  { %v3406_v25 = vsel %vm3315_vm0, %v3405_v29, %v3404_v49  ;;  %v3364_v59 = vsel %vm3363_vm12, %v3362_v37, %v3360_v19  ;;  %v3391_v49 = vsel %vm3347_vm8, %v3390_v7, %v3389_v53  ;;  %v10931_v19 = vld [vmem:[#allocation138_spill] sm:$0xff]  ;;  %v10935_v7 = vld [vmem:[#allocation124_spill] sm:$0xff] }
 0x688   :  { %v3408_v61 = vsel %vm3319_vm1, %v3407_v10, %v3406_v25  ;;  %v3437_v35 = vsel %vm3315_vm0, %v3436_v27, %v3435_v33  ;;  %v8969_v41 = vpop.permute.xlu2 %3269  ;;  %v3560_v29 = vperm.slane %v10931_v19, %v8757_v32  ;;  %v3394_v10 = vperm.slane %v10932_v57, %v8791_v38  ;;  %v10937_v19 = vld [vmem:[#allocation177_spill] sm:$0xff] }
 0x689   :  { %v10934_v25 = vperm.slane %v10933_v52, %v8794_v55  ;;  %v3411_v33 = vperm.slane %v10935_v7, %v8775_v16  ;;  %v10936_v27 = vperm.slane %v8368_v0, %v8781_v8  ;;  %v3413_v57 = vperm.slane %v10937_v19, %v8778_v51  ;;  %v10939_v52 = vld [vmem:[#allocation83_spill] sm:$0xff]  ;;  %v10941_v0 = vld [vmem:[#allocation185_spill] sm:$0xff] }
 0x68a   :  { %v8965_v47 = vpop.permute.xlu0 %3284  ;;  %v3393_v30 = vsel %vm10443_vm9, %v10938_v4, %v3391_v49  ;;  %v3396_v37 = vperm.slane %v10939_v52, %v8834_v46  ;;  %v3442_v7 = vperm.slane %v10941_v0, %v8775_v16  ;;  %v10943_v4 = vld [vmem:[#allocation176_spill] sm:$0xff]  ;;  %v10946_v0 = vld [vmem:[#allocation218_spill] sm:$0xff] }
 0x68b   :  { %v3368_v15 = vsel %vm3367_vm13, %v10934_v25, %v3364_v59  ;;  %v3410_v53 = vsel %vm3323_vm2, %v10936_v27, %v3408_v61  ;;  %v10940_v59 = vperm.slane %v8461_v26, %v8760_v2  ;;  %v10942_v27 = vld [vmem:[#allocation96_spill] sm:$0xff]  ;;  %v3440_v49 = vperm.slane %v10943_v4, %v8781_v8  ;;  %v10945_v26 = vld [vmem:[#allocation133_spill] sm:$0xff] }
 0x68c   :  { %v3400_v19 = vperm.slane %v10942_v27, %v8794_v55  ;;  %v10944_v52 = vld [vmem:[#allocation192_spill] sm:$0xff]  ;;  %v3417_v60 = vperm.slane %v10945_v26, %v8811_v45  ;;  %v3529_v27 = vperm.slane %v10946_v0, %v8757_v32  ;;  %v10950_v0 = vld [vmem:[#allocation55_spill] sm:$0xff] }
 0x68d   :  { %v3439_v25 = vsel %vm3319_vm1, %v10940_v59, %v3437_v35  ;;  %v3466_v14 = vperm.slane %v10944_v52, %v8754_v24  ;;  %v9012_v35 = vsel %vm3371_vm14, %v3370_v22, %v3368_v15  ;;  %v3412_v59 = vsel %vm3327_vm3, %v3411_v33, %v3410_v53  ;;  %v10948_v22 = vld [vmem:[#allocation210_spill] sm:$0xff]  ;;  %v10949_v33 = vld [vmem:[#allocation204_spill] sm:$0xff] }
 0x68e   :  { %v8937_v44 = vpop.permute.xlu1 %3254  ;;  %v3414_v36 = vsel %vm3331_vm4, %v3413_v57, %v3412_v59  ;;  %v3441_v4 = vsel %vm3323_vm2, %v3440_v49, %v3439_v25  ;;  %v3498_v52 = vperm.slane %v10947_v54, %v8757_v32  ;;  %v3528_v15 = vperm.slane %v10948_v22, %v8754_v24 }
 0x68f   :  { %10921 = vst [vmem:[#allocation158_spill] sm:$0xff] %v8937_v44  ;;  %v3395_v44 = vsel %vm10441_vm10, %v3394_v10, %v3393_v30  ;;  %v3443_v26 = vsel %vm3327_vm3, %v3442_v7, %v3441_v4  ;;  %v3500_v53 = vperm.slane %v10949_v33, %v8760_v2  ;;  %v10951_v10 = vld [vmem:[#allocation130_spill] sm:$0xff]  ;;  %v10952_v54 = vperm.slane %v8556_v43, %v8757_v32  ;;  %v10955_v4 = vld [vmem:[#allocation179_spill] sm:$0xff]  ;;  %v10956_v33 = vld [vmem:[#allocation153_spill] sm:$0xff] }
 0x690   :  { %v3397_v55 = vsel %vm10442_vm11, %v3396_v37, %v3395_v44  ;;  %v10953_v37 = vld [vmem:[#allocation194_spill] sm:$0xff]  ;;  %v10954_v49 = vperm.slane %v8385_v31, %v8824_v23  ;;  %v3419_v22 = vperm.slane %v10955_v4, %v8785_v17  ;;  %v3469_v57 = vperm.slane %v10956_v33, %v8760_v2 }
 0x691   :  { %v3468_v44 = vsel %vm3315_vm0, %v10952_v54, %v3466_v14  ;;  %v3471_v7 = vperm.slane %v10953_v37, %v8781_v8  ;;  %v3530_v30 = vsel %vm3315_vm0, %v3529_v27, %v3528_v15  ;;  %v10957_v43 = vperm.slane %v8326_v48, %v8821_v21  ;;  %v10960_v48 = vld [vmem:[#allocation141_spill] sm:$0xff] }
 0x692   :  { %v9032_v25 = vpop.permute.xlu0 %3293  ;;  %v3416_v59 = vsel %vm10439_vm5, %v10954_v49, %v3414_v36  ;;  %v10958_v54 = vperm.slane %v8480_v50, %v8778_v51  ;;  %v10959_v36 = vperm.slane %v8648_v34, %v8754_v24  ;;  %v9061_v49 = vpop.permute.xlu2 %3278  ;;  %v3470_v15 = vsel %vm3319_vm1, %v3469_v57, %v3468_v44  ;;  %v10963_v57 = vld [vmem:[#allocation187_spill] sm:$0xff]  ;;  %v10964_v44 = vld [vmem:[#allocation213_spill] sm:$0xff] }
 0x693   :  { %v3399_v14 = vsel %vm3363_vm12, %v10957_v43, %v3397_v55  ;;  %v3578_v27 = vperm.slane %v9032_v25, %v8814_v3  ;;  %v3446_v55 = vperm.slane %v10960_v48, %v8824_v23  ;;  %v3418_v33 = vsel %vm10440_vm6, %v3417_v60, %v3416_v59  ;;  %v10962_v43 = vld [vmem:[#allocation79_spill] sm:$0xff] }
 0x694   :  { %v3445_v31 = vsel %vm3331_vm4, %v10958_v54, %v3443_v26  ;;  %v3499_v37 = vsel %vm3315_vm0, %v3498_v52, %v10959_v36  ;;  %v3472_v34 = vsel %vm3323_vm2, %v3471_v7, %v3470_v15  ;;  %v10961_v52 = vperm.slane %v10923_v6, %v8760_v2 }
 0x695   :  { %v3501_v50 = vsel %vm3319_vm1, %v3500_v53, %v3499_v37  ;;  %v3535_v54 = vperm.slane %v10962_v43, %v8775_v16  ;;  %v3420_v36 = vsel %vm3343_vm7, %v3419_v22, %v3418_v33  ;;  %v3447_v48 = vsel %vm10439_vm5, %v3446_v55, %v3445_v31  ;;  %v10967_v31 = vld [vmem:[#allocation198_spill] sm:$0xff] }
 0x696   :  { %v3264_v61 = vpop.permute.xlu1 %3263  ;;  %v3448_v53 = vperm.slane %v10963_v57, %v8811_v45  ;;  %v3533_v60 = vperm.slane %v10964_v44, %v8781_v8  ;;  %v10965_v7 = vperm.slane %v8668_v56, %v8781_v8  ;;  %v3504_v55 = vperm.slane %v10967_v31, %v8775_v16 }
 0x697   :  { %v3559_v4 = vperm.slane %v3264_v61, %v8754_v24  ;;  %v3532_v61 = vsel %vm3319_vm1, %v10961_v52, %v3530_v30  ;;  %v10966_v30 = vld [vmem:[#allocation207_spill] sm:$0xff]  ;;  %v10968_v15 = vperm.slane %v8572_v13, %v8775_v16  ;;  %v3562_v56 = vperm.slane %v8969_v41, %v8760_v2  ;;  %v10969_v52 = vld [vmem:[#allocation196_spill] sm:$0xff] }
 0x698   :  { %v3503_v6 = vsel %vm3323_vm2, %v10965_v7, %v3501_v50  ;;  %v3506_v59 = vperm.slane %v10966_v30, %v8778_v51  ;;  %v3534_v50 = vsel %vm3323_vm2, %v3533_v60, %v3532_v61  ;;  %v3477_v43 = vperm.slane %v10969_v52, %v8824_v23  ;;  %v10971_v61 = vld [vmem:[#allocation178_spill] sm:$0xff]  ;;  %v10979_v52 = vld [vmem:[#allocation209_spill] sm:$0xff] }
 0x699   :  { %v3561_v37 = vsel %vm3315_vm0, %v3560_v29, %v3559_v4  ;;  %v3474_v33 = vsel %vm3327_vm3, %v10968_v15, %v3472_v34  ;;  %v3536_v29 = vsel %vm3327_vm3, %v3535_v54, %v3534_v50  ;;  %v10970_v4 = vld [vmem:[#allocation186_spill] sm:$0xff]  ;;  %v3449_v57 = vsel %vm10440_vm6, %v3448_v53, %v3447_v48  ;;  %v10977_v15 = vld [vmem:[#allocation216_spill] sm:$0xff] }
 0x69a   :  { %v3505_v13 = vsel %vm3327_vm3, %v3504_v55, %v3503_v6  ;;  %v3563_v34 = vsel %vm3319_vm1, %v3562_v56, %v3561_v37  ;;  %v6695_v44 = vmov -inf   ;;  %v3401_v41 = vsel %vm3367_vm13, %v3400_v19, %v3399_v14  ;;  %v10974_v19 = vld [vmem:[#allocation33_spill] sm:$0xff] }
 0x69b   :  { %106 = vst.msk [vmem:[#allocation2] sm:$0xff] %vm10446_vm15, %v6695_v44  ;;  %v3452_v60 = vperm.slane %v10971_v61, %v8827_v62  ;;  %v3507_v54 = vsel %vm3331_vm4, %v3506_v59, %v3505_v13  ;;  %v10972_v30 = vperm.slane %v8404_v42, %v8827_v62  ;;  %v10973_v6 = vperm.slane %v10924_v40, %v8778_v51  ;;  %v10975_v59 = vld [vmem:[#allocation181_spill] sm:$0xff]  ;;  %v3288_v40 = vpop.permute.xlu2 %3287  ;;  %v10982_v13 = vld [vmem:[#allocation200_spill] sm:$0xff] }
 0x69c   :  { %v3541_v14 = vperm.slane %v10974_v19, %v8811_v45  ;;  %v3425_v55 = vperm.slane %v10975_v59, %v8791_v38  ;;  %v10978_v56 = vperm.slane %v8685_v39, %v8824_v23  ;;  %v3568_v39 = vperm.slane %v9061_v49, %v8778_v51  ;;  %v10986_v49 = vld [vmem:[#allocation189_spill] sm:$0xff] }
 0x69d   :  { %v3422_v48 = vsel %vm3347_vm8, %v10972_v30, %v3420_v36  ;;  %v3538_v37 = vsel %vm3331_vm4, %v10973_v6, %v3536_v29  ;;  %v3512_v29 = vperm.slane %v10979_v52, %v8785_v17  ;;  %v10983_v61 = vperm.slane %v10950_v0, %v8814_v3  ;;  %v10985_v30 = vld [vmem:[#allocation197_spill] sm:$0xff] }
 0x69e   :  { %v3273_v26 = vpop.permute.xlu1 %3272  ;;  %v3509_v50 = vsel %vm10439_vm5, %v10978_v56, %v3507_v54  ;;  %v10984_v54 = vperm.slane %v8592_v1, %v8811_v45  ;;  %v3547_v56 = vperm.slane %v8879_v20, %v8814_v3  ;;  %v10993_v20 = vld [vmem:[#allocation212_spill] sm:$0xff] }
 0x69f   :  { %v3564_v22 = vperm.slane %v3273_v26, %v8781_v8  ;;  %v3475_v26 = vperm.slane %v10970_v4, %v8778_v51  ;;  %v10980_v4 = vperm.slane %v8899_v18, %v8775_v16  ;;  %v3424_v18 = vsel %vm10443_vm9, %v10983_v61, %v3422_v48  ;;  %v10987_v48 = vld [vmem:[#allocation104_spill] sm:$0xff]  ;;  %v10996_v61 = vld [vmem:[#allocation203_spill] sm:$0xff] }
 0x6a0   :  { %v3426_v19 = vsel %vm10441_vm10, %v3425_v55, %v3424_v18  ;;  %v3402_v59 = vperm.slane %v10987_v48, %v8849_v11  ;;  %v3574_v18 = vperm.slane %v3288_v40, %v8785_v17 }
 0x6a1   :  { %v3565_v7 = vsel %vm3323_vm2, %v3564_v22, %v3563_v34  ;;  %v3476_v53 = vsel %vm3331_vm4, %v3475_v26, %v3474_v33  ;;  %v10976_v22 = vperm.slane %v8496_v58, %v8785_v17  ;;  %v3539_v33 = vperm.slane %v10977_v15, %v8824_v23 }
 0x6a2   :  { %v3478_v36 = vsel %vm10439_vm5, %v3477_v43, %v3476_v53  ;;  %v3567_v58 = vsel %vm3327_vm3, %v10980_v4, %v3565_v7  ;;  %v10981_v43 = vld [vmem:[#allocation188_spill] sm:$0xff]  ;;  %v3510_v34 = vperm.slane %v10982_v13, %v8811_v45  ;;  %v3483_v53 = vperm.slane %v10985_v30, %v8827_v62  ;;  %v10991_v4 = vld [vmem:[#allocation219_spill] sm:$0xff] }
 0x6a3   :  { %v3451_v42 = vsel %vm3343_vm7, %v10976_v22, %v3449_v57  ;;  %v3454_v57 = vperm.slane %v10981_v43, %v8814_v3  ;;  %v3540_v44 = vsel %vm10439_vm5, %v3539_v33, %v3538_v37  ;;  %v3480_v7 = vsel %vm10440_vm6, %v10984_v54, %v3478_v36 }
 0x6a4   :  { %v3542_v6 = vsel %vm10440_vm6, %v3541_v14, %v3540_v44  ;;  %v3481_v37 = vperm.slane %v10986_v49, %v8785_v17  ;;  %v3569_v0 = vsel %vm3331_vm4, %v3568_v39, %v3567_v58  ;;  %v3453_v1 = vsel %vm3347_vm8, %v3452_v60, %v3451_v42 }
 0x6a5   :  { %v3455_v14 = vsel %vm10443_vm9, %v3454_v57, %v3453_v1  ;;  %v10988_v15 = vperm.slane %v10925_v12, %v8785_v17  ;;  %v10990_v60 = vperm.slane %v8420_v9, %v8834_v46  ;;  %v3545_v58 = vperm.slane %v10991_v4, %v8827_v62 }
 0x6a6   :  { %v3282_v31 = vpop.permute.xlu1 %3281  ;;  %v3482_v55 = vsel %vm3343_vm7, %v3481_v37, %v3480_v7  ;;  %v10992_v12 = vperm.slane %v8698_v28, %v8827_v62  ;;  %v3518_v57 = vperm.slane %v10993_v20, %v8791_v38  ;;  %v10994_v13 = vperm.slane %v8965_v47, %v8811_v45  ;;  %v10997_v7 = vld [vmem:[#allocation93_spill] sm:$0xff]  ;;  %v11000_v37 = vld [vmem:[#allocation220_spill] sm:$0xff] }
 0x6a7   :  { %v3570_v26 = vperm.slane %v3282_v31, %v8824_v23  ;;  %v3511_v31 = vsel %vm10440_vm6, %v3510_v34, %v3509_v50  ;;  %v3544_v33 = vsel %vm3343_vm7, %v10988_v15, %v3542_v6  ;;  %v10989_v50 = vld [vmem:[#allocation182_spill] sm:$0xff]  ;;  %v3428_v42 = vsel %vm10442_vm11, %v10990_v60, %v3426_v19  ;;  %v3297_v19 = vpop.permute.xlu2 %3296 }
 0x6a8   :  { %v3513_v22 = vsel %vm3343_vm7, %v3512_v29, %v3511_v31  ;;  %v3458_v52 = vperm.slane %v10989_v50, %v8834_v46  ;;  %v3484_v29 = vsel %vm3347_vm8, %v3483_v53, %v3482_v55  ;;  %v10995_v39 = vperm.slane %v8520_v5, %v8791_v38  ;;  %v10999_v5 = vld [vmem:[#allocation199_spill] sm:$0xff]  ;;  %v11001_v31 = vld [vmem:[#allocation45_spill] sm:$0xff]  ;;  %v11005_v60 = vld [vmem:[#allocation158_spill] sm:$0xff] }
 0x6a9   :  { %v3571_v36 = vsel %vm10439_vm5, %v3570_v26, %v3569_v0  ;;  %v3515_v43 = vsel %vm3347_vm8, %v10992_v12, %v3513_v22  ;;  %v3516_v28 = vperm.slane %v10996_v61, %v8814_v3  ;;  %v3546_v54 = vsel %vm3347_vm8, %v3545_v58, %v3544_v33  ;;  %v11002_v0 = vld [vmem:[#allocation191_spill] sm:$0xff]  ;;  %v11003_v33 = vld [vmem:[#allocation217_spill] sm:$0xff] }
 0x6aa   :  { %v3573_v9 = vsel %vm10440_vm6, %v10994_v13, %v3571_v36  ;;  %v3457_v44 = vsel %vm10441_vm10, %v10995_v39, %v3455_v14  ;;  %vm10444_vm5 = vcmask 1041409   ;;  %v3460_v47 = vperm.slane %v10997_v7, %v8821_v21  ;;  %v11010_v13 = vld [vmem:[#allocation215_spill] sm:$0xff]  ;;  %v11011_v39 = vld [vmem:[#allocation206_spill] sm:$0xff] }
 0x6ab   :  { %v10998_v30 = vperm.slane %v8613_v63, %v8814_v3  ;;  %v3489_v6 = vperm.slane %v10999_v5, %v8834_v46  ;;  %v3548_v49 = vsel %vm10443_vm9, %v3547_v56, %v3546_v54  ;;  %v3431_v40 = vperm.slane %v11001_v31, %v11000_v37  ;;  %v11012_v54 = vld [vmem:[#allocation180_spill] sm:$0xff]  ;;  %v11018_v31 = vld [vmem:[#allocation193_spill] sm:$0xff] }
 0x6ac   :  { %v3487_v48 = vperm.slane %v11002_v0, %v8791_v38  ;;  %v3517_v1 = vsel %vm10443_vm9, %v3516_v28, %v3515_v43  ;;  %v3575_v22 = vsel %vm3343_vm7, %v3574_v18, %v3573_v9  ;;  %v3403_v63 = vsel %vm3371_vm14, %v3402_v59, %v3401_v41  ;;  %v11008_v43 = vld [vmem:[#allocation202_spill] sm:$0xff] }
 0x6ad   :  { %v3486_v53 = vsel %vm10443_vm9, %v10998_v30, %v3484_v29  ;;  %vm10445_vm6 = vcmask 1042434   ;;  %v3519_v36 = vsel %vm10441_vm10, %v3518_v57, %v3517_v1  ;;  %v3459_v55 = vsel %vm10442_vm11, %v3458_v52, %v3457_v44  ;;  %v11007_v52 = vld [vmem:[#allocation221_spill] sm:$0xff]  ;;  %v11014_v30 = vld [vmem:[#allocation190_spill] sm:$0xff] }
 0x6ae   :  { %v3291_v26 = vpop.permute.xlu1 %3290  ;;  %v3488_v15 = vsel %vm10441_vm10, %v3487_v48, %v3486_v53  ;;  %v11004_v56 = vperm.slane %v11003_v33, %v8791_v38  ;;  %v3553_v29 = vperm.slane %v11005_v60, %v8821_v21  ;;  %v11006_v41 = vperm.slane %v10951_v10, %v8821_v21  ;;  %v11016_v53 = vld [vmem:[#allocation201_spill] sm:$0xff] }
 0x6af   :  { %v3576_v34 = vperm.slane %v3291_v26, %v8827_v62  ;;  %v3461_v4 = vsel %vm3363_vm12, %v3460_v47, %v3459_v55  ;;  %v3490_v58 = vsel %vm10442_vm11, %v3489_v6, %v3488_v15  ;;  %v3551_v26 = vperm.slane %v11007_v52, %v8834_v46  ;;  %v11021_v60 = vld [vmem:[#allocation97_spill] sm:$0xff] }
 0x6b0   :  { %v3550_v50 = vsel %vm10441_vm10, %v11004_v56, %v3548_v49  ;;  %v3430_v59 = vsel %vm3363_vm12, %v11006_v41, %v3428_v42  ;;  %v11009_v20 = vperm.slane %v11008_v43, %v8834_v46  ;;  %v3524_v9 = vperm.slane %v11010_v13, %v11000_v37  ;;  %v11024_v43 = vld [vmem:[#allocation205_spill] sm:$0xff] }
 0x6b1   :  { %v3577_v14 = vsel %vm3347_vm8, %v3576_v34, %v3575_v22  ;;  %v3432_v12 = vsel %vm3367_vm13, %v3431_v40, %v3430_v59  ;;  %v3303_v34 = vpop.permute.xlu0 %3302  ;;  %v3522_v44 = vperm.slane %v11011_v39, %v8821_v21  ;;  %v3580_v61 = vperm.slane %v3297_v19, %v8791_v38  ;;  %v11017_v19 = vld [vmem:[#allocation183_spill] sm:$0xff]  ;;  %v11019_v22 = vld [vmem:[#allocation77_spill] sm:$0xff] }
 0x6b2   :  { %v3521_v57 = vsel %vm10442_vm11, %v11009_v20, %v3519_v36  ;;  %v3579_v10 = vsel %vm10443_vm9, %v3578_v27, %v3577_v14  ;;  %v3552_v28 = vsel %vm10442_vm11, %v3551_v26, %v3550_v50  ;;  %v11013_v7 = vperm.slane %v11012_v54, %v11000_v37  ;;  %v3306_v50 = vpop.permute.xlu2 %3305 }
 0x6b3   :  { %v11015_v25 = vperm.slane %v11014_v30, %v8821_v21  ;;  %v3495_v5 = vperm.slane %v11016_v53, %v8849_v11  ;;  %v3554_v6 = vsel %vm3363_vm12, %v3553_v29, %v3552_v28  ;;  %v3464_v49 = vperm.slane %v11017_v19, %v8849_v11  ;;  %v11026_v53 = vld [vmem:[#allocation146_spill] sm:$0xff] }
 0x6b4   :  { %v3463_v47 = vsel %vm3367_vm13, %v11013_v7, %v3461_v4  ;;  %v3493_v40 = vperm.slane %v11018_v31, %v11000_v37  ;;  %v3523_v0 = vsel %vm3363_vm12, %v3522_v44, %v3521_v57  ;;  %v3581_v48 = vsel %vm10441_vm10, %v3580_v61, %v3579_v10 }
 0x6b5   :  { %v3492_v27 = vsel %vm3363_vm12, %v11015_v25, %v3490_v58  ;;  %v3584_v1 = vperm.slane %v3303_v34, %v8821_v21  ;;  %v11020_v36 = vperm.slane %v11019_v22, %v8849_v11  ;;  %v3525_v55 = vsel %vm3367_vm13, %v3524_v9, %v3523_v0  ;;  %v11023_v58 = vld [vmem:[#allocation32_spill] sm:$0xff] }
 0x6b6   :  { %v3300_v42 = vpop.permute.xlu1 %3299  ;;  %v3465_v33 = vsel %vm3371_vm14, %v3464_v49, %v3463_v47  ;;  %v3494_v56 = vsel %vm3367_vm13, %v3493_v40, %v3492_v27  ;;  %v11022_v29 = vperm.slane %v11021_v60, %v11000_v37  ;;  %vm3594_vm10 = vcmask 1043459   ;;  %v11028_v49 = vld [vmem:[#allocation139_spill] sm:$0xff] }
 0x6b7   :  { %v3582_v18 = vperm.slane %v3300_v42, %v8834_v46  ;;  %v3434_v14 = vsel %vm3371_vm14, %v11020_v36, %v3432_v12  ;;  %v3591_v59 = vsel %vm10444_vm5, %v3403_v63, %v9012_v35  ;;  %v3496_v4 = vsel %vm3371_vm14, %v3495_v5, %v3494_v56  ;;  %v11030_v36 = vld [vmem:[#allocation67_spill] sm:$0xff] }
 0x6b8   :  { %v3556_v41 = vsel %vm3367_vm13, %v11022_v29, %v3554_v6  ;;  %v3557_v52 = vperm.slane %v11023_v58, %v8849_v11  ;;  %v3593_v26 = vsel %vm10445_vm6, %v3434_v14, %v3591_v59  ;;  %v11025_v20 = vperm.slane %v11024_v43, %v8849_v11  ;;  %v11027_v6 = vld [vmem:[#allocation26_spill] sm:$0xff]  ;;  %v11032_v59 = vld [vmem:[#allocation85_spill] sm:$0xff] }
 0x6b9   :  { %v3583_v15 = vsel %vm10442_vm11, %v3582_v18, %v3581_v48  ;;  %vm3596_vm11 = vcmask 1044484   ;;  %vm3598_vm9 = vcmask 1045509   ;;  %v3586_v13 = vperm.slane %v3306_v50, %v11000_v37  ;;  %v9311_v18 = vld [vmem:[#allocation2] sm:$0xff] }
 0x6ba   :  { %v3585_v12 = vsel %vm3363_vm12, %v3584_v1, %v3583_v15  ;;  %v3527_v57 = vsel %vm3371_vm14, %v11025_v20, %v3525_v55  ;;  %v3558_v35 = vsel %vm3371_vm14, %v3557_v52, %v3556_v41  ;;  %v3595_v63 = vsel %vm3594_vm10, %v3465_v33, %v3593_v26  ;;  %v11029_v1 = vld [vmem:[#allocation88_spill] sm:$0xff]  ;;  %v11031_v55 = vld [vmem:[#allocation34_spill] sm:$0xff] }
 0x6bb   :  { %vm10448_vm5 = vcmask 1046534   ;;  %v3597_v42 = vsel %vm3596_vm11, %v3496_v4, %v3595_v63  ;;  %vm10447_vm6 = vcmask 1047559   ;;  %v3587_v34 = vsel %vm3367_vm13, %v3586_v13, %v3585_v12  ;;  %v11033_v58 = vld [vmem:[#allocation142_spill] sm:$0xff]  ;;  %v11034_v26 = vld [vmem:[#allocation100_spill] sm:$0xff]  ;;  %v11035_v63 = vld [vmem:[#allocation47_spill] sm:$0xff] }
 0x6bc   :  { %v3599_v39 = vsel %vm3598_vm9, %v3527_v57, %v3597_v42  ;;  %v11036_v42 = vld [vmem:[#allocation70_spill] sm:$0xff] }
 0x6bd   :  { %v3601_v61 = vsel %vm10448_vm5, %v3558_v35, %v3599_v39  ;;  %v11037_v39 = vld [vmem:[#allocation27_spill] sm:$0xff]  ;;  %vm11097_vm5 = vcmask 851712  }
 0x6be   :  { %v3309_v9 = vpop.permute.xlu1 %3308 }
 0x6bf   :  { %v3588_v10 = vperm.slane %v3309_v9, %v8849_v11 }
 0x6c1   :  { %v3589_v44 = vsel %vm3371_vm14, %v3588_v10, %v3587_v34 }
 0x6c2   :  { %v3603_v28 = vsel %vm10447_vm6, %v3589_v44, %v3601_v61  ;;  %vm11087_vm6 = vcmask 523712  }
 0x6c3   :  { %3605 = vmax.xlane.f32.xlu0 %v3603_v28 }
 0x736   :  { %v3606_v54 = vpop.xlane.xlu0 %3605 }
 0x737   :  { %v9314_v7 = vmax.f32 %v9311_v18, %v3606_v54 }
 0x739   :  { %v3608_v47 = vsub.f32 %v9311_v18, %v9314_v7  ;;  %5367 = vst.msk [vmem:[#allocation2] sm:$0xff] %vm10446_vm15, %v9314_v7  ;;  %3613 = vperm.xlu2 %5988, %v9314_v7  }
 0x793   :  { %v9321_v30 = vpop.permute.xlu2 %3613 }
 0x794   :  { %v9324_v25 = vperm.slane %v9321_v30, 0  ;;  %v9327_v27 = vperm.slane %v9321_v30, 1 }
 0x796   :  { %v3642_v5 = vsub.f32 %v11026_v53, %v9324_v25  ;;  %v3632_v19 = vsub.f32 %v11027_v6, %v9324_v25  ;;  %v3631_v31 = vsub.f32 %v11028_v49, %v9324_v25  ;;  %v3647_v22 = vsub.f32 %v11029_v1, %v9327_v27 }
 0x797   :  { %v3634_v14 = vsub.f32 %v11030_v36, %v9324_v25  ;;  %v3633_v15 = vsub.f32 %v11031_v55, %v9324_v25  ;;  %v3650_v4 = vsub.f32 %v11032_v59, %v9327_v27  ;;  %v3636_v52 = vsub.f32 %v11033_v58, %v9324_v25 }
 0x798   :  { %v3781_v40 = vmul.f32 1.442695, %v3642_v5  ;;  %v3761_v0 = vmul.f32 1.442695, %v3632_v19  ;;  %v3759_v48 = vmul.f32 1.442695, %v3631_v31  ;;  %v3635_v12 = vsub.f32 %v11034_v26, %v9324_v25 }
 0x799   :  { %v3791_v33 = vmul.f32 1.442695, %v3647_v22  ;;  %v3765_v56 = vmul.f32 1.442695, %v3634_v14  ;;  %v3763_v60 = vmul.f32 1.442695, %v3633_v15  ;;  %v3653_v10 = vsub.f32 %v11035_v63, %v9327_v27 }
 0x79a   :  { %6247 = vpow2.f32 %v3781_v40  ;;  %v3797_v43 = vmul.f32 1.442695, %v3650_v4  ;;  %v3769_v20 = vmul.f32 1.442695, %v3636_v52  ;;  %v3767_v13 = vmul.f32 1.442695, %v3635_v12 }
 0x79b   :  { %6249 = vpow2.f32 %v3761_v0  ;;  %v3638_v34 = vsub.f32 %v11036_v42, %v9324_v25  ;;  %v3637_v44 = vsub.f32 %v11037_v39, %v9324_v25  ;;  %v3803_v61 = vmul.f32 1.442695, %v3653_v10  ;;  %v11038_v19 = vld [vmem:[#allocation106_spill] sm:$0xff]  ;;  %v11039_v31 = vld [vmem:[#allocation31_spill] sm:$0xff]  ;;  %v11040_v0 = vld [vmem:[#allocation144_spill] sm:$0xff] }
 0x79c   :  { %6251 = vpow2.f32 %v3759_v48  ;;  %v3656_v49 = vsub.f32 %v11038_v19, %v9327_v27  ;;  %v3640_v40 = vsub.f32 %v11039_v31, %v9324_v25  ;;  %v3639_v48 = vsub.f32 %v11040_v0, %v9324_v25 }
 0x79d   :  { %6253 = vpow2.f32 %v3791_v33  ;;  %v3773_v28 = vmul.f32 1.442695, %v3638_v34  ;;  %v3771_v53 = vmul.f32 1.442695, %v3637_v44  ;;  %v11041_v33 = vld [vmem:[#allocation24_spill] sm:$0xff]  ;;  %v9372_v63 = vperm.slane %v9321_v30, 2 }
 0x79e   :  { %6255 = vpow2.f32 %v3765_v56  ;;  %v3809_v1 = vmul.f32 1.442695, %v3656_v49  ;;  %v3777_v22 = vmul.f32 1.442695, %v3640_v40  ;;  %v3775_v14 = vmul.f32 1.442695, %v3639_v48 }
 0x79f   :  { %6257 = vpow2.f32 %v3763_v60  ;;  %v3659_v56 = vsub.f32 %v11041_v33, %v9327_v27 }
 0x7a0   :  { %v6248_v50 = vpop.eup %6247  ;;  %6259 = vpow2.f32 %v3797_v43  ;;  %v11044_v43 = vld [vmem:[#allocation121_spill] sm:$0xff] }
 0x7a1   :  { %v6250_v29 = vpop.eup %6249  ;;  %4179 = vperm.xlu0 %5987, %v6248_v50   ;;  %6261 = vpow2.f32 %v3769_v20  ;;  %v11042_v50 = vld [vmem:[#allocation91_spill] sm:$0xff]  ;;  %v3815_v59 = vmul.f32 1.442695, %v3659_v56  ;;  %v3662_v20 = vsub.f32 %v11044_v43, %v9327_v27 }
 0x7a2   :  { %v6252_v41 = vpop.eup %6251  ;;  %4149 = vperm.xlu2 %5988, %v6250_v29   ;;  %6263 = vpow2.f32 %v3767_v13  ;;  %v3643_v60 = vsub.f32 %v11042_v50, %v9324_v25  ;;  %v11043_v29 = vld [vmem:[#allocation66_spill] sm:$0xff] }
 0x7a3   :  { %4146 = vperm.xlu1 %5989, %v6252_v41   ;;  %v6254_v57 = vpop.eup %6253  ;;  %6265 = vpow2.f32 %v3803_v61  ;;  %v3641_v41 = vsub.f32 %v11043_v29, %v9324_v25  ;;  %v3821_v10 = vmul.f32 1.442695, %v3662_v20 }
 0x7a4   :  { %v6256_v9 = vpop.eup %6255  ;;  %6267 = vpow2.f32 %v3773_v28  ;;  %v3783_v4 = vmul.f32 1.442695, %v3643_v60  ;;  %v11047_v28 = vld [vmem:[#allocation43_spill] sm:$0xff] }
 0x7a5   :  { %v6258_v35 = vpop.eup %6257  ;;  %6269 = vpow2.f32 %v3771_v53  ;;  %v3779_v52 = vmul.f32 1.442695, %v3641_v41  ;;  %v11048_v53 = vld [vmem:[#allocation150_spill] sm:$0xff] }
 0x7a6   :  { %v6260_v54 = vpop.eup %6259  ;;  %6271 = vpow2.f32 %v3809_v1  ;;  %v6696_v1 = vmov 0.0  }
 0x7a7   :  { %v6262_v5 = vpop.eup %6261  ;;  %6273 = vpow2.f32 %v3777_v22  ;;  %107 = vst.msk [vmem:[#allocation3] sm:$0xff] %vm10446_vm15, %v6696_v1  ;;  %v11061_v1 = vld [vmem:[#allocation76_spill] sm:$0xff]  ;;  %vm11086_vm15 = vcmask 458112  }
 0x7a8   :  { %v6264_v6 = vpop.eup %6263  ;;  %6275 = vpow2.f32 %v3775_v14 }
 0x7a9   :  { %4194 = vperm.xlu0 %5987, %v6254_v57   ;;  %v6266_v36 = vpop.eup %6265  ;;  %6277 = vpow2.f32 %v3815_v59  ;;  %v11045_v57 = vld [vmem:[#allocation147_spill] sm:$0xff] }
 0x7aa   :  { %4155 = vperm.xlu2 %5988, %v6256_v9   ;;  %v6268_v55 = vpop.eup %6267  ;;  %6279 = vpow2.f32 %v3783_v4  ;;  %v3645_v13 = vsub.f32 %v11045_v57, %v9324_v25  ;;  %v11046_v9 = vld [vmem:[#allocation118_spill] sm:$0xff]  ;;  %v11053_v4 = vld [vmem:[#allocation135_spill] sm:$0xff] }
 0x7ab   :  { %4152 = vperm.xlu1 %5989, %v6258_v35   ;;  %v6270_v15 = vpop.eup %6269  ;;  %6281 = vpow2.f32 %v3779_v52  ;;  %v3644_v35 = vsub.f32 %v11046_v9, %v9324_v25  ;;  %v11054_v52 = vld [vmem:[#allocation152_spill] sm:$0xff] }
 0x7ac   :  { %v6272_v58 = vpop.eup %6271  ;;  %v3787_v42 = vmul.f32 1.442695, %v3645_v13  ;;  %6283 = vpow2.f32 %v3821_v10 }
 0x7ad   :  { %v6274_v26 = vpop.eup %6273  ;;  %v3785_v39 = vmul.f32 1.442695, %v3644_v35 }
 0x7ae   :  { %v6276_v12 = vpop.eup %6275  ;;  %6285 = vpow2.f32 %v3787_v42  ;;  %v11056_v42 = vld [vmem:[#allocation72_spill] sm:$0xff] }
 0x7af   :  { %v6278_v34 = vpop.eup %6277  ;;  %6287 = vpow2.f32 %v3785_v39  ;;  %v11057_v39 = vld [vmem:[#allocation154_spill] sm:$0xff] }
 0x7b0   :  { %v6280_v44 = vpop.eup %6279 }
 0x7b1   :  { %4203 = vperm.xlu0 %5987, %v6260_v54   ;;  %v6282_v61 = vpop.eup %6281  ;;  %v3665_v54 = vsub.f32 %v11047_v28, %v9372_v63 }
 0x7b2   :  { %4161 = vperm.xlu2 %5988, %v6262_v5   ;;  %v3648_v5 = vsub.f32 %v11048_v53, %v9327_v27  ;;  %v6284_v40 = vpop.eup %6283 }
 0x7b3   :  { %4158 = vperm.xlu1 %5989, %v6264_v6   ;;  %v11049_v6 = vld [vmem:[#allocation60_spill] sm:$0xff]  ;;  %v3827_v49 = vmul.f32 1.442695, %v3665_v54 }
 0x7b4   :  { %v3646_v19 = vsub.f32 %v11049_v6, %v9324_v25  ;;  %v3793_v31 = vmul.f32 1.442695, %v3648_v5  ;;  %v6286_v48 = vpop.eup %6285 }
 0x7b5   :  { %v6288_v22 = vpop.eup %6287  ;;  %6289 = vpow2.f32 %v3827_v49 }
 0x7b6   :  { %v3789_v0 = vmul.f32 1.442695, %v3646_v19  ;;  %6291 = vpow2.f32 %v3793_v31  ;;  %v11059_v31 = vld [vmem:[#allocation120_spill] sm:$0xff] }
 0x7b8   :  { %6293 = vpow2.f32 %v3789_v0  ;;  %v11060_v0 = vld [vmem:[#allocation155_spill] sm:$0xff] }
 0x7b9   :  { %4212 = vperm.xlu0 %5987, %v6266_v36   ;;  %v11050_v36 = vld [vmem:[#allocation50_spill] sm:$0xff] }
 0x7ba   :  { %4167 = vperm.xlu2 %5988, %v6268_v55   ;;  %v3668_v14 = vsub.f32 %v11050_v36, %v9372_v63  ;;  %v11051_v55 = vld [vmem:[#allocation151_spill] sm:$0xff]  ;;  %v9406_v36 = vperm.slane %v9321_v30, 3 }
 0x7bb   :  { %4164 = vperm.xlu1 %5989, %v6270_v15   ;;  %v3651_v25 = vsub.f32 %v11051_v55, %v9327_v27  ;;  %v11052_v15 = vld [vmem:[#allocation62_spill] sm:$0xff]  ;;  %v6290_v60 = vpop.eup %6289 }
 0x7bc   :  { %v3649_v33 = vsub.f32 %v11052_v15, %v9327_v27  ;;  %v3833_v56 = vmul.f32 1.442695, %v3668_v14  ;;  %v6292_v41 = vpop.eup %6291 }
 0x7bd   :  { %v3799_v50 = vmul.f32 1.442695, %v3651_v25 }
 0x7be   :  { %v3795_v29 = vmul.f32 1.442695, %v3649_v33  ;;  %v6294_v59 = vpop.eup %6293  ;;  %6295 = vpow2.f32 %v3833_v56 }
 0x7bf   :  { %6297 = vpow2.f32 %v3799_v50  ;;  %v11062_v50 = vld [vmem:[#allocation87_spill] sm:$0xff] }
 0x7c0   :  { %6299 = vpow2.f32 %v3795_v29  ;;  %v11063_v29 = vld [vmem:[#allocation156_spill] sm:$0xff] }
 0x7c1   :  { %4221 = vperm.xlu0 %5987, %v6272_v58   ;;  %v3671_v58 = vsub.f32 %v11053_v4, %v9372_v63 }
 0x7c2   :  { %4173 = vperm.xlu2 %5988, %v6274_v26   ;;  %v3654_v26 = vsub.f32 %v11054_v52, %v9327_v27 }
 0x7c3   :  { %4170 = vperm.xlu1 %5989, %v6276_v12   ;;  %v11055_v12 = vld [vmem:[#allocation39_spill] sm:$0xff]  ;;  %v3839_v20 = vmul.f32 1.442695, %v3671_v58 }
 0x7c4   :  { %v3652_v43 = vsub.f32 %v11055_v12, %v9327_v27  ;;  %v3805_v57 = vmul.f32 1.442695, %v3654_v26  ;;  %v6296_v13 = vpop.eup %6295 }
 0x7c5   :  { %v6298_v35 = vpop.eup %6297  ;;  %6301 = vpow2.f32 %v3839_v20 }
 0x7c6   :  { %v3801_v9 = vmul.f32 1.442695, %v3652_v43  ;;  %v6300_v10 = vpop.eup %6299  ;;  %6303 = vpow2.f32 %v3805_v57  ;;  %v11065_v57 = vld [vmem:[#allocation108_spill] sm:$0xff] }
 0x7c8   :  { %6305 = vpow2.f32 %v3801_v9  ;;  %v11066_v9 = vld [vmem:[#allocation157_spill] sm:$0xff] }
 0x7c9   :  { %4230 = vperm.xlu0 %5987, %v6278_v34   ;;  %v3674_v34 = vsub.f32 %v11056_v42, %v9372_v63 }
 0x7ca   :  { %4182 = vperm.xlu2 %5988, %v6280_v44   ;;  %v3657_v44 = vsub.f32 %v11057_v39, %v9327_v27 }
 0x7cb   :  { %4176 = vperm.xlu1 %5989, %v6282_v61   ;;  %v11058_v61 = vld [vmem:[#allocation29_spill] sm:$0xff]  ;;  %v3845_v54 = vmul.f32 1.442695, %v3674_v34  ;;  %v6302_v5 = vpop.eup %6301 }
 0x7cc   :  { %v3655_v28 = vsub.f32 %v11058_v61, %v9327_v27  ;;  %v3811_v53 = vmul.f32 1.442695, %v3657_v44  ;;  %v6304_v19 = vpop.eup %6303 }
 0x7cd   :  { %6307 = vpow2.f32 %v3845_v54 }
 0x7ce   :  { %v3807_v6 = vmul.f32 1.442695, %v3655_v28  ;;  %v6306_v49 = vpop.eup %6305  ;;  %6309 = vpow2.f32 %v3811_v53  ;;  %v11068_v53 = vld [vmem:[#allocation23_spill] sm:$0xff] }
 0x7d0   :  { %6311 = vpow2.f32 %v3807_v6  ;;  %v11069_v6 = vld [vmem:[#allocation159_spill] sm:$0xff] }
 0x7d1   :  { %4239 = vperm.xlu0 %5987, %v6284_v40   ;;  %v3677_v40 = vsub.f32 %v11059_v31, %v9372_v63  ;;  %v11070_v31 = vld [vmem:[#allocation94_spill] sm:$0xff] }
 0x7d2   :  { %4188 = vperm.xlu2 %5988, %v6286_v48   ;;  %v3660_v48 = vsub.f32 %v11060_v0, %v9327_v27 }
 0x7d3   :  { %4185 = vperm.xlu1 %5989, %v6288_v22   ;;  %v3658_v22 = vsub.f32 %v11061_v1, %v9327_v27  ;;  %v3851_v14 = vmul.f32 1.442695, %v3677_v40  ;;  %v6308_v25 = vpop.eup %6307  ;;  %v3667_v40 = vsub.f32 %v11070_v31, %v9372_v63 }
 0x7d4   :  { %v3817_v55 = vmul.f32 1.442695, %v3660_v48  ;;  %v6310_v33 = vpop.eup %6309 }
 0x7d5   :  { %v3813_v15 = vmul.f32 1.442695, %v3658_v22  ;;  %6313 = vpow2.f32 %v3851_v14  ;;  %v3831_v22 = vmul.f32 1.442695, %v3667_v40 }
 0x7d6   :  { %v6312_v56 = vpop.eup %6311  ;;  %6315 = vpow2.f32 %v3817_v55 }
 0x7d7   :  { %6317 = vpow2.f32 %v3813_v15 }
 0x7d9   :  { %4248 = vperm.xlu0 %5987, %v6290_v60   ;;  %v3680_v60 = vsub.f32 %v11062_v50, %v9406_v36 }
 0x7da   :  { %4197 = vperm.xlu2 %5988, %v6292_v41   ;;  %v3663_v41 = vsub.f32 %v11063_v29, %v9372_v63 }
 0x7db   :  { %4191 = vperm.xlu1 %5989, %v6294_v59   ;;  %v11064_v59 = vld [vmem:[#allocation44_spill] sm:$0xff]  ;;  %v3857_v58 = vmul.f32 1.442695, %v3680_v60  ;;  %v6314_v26 = vpop.eup %6313  ;;  %v11073_v60 = vld [vmem:[#allocation103_spill] sm:$0xff] }
 0x7dc   :  { %v3661_v4 = vsub.f32 %v11064_v59, %v9327_v27  ;;  %v3823_v52 = vmul.f32 1.442695, %v3663_v41  ;;  %v6316_v43 = vpop.eup %6315  ;;  %v11067_v27 = vld [vmem:[#allocation36_spill] sm:$0xff]  ;;  %v3670_v29 = vsub.f32 %v11073_v60, %v9372_v63 }
 0x7dd   :  { %v6318_v20 = vpop.eup %6317  ;;  %6319 = vpow2.f32 %v3857_v58  ;;  %v3664_v42 = vsub.f32 %v11067_v27, %v9372_v63  ;;  %v190_v59 = vld [vmem:[#allocation9 + $0x4] sm:$0xff]  }
 0x7de   :  { %v3819_v12 = vmul.f32 1.442695, %v3661_v4  ;;  %6321 = vpow2.f32 %v3823_v52  ;;  %v189_v4 = vld [vmem:[#allocation9] sm:$0xf]  ;;  %v11075_v27 = vld [vmem:[#allocation161_spill] sm:$0xff] }
 0x7df   :  { %v3825_v61 = vmul.f32 1.442695, %v3664_v42  ;;  %v3675_v42 = vsub.f32 %v11075_v27, %v9372_v63 }
 0x7e0   :  { %6323 = vpow2.f32 %v3819_v12 }
 0x7e1   :  { %4257 = vperm.xlu0 %5987, %v6296_v13   ;;  %v3683_v13 = vsub.f32 %v11065_v57, %v9406_v36  ;;  %v3847_v31 = vmul.f32 1.442695, %v3675_v42 }
 0x7e2   :  { %4206 = vperm.xlu2 %5988, %v6298_v35   ;;  %v3666_v35 = vsub.f32 %v11066_v9, %v9372_v63  ;;  %v4797_v9 = vunpack.c.l.bf16 %v189_v4  ;;  %v11079_v4 = vld [vmem:[#allocation46_spill] sm:$0xff] }
 0x7e3   :  { %4200 = vperm.xlu1 %5989, %v6300_v10   ;;  %v3863_v34 = vmul.f32 1.442695, %v3683_v13  ;;  %v6320_v44 = vpop.eup %6319  ;;  %v4798_v13 = vunpack.c.l.bf16 %v190_v59 }
 0x7e4   :  { %v3829_v39 = vmul.f32 1.442695, %v3666_v35  ;;  %v6322_v28 = vpop.eup %6321 }
 0x7e5   :  { %6325 = vpow2.f32 %v3863_v34 }
 0x7e6   :  { %v6324_v54 = vpop.eup %6323  ;;  %6327 = vpow2.f32 %v3829_v39  ;;  %v11076_v39 = vld [vmem:[#allocation112_spill] sm:$0xff] }
 0x7e7   :  { %6329 = vpow2.f32 %v3825_v61  ;;  %v9449_v61 = vperm.slane %v9321_v30, 4 }
 0x7e9   :  { %4266 = vperm.xlu0 %5987, %v6302_v5   ;;  %v3686_v5 = vsub.f32 %v11068_v53, %v9406_v36 }
 0x7ea   :  { %4215 = vperm.xlu2 %5988, %v6304_v19   ;;  %v3669_v19 = vsub.f32 %v11069_v6, %v9372_v63 }
 0x7eb   :  { %4209 = vperm.xlu1 %5989, %v6306_v49   ;;  %v3869_v0 = vmul.f32 1.442695, %v3686_v5  ;;  %v6326_v1 = vpop.eup %6325 }
 0x7ec   :  { %v3835_v48 = vmul.f32 1.442695, %v3669_v19  ;;  %v6328_v14 = vpop.eup %6327 }
 0x7ed   :  { %v6330_v55 = vpop.eup %6329  ;;  %6331 = vpow2.f32 %v3869_v0 }
 0x7ee   :  { %6333 = vpow2.f32 %v3835_v48 }
 0x7ef   :  { %6335 = vpow2.f32 %v3831_v22 }
 0x7f1   :  { %4275 = vperm.xlu0 %5987, %v6308_v25   ;;  %v11071_v25 = vld [vmem:[#allocation123_spill] sm:$0xff] }
 0x7f2   :  { %4224 = vperm.xlu2 %5988, %v6310_v33   ;;  %v3689_v15 = vsub.f32 %v11071_v25, %v9406_v36  ;;  %v11072_v33 = vld [vmem:[#allocation160_spill] sm:$0xff]  ;;  %v4799_v25 = vunpack.c.h.bf16 %v190_v59 }
 0x7f3   :  { %4218 = vperm.xlu1 %5989, %v6312_v56   ;;  %v3672_v56 = vsub.f32 %v11072_v33, %v9372_v63  ;;  %v6332_v52 = vpop.eup %6331 }
 0x7f4   :  { %v3875_v41 = vmul.f32 1.442695, %v3689_v15  ;;  %v6334_v12 = vpop.eup %6333  ;;  %v11077_v15 = vld [vmem:[#allocation122_spill] sm:$0xff] }
 0x7f5   :  { %v3841_v58 = vmul.f32 1.442695, %v3672_v56  ;;  %v6336_v57 = vpop.eup %6335  ;;  %v3695_v33 = vsub.f32 %v11077_v15, %v9449_v61  ;;  %v11078_v56 = vld [vmem:[#allocation162_spill] sm:$0xff] }
 0x7f6   :  { %6337 = vpow2.f32 %v3875_v41  ;;  %v3678_v60 = vsub.f32 %v11078_v56, %v9372_v63 }
 0x7f7   :  { %6339 = vpow2.f32 %v3841_v58  ;;  %v3676_v58 = vsub.f32 %v11079_v4, %v9372_v63 }
 0x7f9   :  { %4284 = vperm.xlu0 %5987, %v6314_v26   ;;  %v3837_v26 = vmul.f32 1.442695, %v3670_v29  ;;  %v3849_v42 = vmul.f32 1.442695, %v3676_v58 }
 0x7fa   :  { %4233 = vperm.xlu2 %5988, %v6316_v43   ;;  %v11074_v43 = vld [vmem:[#allocation49_spill] sm:$0xff] }
 0x7fb   :  { %4227 = vperm.xlu1 %5989, %v6318_v20   ;;  %v3692_v20 = vsub.f32 %v11074_v43, %v9406_v36  ;;  %6341 = vpow2.f32 %v3837_v26 }
 0x7fc   :  { %v9418_v10 = vpop.permute.xlu2 %4149  ;;  %v6338_v40 = vpop.eup %6337 }
 0x7fd   :  { %v4530_v53 = vperm.slane %v9418_v10, %v8757_v32  ;;  %v5054_v5 = vmul.f32 %v4798_v13, %v9418_v10  ;;  %v6340_v22 = vpop.eup %6339 }
 0x801   :  { %4293 = vperm.xlu0 %5987, %v6320_v44   ;;  %v3673_v44 = vsub.f32 %v11076_v39, %v9372_v63 }
 0x802   :  { %4242 = vperm.xlu2 %5988, %v6322_v28  }
 0x803   :  { %4236 = vperm.xlu1 %5989, %v6324_v54   ;;  %v3881_v54 = vmul.f32 1.442695, %v3692_v20  ;;  %v3853_v20 = vmul.f32 1.442695, %v3678_v60 }
 0x804   :  { %v9426_v49 = vpop.permute.xlu2 %4155 }
 0x805   :  { %6343 = vpow2.f32 %v3881_v54  ;;  %v4534_v43 = vperm.slane %v9426_v49, %v8781_v8 }
 0x806   :  { %6345 = vpow2.f32 %v3847_v31 }
 0x809   :  { %4302 = vperm.xlu0 %5987, %v6326_v1   ;;  %v3843_v1 = vmul.f32 1.442695, %v3673_v44  ;;  %v194_v44 = vld [vmem:[#allocation9 + $0x14] sm:$0xff]  }
 0x80a   :  { %4251 = vperm.xlu2 %5988, %v6328_v14   ;;  %v192_v14 = vld [vmem:[#allocation9 + $0xc] sm:$0xff]  }
 0x80b   :  { %4245 = vperm.xlu1 %5989, %v6330_v55   ;;  %v6342_v55 = vpop.eup %6341  ;;  %v4800_v29 = vunpack.c.l.bf16 %v192_v14  ;;  %6347 = vpow2.f32 %v3843_v1  ;;  %v4801_v54 = vunpack.c.h.bf16 %v192_v14 }
 0x80c   :  { %v9434_v50 = vpop.permute.xlu2 %4161 }
 0x80d   :  { %v5056_v13 = vmul.f32 %v4800_v29, %v9426_v49  ;;  %v11081_v49 = vld [vmem:[#allocation163_spill] sm:$0xff]  ;;  %v4538_v15 = vperm.slane %v9434_v50, %v8778_v51 }
 0x80e   :  { %v3681_v31 = vsub.f32 %v11081_v49, %v9406_v36 }
 0x811   :  { %4311 = vperm.xlu0 %5987, %v6332_v52  }
 0x812   :  { %4260 = vperm.xlu2 %5988, %v6334_v12   ;;  %v3887_v12 = vmul.f32 1.442695, %v3695_v33  ;;  %v3859_v33 = vmul.f32 1.442695, %v3681_v31 }
 0x813   :  { %4254 = vperm.xlu1 %5989, %v6336_v57   ;;  %v9440_v35 = vpop.permute.xlu0 %4179  ;;  %v6344_v57 = vpop.eup %6343 }
 0x814   :  { %v9444_v34 = vpop.permute.xlu2 %4167  ;;  %v6346_v39 = vpop.eup %6345  ;;  %6349 = vpow2.f32 %v3887_v12 }
 0x815   :  { %v4147_v28 = vpop.permute.xlu1 %4146  ;;  %6351 = vpow2.f32 %v3853_v20  ;;  %v4542_v49 = vperm.slane %v9444_v34, %v8811_v45 }
 0x816   :  { %v4529_v6 = vperm.slane %v4147_v28, %v8754_v24  ;;  %v5053_v19 = vmul.f32 %v4797_v9, %v4147_v28  ;;  %v6348_v28 = vpop.eup %6347  ;;  %6353 = vpow2.f32 %v3849_v42 }
 0x818   :  { %v4531_v0 = vsel %vm3315_vm0, %v4530_v53, %v4529_v6  ;;  %v5181_v48 = vadd.f32 %v5054_v5, %v5053_v19  ;;  %v11080_v5 = vld [vmem:[#allocation68_spill] sm:$0xff] }
 0x819   :  { %4320 = vperm.xlu0 %5987, %v6338_v40   ;;  %v3698_v6 = vsub.f32 %v11080_v5, %v9449_v61  ;;  %v4802_v40 = vunpack.c.l.bf16 %v194_v44 }
 0x81a   :  { %4269 = vperm.xlu2 %5988, %v6340_v22   ;;  %v6350_v56 = vpop.eup %6349 }
 0x81b   :  { %4263 = vperm.xlu1 %5989, %v6342_v55   ;;  %v9458_v10 = vpop.permute.xlu0 %4194  ;;  %v5058_v60 = vmul.f32 %v4802_v40, %v9434_v50  ;;  %v11084_v50 = vld [vmem:[#allocation164_spill] sm:$0xff] }
 0x81c   :  { %v9462_v41 = vpop.permute.xlu2 %4173 }
 0x81d   :  { %v4153_v52 = vpop.permute.xlu1 %4152 }
 0x81e   :  { %v4532_v59 = vperm.slane %v4153_v52, %v8760_v2  ;;  %v5055_v26 = vmul.f32 %v4799_v25, %v4153_v52  ;;  %v3893_v25 = vmul.f32 1.442695, %v3698_v6  ;;  %v6352_v52 = vpop.eup %6351 }
 0x81f   :  { %v6354_v12 = vpop.eup %6353 }
 0x820   :  { %v4533_v9 = vsel %vm3319_vm1, %v4532_v59, %v4531_v0  ;;  %v5182_v27 = vadd.f32 %v5181_v48, %v5055_v26  ;;  %v11082_v48 = vld [vmem:[#allocation131_spill] sm:$0xff]  ;;  %6355 = vpow2.f32 %v3893_v25 }
 0x821   :  { %4329 = vperm.xlu0 %5987, %v6344_v57   ;;  %v4535_v63 = vsel %vm3323_vm2, %v4534_v43, %v4533_v9  ;;  %v3679_v1 = vsub.f32 %v11082_v48, %v9406_v36  ;;  %v196_v59 = vld [vmem:[#allocation9 + $0x1c] sm:$0xff]   ;;  %v4803_v43 = vunpack.c.h.bf16 %v194_v44  ;;  %v11083_v57 = vld [vmem:[#allocation74_spill] sm:$0xff]  ;;  %6357 = vpow2.f32 %v3859_v33 }
 0x822   :  { %4278 = vperm.xlu2 %5988, %v6346_v39   ;;  %v5183_v53 = vadd.f32 %v5182_v27, %v5056_v13  ;;  %v3701_v13 = vsub.f32 %v11083_v57, %v9449_v61  ;;  %v3684_v27 = vsub.f32 %v11084_v50, %v9406_v36  ;;  %v4804_v42 = vunpack.c.l.bf16 %v196_v59  ;;  %v11090_v57 = vld [vmem:[#allocation57_spill] sm:$0xff] }
 0x823   :  { %4272 = vperm.xlu1 %5989, %v6348_v28   ;;  %v9474_v19 = vpop.permute.xlu0 %4203  ;;  %v3855_v58 = vmul.f32 1.442695, %v3679_v1 }
 0x824   :  { %v9478_v0 = vpop.permute.xlu2 %4182  ;;  %v3899_v6 = vmul.f32 1.442695, %v3701_v13  ;;  %v3865_v31 = vmul.f32 1.442695, %v3684_v27  ;;  %v5060_v48 = vmul.f32 %v4804_v42, %v9444_v34  ;;  %v3685_v13 = vsub.f32 %v11090_v57, %v9406_v36 }
 0x825   :  { %v4159_v22 = vpop.permute.xlu1 %4158  ;;  %6359 = vpow2.f32 %v3855_v58  ;;  %v11088_v58 = vld [vmem:[#allocation92_spill] sm:$0xff] }
 0x826   :  { %v4536_v14 = vperm.slane %v4159_v22, %v8775_v16  ;;  %v5057_v55 = vmul.f32 %v4801_v54, %v4159_v22  ;;  %v205_v54 = vld [vmem:[#allocation9 + $0x40] sm:$0xff]   ;;  %v6356_v40 = vpop.eup %6355  ;;  %6361 = vpow2.f32 %v3899_v6 }
 0x827   :  { %v4813_v25 = vunpack.c.l.bf16 %v205_v54  ;;  %v4814_v33 = vunpack.c.h.bf16 %v205_v54  ;;  %6363 = vpow2.f32 %v3865_v31 }
 0x828   :  { %v4537_v29 = vsel %vm3327_vm3, %v4536_v14, %v4535_v63  ;;  %v5184_v4 = vadd.f32 %v5183_v53, %v5057_v55  ;;  %v11085_v63 = vld [vmem:[#allocation63_spill] sm:$0xff]  ;;  %v6358_v55 = vpop.eup %6357 }
 0x829   :  { %4338 = vperm.xlu0 %5987, %v6350_v56   ;;  %v4539_v26 = vsel %vm3331_vm4, %v4538_v15, %v4537_v29  ;;  %v3682_v28 = vsub.f32 %v11085_v63, %v9406_v36  ;;  %v198_v15 = vld [vmem:[#allocation9 + $0x24] sm:$0xff]   ;;  %v4805_v29 = vunpack.c.h.bf16 %v196_v59  ;;  %v4560_v59 = vperm.slane %v9458_v10, %v8754_v24 }
 0x82a   :  { %4287 = vperm.xlu2 %5988, %v6352_v52   ;;  %v5185_v20 = vadd.f32 %v5184_v4, %v5058_v60  ;;  %v3704_v52 = vsub.f32 %v11088_v58, %v9449_v61  ;;  %v5069_v50 = vmul.f32 %v4813_v25, %v9458_v10  ;;  %v11091_v25 = vld [vmem:[#allocation101_spill] sm:$0xff] }
 0x82b   :  { %4281 = vperm.xlu1 %5989, %v6354_v12   ;;  %v9490_v9 = vpop.permute.xlu0 %4212  ;;  %v3861_v14 = vmul.f32 1.442695, %v3682_v28  ;;  %v6360_v60 = vpop.eup %6359 }
 0x82c   :  { %v9494_v39 = vpop.permute.xlu2 %4188  ;;  %v3905_v54 = vmul.f32 1.442695, %v3704_v52  ;;  %v6362_v31 = vpop.eup %6361 }
 0x82d   :  { %v4165_v44 = vpop.permute.xlu1 %4164  ;;  %6365 = vpow2.f32 %v3861_v14  ;;  %v200_v14 = vld [vmem:[#allocation9 + $0x2c] sm:$0xff]  }
 0x82e   :  { %v4540_v53 = vperm.slane %v4165_v44, %v8824_v23  ;;  %v5059_v5 = vmul.f32 %v4803_v43, %v4165_v44  ;;  %v4806_v43 = vunpack.c.l.bf16 %v198_v15  ;;  %6367 = vpow2.f32 %v3905_v54 }
 0x82f   :  { %v4552_v54 = vperm.slane %v9478_v0, %v8834_v46 }
 0x830   :  { %v4541_v1 = vsel %vm11086_vm15, %v4540_v53, %v4539_v26  ;;  %v5186_v22 = vadd.f32 %v5185_v20, %v5059_v5  ;;  %v11089_v26 = vld [vmem:[#allocation165_spill] sm:$0xff]  ;;  %v4546_v53 = vperm.slane %v9462_v41, %v8827_v62  ;;  %v5062_v10 = vmul.f32 %v4806_v43, %v9462_v41  ;;  %v11092_v41 = vld [vmem:[#allocation166_spill] sm:$0xff] }
 0x831   :  { %4347 = vperm.xlu0 %5987, %v6356_v40   ;;  %v4543_v56 = vsel %vm11087_vm6, %v4542_v49, %v4541_v1  ;;  %v3687_v12 = vsub.f32 %v11089_v26, %v9406_v36  ;;  %v3867_v1 = vmul.f32 1.442695, %v3685_v13  ;;  %v4809_v13 = vunpack.c.h.bf16 %v200_v14 }
 0x832   :  { %4296 = vperm.xlu2 %5988, %v6358_v55   ;;  %v5187_v4 = vadd.f32 %v5186_v22, %v5060_v48  ;;  %v6364_v22 = vpop.eup %6363  ;;  %vm11094_vm6 = vcmask 720512   ;;  %vm11095_vm15 = vcmask 786112  }
 0x833   :  { %4290 = vperm.xlu1 %5989, %v6360_v60   ;;  %v9506_v34 = vpop.permute.xlu0 %4221  ;;  %v3871_v49 = vmul.f32 1.442695, %v3687_v12  ;;  %v6366_v60 = vpop.eup %6365  ;;  %v4808_v12 = vunpack.c.l.bf16 %v200_v14  ;;  %v5065_v14 = vmul.f32 %v4809_v13, %v9478_v0 }
 0x834   :  { %v4198_v20 = vpop.permute.xlu2 %4197 }
 0x835   :  { %v4561_v27 = vperm.slane %v4198_v20, %v8757_v32  ;;  %v5070_v42 = vmul.f32 %v4814_v33, %v4198_v20  ;;  %v4171_v63 = vpop.permute.xlu1 %4170  ;;  %v3707_v33 = vsub.f32 %v11091_v25, %v9449_v61  ;;  %6369 = vpow2.f32 %v3871_v49 }
 0x836   :  { %v4544_v28 = vperm.slane %v4171_v63, %v8785_v17  ;;  %v5061_v44 = vmul.f32 %v4805_v29, %v4171_v63  ;;  %v4807_v29 = vunpack.c.h.bf16 %v198_v15  ;;  %6371 = vpow2.f32 %v3867_v1 }
 0x837   :  { %v9520_v5 = vsel %vm3315_vm0, %v4561_v27, %v4560_v59  ;;  %v9522_v6 = vadd.f32 %v5070_v42, %v5069_v50  ;;  %v3911_v57 = vmul.f32 1.442695, %v3707_v33  ;;  %v4550_v50 = vperm.slane %v9440_v35, %v8791_v38  ;;  %v202_v27 = vld [vmem:[#allocation9 + $0x34] sm:$0xf] }
 0x838   :  { %v4545_v40 = vsel %vm3343_vm7, %v4544_v28, %v4543_v56  ;;  %v5188_v48 = vadd.f32 %v5187_v4, %v5061_v44  ;;  %v3690_v56 = vsub.f32 %v11092_v41, %v9406_v36  ;;  %v11093_v4 = vld [vmem:[#allocation69_spill] sm:$0xff]  ;;  %v6368_v28 = vpop.eup %6367  ;;  %v5064_v44 = vmul.f32 %v4808_v12, %v9440_v35 }
 0x839   :  { %4356 = vperm.xlu0 %5987, %v6362_v31   ;;  %v4547_v55 = vsel %vm3347_vm8, %v4546_v53, %v4545_v40  ;;  %v3688_v26 = vsub.f32 %v11093_v4, %v9406_v36  ;;  %6373 = vpow2.f32 %v3911_v57  ;;  %v4810_v33 = vunpack.c.l.bf16 %v202_v27  ;;  %v11099_v4 = vld [vmem:[#allocation78_spill] sm:$0xff] }
 0x83a   :  { %4305 = vperm.xlu2 %5988, %v6364_v22   ;;  %v5189_v58 = vadd.f32 %v5188_v48, %v5062_v10  ;;  %v3877_v42 = vmul.f32 1.442695, %v3690_v56  ;;  %v203_v10 = vld [vmem:[#allocation9 + $0x38] sm:$0xff]   ;;  %v11096_v48 = vld [vmem:[#allocation110_spill] sm:$0xff]  ;;  %v3691_v0 = vsub.f32 %v11099_v4, %v9406_v36  ;;  %v9558_v12 = vperm.slane %v9321_v30, 5 }
 0x83b   :  { %4299 = vperm.xlu1 %5989, %v6366_v60   ;;  %v9529_v52 = vpop.permute.xlu0 %4230  ;;  %v3873_v63 = vmul.f32 1.442695, %v3688_v26  ;;  %v6370_v31 = vpop.eup %6369  ;;  %v3710_v1 = vsub.f32 %v11096_v48, %v9449_v61  ;;  %v11098_v60 = vld [vmem:[#allocation167_spill] sm:$0xff] }
 0x83c   :  { %v9535_v43 = vpop.permute.xlu2 %4206  ;;  %v6372_v22 = vpop.eup %6371  ;;  %6375 = vpow2.f32 %v3877_v42 }
 0x83d   :  { %v4177_v20 = vpop.permute.xlu1 %4176  ;;  %6377 = vpow2.f32 %v3873_v63  ;;  %v3917_v13 = vmul.f32 1.442695, %v3710_v1 }
 0x83e   :  { %v4548_v15 = vperm.slane %v4177_v20, %v8814_v3  ;;  %v5063_v59 = vmul.f32 %v4807_v29, %v4177_v20  ;;  %v3693_v29 = vsub.f32 %v11098_v60, %v9406_v36 }
 0x83f   :  { %6379 = vpow2.f32 %v3917_v13  ;;  %v208_v13 = vld [vmem:[#allocation9 + $0x4c] sm:$0xff]  }
 0x840   :  { %v4549_v53 = vsel %vm11094_vm6, %v4548_v15, %v4547_v55  ;;  %v5190_v49 = vadd.f32 %v5189_v58, %v5063_v59  ;;  %v4811_v58 = vunpack.c.l.bf16 %v203_v10  ;;  %v6374_v15 = vpop.eup %6373  ;;  %v4556_v59 = vperm.slane %v9494_v39, %v11000_v37 }
 0x841   :  { %v4551_v40 = vsel %vm11095_vm15, %v4550_v50, %v4549_v53  ;;  %4365 = vperm.xlu0 %5987, %v6368_v28   ;;  %v3883_v50 = vmul.f32 1.442695, %v3693_v29  ;;  %v3879_v28 = vmul.f32 1.442695, %v3691_v0  ;;  %vm11111_vm6 = vcmask 523712  }
 0x842   :  { %v5191_v25 = vadd.f32 %v5190_v49, %v5064_v44  ;;  %4314 = vperm.xlu2 %5988, %v6370_v31   ;;  %v4553_v35 = vsel %vm11097_vm5, %v4552_v54, %v4551_v40  ;;  %v5067_v27 = vmul.f32 %v4811_v58, %v9494_v39  ;;  %v6376_v44 = vpop.eup %6375  ;;  %v4812_v49 = vunpack.c.h.bf16 %v203_v10  ;;  %v11100_v40 = vld [vmem:[#allocation119_spill] sm:$0xff]  ;;  %v11101_v39 = vld [vmem:[#allocation168_spill] sm:$0xff]  ;;  %v207_v58 = vld [vmem:[#allocation9 + $0x48] sm:$0xf] }
 0x843   :  { %4308 = vperm.xlu1 %5989, %v6372_v22   ;;  %v9549_v55 = vpop.permute.xlu0 %4239  ;;  %v6378_v53 = vpop.eup %6377  ;;  %v3713_v48 = vsub.f32 %v11100_v40, %v9558_v12  ;;  %6381 = vpow2.f32 %v3883_v50  ;;  %v3696_v22 = vsub.f32 %v11101_v39, %v9449_v61  ;;  %v4815_v50 = vunpack.c.l.bf16 %v207_v58 }
 0x844   :  { %v9553_v41 = vpop.permute.xlu2 %4215  ;;  %v5192_v56 = vadd.f32 %v5191_v25, %v5065_v14  ;;  %6383 = vpow2.f32 %v3879_v28  ;;  %v11102_v25 = vld [vmem:[#allocation99_spill] sm:$0xff]  ;;  %v11105_v28 = vld [vmem:[#allocation105_spill] sm:$0xff]  ;;  %v4817_v40 = vunpack.c.h.bf16 %v208_v13  ;;  %vm11109_vm5 = vcmask 458112  }
 0x845   :  { %v4186_v26 = vpop.permute.xlu1 %4185  ;;  %v3923_v29 = vmul.f32 1.442695, %v3713_v48  ;;  %v6380_v4 = vpop.eup %6379  ;;  %vm11115_vm15 = vcmask 720512  }
 0x846   :  { %v4554_v20 = vperm.slane %v4186_v26, %v8821_v21  ;;  %v5066_v57 = vmul.f32 %v4810_v33, %v4186_v26 }
 0x847   :  { %6385 = vpow2.f32 %v3923_v29  ;;  %v4567_v29 = vperm.slane %v9535_v43, %v8775_v16 }
 0x848   :  { %v4555_v42 = vsel %vm3363_vm12, %v4554_v20, %v4553_v35  ;;  %v5193_v63 = vadd.f32 %v5192_v56, %v5066_v57  ;;  %v3694_v35 = vsub.f32 %v11102_v25, %v9406_v36  ;;  %v3889_v56 = vmul.f32 1.442695, %v3696_v22  ;;  %v210_v25 = vld [vmem:[#allocation9 + $0x54] sm:$0xf] }
 0x849   :  { %4374 = vperm.xlu0 %5987, %v6374_v15   ;;  %v4557_v54 = vsel %vm3367_vm13, %v4556_v59, %v4555_v42  ;;  %v6382_v57 = vpop.eup %6381  ;;  %v11103_v15 = vld [vmem:[#allocation127_spill] sm:$0xff]  ;;  %v11104_v42 = vld [vmem:[#allocation169_spill] sm:$0xff]  ;;  %v4565_v22 = vperm.slane %v9474_v19, %v8781_v8 }
 0x84a   :  { %4323 = vperm.xlu2 %5988, %v6376_v44   ;;  %v5194_v31 = vadd.f32 %v5193_v63, %v5067_v27  ;;  %v3885_v20 = vmul.f32 1.442695, %v3694_v35  ;;  %v3716_v36 = vsub.f32 %v11103_v15, %v9558_v12  ;;  %v6384_v59 = vpop.eup %6383  ;;  %6387 = vpow2.f32 %v3889_v56 }
 0x84b   :  { %4317 = vperm.xlu1 %5989, %v6378_v53   ;;  %v9568_v1 = vpop.permute.xlu0 %4248  ;;  %v3699_v63 = vsub.f32 %v11104_v42, %v9449_v61  ;;  %v3697_v44 = vsub.f32 %v11105_v28, %v9449_v61  ;;  %v4818_v42 = vunpack.c.l.bf16 %v210_v25  ;;  %v11108_v28 = vld [vmem:[#allocation114_spill] sm:$0xff] }
 0x84c   :  { %v9572_v14 = vpop.permute.xlu2 %4224  ;;  %6389 = vpow2.f32 %v3885_v20  ;;  %v211_v20 = vld [vmem:[#allocation9 + $0x58] sm:$0xff]  }
 0x84d   :  { %v4192_v33 = vpop.permute.xlu1 %4191  ;;  %v3895_v35 = vmul.f32 1.442695, %v3699_v63 }
 0x84e   :  { %v4558_v10 = vperm.slane %v4192_v33, %v8849_v11  ;;  %v5068_v60 = vmul.f32 %v4812_v49, %v4192_v33  ;;  %v3891_v33 = vmul.f32 1.442695, %v3697_v44  ;;  %v3700_v44 = vsub.f32 %v11108_v28, %v9449_v61 }
 0x850   :  { %v9578_v0 = vsel %vm3371_vm14, %v4558_v10, %v4557_v54  ;;  %v9580_v26 = vadd.f32 %v5194_v31, %v5068_v60  ;;  %v4816_v54 = vunpack.c.l.bf16 %v208_v13  ;;  %v3929_v31 = vmul.f32 1.442695, %v3716_v36  ;;  %v6386_v10 = vpop.eup %6385  ;;  %v11106_v13 = vld [vmem:[#allocation137_spill] sm:$0xff] }
 0x851   :  { %4383 = vperm.xlu0 %5987, %v6380_v4   ;;  %v6388_v4 = vpop.eup %6387  ;;  %v3719_v15 = vsub.f32 %v11106_v13, %v9558_v12 }
 0x852   :  { %4332 = vperm.xlu2 %5988, %v6382_v57   ;;  %v5072_v60 = vmul.f32 %v4816_v54, %v9474_v19  ;;  %6391 = vpow2.f32 %v3929_v31  ;;  %v6390_v36 = vpop.eup %6389  ;;  %v5073_v19 = vmul.f32 %v4817_v40, %v9535_v43  ;;  %v4819_v54 = vunpack.c.l.bf16 %v211_v20 }
 0x853   :  { %4326 = vperm.xlu1 %5989, %v6384_v59   ;;  %v9584_v27 = vpop.permute.xlu0 %4257  ;;  %6393 = vpow2.f32 %v3895_v35  ;;  %v3935_v40 = vmul.f32 1.442695, %v3719_v15  ;;  %v4571_v35 = vperm.slane %v9490_v9, %v8824_v23  ;;  %v11110_v15 = vld [vmem:[#allocation145_spill] sm:$0xff] }
 0x854   :  { %v9590_v53 = vpop.permute.xlu2 %4233  ;;  %6395 = vpow2.f32 %v3891_v33 }
 0x855   :  { %v4201_v49 = vpop.permute.xlu1 %4200  ;;  %6397 = vpow2.f32 %v3935_v40 }
 0x856   :  { %v4563_v48 = vperm.slane %v4201_v49, %v8760_v2  ;;  %v5071_v39 = vmul.f32 %v4815_v50, %v4201_v49 }
 0x858   :  { %v4564_v58 = vsel %vm3319_vm1, %v4563_v48, %v9520_v5  ;;  %v5203_v56 = vadd.f32 %v9522_v6, %v5071_v39  ;;  %v11107_v6 = vld [vmem:[#allocation170_spill] sm:$0xff]  ;;  %v4820_v48 = vunpack.c.h.bf16 %v211_v20  ;;  %v6392_v25 = vpop.eup %6391  ;;  %v214_v20 = vld [vmem:[#allocation9 + $0x64] sm:$0xff]  }
 0x859   :  { %v4566_v57 = vsel %vm3323_vm2, %v4565_v22, %v4564_v58  ;;  %4392 = vperm.xlu0 %5987, %v6386_v10   ;;  %v3702_v63 = vsub.f32 %v11107_v6, %v9449_v61  ;;  %v213_v10 = vld [vmem:[#allocation9 + $0x60] sm:$0xf]  ;;  %v5075_v58 = vmul.f32 %v4819_v54, %v9490_v9 }
 0x85a   :  { %v5204_v59 = vadd.f32 %v5203_v56, %v5072_v60  ;;  %4341 = vperm.xlu2 %5988, %v6388_v4   ;;  %v4568_v50 = vsel %vm3327_vm3, %v4567_v29, %v4566_v57  ;;  %v3897_v29 = vmul.f32 1.442695, %v3700_v44  ;;  %v4573_v56 = vperm.slane %v9553_v41, %v8811_v45  ;;  %v6394_v57 = vpop.eup %6393  ;;  %v11113_v44 = vld [vmem:[#allocation38_spill] sm:$0xff] }
 0x85b   :  { %4335 = vperm.xlu1 %5989, %v6390_v36   ;;  %v9606_v5 = vpop.permute.xlu0 %4266  ;;  %v3901_v60 = vmul.f32 1.442695, %v3702_v63  ;;  %v3722_v36 = vsub.f32 %v11110_v15, %v9558_v12  ;;  %v4821_v6 = vunpack.c.l.bf16 %v213_v10  ;;  %v11112_v63 = vld [vmem:[#allocation171_spill] sm:$0xff]  ;;  %v3703_v54 = vsub.f32 %v11113_v44, %v9449_v61 }
 0x85c   :  { %v9612_v49 = vpop.permute.xlu2 %4242  ;;  %v5205_v31 = vadd.f32 %v5204_v59, %v5073_v19  ;;  %v6396_v19 = vpop.eup %6395  ;;  %v5076_v59 = vmul.f32 %v4820_v48, %v9553_v41  ;;  %v3705_v28 = vsub.f32 %v11112_v63, %v9449_v61  ;;  %v4577_v10 = vperm.slane %v9506_v34, %v8827_v62 }
 0x85d   :  { %v4210_v43 = vpop.permute.xlu1 %4209  ;;  %6399 = vpow2.f32 %v3901_v60  ;;  %v3941_v48 = vmul.f32 1.442695, %v3722_v36  ;;  %v216_v60 = vld [vmem:[#allocation9 + $0x6c] sm:$0xf]  ;;  %v11114_v36 = vld [vmem:[#allocation52_spill] sm:$0xff] }
 0x85e   :  { %v4569_v39 = vperm.slane %v4210_v43, %v8778_v51  ;;  %v5074_v22 = vmul.f32 %v4818_v42, %v4210_v43  ;;  %6401 = vpow2.f32 %v3897_v29  ;;  %v4824_v63 = vunpack.c.l.bf16 %v216_v60 }
 0x85f   :  { %6403 = vpow2.f32 %v3941_v48 }
 0x860   :  { %v4570_v33 = vsel %vm3331_vm4, %v4569_v39, %v4568_v50  ;;  %v5206_v4 = vadd.f32 %v5205_v31, %v5074_v22  ;;  %v4822_v31 = vunpack.c.l.bf16 %v214_v20  ;;  %v4823_v39 = vunpack.c.h.bf16 %v214_v20  ;;  %v217_v20 = vld [vmem:[#allocation9 + $0x70] sm:$0xff]  }
 0x861   :  { %v4572_v13 = vsel %vm11109_vm5, %v4571_v35, %v4570_v33  ;;  %4401 = vperm.xlu0 %5987, %v6392_v25   ;;  %v6398_v35 = vpop.eup %6397  ;;  %vm11118_vm5 = vcmask 786112  }
 0x862   :  { %v5207_v42 = vadd.f32 %v5206_v4, %v5075_v58  ;;  %4350 = vperm.xlu2 %5988, %v6394_v57   ;;  %v4574_v9 = vsel %vm11111_vm6, %v4573_v56, %v4572_v13  ;;  %v3907_v58 = vmul.f32 1.442695, %v3705_v28  ;;  %v3903_v56 = vmul.f32 1.442695, %v3703_v54  ;;  %v11116_v28 = vld [vmem:[#allocation172_spill] sm:$0xff] }
 0x863   :  { %4344 = vperm.xlu1 %5989, %v6396_v19   ;;  %v9626_v50 = vpop.permute.xlu0 %4275  ;;  %v5078_v33 = vmul.f32 %v4822_v31, %v9506_v34  ;;  %v4579_v4 = vperm.slane %v9572_v14, %v8814_v3  ;;  %v6400_v13 = vpop.eup %6399  ;;  %v3725_v19 = vsub.f32 %v11114_v36, %v9558_v12  ;;  %v3708_v44 = vsub.f32 %v11116_v28, %v9449_v61  ;;  %v11117_v54 = vld [vmem:[#allocation140_spill] sm:$0xff] }
 0x864   :  { %v9632_v43 = vpop.permute.xlu2 %4251  ;;  %v5208_v40 = vadd.f32 %v5207_v42, %v5076_v59  ;;  %v6402_v59 = vpop.eup %6401  ;;  %v5079_v42 = vmul.f32 %v4823_v39, %v9572_v14  ;;  %6405 = vpow2.f32 %v3907_v58  ;;  %v3706_v31 = vsub.f32 %v11117_v54, %v9449_v61  ;;  %v11121_v54 = vld [vmem:[#allocation173_spill] sm:$0xff] }
 0x865   :  { %v4219_v41 = vpop.permute.xlu1 %4218  ;;  %6407 = vpow2.f32 %v3903_v56  ;;  %v9655_v14 = vperm.slane %v9321_v30, 6  ;;  %v6404_v60 = vpop.eup %6403  ;;  %v4583_v58 = vperm.slane %v9529_v52, %v8834_v46  ;;  %v4585_v56 = vperm.slane %v9590_v53, %v8821_v21 }
 0x866   :  { %v4575_v22 = vperm.slane %v4219_v41, %v8785_v17  ;;  %v5077_v25 = vmul.f32 %v4821_v6, %v4219_v41  ;;  %vm11119_vm6 = vcmask 851712  }
 0x868   :  { %v4576_v29 = vsel %vm3343_vm7, %v4575_v22, %v4574_v9  ;;  %v5209_v57 = vadd.f32 %v5208_v40, %v5077_v25  ;;  %v4825_v40 = vunpack.c.l.bf16 %v217_v20  ;;  %v3947_v22 = vmul.f32 1.442695, %v3725_v19 }
 0x869   :  { %v4578_v15 = vsel %vm3347_vm8, %v4577_v10, %v4576_v29  ;;  %4410 = vperm.xlu0 %5987, %v6398_v35   ;;  %v4826_v25 = vunpack.c.h.bf16 %v217_v20  ;;  %v3909_v29 = vmul.f32 1.442695, %v3706_v31  ;;  %v220_v20 = vld [vmem:[#allocation9 + $0x7c] sm:$0xff]   ;;  %v3711_v31 = vsub.f32 %v11121_v54, %v9558_v12 }
 0x86a   :  { %v5210_v6 = vadd.f32 %v5209_v57, %v5078_v33  ;;  %4359 = vperm.xlu2 %5988, %v6400_v13   ;;  %v4580_v34 = vsel %vm11115_vm15, %v4579_v4, %v4578_v15  ;;  %v219_v33 = vld [vmem:[#allocation9 + $0x78] sm:$0xf]  ;;  %v3913_v4 = vmul.f32 1.442695, %v3708_v44  ;;  %v5081_v57 = vmul.f32 %v4825_v40, %v9529_v52  ;;  %v6406_v36 = vpop.eup %6405  ;;  %v11125_v54 = vld [vmem:[#allocation132_spill] sm:$0xff] }
 0x86b   :  { %4353 = vperm.xlu1 %5989, %v6402_v59   ;;  %v9646_v9 = vpop.permute.xlu0 %4284  ;;  %6409 = vpow2.f32 %v3947_v22  ;;  %v11120_v59 = vld [vmem:[#allocation59_spill] sm:$0xff]  ;;  %v4827_v44 = vunpack.c.l.bf16 %v219_v33  ;;  %v4828_v40 = vunpack.c.l.bf16 %v220_v20  ;;  %v11122_v22 = vld [vmem:[#allocation58_spill] sm:$0xff]  ;;  %v4589_v33 = vperm.slane %v9549_v55, %v8849_v11 }
 0x86c   :  { %v9652_v41 = vpop.permute.xlu2 %4260  ;;  %v5211_v48 = vadd.f32 %v5210_v6, %v5079_v42  ;;  %v3728_v42 = vsub.f32 %v11120_v59, %v9655_v14  ;;  %v6408_v6 = vpop.eup %6407  ;;  %6411 = vpow2.f32 %v3913_v4  ;;  %v222_v4 = vld [vmem:[#allocation9 + $0x84] sm:$0xf]  ;;  %v11123_v59 = vld [vmem:[#allocation71_spill] sm:$0xff]  ;;  %vm11124_vm15 = vcmask 1041409  }
 0x86d   :  { %v4228_v39 = vpop.permute.xlu1 %4227  ;;  %6413 = vpow2.f32 %v3909_v29 }
 0x86e   :  { %v4581_v35 = vperm.slane %v4228_v39, %v8791_v38  ;;  %v5080_v10 = vmul.f32 %v4824_v63, %v4228_v39  ;;  %v5082_v63 = vmul.f32 %v4826_v25, %v9590_v53  ;;  %v3709_v53 = vsub.f32 %v11122_v22, %v9449_v61 }
 0x870   :  { %v4582_v13 = vsel %vm11118_vm5, %v4581_v35, %v4580_v34  ;;  %v5212_v15 = vadd.f32 %v5211_v48, %v5080_v10  ;;  %v3953_v35 = vmul.f32 1.442695, %v3728_v42  ;;  %v3915_v29 = vmul.f32 1.442695, %v3709_v53 }
 0x871   :  { %v4584_v19 = vsel %vm11119_vm6, %v4583_v58, %v4582_v13  ;;  %4419 = vperm.xlu0 %5987, %v6404_v60   ;;  %v6410_v58 = vpop.eup %6409  ;;  %v3731_v42 = vsub.f32 %v11123_v59, %v9655_v14  ;;  %vm11131_vm5 = vcmask 458112   ;;  %vm11134_vm6 = vcmask 523712  }
 0x872   :  { %v5213_v28 = vadd.f32 %v5212_v15, %v5081_v57  ;;  %4368 = vperm.xlu2 %5988, %v6406_v36   ;;  %v4586_v52 = vsel %vm3363_vm12, %v4585_v56, %v4584_v19  ;;  %v3919_v57 = vmul.f32 1.442695, %v3711_v31  ;;  %v5084_v56 = vmul.f32 %v4828_v40, %v9549_v55  ;;  %v6412_v36 = vpop.eup %6411  ;;  %v223_v19 = vld [vmem:[#allocation9 + $0x88] sm:$0xff]   ;;  %v11126_v40 = vld [vmem:[#allocation64_spill] sm:$0xff] }
 0x873   :  { %4362 = vperm.xlu1 %5989, %v6408_v6   ;;  %v9669_v34 = vpop.permute.xlu0 %4293  ;;  %6415 = vpow2.f32 %v3953_v35  ;;  %v6414_v6 = vpop.eup %6413  ;;  %v3714_v31 = vsub.f32 %v11125_v54, %v9558_v12  ;;  %v4831_v22 = vunpack.c.l.bf16 %v223_v19  ;;  %v4591_v35 = vperm.slane %v9612_v49, %v8754_v24 }
 0x874   :  { %v9673_v48 = vpop.permute.xlu2 %4269  ;;  %v5214_v39 = vadd.f32 %v5213_v28, %v5082_v63  ;;  %v4829_v63 = vunpack.c.h.bf16 %v220_v20  ;;  %6417 = vpow2.f32 %v3919_v57  ;;  %v225_v57 = vld [vmem:[#allocation9 + $0x90] sm:$0xf] }
 0x875   :  { %v4237_v25 = vpop.permute.xlu1 %4236  ;;  %6419 = vpow2.f32 %v3915_v29  ;;  %v4596_v29 = vperm.slane %v9632_v43, %v8781_v8 }
 0x876   :  { %v4587_v10 = vperm.slane %v4237_v25, %v11000_v37  ;;  %v5083_v60 = vmul.f32 %v4827_v44, %v4237_v25  ;;  %v3959_v25 = vmul.f32 1.442695, %v3731_v42  ;;  %v11127_v42 = vld [vmem:[#allocation80_spill] sm:$0xff] }
 0x878   :  { %v4588_v13 = vsel %vm3367_vm13, %v4587_v10, %v4586_v52  ;;  %v5215_v15 = vadd.f32 %v5214_v39, %v5083_v60  ;;  %v4830_v52 = vunpack.c.l.bf16 %v222_v4  ;;  %v3712_v39 = vsub.f32 %v11126_v40, %v9558_v12 }
 0x879   :  { %v4590_v61 = vsel %vm3371_vm14, %v4589_v33, %v4588_v13  ;;  %4428 = vperm.xlu0 %5987, %v6410_v58   ;;  %v5085_v10 = vmul.f32 %v4829_v63, %v9612_v49  ;;  %v6416_v33 = vpop.eup %6415  ;;  %v4594_v4 = vperm.slane %v9568_v1, %v8760_v2  ;;  %v226_v49 = vld [vmem:[#allocation9 + $0x94] sm:$0xff]   ;;  %6421 = vpow2.f32 %v3959_v25 }
 0x87a   :  { %v9687_v28 = vsel %vm11124_vm15, %v4590_v61, %v9578_v0  ;;  %v9689_v55 = vadd.f32 %v5215_v15, %v5084_v56  ;;  %4377 = vperm.xlu2 %5988, %v6412_v36   ;;  %v4832_v0 = vunpack.c.h.bf16 %v223_v19  ;;  %v3925_v56 = vmul.f32 1.442695, %v3714_v31  ;;  %v6418_v61 = vpop.eup %6417 }
 0x87b   :  { %4371 = vperm.xlu1 %5989, %v6414_v6   ;;  %v9691_v44 = vpop.permute.xlu0 %4302  ;;  %v3921_v13 = vmul.f32 1.442695, %v3712_v39  ;;  %v5087_v15 = vmul.f32 %v4831_v22, %v9568_v1  ;;  %v3734_v6 = vsub.f32 %v11127_v42, %v9655_v14  ;;  %v6420_v63 = vpop.eup %6419  ;;  %v4833_v31 = vunpack.c.l.bf16 %v225_v57  ;;  %v11128_v39 = vld [vmem:[#allocation129_spill] sm:$0xff] }
 0x87c   :  { %v9697_v20 = vpop.permute.xlu2 %4278  ;;  %6423 = vpow2.f32 %v3925_v56  ;;  %v3717_v22 = vsub.f32 %v11128_v39, %v9558_v12  ;;  %v4600_v56 = vperm.slane %v9584_v27, %v8778_v51  ;;  %vm11138_vm15 = vcmask 720512  }
 0x87d   :  { %v4246_v53 = vpop.permute.xlu1 %4245  ;;  %6425 = vpow2.f32 %v3921_v13 }
 0x87e   :  { %v4592_v60 = vperm.slane %v4246_v53, %v8757_v32  ;;  %v5086_v58 = vmul.f32 %v4830_v52, %v4246_v53  ;;  %v5088_v52 = vmul.f32 %v4832_v0, %v9632_v43  ;;  %v11129_v53 = vld [vmem:[#allocation86_spill] sm:$0xff]  ;;  %v3965_v0 = vmul.f32 1.442695, %v3734_v6 }
 0x87f   :  { %v3715_v25 = vsub.f32 %v11129_v53, %v9558_v12  ;;  %v6422_v57 = vpop.eup %6421  ;;  %v11132_v53 = vld [vmem:[#allocation174_spill] sm:$0xff] }
 0x880   :  { %v4593_v36 = vsel %vm3315_vm0, %v4592_v60, %v4591_v35  ;;  %v5223_v19 = vadd.f32 %v5086_v58, %v5085_v10  ;;  %v4834_v35 = vunpack.c.l.bf16 %v226_v49  ;;  %v4835_v58 = vunpack.c.h.bf16 %v226_v49  ;;  %v229_v49 = vld [vmem:[#allocation9 + $0xa0] sm:$0xff]  }
 0x881   :  { %v4595_v59 = vsel %vm3319_vm1, %v4594_v4, %v4593_v36  ;;  %4437 = vperm.xlu0 %5987, %v6416_v33   ;;  %v3927_v36 = vmul.f32 1.442695, %v3715_v25  ;;  %6427 = vpow2.f32 %v3965_v0  ;;  %v3720_v25 = vsub.f32 %v11132_v53, %v9558_v12 }
 0x882   :  { %v5224_v54 = vadd.f32 %v5223_v19, %v5087_v15  ;;  %4386 = vperm.xlu2 %5988, %v6418_v61   ;;  %v4597_v1 = vsel %vm3323_vm2, %v4596_v29, %v4595_v59  ;;  %v228_v15 = vld [vmem:[#allocation9 + $0x9c] sm:$0xf]  ;;  %v3931_v29 = vmul.f32 1.442695, %v3717_v22  ;;  %v5090_v19 = vmul.f32 %v4834_v35, %v9584_v27  ;;  %v6424_v42 = vpop.eup %6423  ;;  %v11133_v35 = vld [vmem:[#allocation128_spill] sm:$0xff] }
 0x883   :  { %4380 = vperm.xlu1 %5989, %v6420_v63   ;;  %v9714_v40 = vpop.permute.xlu0 %4311  ;;  %v4602_v61 = vperm.slane %v9652_v41, %v8824_v23  ;;  %v11130_v63 = vld [vmem:[#allocation89_spill] sm:$0xff]  ;;  %v4836_v22 = vunpack.c.l.bf16 %v228_v15 }
 0x884   :  { %v9720_v10 = vpop.permute.xlu2 %4287  ;;  %v5225_v60 = vadd.f32 %v5224_v54, %v5088_v52  ;;  %v3737_v52 = vsub.f32 %v11130_v63, %v9655_v14  ;;  %v6426_v54 = vpop.eup %6425  ;;  %6429 = vpow2.f32 %v3931_v29 }
 0x885   :  { %v4255_v43 = vpop.permute.xlu1 %4254  ;;  %6431 = vpow2.f32 %v3927_v36  ;;  %v4608_v36 = vperm.slane %v9673_v48, %v8827_v62 }
 0x886   :  { %v4598_v33 = vperm.slane %v4255_v43, %v8775_v16  ;;  %v5089_v4 = vmul.f32 %v4833_v31, %v4255_v43  ;;  %v5091_v31 = vmul.f32 %v4835_v58, %v9652_v41  ;;  %v4837_v43 = vunpack.c.l.bf16 %v229_v49 }
 0x887   :  { %v9743_v41 = vperm.slane %v9321_v30, 7  ;;  %v6428_v29 = vpop.eup %6427 }
 0x888   :  { %v4599_v13 = vsel %vm3327_vm3, %v4598_v33, %v4597_v1  ;;  %v5226_v59 = vadd.f32 %v5225_v60, %v5089_v4  ;;  %v3718_v60 = vsub.f32 %v11133_v35, %v9558_v12  ;;  %v3971_v4 = vmul.f32 1.442695, %v3737_v52  ;;  %v11136_v35 = vld [vmem:[#allocation175_spill] sm:$0xff] }
 0x889   :  { %v4601_v6 = vsel %vm3331_vm4, %v4600_v56, %v4599_v13  ;;  %4446 = vperm.xlu0 %5987, %v6422_v57   ;;  %v4838_v57 = vunpack.c.h.bf16 %v229_v49  ;;  %v3937_v13 = vmul.f32 1.442695, %v3720_v25  ;;  %v232_v49 = vld [vmem:[#allocation9 + $0xac] sm:$0xff]  }
 0x88a   :  { %v5227_v39 = vadd.f32 %v5226_v59, %v5090_v19  ;;  %4395 = vperm.xlu2 %5988, %v6424_v42   ;;  %v4603_v27 = vsel %vm11131_vm5, %v4602_v61, %v4601_v6  ;;  %v4606_v19 = vperm.slane %v9606_v5, %v8785_v17  ;;  %v231_v61 = vld [vmem:[#allocation9 + $0xa8] sm:$0xf]  ;;  %v3933_v59 = vmul.f32 1.442695, %v3718_v60  ;;  %v6430_v63 = vpop.eup %6429 }
 0x88b   :  { %4389 = vperm.xlu1 %5989, %v6426_v54   ;;  %v9734_v1 = vpop.permute.xlu0 %4320  ;;  %v5093_v42 = vmul.f32 %v4837_v43, %v9606_v5  ;;  %6433 = vpow2.f32 %v3971_v4  ;;  %v11135_v54 = vld [vmem:[#allocation37_spill] sm:$0xff]  ;;  %v4839_v25 = vunpack.c.l.bf16 %v231_v61  ;;  %v3723_v60 = vsub.f32 %v11136_v35, %v9558_v12 }
 0x88c   :  { %v9740_v0 = vpop.permute.xlu2 %4296  ;;  %v5228_v33 = vadd.f32 %v5227_v39, %v5091_v31  ;;  %v3744_v31 = vsub.f32 %v11135_v54, %v9743_v41  ;;  %v6432_v39 = vpop.eup %6431  ;;  %6435 = vpow2.f32 %v3937_v13  ;;  %v11137_v43 = vld [vmem:[#allocation113_spill] sm:$0xff]  ;;  %v4612_v13 = vperm.slane %v9626_v50, %v8791_v38 }
 0x88d   :  { %v4264_v58 = vpop.permute.xlu1 %4263  ;;  %6437 = vpow2.f32 %v3933_v59  ;;  %vm11139_vm5 = vcmask 786112  }
 0x88e   :  { %v4604_v56 = vperm.slane %v4264_v58, %v8811_v45  ;;  %v5092_v15 = vmul.f32 %v4836_v22, %v4264_v58  ;;  %v5094_v22 = vmul.f32 %v4838_v57, %v9673_v48  ;;  %v4840_v58 = vunpack.c.l.bf16 %v232_v49 }
 0x88f   :  { %v3985_v57 = vmul.f32 1.442695, %v3744_v31 }
 0x890   :  { %v4605_v30 = vsel %vm11134_vm6, %v4604_v56, %v4603_v27  ;;  %v5229_v6 = vadd.f32 %v5228_v33, %v5092_v15  ;;  %v3721_v33 = vsub.f32 %v11137_v43, %v9558_v12  ;;  %v4841_v15 = vunpack.c.h.bf16 %v232_v49  ;;  %v235_v49 = vld [vmem:[#allocation9 + $0xb8] sm:$0xff]   ;;  %v11142_v43 = vld [vmem:[#allocation54_spill] sm:$0xff] }
 0x891   :  { %v4607_v52 = vsel %vm3343_vm7, %v4606_v19, %v4605_v30  ;;  %4455 = vperm.xlu0 %5987, %v6428_v29   ;;  %v6434_v61 = vpop.eup %6433  ;;  %6439 = vpow2.f32 %v3985_v57  ;;  %vm11141_vm6 = vcmask 851712  }
 0x892   :  { %v5230_v53 = vadd.f32 %v5229_v6, %v5093_v42  ;;  %4404 = vperm.xlu2 %5988, %v6430_v63   ;;  %v4609_v5 = vsel %vm3347_vm8, %v4608_v36, %v4607_v52  ;;  %v234_v42 = vld [vmem:[#allocation9 + $0xb4] sm:$0xf]  ;;  %v3943_v36 = vmul.f32 1.442695, %v3723_v60  ;;  %v3939_v30 = vmul.f32 1.442695, %v3721_v33  ;;  %v6436_v54 = vpop.eup %6435 }
 0x893   :  { %4398 = vperm.xlu1 %5989, %v6432_v39   ;;  %v9757_v27 = vpop.permute.xlu0 %4329  ;;  %v5096_v6 = vmul.f32 %v4840_v58, %v9626_v50  ;;  %v4614_v63 = vperm.slane %v9697_v20, %v8834_v46  ;;  %v11140_v39 = vld [vmem:[#allocation28_spill] sm:$0xff]  ;;  %v4842_v60 = vunpack.c.l.bf16 %v234_v42  ;;  %v3726_v33 = vsub.f32 %v11142_v43, %v9558_v12  ;;  %v11143_v58 = vld [vmem:[#allocation117_spill] sm:$0xff] }
 0x894   :  { %v9763_v4 = vpop.permute.xlu2 %4305  ;;  %v5231_v56 = vadd.f32 %v5230_v53, %v5094_v22  ;;  %v3747_v22 = vsub.f32 %v11140_v39, %v9743_v41  ;;  %v6438_v53 = vpop.eup %6437  ;;  %6441 = vpow2.f32 %v3943_v36  ;;  %v4618_v36 = vperm.slane %v9646_v9, %v11000_v37 }
 0x895   :  { %v4273_v48 = vpop.permute.xlu1 %4272  ;;  %6443 = vpow2.f32 %v3939_v30 }
 0x896   :  { %v4610_v29 = vperm.slane %v4273_v48, %v8814_v3  ;;  %v5095_v19 = vmul.f32 %v4839_v25, %v4273_v48  ;;  %v5097_v25 = vmul.f32 %v4841_v15, %v9697_v20  ;;  %v4843_v48 = vunpack.c.l.bf16 %v235_v49 }
 0x897   :  { %v3991_v15 = vmul.f32 1.442695, %v3747_v22 }
 0x898   :  { %v4611_v59 = vsel %vm11138_vm15, %v4610_v29, %v4609_v5  ;;  %v5232_v52 = vadd.f32 %v5231_v56, %v5095_v19  ;;  %v3724_v56 = vsub.f32 %v11143_v58, %v9558_v12  ;;  %v238_v19 = vld [vmem:[#allocation9 + $0xc4] sm:$0xff]   ;;  %v5099_v12 = vmul.f32 %v4843_v48, %v9646_v9 }
 0x899   :  { %v4613_v31 = vsel %vm11139_vm5, %v4612_v13, %v4611_v59  ;;  %4464 = vperm.xlu0 %5987, %v6434_v61   ;;  %v4844_v61 = vunpack.c.h.bf16 %v235_v49  ;;  %v3949_v59 = vmul.f32 1.442695, %v3726_v33  ;;  %v4846_v49 = vunpack.c.l.bf16 %v238_v19  ;;  %v11145_v58 = vld [vmem:[#allocation61_spill] sm:$0xff] }
 0x89a   :  { %v5233_v35 = vadd.f32 %v5232_v52, %v5096_v6  ;;  %4413 = vperm.xlu2 %5988, %v6436_v54   ;;  %v4615_v50 = vsel %vm11141_vm6, %v4614_v63, %v4613_v31  ;;  %v6440_v6 = vpop.eup %6439  ;;  %v237_v63 = vld [vmem:[#allocation9 + $0xc0] sm:$0xf]  ;;  %v3945_v52 = vmul.f32 1.442695, %v3724_v56  ;;  %v4620_v54 = vperm.slane %v9720_v10, %v8849_v11 }
 0x89b   :  { %4407 = vperm.xlu1 %5989, %v6438_v53   ;;  %v9777_v5 = vpop.permute.xlu0 %4338  ;;  %v6442_v39 = vpop.eup %6441  ;;  %6445 = vpow2.f32 %v3991_v15  ;;  %v11144_v53 = vld [vmem:[#allocation109_spill] sm:$0xff]  ;;  %v4845_v33 = vunpack.c.l.bf16 %v237_v63  ;;  %v3729_v56 = vsub.f32 %v11145_v58, %v9655_v14  ;;  %v4847_v48 = vunpack.c.h.bf16 %v238_v19 }
 0x89c   :  { %v9783_v57 = vpop.permute.xlu2 %4314  ;;  %v5234_v29 = vadd.f32 %v5233_v35, %v5097_v25  ;;  %v3750_v25 = vsub.f32 %v11144_v53, %v9743_v41  ;;  %v6444_v35 = vpop.eup %6443  ;;  %6447 = vpow2.f32 %v3949_v59  ;;  %v4625_v19 = vperm.slane %v9740_v0, %v8760_v2  ;;  %v241_v53 = vld [vmem:[#allocation9 + $0xd0] sm:$0xff]  }
 0x89d   :  { %v4282_v20 = vpop.permute.xlu1 %4281  ;;  %6449 = vpow2.f32 %v3945_v52  ;;  %v5103_v52 = vmul.f32 %v4847_v48, %v9740_v0  ;;  %vm11150_vm15 = vcmask 1042434   ;;  %vm11154_vm5 = vcmask 458112  }
 0x89e   :  { %v4616_v13 = vperm.slane %v4282_v20, %v8821_v21  ;;  %v5098_v42 = vmul.f32 %v4842_v60, %v4282_v20  ;;  %v5100_v60 = vmul.f32 %v4844_v61, %v9720_v10  ;;  %v11146_v10 = vld [vmem:[#allocation25_spill] sm:$0xff]  ;;  %vm11155_vm6 = vcmask 523712  }
 0x89f   :  { %v3727_v15 = vsub.f32 %v11146_v10, %v9655_v14  ;;  %v4849_v10 = vunpack.c.l.bf16 %v241_v53 }
 0x8a0   :  { %v4617_v30 = vsel %vm3363_vm12, %v4616_v13, %v4615_v50  ;;  %v5235_v31 = vadd.f32 %v5234_v29, %v5098_v42  ;;  %v3997_v13 = vmul.f32 1.442695, %v3750_v25  ;;  %v4623_v42 = vperm.slane %v9669_v34, %v8757_v32 }
 0x8a1   :  { %v4619_v22 = vsel %vm3367_vm13, %v4618_v36, %v4617_v30  ;;  %4485 = vperm.xlu0 %5987, %v6440_v6   ;;  %v5102_v6 = vmul.f32 %v4846_v49, %v9669_v34  ;;  %v6446_v59 = vpop.eup %6445  ;;  %v11147_v49 = vld [vmem:[#allocation42_spill] sm:$0xff] }
 0x8a2   :  { %v4621_v9 = vsel %vm3371_vm14, %v4620_v54, %v4619_v22  ;;  %v5236_v43 = vadd.f32 %v5235_v31, %v5099_v12  ;;  %4422 = vperm.xlu2 %5988, %v6442_v39   ;;  %v240_v12 = vld [vmem:[#allocation9 + $0xcc] sm:$0xf]  ;;  %v3955_v54 = vmul.f32 1.442695, %v3729_v56  ;;  %v3951_v39 = vmul.f32 1.442695, %v3727_v15  ;;  %v6448_v22 = vpop.eup %6447 }
 0x8a3   :  { %4416 = vperm.xlu1 %5989, %v6444_v35   ;;  %v9797_v50 = vpop.permute.xlu0 %4347  ;;  %v3753_v25 = vsub.f32 %v11147_v49, %v9743_v41  ;;  %v6450_v35 = vpop.eup %6449  ;;  %6451 = vpow2.f32 %v3997_v13  ;;  %v11149_v56 = vld [vmem:[#allocation35_spill] sm:$0xff]  ;;  %v4850_v13 = vunpack.c.h.bf16 %v241_v53 }
 0x8a4   :  { %v9801_v29 = vadd.f32 %v5236_v43, %v5100_v60  ;;  %v9803_v20 = vpop.permute.xlu2 %4323  ;;  %v4848_v60 = vunpack.c.l.bf16 %v240_v12  ;;  %6453 = vpow2.f32 %v3955_v54  ;;  %v3730_v48 = vsub.f32 %v11149_v56, %v9655_v14  ;;  %v243_v54 = vld [vmem:[#allocation9 + $0xd8] sm:$0xf] }
 0x8a5   :  { %v4291_v61 = vpop.permute.xlu1 %4290  ;;  %6455 = vpow2.f32 %v3951_v39  ;;  %v4629_v12 = vperm.slane %v9691_v44, %v8775_v16  ;;  %v11152_v39 = vld [vmem:[#allocation82_spill] sm:$0xff] }
 0x8a6   :  { %v4622_v36 = vperm.slane %v4291_v61, %v8754_v24  ;;  %v5101_v63 = vmul.f32 %v4845_v33, %v4291_v61  ;;  %v11148_v33 = vld [vmem:[#allocation73_spill] sm:$0xff] }
 0x8a7   :  { %v3732_v0 = vsub.f32 %v11148_v33, %v9655_v14 }
 0x8a8   :  { %v4624_v30 = vsel %vm3315_vm0, %v4623_v42, %v4622_v36  ;;  %v5244_v31 = vadd.f32 %v5102_v6, %v5101_v63  ;;  %v4003_v42 = vmul.f32 1.442695, %v3753_v25  ;;  %v9828_v6 = vsel %vm11150_vm15, %v4621_v9, %v9687_v28  ;;  %v253_v36 = vld [vmem:[#allocation9 + $0x100] sm:$0xff]  }
 0x8a9   :  { %4494 = vperm.xlu0 %5987, %v6446_v59   ;;  %v4626_v34 = vsel %vm3319_vm1, %v4625_v19, %v4624_v30  ;;  %v3961_v19 = vmul.f32 1.442695, %v3732_v0  ;;  %v11151_v30 = vld [vmem:[#allocation98_spill] sm:$0xff]  ;;  %v6452_v49 = vpop.eup %6451  ;;  %v5105_v28 = vmul.f32 %v4849_v10, %v9691_v44  ;;  %v4631_v9 = vperm.slane %v9763_v4, %v8778_v51 }
 0x8aa   :  { %4431 = vperm.xlu2 %5988, %v6448_v22   ;;  %v5245_v43 = vadd.f32 %v5244_v31, %v5103_v52  ;;  %v3957_v52 = vmul.f32 1.442695, %v3730_v48  ;;  %v3740_v31 = vsub.f32 %v11151_v30, %v9655_v14  ;;  %v3735_v22 = vsub.f32 %v11152_v39, %v9655_v14 }
 0x8ab   :  { %4425 = vperm.xlu1 %5989, %v6450_v35   ;;  %v9820_v58 = vpop.permute.xlu0 %4356  ;;  %v6454_v35 = vpop.eup %6453  ;;  %v4861_v33 = vunpack.c.l.bf16 %v253_v36  ;;  %v4862_v56 = vunpack.c.h.bf16 %v253_v36  ;;  %6457 = vpow2.f32 %v4003_v42  ;;  %v4851_v10 = vunpack.c.l.bf16 %v243_v54 }
 0x8ac   :  { %v9824_v15 = vpop.permute.xlu2 %4332  ;;  %v6456_v48 = vpop.eup %6455  ;;  %6459 = vpow2.f32 %v3961_v19  ;;  %v3977_v42 = vmul.f32 1.442695, %v3740_v31  ;;  %vm11159_vm15 = vcmask 720512  }
 0x8ad   :  { %v4300_v61 = vpop.permute.xlu1 %4299  ;;  %6461 = vpow2.f32 %v3957_v52 }
 0x8ae   :  { %v4627_v63 = vperm.slane %v4300_v61, %v8781_v8  ;;  %v5104_v59 = vmul.f32 %v4848_v60, %v4300_v61  ;;  %v244_v60 = vld [vmem:[#allocation9 + $0xdc] sm:$0xff]   ;;  %v5106_v61 = vmul.f32 %v4850_v13, %v9763_v4  ;;  %v4653_v4 = vperm.slane %v9777_v5, %v8754_v24 }
 0x8af   :  { %v5117_v13 = vmul.f32 %v4861_v33, %v9777_v5  ;;  %6463 = vpow2.f32 %v3977_v42  ;;  %v11158_v42 = vld [vmem:[#allocation56_spill] sm:$0xff] }
 0x8b0   :  { %v4628_v53 = vsel %vm3323_vm2, %v4627_v63, %v4626_v34  ;;  %v5246_v25 = vadd.f32 %v5245_v43, %v5104_v59  ;;  %v11153_v34 = vld [vmem:[#allocation136_spill] sm:$0xff]  ;;  %v4852_v63 = vunpack.c.l.bf16 %v244_v60 }
 0x8b1   :  { %v4630_v0 = vsel %vm3327_vm3, %v4629_v12, %v4628_v53  ;;  %4503 = vperm.xlu0 %5987, %v6452_v49   ;;  %v3733_v43 = vsub.f32 %v11153_v34, %v9655_v14  ;;  %v3967_v53 = vmul.f32 1.442695, %v3735_v22 }
 0x8b2   :  { %v5247_v30 = vadd.f32 %v5246_v25, %v5105_v28  ;;  %4440 = vperm.xlu2 %5988, %v6454_v35   ;;  %v4632_v44 = vsel %vm3331_vm4, %v4631_v9, %v4630_v0  ;;  %v4853_v28 = vunpack.c.h.bf16 %v244_v60  ;;  %v6458_v25 = vpop.eup %6457  ;;  %v4635_v35 = vperm.slane %v9714_v40, %v8811_v45  ;;  %v246_v0 = vld [vmem:[#allocation9 + $0xe4] sm:$0xf] }
 0x8b3   :  { %4434 = vperm.xlu1 %5989, %v6456_v48   ;;  %v9844_v39 = vpop.permute.xlu0 %4365  ;;  %v3963_v5 = vmul.f32 1.442695, %v3733_v43  ;;  %v5108_v33 = vmul.f32 %v4852_v63, %v9714_v40  ;;  %v4637_v60 = vperm.slane %v9783_v57, %v8785_v17  ;;  %v6460_v22 = vpop.eup %6459  ;;  %v4854_v63 = vunpack.c.l.bf16 %v246_v0 }
 0x8b4   :  { %v4342_v59 = vpop.permute.xlu2 %4341  ;;  %v5248_v12 = vadd.f32 %v5247_v30, %v5106_v61  ;;  %v247_v61 = vld [vmem:[#allocation9 + $0xe8] sm:$0xff]   ;;  %v5109_v43 = vmul.f32 %v4853_v28, %v9783_v57  ;;  %6465 = vpow2.f32 %v3967_v53  ;;  %v4641_v53 = vperm.slane %v9734_v1, %v8814_v3 }
 0x8b5   :  { %v4654_v36 = vperm.slane %v4342_v59, %v8757_v32  ;;  %v5118_v54 = vmul.f32 %v4862_v56, %v4342_v59  ;;  %v4309_v49 = vpop.permute.xlu1 %4308  ;;  %v6462_v59 = vpop.eup %6461  ;;  %6467 = vpow2.f32 %v3963_v5 }
 0x8b6   :  { %v4633_v19 = vperm.slane %v4309_v49, %v8824_v23  ;;  %v5107_v9 = vmul.f32 %v4851_v10, %v4309_v49  ;;  %v11156_v10 = vld [vmem:[#allocation48_spill] sm:$0xff]  ;;  %v6464_v0 = vpop.eup %6463 }
 0x8b7   :  { %v9856_v52 = vsel %vm3315_vm0, %v4654_v36, %v4653_v4  ;;  %v9858_v31 = vadd.f32 %v5118_v54, %v5117_v13  ;;  %v3756_v34 = vsub.f32 %v11156_v10, %v9743_v41  ;;  %v3736_v36 = vsub.f32 %v11158_v42, %v9655_v14  ;;  %v11162_v42 = vld [vmem:[#allocation84_spill] sm:$0xff] }
 0x8b8   :  { %v4634_v56 = vsel %vm11154_vm5, %v4633_v19, %v4632_v44  ;;  %v5249_v48 = vadd.f32 %v5248_v12, %v5107_v9  ;;  %v11157_v12 = vld [vmem:[#allocation41_spill] sm:$0xff]  ;;  %v4855_v54 = vunpack.c.l.bf16 %v247_v61  ;;  %v4856_v9 = vunpack.c.h.bf16 %v247_v61  ;;  %v250_v61 = vld [vmem:[#allocation9 + $0xf4] sm:$0xff]  }
 0x8b9   :  { %v4636_v30 = vsel %vm11155_vm6, %v4635_v35, %v4634_v56  ;;  %4512 = vperm.xlu0 %5987, %v6458_v25   ;;  %v3738_v13 = vsub.f32 %v11157_v12, %v9655_v14  ;;  %v4009_v28 = vmul.f32 1.442695, %v3756_v34  ;;  %v3969_v56 = vmul.f32 1.442695, %v3736_v36 }
 0x8ba   :  { %v5250_v4 = vadd.f32 %v5249_v48, %v5108_v33  ;;  %4449 = vperm.xlu2 %5988, %v6460_v22   ;;  %v4638_v40 = vsel %vm3343_vm7, %v4637_v60, %v4636_v30  ;;  %v249_v33 = vld [vmem:[#allocation9 + $0xf0] sm:$0xf]  ;;  %v5111_v48 = vmul.f32 %v4855_v54, %v9734_v1  ;;  %v4643_v22 = vperm.slane %v9803_v20, %v8791_v38  ;;  %v6466_v10 = vpop.eup %6465  ;;  %v11163_v54 = vld [vmem:[#allocation107_spill] sm:$0xff] }
 0x8bb   :  { %4443 = vperm.xlu1 %5989, %v6462_v59   ;;  %v9869_v44 = vpop.permute.xlu0 %4374  ;;  %v3973_v60 = vmul.f32 1.442695, %v3738_v13  ;;  %6469 = vpow2.f32 %v4009_v28  ;;  %v11160_v59 = vld [vmem:[#allocation148_spill] sm:$0xff]  ;;  %vm11161_vm5 = vcmask 786112   ;;  %v4857_v13 = vunpack.c.l.bf16 %v249_v33 }
 0x8bc   :  { %v9875_v49 = vpop.permute.xlu2 %4350  ;;  %v5251_v19 = vadd.f32 %v5250_v4, %v5109_v43  ;;  %v3758_v43 = vsub.f32 %v11160_v59, %v9743_v41  ;;  %v6468_v4 = vpop.eup %6467  ;;  %v3745_v36 = vsub.f32 %v11162_v42, %v9743_v41  ;;  %vm11164_vm6 = vcmask 851712  }
 0x8bd   :  { %v4318_v57 = vpop.permute.xlu1 %4317  ;;  %6471 = vpow2.f32 %v3973_v60  ;;  %v4647_v60 = vperm.slane %v9757_v27, %v8821_v21 }
 0x8be   :  { %v4639_v25 = vperm.slane %v4318_v57, %v8827_v62  ;;  %v5110_v35 = vmul.f32 %v4854_v63, %v4318_v57  ;;  %v5112_v63 = vmul.f32 %v4856_v9, %v9803_v20  ;;  %v4858_v57 = vunpack.c.l.bf16 %v250_v61 }
 0x8bf   :  { %6473 = vpow2.f32 %v3969_v56  ;;  %v4013_v9 = vmul.f32 1.442695, %v3758_v43 }
 0x8c0   :  { %v4640_v5 = vsel %vm3347_vm8, %v4639_v25, %v4638_v40  ;;  %v5252_v30 = vadd.f32 %v5251_v19, %v5110_v35  ;;  %v3743_v19 = vsub.f32 %v11163_v54, %v9743_v41  ;;  %v4859_v35 = vunpack.c.h.bf16 %v250_v61 }
 0x8c1   :  { %v4642_v34 = vsel %vm11159_vm15, %v4641_v53, %v4640_v5  ;;  %4473 = vperm.xlu0 %5987, %v6464_v0   ;;  %v6470_v33 = vpop.eup %6469  ;;  %6475 = vpow2.f32 %v4013_v9  ;;  %vm11171_vm15 = vcmask 458112  }
 0x8c2   :  { %v5253_v12 = vadd.f32 %v5252_v30, %v5111_v48  ;;  %4458 = vperm.xlu2 %5988, %v6466_v10   ;;  %v4644_v1 = vsel %vm11161_vm5, %v4643_v22, %v4642_v34  ;;  %v252_v48 = vld [vmem:[#allocation9 + $0xfc] sm:$0xf]  ;;  %v3987_v22 = vmul.f32 1.442695, %v3745_v36  ;;  %v3983_v5 = vmul.f32 1.442695, %v3743_v19 }
 0x8c3   :  { %4452 = vperm.xlu1 %5989, %v6468_v4   ;;  %v9889_v40 = vpop.permute.xlu0 %4383  ;;  %v5114_v30 = vmul.f32 %v4858_v57, %v9757_v27  ;;  %v4649_v10 = vperm.slane %v9824_v15, %v11000_v37  ;;  %v6472_v59 = vpop.eup %6471  ;;  %v5115_v4 = vmul.f32 %v4859_v35, %v9824_v15  ;;  %v11166_v19 = vld [vmem:[#allocation116_spill] sm:$0xff]  ;;  %v255_v35 = vld [vmem:[#allocation9 + $0x108] sm:$0xf]  ;;  %vm11172_vm5 = vcmask 523712  }
 0x8c4   :  { %v9895_v28 = vpop.permute.xlu2 %4359  ;;  %v5254_v25 = vadd.f32 %v5253_v12, %v5112_v63  ;;  %6477 = vpow2.f32 %v3987_v22  ;;  %v3746_v57 = vsub.f32 %v11166_v19, %v9743_v41  ;;  %v256_v22 = vld [vmem:[#allocation9 + $0x10c] sm:$0xff]  }
 0x8c5   :  { %v4327_v20 = vpop.permute.xlu1 %4326  ;;  %v6474_v43 = vpop.eup %6473  ;;  %6479 = vpow2.f32 %v3983_v5 }
 0x8c6   :  { %v4645_v0 = vperm.slane %v4327_v20, %v8834_v46  ;;  %v5113_v53 = vmul.f32 %v4857_v13, %v4327_v20  ;;  %v4860_v13 = vunpack.c.l.bf16 %v252_v48 }
 0x8c7   :  { %v6476_v9 = vpop.eup %6475 }
 0x8c8   :  { %v4646_v56 = vsel %vm11164_vm6, %v4645_v0, %v4644_v1  ;;  %v5255_v34 = vadd.f32 %v5254_v25, %v5113_v53  ;;  %v11165_v1 = vld [vmem:[#allocation149_spill] sm:$0xff]  ;;  %vm11175_vm6 = vcmask 720512  }
 0x8c9   :  { %v4648_v61 = vsel %vm3363_vm12, %v4647_v60, %v4646_v56  ;;  %4521 = vperm.xlu0 %5987, %v6470_v33   ;;  %v3748_v42 = vsub.f32 %v11165_v1, %v9743_v41  ;;  %v3989_v60 = vmul.f32 1.442695, %v3746_v57 }
 0x8ca   :  { %v5256_v63 = vadd.f32 %v5255_v34, %v5114_v30  ;;  %4467 = vperm.xlu2 %5988, %v6472_v59   ;;  %v4650_v12 = vsel %vm3367_vm13, %v4649_v10, %v4648_v61  ;;  %v6478_v48 = vpop.eup %6477  ;;  %v4863_v10 = vunpack.c.l.bf16 %v255_v35  ;;  %v11167_v34 = vld [vmem:[#allocation102_spill] sm:$0xff]  ;;  %v11168_v61 = vld [vmem:[#allocation125_spill] sm:$0xff] }
 0x8cb   :  { %4461 = vperm.xlu1 %5989, %v6474_v43   ;;  %v9907_v27 = vpop.permute.xlu0 %4392  ;;  %v3993_v0 = vmul.f32 1.442695, %v3748_v42  ;;  %v6480_v30 = vpop.eup %6479  ;;  %v3751_v59 = vsub.f32 %v11167_v34, %v9743_v41  ;;  %v3749_v43 = vsub.f32 %v11168_v61, %v9743_v41  ;;  %v4658_v42 = vperm.slane %v9797_v50, %v8781_v8 }
 0x8cc   :  { %v9911_v36 = vpop.permute.xlu2 %4368  ;;  %v5257_v54 = vadd.f32 %v5256_v63, %v5115_v4  ;;  %v4864_v4 = vunpack.c.l.bf16 %v256_v22 }
 0x8cd   :  { %v4336_v15 = vpop.permute.xlu1 %4335  ;;  %6481 = vpow2.f32 %v3993_v0  ;;  %v3999_v19 = vmul.f32 1.442695, %v3751_v59  ;;  %v3995_v57 = vmul.f32 1.442695, %v3749_v43  ;;  %v259_v0 = vld [vmem:[#allocation9 + $0x118] sm:$0xff]  }
 0x8ce   :  { %v4651_v25 = vperm.slane %v4336_v15, %v8849_v11  ;;  %v5116_v20 = vmul.f32 %v4860_v13, %v4336_v15  ;;  %6483 = vpow2.f32 %v3989_v60  ;;  %v5120_v15 = vmul.f32 %v4864_v4, %v9797_v50 }
 0x8cf   :  { %6485 = vpow2.f32 %v3999_v19  ;;  %v4867_v61 = vunpack.c.l.bf16 %v259_v0 }
 0x8d0   :  { %v4652_v53 = vsel %vm3371_vm14, %v4651_v25, %v4650_v12  ;;  %v9917_v33 = vadd.f32 %v5257_v54, %v5116_v20  ;;  %v4865_v12 = vunpack.c.h.bf16 %v256_v22  ;;  %v258_v54 = vld [vmem:[#allocation9 + $0x114] sm:$0xf]  ;;  %v4660_v25 = vperm.slane %v9875_v49, %v8775_v16 }
 0x8d1   :  { %v9921_v5 = vsel %vm3594_vm10, %v4652_v53, %v9828_v6  ;;  %4527 = vperm.xlu0 %5987, %v6476_v9   ;;  %v4866_v50 = vunpack.c.l.bf16 %v258_v54  ;;  %6487 = vpow2.f32 %v3995_v57 }
 0x8d2   :  { %4488 = vperm.xlu2 %5988, %v6478_v48   ;;  %v5121_v48 = vmul.f32 %v4865_v12, %v9875_v49 }
 0x8d3   :  { %4482 = vperm.xlu1 %5989, %v6480_v30   ;;  %v9923_v56 = vpop.permute.xlu0 %4401  ;;  %v6482_v35 = vpop.eup %6481 }
 0x8d4   :  { %v9929_v63 = vpop.permute.xlu2 %4377  ;;  %v6484_v60 = vpop.eup %6483 }
 0x8d5   :  { %v4345_v6 = vpop.permute.xlu1 %4344  ;;  %v6486_v57 = vpop.eup %6485 }
 0x8d6   :  { %v4656_v13 = vperm.slane %v4345_v6, %v8760_v2  ;;  %v5119_v1 = vmul.f32 %v4863_v10, %v4345_v6  ;;  %v4868_v6 = vunpack.c.h.bf16 %v259_v0 }
 0x8d8   :  { %v4657_v20 = vsel %vm3319_vm1, %v4656_v13, %v9856_v52  ;;  %v5266_v9 = vadd.f32 %v9858_v31, %v5119_v1  ;;  %v11169_v52 = vld [vmem:[#allocation65_spill] sm:$0xff]  ;;  %v11170_v31 = vld [vmem:[#allocation134_spill] sm:$0xff]  ;;  %v4664_v1 = vperm.slane %v9820_v58, %v8824_v23 }
 0x8d9   :  { %v4659_v53 = vsel %vm3323_vm2, %v4658_v42, %v4657_v20  ;;  %v3739_v34 = vsub.f32 %v11169_v52, %v9655_v14  ;;  %v3752_v59 = vsub.f32 %v11170_v31, %v9743_v41  ;;  %v261_v42 = vld [vmem:[#allocation9 + $0x120] sm:$0xf]  ;;  %v11174_v31 = vld [vmem:[#allocation111_spill] sm:$0xff] }
 0x8da   :  { %v5267_v22 = vadd.f32 %v5266_v9, %v5120_v15  ;;  %4497 = vperm.xlu2 %5988, %v6482_v35   ;;  %v4661_v30 = vsel %vm3327_vm3, %v4660_v25, %v4659_v53  ;;  %v5123_v15 = vmul.f32 %v4867_v61, %v9820_v58  ;;  %v4666_v25 = vperm.slane %v9895_v28, %v8811_v45  ;;  %v262_v35 = vld [vmem:[#allocation9 + $0x124] sm:$0xff]   ;;  %v6488_v53 = vpop.eup %6487 }
 0x8db   :  { %4491 = vperm.xlu1 %5989, %v6484_v60   ;;  %v9943_v10 = vpop.permute.xlu0 %4410  ;;  %v3975_v54 = vmul.f32 1.442695, %v3739_v34  ;;  %v4001_v19 = vmul.f32 1.442695, %v3752_v59  ;;  %v5124_v60 = vmul.f32 %v4868_v6, %v9895_v28  ;;  %v5217_v58 = vrot.slane %v9689_v55, 4 }
 0x8dc   :  { %v9949_v43 = vpop.permute.xlu2 %4386  ;;  %v5268_v4 = vadd.f32 %v5267_v22, %v5121_v48  ;;  %v3754_v59 = vsub.f32 %v11174_v31, %v9743_v41  ;;  %v4870_v61 = vunpack.c.l.bf16 %v262_v35 }
 0x8dd   :  { %v4354_v49 = vpop.permute.xlu1 %4353  ;;  %6489 = vpow2.f32 %v3975_v54  ;;  %v4670_v54 = vperm.slane %v9844_v39, %v8827_v62 }
 0x8de   :  { %v4662_v12 = vperm.slane %v4354_v49, %v8778_v51  ;;  %v5122_v13 = vmul.f32 %v4866_v50, %v4354_v49  ;;  %v4869_v50 = vunpack.c.l.bf16 %v261_v42  ;;  %6491 = vpow2.f32 %v4001_v19 }
 0x8df   :  { %v5196_v49 = vrot.slane %v9580_v26, 4  ;;  %v5218_v42 = vadd.f32 %v5217_v58, %v9689_v55  ;;  %v4672_v19 = vperm.slane %v9911_v36, %v8814_v3 }
 0x8e0   :  { %v4663_v20 = vsel %vm3331_vm4, %v4662_v12, %v4661_v30  ;;  %v5269_v9 = vadd.f32 %v5268_v4, %v5122_v13  ;;  %v11173_v30 = vld [vmem:[#allocation143_spill] sm:$0xff]  ;;  %v4871_v12 = vunpack.c.h.bf16 %v262_v35 }
 0x8e1   :  { %v4665_v0 = vsel %vm11171_vm15, %v4664_v1, %v4663_v20  ;;  %v3755_v34 = vsub.f32 %v11173_v30, %v9743_v41  ;;  %v4005_v20 = vmul.f32 1.442695, %v3754_v59  ;;  %vm11178_vm15 = vcmask 786112  }
 0x8e2   :  { %v5270_v48 = vadd.f32 %v5269_v9, %v5123_v15  ;;  %4506 = vperm.xlu2 %5988, %v6486_v57   ;;  %v4667_v22 = vsel %vm11172_vm5, %v4666_v25, %v4665_v0  ;;  %v264_v15 = vld [vmem:[#allocation9 + $0x12c] sm:$0xf]  ;;  %v5126_v9 = vmul.f32 %v4870_v61, %v9844_v39  ;;  %vm11179_vm5 = vcmask 851712  }
 0x8e3   :  { %4500 = vperm.xlu1 %5989, %v6488_v53   ;;  %v9962_v52 = vpop.permute.xlu0 %4419  ;;  %v4007_v25 = vmul.f32 1.442695, %v3755_v34  ;;  %v6490_v35 = vpop.eup %6489  ;;  %v5197_v53 = vadd.f32 %v5196_v49, %v9580_v26  ;;  %v4872_v39 = vunpack.c.l.bf16 %v264_v15  ;;  %v5219_v34 = vrot.slane %v5218_v42, 2  ;;  %v11177_v26 = vld [vmem:[#allocation51_spill] sm:$0xff] }
 0x8e4   :  { %v9968_v4 = vpop.permute.xlu2 %4395  ;;  %v5271_v28 = vadd.f32 %v5270_v48, %v5124_v60  ;;  %v265_v60 = vld [vmem:[#allocation9 + $0x130] sm:$0xff]   ;;  %v6492_v48 = vpop.eup %6491  ;;  %v3741_v61 = vsub.f32 %v11177_v26, %v9655_v14 }
 0x8e5   :  { %v4363_v6 = vpop.permute.xlu1 %4362  ;;  %6493 = vpow2.f32 %v4007_v25  ;;  %v5220_v15 = vadd.f32 %v5219_v34, %v5218_v42  ;;  %v4676_v25 = vperm.slane %v9869_v44, %v8834_v46 }
 0x8e6   :  { %v4668_v13 = vperm.slane %v4363_v6, %v8785_v17  ;;  %v5125_v1 = vmul.f32 %v4869_v50, %v4363_v6  ;;  %v5127_v50 = vmul.f32 %v4871_v12, %v9911_v36  ;;  %6495 = vpow2.f32 %v4005_v20 }
 0x8e7   :  { %v5198_v6 = vrot.slane %v5197_v53, 2 }
 0x8e8   :  { %v4669_v57 = vsel %vm3343_vm7, %v4668_v13, %v4667_v22  ;;  %v5272_v0 = vadd.f32 %v5271_v28, %v5125_v1  ;;  %v11176_v22 = vld [vmem:[#allocation75_spill] sm:$0xff]  ;;  %v4873_v28 = vunpack.c.l.bf16 %v265_v60  ;;  %v4874_v13 = vunpack.c.h.bf16 %v265_v60 }
 0x8e9   :  { %v4671_v55 = vsel %vm3347_vm8, %v4670_v54, %v4669_v57  ;;  %v3742_v59 = vsub.f32 %v11176_v22, %v9655_v14  ;;  %v3979_v57 = vmul.f32 1.442695, %v3741_v61  ;;  %v5199_v60 = vadd.f32 %v5198_v6, %v5197_v53  ;;  %v11180_v53 = vld [vmem:[#allocation115_spill] sm:$0xff] }
 0x8ea   :  { %v5273_v58 = vadd.f32 %v5272_v0, %v5126_v9  ;;  %4470 = vperm.xlu2 %5988, %v6490_v35   ;;  %v4673_v30 = vsel %vm11175_vm6, %v4672_v19, %v4671_v55  ;;  %v267_v9 = vld [vmem:[#allocation9 + $0x138] sm:$0xf]  ;;  %v5129_v14 = vmul.f32 %v4873_v28, %v9869_v44  ;;  %v4678_v0 = vperm.slane %v9929_v63, %v8821_v21 }
 0x8eb   :  { %4509 = vperm.xlu1 %5989, %v6492_v48   ;;  %v9983_v31 = vpop.permute.xlu0 %4428  ;;  %v3981_v19 = vmul.f32 1.442695, %v3742_v59  ;;  %v6494_v55 = vpop.eup %6493  ;;  %v268_v48 = vld [vmem:[#allocation9 + $0x13c] sm:$0xff]   ;;  %v4875_v22 = vunpack.c.l.bf16 %v267_v9  ;;  %v5221_v44 = vrot.slane %v5220_v15, 1  ;;  %v3757_v61 = vsub.f32 %v11180_v53, %v9743_v41 }
 0x8ec   :  { %v9989_v49 = vpop.permute.xlu2 %4404  ;;  %v5274_v36 = vadd.f32 %v5273_v58, %v5127_v50  ;;  %v6496_v42 = vpop.eup %6495  ;;  %v5130_v58 = vmul.f32 %v4874_v13, %v9929_v63  ;;  %v4876_v59 = vunpack.c.l.bf16 %v268_v48  ;;  %v5200_v28 = vrot.slane %v5199_v60, 1 }
 0x8ed   :  { %v4372_v12 = vpop.permute.xlu1 %4371  ;;  %6497 = vpow2.f32 %v3981_v19  ;;  %v5222_v13 = vadd.f32 %v5221_v44, %v5220_v15  ;;  %vm11181_vm6 = vcmask 1041409  }
 0x8ee   :  { %v4674_v1 = vperm.slane %v4372_v12, %v8791_v38  ;;  %v5128_v54 = vmul.f32 %v4872_v39, %v4372_v12  ;;  %6499 = vpow2.f32 %v3979_v57  ;;  %v4011_v57 = vmul.f32 1.442695, %v3757_v61  ;;  %v273_v61 = vld [vmem:[#allocation9 + $0x150] sm:$0xf] }
 0x8ef   :  { %v5201_v41 = vadd.f32 %v5200_v28, %v5199_v60 }
 0x8f0   :  { %v4675_v20 = vsel %vm11178_vm15, %v4674_v1, %v4673_v30  ;;  %v5275_v35 = vadd.f32 %v5274_v36, %v5128_v54  ;;  %v4682_v1 = vperm.slane %v9889_v40, %v8849_v11  ;;  %v270_v54 = vld [vmem:[#allocation9 + $0x144] sm:$0xf]  ;;  %6501 = vpow2.f32 %v4011_v57 }
 0x8f1   :  { %v4677_v50 = vsel %vm11179_vm5, %v4676_v25, %v4675_v20  ;;  %v5132_v25 = vmul.f32 %v4876_v59, %v9889_v40  ;;  %v4878_v15 = vunpack.c.l.bf16 %v270_v54  ;;  %v3609_v59 = vmul.f32 1.442695, %v3608_v47 }
 0x8f2   :  { %v5276_v39 = vadd.f32 %v5275_v35, %v5129_v14  ;;  %4518 = vperm.xlu2 %5988, %v6494_v55   ;;  %v4679_v34 = vsel %vm3363_vm12, %v4678_v0, %v4677_v50  ;;  %v271_v0 = vld [vmem:[#allocation9 + $0x148] sm:$0xff]   ;;  %v4877_v55 = vunpack.c.h.bf16 %v268_v48  ;;  %v4881_v54 = vunpack.c.l.bf16 %v273_v61 }
 0x8f3   :  { %4515 = vperm.xlu1 %5989, %v6496_v42   ;;  %v10005_v36 = vpop.permute.xlu0 %4437  ;;  %v6498_v14 = vpop.eup %6497  ;;  %v10018_v42 = vsel %vm11181_vm6, %v5222_v13, %v5201_v41  ;;  %v4879_v40 = vunpack.c.l.bf16 %v271_v0  ;;  %6503 = vpow2.f32 %v3609_v59  ;;  %vm11183_vm15 = vcmask 458112  }
 0x8f4   :  { %v10001_v26 = vpop.permute.xlu2 %4413  ;;  %v5277_v30 = vadd.f32 %v5276_v39, %v5130_v58  ;;  %v6500_v35 = vpop.eup %6499  ;;  %v4880_v39 = vunpack.c.h.bf16 %v271_v0  ;;  %v4693_v0 = vperm.slane %v9923_v56, %v8778_v51  ;;  %vm11184_vm5 = vcmask 523712  }
 0x8f5   :  { %v4381_v63 = vpop.permute.xlu1 %4380  ;;  %v5135_v28 = vmul.f32 %v4879_v40, %v9907_v27  ;;  %vm11185_vm6 = vcmask 720512  }
 0x8f6   :  { %v4680_v6 = vperm.slane %v4381_v63, %v11000_v37  ;;  %v5131_v12 = vmul.f32 %v4875_v22, %v4381_v63  ;;  %v5133_v22 = vmul.f32 %v4877_v55, %v9949_v43  ;;  %v4689_v63 = vperm.slane %v9968_v4, %v8781_v8 }
 0x8f7   :  { %v5136_v18 = vmul.f32 %v4880_v39, %v9968_v4  ;;  %v4695_v55 = vperm.slane %v9989_v49, %v8824_v23  ;;  %v277_v39 = vld [vmem:[#allocation9 + $0x160] sm:$0xff]  }
 0x8f8   :  { %v4681_v9 = vsel %vm3367_vm13, %v4680_v6, %v4679_v34  ;;  %v5278_v19 = vadd.f32 %v5277_v30, %v5131_v12  ;;  %v4684_v34 = vperm.slane %v9949_v43, %v8754_v24  ;;  %v4687_v30 = vperm.slane %v9907_v27, %v8760_v2  ;;  %v274_v12 = vld [vmem:[#allocation9 + $0x154] sm:$0xff]  }
 0x8f9   :  { %v10013_v20 = vsel %vm3371_vm14, %v4682_v1, %v4681_v9  ;;  %v6502_v1 = vpop.eup %6501  ;;  %v4883_v57 = vunpack.c.h.bf16 %v274_v12 }
 0x8fa   :  { %v10015_v50 = vadd.f32 %v5278_v19, %v5132_v25  ;;  %4479 = vperm.xlu2 %5988, %v6498_v14   ;;  %v4882_v25 = vunpack.c.l.bf16 %v274_v12 }
 0x8fb   :  { %4476 = vperm.xlu1 %5989, %v6500_v35   ;;  %v10031_v53 = vpop.permute.xlu0 %4446  ;;  %v276_v35 = vld [vmem:[#allocation9 + $0x15c] sm:$0xf] }
 0x8fc   :  { %v10020_v58 = vpop.permute.xlu2 %4422  ;;  %v5138_v4 = vmul.f32 %v4882_v25, %v9923_v56  ;;  %v4885_v56 = vunpack.c.l.bf16 %v277_v39 }
 0x8fd   :  { %v4390_v60 = vpop.permute.xlu1 %4389 }
 0x8fe   :  { %v4685_v48 = vperm.slane %v4390_v60, %v8757_v32  ;;  %v5134_v44 = vmul.f32 %v4878_v15, %v4390_v60 }
 0x900   :  { %v4686_v43 = vsel %vm3315_vm0, %v4685_v48, %v4684_v34  ;;  %v5286_v6 = vadd.f32 %v5134_v44, %v5133_v22  ;;  %v10052_v22 = vpop.eup %6503  ;;  %v5139_v48 = vmul.f32 %v4883_v57, %v9989_v49  ;;  %v4699_v49 = vperm.slane %v9943_v10, %v8785_v17 }
 0x901   :  { %v4688_v13 = vsel %vm3319_vm1, %v4687_v30, %v4686_v43  ;;  %11182 = vst [vmem:[#allocation30_spill] sm:$0xff] %v10052_v22  ;;  %v4884_v30 = vunpack.c.l.bf16 %v276_v35 }
 0x902   :  { %v5287_v7 = vadd.f32 %v5286_v6, %v5135_v28  ;;  %v4690_v47 = vsel %vm3323_vm2, %v4689_v63, %v4688_v13  ;;  %v5238_v63 = vrot.slane %v9801_v29, 4  ;;  %v4886_v6 = vunpack.c.h.bf16 %v277_v39 }
 0x903   :  { %4524 = vperm.xlu1 %5989, %v6502_v1   ;;  %v10049_v60 = vpop.permute.xlu0 %4455  ;;  %v279_v1 = vld [vmem:[#allocation9 + $0x168] sm:$0xf] }
 0x904   :  { %v10040_v27 = vpop.permute.xlu2 %4431  ;;  %v5288_v9 = vadd.f32 %v5287_v7, %v5136_v18  ;;  %v5141_v18 = vmul.f32 %v4885_v56, %v9943_v10  ;;  %v4701_v7 = vperm.slane %v10001_v26, %v8827_v62  ;;  %v5239_v25 = vadd.f32 %v5238_v63, %v9801_v29  ;;  %v283_v63 = vld [vmem:[#allocation9 + $0x178] sm:$0xff]  }
 0x905   :  { %v4399_v19 = vpop.permute.xlu1 %4398  ;;  %v5142_v57 = vmul.f32 %v4886_v6, %v10001_v26  ;;  %v282_v26 = vld [vmem:[#allocation9 + $0x174] sm:$0xf] }
 0x906   :  { %v4691_v14 = vperm.slane %v4399_v19, %v8775_v16  ;;  %v5137_v41 = vmul.f32 %v4881_v54, %v4399_v19 }
 0x908   :  { %v4692_v15 = vsel %vm3327_vm3, %v4691_v14, %v4690_v47  ;;  %v5289_v40 = vadd.f32 %v5288_v9, %v5137_v41  ;;  %v280_v9 = vld [vmem:[#allocation9 + $0x16c] sm:$0xff]  }
 0x909   :  { %v4694_v34 = vsel %vm3331_vm4, %v4693_v0, %v4692_v15  ;;  %v4887_v0 = vunpack.c.l.bf16 %v279_v1  ;;  %v4888_v10 = vunpack.c.l.bf16 %v280_v9  ;;  %v5240_v15 = vrot.slane %v5239_v25, 2 }
 0x90a   :  { %v5290_v44 = vadd.f32 %v5289_v40, %v5138_v4  ;;  %v4696_v59 = vsel %vm11183_vm15, %v4695_v55, %v4694_v34  ;;  %v4889_v39 = vunpack.c.h.bf16 %v280_v9  ;;  %vm11186_vm15 = vcmask 786112  }
 0x90b   :  { %4793 = vperm.xlu1 %5989, %v10052_v22   ;;  %v10071_v35 = vpop.permute.xlu0 %4464  ;;  %v4891_v1 = vunpack.c.l.bf16 %v283_v63  ;;  %v4892_v9 = vunpack.c.h.bf16 %v283_v63 }
 0x90c   :  { %v10057_v61 = vpop.permute.xlu2 %4440  ;;  %v5291_v28 = vadd.f32 %v5290_v44, %v5139_v48  ;;  %v4705_v48 = vperm.slane %v9962_v52, %v8791_v38  ;;  %v5144_v44 = vmul.f32 %v4888_v10, %v9962_v52  ;;  %v5145_v6 = vmul.f32 %v4889_v39, %v10020_v58 }
 0x90d   :  { %v4408_v43 = vpop.permute.xlu1 %4407  ;;  %v5148_v39 = vmul.f32 %v4892_v9, %v10040_v27 }
 0x90e   :  { %v4697_v12 = vperm.slane %v4408_v43, %v8811_v45  ;;  %v5140_v13 = vmul.f32 %v4884_v30, %v4408_v43 }
 0x910   :  { %v4698_v47 = vsel %vm11184_vm5, %v4697_v12, %v4696_v59  ;;  %v5292_v54 = vadd.f32 %v5291_v28, %v5140_v13  ;;  %v4707_v59 = vperm.slane %v10020_v58, %v8834_v46  ;;  %v5241_v28 = vadd.f32 %v5240_v15, %v5239_v25  ;;  %v286_v58 = vld [vmem:[#allocation9 + $0x184] sm:$0xff]  }
 0x911   :  { %v4700_v19 = vsel %vm3343_vm7, %v4699_v49, %v4698_v47  ;;  %vm11187_vm5 = vcmask 851712   ;;  %v4890_v49 = vunpack.c.l.bf16 %v282_v26 }
 0x912   :  { %v5293_v14 = vadd.f32 %v5292_v54, %v5141_v18  ;;  %v4702_v41 = vsel %vm3347_vm8, %v4701_v7, %v4700_v19  ;;  %v5242_v7 = vrot.slane %v5241_v28, 1 }
 0x913   :  { %v10087_v47 = vpop.permute.xlu0 %4485 }
 0x914   :  { %v10073_v4 = vpop.permute.xlu2 %4449  ;;  %v5294_v55 = vadd.f32 %v5293_v14, %v5142_v57  ;;  %v4711_v57 = vperm.slane %v9983_v31, %v11000_v37  ;;  %v285_v14 = vld [vmem:[#allocation9 + $0x180] sm:$0xf] }
 0x915   :  { %v4417_v40 = vpop.permute.xlu1 %4416 }
 0x916   :  { %v4703_v29 = vperm.slane %v4417_v40, %v8814_v3  ;;  %v5143_v34 = vmul.f32 %v4887_v0, %v4417_v40  ;;  %v4894_v40 = vunpack.c.l.bf16 %v286_v58 }
 0x918   :  { %v4704_v30 = vsel %vm11185_vm6, %v4703_v29, %v4702_v41  ;;  %v5295_v56 = vadd.f32 %v5294_v55, %v5143_v34  ;;  %v5147_v41 = vmul.f32 %v4891_v1, %v9983_v31  ;;  %v5243_v55 = vadd.f32 %v5242_v7, %v5241_v28  ;;  %v289_v1 = vld [vmem:[#allocation9 + $0x190] sm:$0xff]  }
 0x919   :  { %v4706_v43 = vsel %vm11186_vm15, %v4705_v48, %v4704_v30  ;;  %v4893_v34 = vunpack.c.l.bf16 %v285_v14  ;;  %v4895_v48 = vunpack.c.h.bf16 %v286_v58  ;;  %vm11189_vm6 = vcmask 1042434   ;;  %v292_v14 = vld [vmem:[#allocation9 + $0x19c] sm:$0xff]  }
 0x91a   :  { %v5296_v12 = vadd.f32 %v5295_v56, %v5144_v44  ;;  %v4708_v13 = vsel %vm11187_vm5, %v4707_v59, %v4706_v43  ;;  %v10104_v31 = vsel %vm11189_vm6, %v5243_v55, %v10018_v42  ;;  %v4716_v30 = vperm.slane %v10005_v36, %v8757_v32 }
 0x91b   :  { %v5150_v56 = vmul.f32 %v4894_v40, %v10005_v36  ;;  %v10110_v43 = vpop.permute.xlu0 %4494  ;;  %v4897_v7 = vunpack.c.l.bf16 %v289_v1  ;;  %v4898_v36 = vunpack.c.h.bf16 %v289_v1  ;;  %v4900_v40 = vunpack.c.l.bf16 %v292_v14 }
 0x91c   :  { %v10085_v18 = vpop.permute.xlu2 %4458  ;;  %v5297_v52 = vadd.f32 %v5296_v12, %v5145_v6  ;;  %v288_v6 = vld [vmem:[#allocation9 + $0x18c] sm:$0xf]  ;;  %v5151_v12 = vmul.f32 %v4895_v48, %v10057_v61  ;;  %v4901_v48 = vunpack.c.h.bf16 %v292_v14  ;;  %v297_v14 = vld [vmem:[#allocation9 + $0x1b0] sm:$0xf] }
 0x91d   :  { %v4426_v54 = vpop.permute.xlu1 %4425  ;;  %v4896_v42 = vunpack.c.l.bf16 %v288_v6  ;;  %v295_v6 = vld [vmem:[#allocation9 + $0x1a8] sm:$0xff]  }
 0x91e   :  { %v4709_v25 = vperm.slane %v4426_v54, %v8821_v21  ;;  %v5146_v19 = vmul.f32 %v4890_v49, %v4426_v54 }
 0x920   :  { %v4710_v0 = vsel %vm3363_vm12, %v4709_v25, %v4708_v13  ;;  %v5298_v10 = vadd.f32 %v5297_v52, %v5146_v19  ;;  %v291_v19 = vld [vmem:[#allocation9 + $0x198] sm:$0xf] }
 0x921   :  { %v10095_v15 = vsel %vm3367_vm13, %v4711_v57, %v4710_v0  ;;  %v5153_v57 = vmul.f32 %v4897_v7, %v10031_v53  ;;  %v5154_v0 = vmul.f32 %v4898_v36, %v10073_v4  ;;  %v4899_v55 = vunpack.c.l.bf16 %v291_v19 }
 0x922   :  { %v5299_v29 = vadd.f32 %v5298_v10, %v5147_v41 }
 0x923   :  { %v10122_v41 = vpop.permute.xlu0 %4503 }
 0x924   :  { %v10098_v26 = vadd.f32 %v5299_v29, %v5148_v39  ;;  %v10100_v44 = vpop.permute.xlu2 %4467 }
 0x925   :  { %11188 = vst [vmem:[#allocation184_spill] sm:$0xff] %v10100_v44  ;;  %v4435_v59 = vpop.permute.xlu1 %4434 }
 0x926   :  { %v4715_v28 = vperm.slane %v4435_v59, %v8754_v24  ;;  %v5149_v63 = vmul.f32 %v4893_v34, %v4435_v59 }
 0x928   :  { %v10114_v13 = vsel %vm3315_vm0, %v4716_v30, %v4715_v28  ;;  %v5307_v49 = vadd.f32 %v5150_v56, %v5149_v63  ;;  %v294_v30 = vld [vmem:[#allocation9 + $0x1a4] sm:$0xf]  ;;  %v5156_v56 = vmul.f32 %v4900_v40, %v10049_v60  ;;  %v5259_v63 = vrot.slane %v9917_v33, 4 }
 0x929   :  { %v4902_v1 = vunpack.c.l.bf16 %v294_v30 }
 0x92a   :  { %v5308_v52 = vadd.f32 %v5307_v49, %v5151_v12  ;;  %v5157_v12 = vmul.f32 %v4901_v48, %v10085_v18  ;;  %v10144_v48 = vld [vmem:[#allocation9 + $0x1b4] sm:$0xff]  }
 0x92b   :  { %11191 = vst [vmem:[#allocation211_spill] sm:$0xff] %v10144_v48 }
 0x92c   :  { %v10116_v54 = vpop.permute.xlu2 %4488 }
 0x92d   :  { %v10118_v9 = vpop.permute.xlu1 %4443 }
 0x92e   :  { %v5152_v25 = vmul.f32 %v4896_v42, %v10118_v9  ;;  %v10133_v42 = vpop.permute.xlu0 %4512 }
 0x930   :  { %v5309_v58 = vadd.f32 %v5308_v52, %v5152_v25  ;;  %v4903_v52 = vunpack.c.l.bf16 %v295_v6  ;;  %v5260_v25 = vadd.f32 %v5259_v63, %v9917_v33 }
 0x932   :  { %v5310_v10 = vadd.f32 %v5309_v58, %v5153_v57  ;;  %v4904_v57 = vunpack.c.h.bf16 %v295_v6  ;;  %v4906_v6 = vunpack.c.l.bf16 %v10144_v48 }
 0x934   :  { %v10125_v39 = vpop.permute.xlu2 %4497  ;;  %v5311_v29 = vadd.f32 %v5310_v10, %v5154_v0  ;;  %v302_v0 = vld [vmem:[#allocation9 + $0x1c4] sm:$0xff]   ;;  %v10141_v10 = vld [vmem:[#allocation9 + $0x1bc] sm:$0xff]  }
 0x935   :  { %v10127_v34 = vpop.permute.xlu1 %4452  ;;  %11190 = vst [vmem:[#allocation208_spill] sm:$0xff] %v10141_v10  ;;  %v4910_v30 = vunpack.c.l.bf16 %v302_v0  ;;  %v4911_v63 = vunpack.c.h.bf16 %v302_v0 }
 0x936   :  { %v5155_v59 = vmul.f32 %v4899_v55, %v10127_v34  ;;  %v5159_v55 = vmul.f32 %v4903_v52, %v10071_v35  ;;  %v10151_v22 = vpop.permute.xlu0 %4473 }
 0x937   :  { %v5162_v0 = vmul.f32 %v4906_v6, %v10151_v22 }
 0x938   :  { %v5312_v28 = vadd.f32 %v5311_v29, %v5155_v59  ;;  %v5261_v29 = vrot.slane %v5260_v25, 2  ;;  %v4905_v59 = vunpack.c.l.bf16 %v297_v14 }
 0x93a   :  { %v5313_v49 = vadd.f32 %v5312_v28, %v5156_v56  ;;  %v5160_v56 = vmul.f32 %v4904_v57, %v10100_v44  ;;  %v4909_v28 = vunpack.c.h.bf16 %v10141_v10  ;;  %v304_v57 = vld [vmem:[#allocation9 + $0x1cc] sm:$0xf]  ;;  %v305_v10 = vld [vmem:[#allocation9 + $0x1d0] sm:$0xff]  }
 0x93b   :  { %v4912_v48 = vunpack.c.l.bf16 %v304_v57  ;;  %v4720_v57 = vperm.slane %v10118_v9, %v8781_v8 }
 0x93c   :  { %v10135_v7 = vpop.permute.xlu2 %4506  ;;  %v5314_v36 = vadd.f32 %v5313_v49, %v5157_v12 }
 0x93d   :  { %v10138_v19 = vpop.permute.xlu1 %4461 }
 0x93e   :  { %v5158_v58 = vmul.f32 %v4902_v1, %v10138_v19  ;;  %v5262_v1 = vadd.f32 %v5261_v29, %v5260_v25  ;;  %v5280_v29 = vrot.slane %v10015_v50, 4 }
 0x940   :  { %v5315_v40 = vadd.f32 %v5314_v36, %v5158_v58  ;;  %v5166_v58 = vmul.f32 %v4910_v30, %v10087_v47  ;;  %v5263_v21 = vrot.slane %v5262_v1, 1  ;;  %v4914_v30 = vunpack.c.h.bf16 %v305_v10 }
 0x942   :  { %v5316_v33 = vadd.f32 %v5315_v40, %v5159_v55  ;;  %v5167_v55 = vmul.f32 %v4911_v63, %v10116_v54 }
 0x944   :  { %v10149_v12 = vpop.permute.xlu2 %4470  ;;  %v5317_v49 = vadd.f32 %v5316_v33, %v5160_v56  ;;  %v5264_v33 = vadd.f32 %v5263_v21, %v5262_v1  ;;  %v5170_v21 = vmul.f32 %v4914_v30, %v10125_v39  ;;  %v4722_v30 = vperm.slane %v10031_v53, %v8775_v16 }
 0x945   :  { %v5161_v52 = vmul.f32 %v4905_v59, %v10149_v12  ;;  %v4483_v36 = vpop.permute.xlu1 %4482  ;;  %v4913_v59 = vunpack.c.l.bf16 %v305_v10 }
 0x946   :  { %v5165_v14 = vmul.f32 %v4909_v28, %v4483_v36 }
 0x947   :  { %v5318_v37 = vadd.f32 %v5317_v49, %v5161_v52  ;;  %v5281_v49 = vadd.f32 %v5280_v29, %v10015_v50  ;;  %v307_v52 = vld [vmem:[#allocation9 + $0x1d8] sm:$0xf]  ;;  %v5169_v63 = vmul.f32 %v4913_v59, %v10110_v43  ;;  %v4718_v50 = vperm.slane %v10057_v61, %v8760_v2 }
 0x948   :  { %v5328_v40 = vadd.f32 %v5166_v58, %v5165_v14  ;;  %v5301_v58 = vrot.slane %v10098_v26, 4  ;;  %v308_v14 = vld [vmem:[#allocation9 + $0x1dc] sm:$0xff]   ;;  %v4746_v61 = vperm.slane %v4483_v36, %v8754_v24  ;;  %v4724_v24 = vperm.slane %v10073_v4, %v8778_v51 }
 0x949   :  { %v10157_v25 = vadd.f32 %v5318_v37, %v5162_v0  ;;  %v10165_v37 = vsel %vm3594_vm10, %v5264_v33, %v10104_v31  ;;  %v5282_v1 = vrot.slane %v5281_v49, 2  ;;  %v4917_v9 = vunpack.c.h.bf16 %v308_v14 }
 0x94a   :  { %v5329_v56 = vadd.f32 %v5328_v40, %v5167_v55  ;;  %v4916_v55 = vunpack.c.l.bf16 %v308_v14  ;;  %v5302_v40 = vadd.f32 %v5301_v58, %v10098_v26  ;;  %v4726_v14 = vperm.slane %v10127_v34, %v8824_v23 }
 0x94b   :  { %v5283_v33 = vadd.f32 %v5282_v1, %v5281_v49  ;;  %v5173_v49 = vmul.f32 %v4917_v9, %v10135_v7  ;;  %v4728_v34 = vperm.slane %v10049_v60, %v8811_v45  ;;  %vm11192_vm10 = vcmask 458112  }
 0x94c   :  { %v4780_v9 = vsel %vm3596_vm11, %v10013_v20, %v9921_v5  ;;  %v4755_v5 = vperm.slane %v10125_v39, %v8778_v51  ;;  %v314_v20 = vld [vmem:[#allocation9 + $0x1f4] sm:$0xff]   ;;  %v4759_v39 = vperm.slane %v10122_v41, %v8811_v45  ;;  %v4761_v45 = vperm.slane %v10135_v7, %v8785_v17 }
 0x94d   :  { %v4492_v44 = vpop.permute.xlu1 %4491 }
 0x94e   :  { %v5168_v28 = vmul.f32 %v4912_v48, %v4492_v44  ;;  %v4915_v48 = vunpack.c.l.bf16 %v307_v52  ;;  %v5172_v52 = vmul.f32 %v4916_v55, %v10122_v41 }
 0x950   :  { %v5330_v6 = vadd.f32 %v5329_v56, %v5168_v28  ;;  %v4719_v56 = vsel %vm3319_vm1, %v4718_v50, %v10114_v13  ;;  %v310_v28 = vld [vmem:[#allocation9 + $0x1e4] sm:$0xf]  ;;  %v4747_v13 = vperm.slane %v10087_v47, %v8757_v32  ;;  %v4749_v47 = vperm.slane %v10116_v54, %v8760_v2 }
 0x951   :  { %v4721_v29 = vsel %vm3323_vm2, %v4720_v57, %v4719_v56  ;;  %v4918_v53 = vunpack.c.l.bf16 %v310_v28  ;;  %v4753_v2 = vperm.slane %v10110_v43, %v8775_v16  ;;  %v4730_v54 = vperm.slane %v10085_v18, %v8785_v17  ;;  %v313_v43 = vld [vmem:[#allocation9 + $0x1f0] sm:$0xf] }
 0x952   :  { %v5331_v10 = vadd.f32 %v5330_v6, %v5169_v63  ;;  %v5303_v63 = vrot.slane %v5302_v40, 2  ;;  %v311_v6 = vld [vmem:[#allocation9 + $0x1e8] sm:$0xff]   ;;  %v4723_v58 = vsel %vm3327_vm3, %v4722_v30, %v4721_v29  ;;  %v4748_v36 = vsel %vm3315_vm0, %v4747_v13, %v4746_v61  ;;  %v4519_v30 = vpop.permute.xlu2 %4518 }
 0x953   :  { %v4919_v32 = vunpack.c.l.bf16 %v311_v6  ;;  %v4725_v50 = vsel %vm3331_vm4, %v4724_v24, %v4723_v58  ;;  %v4750_v56 = vsel %vm3319_vm1, %v4749_v47, %v4748_v36  ;;  %vm11193_vm0 = vcmask 523712   ;;  %vm11194_vm1 = vmmov %vm11192_vm10 }
 0x954   :  { %v5332_v0 = vadd.f32 %v5331_v10, %v5170_v21  ;;  %v5284_v21 = vrot.slane %v5283_v33, 1  ;;  %v4751_v10 = vperm.slane %v4492_v44, %v8781_v8  ;;  %v5304_v1 = vadd.f32 %v5303_v63, %v5302_v40 }
 0x955   :  { %v10175_v31 = vpop.permute.xlu1 %4500  ;;  %v4727_v4 = vsel %vm11192_vm10, %v4726_v14, %v4725_v50  ;;  %v5175_v40 = vmul.f32 %v4919_v32, %v10133_v42  ;;  %v4732_v16 = vperm.slane %v10138_v19, %v8827_v62  ;;  %v4921_v19 = vunpack.c.l.bf16 %v313_v43 }
 0x956   :  { %v5171_v59 = vmul.f32 %v4915_v48, %v10175_v31  ;;  %v5285_v44 = vadd.f32 %v5284_v21, %v5283_v33  ;;  %v4752_v60 = vsel %vm3323_vm2, %v4751_v10, %v4750_v56  ;;  %v5305_v33 = vrot.slane %v5304_v1, 1  ;;  %v11196_v10 = vld [vmem:[#allocation184_spill] sm:$0xff] }
 0x957   :  { %v4754_v61 = vsel %vm3327_vm3, %v4753_v2, %v4752_v60  ;;  %v4757_v28 = vperm.slane %v10175_v31, %v8824_v23  ;;  %v4734_v63 = vperm.slane %v10071_v35, %v8814_v3  ;;  %vm11195_vm2 = vcmask 720512   ;;  %vm11197_vm3 = vmmov %vm11193_vm0  ;;  %v11202_v2 = vld [vmem:[#allocation126_spill] sm:$0xff]  ;;  %v11203_v60 = vld [vmem:[#allocation220_spill] sm:$0xff] }
 0x958   :  { %v5333_v26 = vadd.f32 %v5332_v0, %v5171_v59  ;;  %v4713_v0 = vperm.slane %v10040_v27, %v8849_v11  ;;  %v4729_v59 = vsel %vm11193_vm0, %v4728_v34, %v4727_v4  ;;  %v4756_v14 = vsel %vm3331_vm4, %v4755_v5, %v4754_v61  ;;  %v11198_v34 = vld [vmem:[#allocation211_spill] sm:$0xff]  ;;  %vm11199_vm4 = vmmov %vm11186_vm15 }
 0x959   :  { %v4731_v13 = vsel %vm3343_vm7, %v4730_v54, %v4729_v59  ;;  %v4758_v23 = vsel %vm11194_vm1, %v4757_v28, %v4756_v14  ;;  %v5360_v51 = vsel %vm3596_vm11, %v5285_v44, %v10165_v37  ;;  %v4738_v21 = vperm.slane %v10149_v12, %v8834_v46  ;;  %vm11207_vm15 = vmmov %vm11187_vm5 }
 0x95a   :  { %v5334_v57 = vadd.f32 %v5333_v26, %v5172_v52  ;;  %v4714_v27 = vsel %vm3371_vm14, %v4713_v0, %v10095_v15  ;;  %v4920_v15 = vunpack.c.h.bf16 %v311_v6  ;;  %v5306_v26 = vadd.f32 %v5305_v33, %v5304_v1  ;;  %v4522_v6 = vpop.permute.xlu0 %4521  ;;  %v11201_v0 = vld [vmem:[#allocation208_spill] sm:$0xff]  ;;  %v4480_v56 = vpop.permute.xlu2 %4479  ;;  %v316_v33 = vld [vmem:[#allocation9 + $0x1fc] sm:$0xf] }
 0x95b   :  { %v4781_v18 = vsel %vm3598_vm9, %v4714_v27, %v4780_v9  ;;  %v4733_v58 = vsel %vm3347_vm8, %v4732_v16, %v4731_v13  ;;  %v5177_v24 = vmul.f32 %v4921_v19, %v4519_v30  ;;  %v4736_v32 = vperm.slane %v11196_v10, %v8791_v38 }
 0x95c   :  { %v5335_v48 = vadd.f32 %v5334_v57, %v5173_v49  ;;  %v4922_v57 = vunpack.c.l.bf16 %v314_v20  ;;  %v4735_v35 = vsel %vm11195_vm2, %v4734_v63, %v4733_v58  ;;  %v4760_v47 = vsel %vm11197_vm3, %v4759_v39, %v4758_v23 }
 0x95d   :  { %v4510_v55 = vpop.permute.xlu1 %4509  ;;  %v4907_v1 = vunpack.c.h.bf16 %v11198_v34  ;;  %v4737_v50 = vsel %vm11199_vm4, %v4736_v32, %v4735_v35  ;;  %v4908_v4 = vunpack.c.l.bf16 %v11201_v0  ;;  %v4765_v54 = vperm.slane %v10133_v42, %v8814_v3 }
 0x95e   :  { %v5174_v8 = vmul.f32 %v4918_v53, %v4510_v55  ;;  %v10233_v53 = vsel %vm3598_vm9, %v5306_v26, %v5360_v51  ;;  %v4763_v37 = vperm.slane %v4510_v55, %v8827_v62  ;;  %vm11200_vm9 = vmmov %vm11187_vm5  ;;  %v4740_v62 = vperm.slane %v10151_v22, %v11202_v2 }
 0x95f   :  { %v4739_v12 = vsel %vm11200_vm9, %v4738_v21, %v4737_v50  ;;  %v4744_v27 = vperm.slane %v4480_v56, %v8849_v11  ;;  %v5164_v59 = vmul.f32 %v4908_v4, %v4480_v56  ;;  %v4769_v3 = vperm.slane %v4519_v30, %v8834_v46 }
 0x960   :  { %v5336_v29 = vadd.f32 %v5335_v48, %v5174_v8  ;;  %v5178_v48 = vmul.f32 %v4922_v57, %v4522_v6  ;;  %v4762_v8 = vsel %vm3343_vm7, %v4761_v45, %v4760_v47  ;;  %v4741_v9 = vsel %vm3363_vm12, %v4740_v62, %v4739_v12  ;;  %vm11204_vm7 = vmmov %vm11195_vm2  ;;  %v11211_v45 = vld [vmem:[#allocation30_spill] sm:$0xff] }
 0x961   :  { %v4764_v55 = vsel %vm3347_vm8, %v4763_v37, %v4762_v8  ;;  %vm11205_vm8 = vmmov %vm11199_vm4  ;;  %v4923_v28 = vunpack.c.h.bf16 %v314_v20  ;;  %vm11206_vm11 = vcmask 1046534   ;;  %v4771_v19 = vperm.slane %v4522_v6, %v11202_v2 }
 0x962   :  { %v5337_v52 = vadd.f32 %v5336_v29, %v5175_v40  ;;  %v4766_v16 = vsel %vm11204_vm7, %v4765_v54, %v4764_v55  ;;  %v4528_v5 = vpop.permute.xlu0 %4527  ;;  %vm11208_vm5 = vcmask 1047559   ;;  %vm11209_vm6 = vmmov %vm11206_vm11 }
 0x965   :  { %v4516_v49 = vpop.permute.xlu1 %4515 }
 0x966   :  { %v5176_v31 = vmul.f32 %v4920_v15, %v4516_v49  ;;  %v4767_v17 = vperm.slane %v4516_v49, %v8791_v38  ;;  %v4775_v49 = vperm.slane %v4528_v5, %v8849_v11 }
 0x968   :  { %v5338_v36 = vadd.f32 %v5337_v52, %v5176_v31  ;;  %v4768_v38 = vsel %vm11205_vm8, %v4767_v17, %v4766_v16  ;;  %v4924_v52 = vunpack.c.l.bf16 %v316_v33 }
 0x969   :  { %v4770_v26 = vsel %vm11207_vm15, %v4769_v3, %v4768_v38 }
 0x96a   :  { %v5339_v41 = vadd.f32 %v5338_v36, %v5177_v24  ;;  %v4772_v46 = vsel %vm3363_vm12, %v4771_v19, %v4770_v26  ;;  %v5180_v30 = vmul.f32 %v4924_v52, %v4528_v5  ;;  %vm11210_vm12 = vmmov %vm11208_vm5 }
 0x96c   :  { %v5340_v44 = vadd.f32 %v5339_v41, %v5178_v48  ;;  %v4015_v48 = vld [vmem:[#allocation3] sm:$0xff] }
 0x96d   :  { %v4477_v7 = vpop.permute.xlu1 %4476  ;;  %v4016_v41 = vmul.f32 %v11211_v45, %v4015_v48 }
 0x96e   :  { %v4742_v40 = vperm.slane %v4477_v7, %v11203_v60  ;;  %v5163_v29 = vmul.f32 %v4907_v1, %v4477_v7 }
 0x970   :  { %v4743_v22 = vsel %vm3367_vm13, %v4742_v40, %v4741_v9  ;;  %v5320_v43 = vadd.f32 %v10157_v25, %v5163_v29 }
 0x971   :  { %v4745_v61 = vsel %vm3371_vm14, %v4744_v27, %v4743_v22 }
 0x972   :  { %v5321_v42 = vadd.f32 %v5320_v43, %v5164_v59  ;;  %v4782_v15 = vsel %vm11206_vm11, %v4745_v61, %v4781_v18 }
 0x974   :  { %v5322_v13 = vrot.slane %v5321_v42, 4 }
 0x975   :  { %v4525_v63 = vpop.permute.xlu1 %4524 }
 0x976   :  { %v5323_v25 = vadd.f32 %v5322_v13, %v5321_v42  ;;  %v4773_v58 = vperm.slane %v4525_v63, %v11203_v60  ;;  %v5179_v14 = vmul.f32 %v4923_v28, %v4525_v63 }
 0x978   :  { %v5324_v20 = vrot.slane %v5323_v25, 2  ;;  %v5341_v57 = vadd.f32 %v5340_v44, %v5179_v14  ;;  %v4774_v18 = vsel %vm3367_vm13, %v4773_v58, %v4772_v46  ;;  %vm11212_vm13 = vcmask 7168  }
 0x979   :  { %v4776_v23 = vsel %vm3371_vm14, %v4775_v49, %v4774_v18 }
 0x97a   :  { %v5325_v31 = vadd.f32 %v5324_v20, %v5323_v25  ;;  %v5342_v51 = vadd.f32 %v5341_v57, %v5180_v30  ;;  %v4783_v39 = vsel %vm11208_vm5, %v4776_v23, %v4782_v15 }
 0x97b   :  { %4785 = vadd.xlane.f32.xlu2 %v4783_v39 }
 0x97c   :  { %v5343_v6 = vrot.slane %v5342_v51, 4  ;;  %v5326_v35 = vrot.slane %v5325_v31, 1 }
 0x97d   :  { %v4794_v0 = vpop.permute.xlu1 %4793 }
 0x97e   :  { %v5344_v21 = vadd.f32 %v5343_v6, %v5342_v51  ;;  %v5327_v24 = vadd.f32 %v5326_v35, %v5325_v31  ;;  %v4796_v4 = vmul.f32 0.0, %v4794_v0 }
 0x980   :  { %v5345_v36 = vrot.slane %v5344_v21, 2  ;;  %v5362_v11 = vsel %vm11209_vm6, %v5327_v24, %v10233_v53 }
 0x982   :  { %v5346_v10 = vadd.f32 %v5345_v36, %v5344_v21 }
 0x984   :  { %v5347_v32 = vrot.slane %v5346_v10, 1 }
 0x986   :  { %v5348_v47 = vadd.f32 %v5347_v32, %v5346_v10 }
 0x988   :  { %v5363_v37 = vsel %vm11210_vm12, %v5348_v47, %v5362_v11 }
 0x989   :  { %v5365_v53 = vadd.f32 %v5363_v37, %v4796_v4 }
 0x9ee   :  { %v4786_v34 = vpop.xlane.xlu2 %4785 }
 0x9ef   :  { %v4787_v1 = vadd.f32 %v4786_v34, %v4016_v41 }
 0x9f1   :  { %4789 = vst.msk [vmem:[#allocation3] sm:$0xff] %vm11212_vm13, %v4787_v1 }
 0x9f8   :  { %v5383_v50 = vld [vmem:[#allocation3] sm:$0xff] }
 0x9f9   :  { %6505 = vrcp.f32 %v5383_v50 }
 0x9ff   :  { %v6506_v12 = vpop.eup %6505 }
 0xa00   :  { %5388 = vperm.xlu0 %5987, %v6506_v12  }
 0xa72   :  { %v5389_v56 = vpop.permute.xlu0 %5388 }
 0xa73   :  { %v5391_v8 = vmul.f32 %v5389_v56, %v5365_v53  ;;  %v5394_v44 = vmul.f32 %v5389_v56, %v4783_v39 }
 0xa75   :  { %5392 = vst [vmem:[#allocation15] sm:$0xff] %v5391_v8 }
 0xa76   :  { %5395 = vst [vmem:[#allocation16] sm:$0xff] %v5394_v44  ;;  %5406 = dma.vmem_to_hbm [thread:$0]  %s5402_s27, 128, %s5404_s30, [#allocation8]  }
 0xa77   :  { %5417 = dma.vmem_to_hbm [thread:$0]  %s5413_s9, 128, %s5415_s12, [#allocation17]  }
 0xa78   :  { %6683 = dma.done.wait [#allocation8], 128  }
 0xa79   :  { %6684 = vsyncadd [#allocation8], 4294967168 }
 0xa7a   :  { %6685 = dma.done.wait [#allocation17], 128  }
 0xa7b   :  { %6686 = vsyncadd [#allocation17], 4294967168 }
 0xa7c   :  { %5426 = vsyncpa [#allocation7], 1 }
 0xa7d   :  { %5427 = vsyncpa [#allocation10], 1 }
 0xa7e   :  { %5428 = vsyncpa [#allocation13], 1 }
 0xa7f   :  { %5429 = vsyncpa [#allocation8], 1 }
 0xa80   :  { %5430 = vsyncpa [#allocation17], 1 }

</bundles_post_ra>
